<compile_context>
chip_gen: v6e
topology: v6e:2x2x1
jax: 0.10.0
libtpu: 0.0.40
codegen_flags: <defaults>
</compile_context>

<pallas_src>
import jax
import jax.numpy as jnp
from jax.experimental import pallas as pl
from jax.experimental.pallas import tpu as pltpu

NEG_SLOPE = 0.2                      # LeakyReLU slope used throughout the encoder.
_VMEM_LIMIT = 32 * 1024 * 1024       # explicit scoped-VMEM budget (safe on v5e/v6e/v7x)


# ----------------------------- in-kernel helpers ---------------------------- #

def _conv3x3_lrelu(xp_ref, w_ref, b_ref, h, w):
    """3x3 'SAME' conv + bias + LeakyReLU(0.2) on one whole image.

    Implemented as 9 whole-image MXU matmuls (one per filter tap) accumulated
    in f32.  M = h*w fills the MXU row dimension; K = Cin, N = Cout.
    # TODO(synk): an im2col-in-VMEM variant (one matmul with K = 9*Cin) would
    # further improve MXU contraction-depth utilisation on v6e/v7x.

    xp_ref : (h+2, w+2, Cin) bf16 zero-padded activation (VMEM)
    w_ref  : (9, Cin, Cout)  bf16, tap-major (k = 3*dy + dx)
    b_ref  : (1, Cout)       f32
    returns: (h*w, Cout) f32, row-major over (h, w)
    """
    cin = xp_ref.shape[-1]
    acc = None
    for k in range(9):
        dy, dx = divmod(k, 3)
        tap = xp_ref[pl.ds(dy, h), pl.ds(dx, w), :]                # (h, w, Cin) bf16
        d = jnp.dot(tap.reshape(h * w, cin), w_ref[k],
                    preferred_element_type=jnp.float32)            # (h*w, Cout) f32
        acc = d if acc is None else acc + d
    z = acc + b_ref[...]                          # bias broadcast once per layer
    return jnp.maximum(z, NEG_SLOPE * z)          # LeakyReLU(0.2)


def _avg_pool_2x2_flat(y, h, w):
    """(h*w, c) row-major over (h, w)  ->  (h//2, w//2, c) 2x2 average pool."""
    c = y.shape[-1]
    t = y.reshape(h * w // 2, 2, c)
    t = t[:, 0, :] + t[:, 1, :]                   # pool adjacent columns
    t4 = t.reshape(h // 2, 2, w // 2, c)
    return (t4[:, 0, :, :] + t4[:, 1, :, :]) * 0.25   # pool adjacent rows


def _store_padded_bf16(s_ref, val, h, w):
    """Write `val` ((h, w, c) f32) as the interior of a zero-bordered bf16 scratch."""
    s_ref[...] = jnp.zeros(s_ref.shape, s_ref.dtype)                 # aligned full store
    s_ref[pl.ds(1, h), pl.ds(1, w), :] = val.astype(s_ref.dtype)     # one interior store


# ------------------------------ fused kernel -------------------------------- #

def _perceptual_kernel(x_ref,
                       w1_ref, b1_ref, w2_ref, b2_ref, w3_ref, b3_ref,
                       w4a_ref, b4a_ref, w4b_ref, b4b_ref, w4c_ref, b4c_ref,
                       h1_ref, h2_ref, h3_ref, h4_ref,
                       s1_ref, s2_ref, s3_ref, s4a_ref, s4b_ref):
    """Fully fused Perceptual forward for one image.

    x_ref  : (H+2, W+2, Cin) bf16 padded input image
    s*_ref : bf16 VMEM scratch holding padded intermediate activations
    h*_ref : exposed f32 feature maps (pooled for slices 1-3)
    """
    H = x_ref.shape[0] - 2
    W = x_ref.shape[1] - 2
    H2, W2 = H // 2, W // 2
    H4, W4 = H // 4, W // 4
    H8, W8 = H // 8, W // 8

    # slice1: conv + LeakyReLU + 2x2 avg-pool
    y = _conv3x3_lrelu(x_ref, w1_ref, b1_ref, H, W)
    p = _avg_pool_2x2_flat(y, H, W)
    h1_ref[...] = p.astype(h1_ref.dtype)
    _store_padded_bf16(s1_ref, p, H2, W2)

    # slice2
    y = _conv3x3_lrelu(s1_ref, w2_ref, b2_ref, H2, W2)
    p = _avg_pool_2x2_flat(y, H2, W2)
    h2_ref[...] = p.astype(h2_ref.dtype)
    _store_padded_bf16(s2_ref, p, H4, W4)

    # slice3
    y = _conv3x3_lrelu(s2_ref, w3_ref, b3_ref, H4, W4)
    p = _avg_pool_2x2_flat(y, H4, W4)
    h3_ref[...] = p.astype(h3_ref.dtype)
    _store_padded_bf16(s3_ref, p, H8, W8)

    # slice4: 3 x (conv + LeakyReLU), no pooling
    y = _conv3x3_lrelu(s3_ref, w4a_ref, b4a_ref, H8, W8)
    _store_padded_bf16(s4a_ref, y.reshape(H8, W8, y.shape[-1]), H8, W8)
    y = _conv3x3_lrelu(s4a_ref, w4b_ref, b4b_ref, H8, W8)
    _store_padded_bf16(s4b_ref, y.reshape(H8, W8, y.shape[-1]), H8, W8)
    y = _conv3x3_lrelu(s4b_ref, w4c_ref, b4c_ref, H8, W8)
    h4_ref[...] = y.reshape(H8, W8, y.shape[-1]).astype(h4_ref.dtype)


# ------------------------------ JAX wrapper --------------------------------- #

def perceptual_forward(x_nchw, params):
    """Mirrors Perceptual.forward: returns (h_relu1_1, ..., h_relu1_4) in NCHW."""
    x = jnp.transpose(x_nchw.astype(jnp.float32), (0, 2, 3, 1))     # NCHW -> NHWC
    n, H, W, cin = x.shape
    if H % 8 or W % 8:
        raise ValueError("H and W must be divisible by 8 (three 2x2 avg-pools).")

    c1 = params["w1"].shape[-1]
    c2 = params["w2"].shape[-1]
    c3 = params["w3"].shape[-1]
    c4 = params["w4a"].shape[-1]
    H2, W2, H4, W4, H8, W8 = H // 2, W // 2, H // 4, W // 4, H // 8, W // 8

    # pad + bf16 cast of the network input (intermediates are padded in-kernel)
    xp = jnp.pad(x, ((0, 0), (1, 1), (1, 1), (0, 0))).astype(jnp.bfloat16)

    def w9(w):   # (3,3,Cin,Cout) -> (9,Cin,Cout), tap-major
        return w.reshape(9, w.shape[2], w.shape[3]).astype(jnp.bfloat16)

    def brow(b):
        return b.reshape(1, -1).astype(jnp.float32)

    def wspec(ci, co):
        return pl.BlockSpec((9, ci, co), lambda ni: (0, 0, 0))       # resident

    def bspec(co):
        return pl.BlockSpec((1, co), lambda ni: (0, 0))              # resident

    def ospec(hh, ww, cc):
        return pl.BlockSpec((None, hh, ww, cc), lambda ni: (ni, 0, 0, 0))

    # TODO(synk): for production resolutions, gate this fully-fused VMEM-resident
    # variant on a VMEM budget check (v7x has only 64 MiB physical VMEM) and fall
    # back to per-slice row-tiled kernels with halo fetches.
    outs = pl.pallas_call(
        _perceptual_kernel,
        out_shape=(
            jax.ShapeDtypeStruct((n, H2, W2, c1), jnp.float32),
            jax.ShapeDtypeStruct((n, H4, W4, c2), jnp.float32),
            jax.ShapeDtypeStruct((n, H8, W8, c3), jnp.float32),
            jax.ShapeDtypeStruct((n, H8, W8, c4), jnp.float32),
        ),
        grid_spec=pltpu.PrefetchScalarGridSpec(
            num_scalar_prefetch=0,
            grid=(n,),                                   # one image per step
            in_specs=[
                pl.BlockSpec((None, H + 2, W + 2, cin), lambda ni: (ni, 0, 0, 0)),
                wspec(cin, c1), bspec(c1),
                wspec(c1, c2), bspec(c2),
                wspec(c2, c3), bspec(c3),
                wspec(c3, c4), bspec(c4),
                wspec(c4, c4), bspec(c4),
                wspec(c4, c4), bspec(c4),
            ],
            out_specs=(
                ospec(H2, W2, c1),
                ospec(H4, W4, c2),
                ospec(H8, W8, c3),
                ospec(H8, W8, c4),
            ),
            scratch_shapes=[
                pltpu.VMEM((H2 + 2, W2 + 2, c1), jnp.bfloat16),
                pltpu.VMEM((H4 + 2, W4 + 2, c2), jnp.bfloat16),
                pltpu.VMEM((H8 + 2, W8 + 2, c3), jnp.bfloat16),
                pltpu.VMEM((H8 + 2, W8 + 2, c4), jnp.bfloat16),
                pltpu.VMEM((H8 + 2, W8 + 2, c4), jnp.bfloat16),
            ],
        ),
        compiler_params=pltpu.CompilerParams(
            dimension_semantics=("parallel",),           # batch across TCs (v7x)
            vmem_limit_bytes=_VMEM_LIMIT,
        ),
    )(xp,
      w9(params["w1"]), brow(params["b1"]),
      w9(params["w2"]), brow(params["b2"]),
      w9(params["w3"]), brow(params["b3"]),
      w9(params["w4a"]), brow(params["b4a"]),
      w9(params["w4b"]), brow(params["b4b"]),
      w9(params["w4c"]), brow(params["b4c"]))

    return tuple(jnp.transpose(t, (0, 3, 1, 2)) for t in outs)      # NHWC -> NCHW


# --------------------------- synthetic parameters --------------------------- #

def init_perceptual_params(key, cin=4, c1=8, c2=16, c3=32, c4=32):
    """Deterministic synthetic weights. Weight layout: (3, 3, Cin, Cout) (HWIO)."""
    specs = [("w1", cin, c1), ("w2", c1, c2), ("w3", c2, c3),
             ("w4a", c3, c4), ("w4b", c4, c4), ("w4c", c4, c4)]
    params = {}
    keys = jax.random.split(key, 2 * len(specs))
    for i, (name, ci, co) in enumerate(specs):
        scale = (9.0 * ci) ** -0.5
        params[name] = scale * jax.random.normal(keys[2 * i], (3, 3, ci, co), jnp.float32)
        params["b" + name[1:]] = 0.1 * jax.random.normal(keys[2 * i + 1], (co,), jnp.float32)
    return params


# ------------------------- pure-JAX reference check ------------------------- #

def _ref_conv_block(x_nhwc, w_hwio, b, *, pool):
    y = jax.lax.conv_general_dilated(
        x_nhwc, w_hwio, window_strides=(1, 1), padding="SAME",
        dimension_numbers=("NHWC", "HWIO", "NHWC"))
    y = y + b[None, None, None, :]
    y = jnp.where(y > 0, y, NEG_SLOPE * y)
    if pool:
        n, h, w, c = y.shape
        y = y.reshape(n, h // 2, 2, w // 2, 2, c).mean(axis=(2, 4))
    return y


def _ref_forward(x_nchw, params):
    x = jnp.transpose(x_nchw.astype(jnp.float32), (0, 2, 3, 1))
    h = _ref_conv_block(x, params["w1"], params["b1"], pool=True); h1 = h
    h = _ref_conv_block(h, params["w2"], params["b2"], pool=True); h2 = h
    h = _ref_conv_block(h, params["w3"], params["b3"], pool=True); h3 = h
    h = _ref_conv_block(h, params["w4a"], params["b4a"], pool=False)
    h = _ref_conv_block(h, params["w4b"], params["b4b"], pool=False)
    h = _ref_conv_block(h, params["w4c"], params["b4c"], pool=False)
    h4 = h
    return tuple(jnp.transpose(t, (0, 3, 1, 2)) for t in (h1, h2, h3, h4))


if __name__ == "__main__":
    key = jax.random.PRNGKey(0)
    k_x, k_p = jax.random.split(key)

    N, C, H, W = 2, 4, 16, 16            # NCHW input, as in PyTorch
    x = jax.random.normal(k_x, (N, C, H, W), jnp.float32)
    params = init_perceptual_params(k_p, cin=C)

    outs = jax.block_until_ready(jax.jit(perceptual_forward)(x, params))
    refs = _ref_forward(x, params)

    names = ("h_relu1_1", "h_relu1_2", "h_relu1_3", "h_relu1_4")
    for name, o, r in zip(names, outs, refs):
        assert o.shape == r.shape, (name, o.shape, r.shape)
        # bf16 MXU operands + bf16 forwarded intermediates (f32 accumulation)
        # => tolerance scaled to activation magnitude.
        tol = 5e-2 * float(jnp.max(jnp.abs(r))) + 1e-3
        err = float(jnp.max(jnp.abs(o - r)))
        assert err < tol, (name, err, tol)

    print("KERNEL_OK")
</pallas_src>

<mosaic_0001>
module attributes {stable_mosaic.version = 11 : i64} {
  func.func @_perceptual_kernel(%arg0: i32, %arg1: memref<1x18x18x4xbf16, #tpu.memory_space<vmem>>, %arg2: memref<9x4x8xbf16, #tpu.memory_space<vmem>>, %arg3: memref<1x8xf32, #tpu.memory_space<vmem>>, %arg4: memref<9x8x16xbf16, #tpu.memory_space<vmem>>, %arg5: memref<1x16xf32, #tpu.memory_space<vmem>>, %arg6: memref<9x16x32xbf16, #tpu.memory_space<vmem>>, %arg7: memref<1x32xf32, #tpu.memory_space<vmem>>, %arg8: memref<9x32x32xbf16, #tpu.memory_space<vmem>>, %arg9: memref<1x32xf32, #tpu.memory_space<vmem>>, %arg10: memref<9x32x32xbf16, #tpu.memory_space<vmem>>, %arg11: memref<1x32xf32, #tpu.memory_space<vmem>>, %arg12: memref<9x32x32xbf16, #tpu.memory_space<vmem>>, %arg13: memref<1x32xf32, #tpu.memory_space<vmem>>, %arg14: memref<1x8x8x8xf32, #tpu.memory_space<vmem>>, %arg15: memref<1x4x4x16xf32, #tpu.memory_space<vmem>>, %arg16: memref<1x2x2x32xf32, #tpu.memory_space<vmem>>, %arg17: memref<1x2x2x32xf32, #tpu.memory_space<vmem>>, %arg18: memref<10x10x8xbf16, #tpu.memory_space<vmem>>, %arg19: memref<6x6x16xbf16, #tpu.memory_space<vmem>>, %arg20: memref<4x4x32xbf16, #tpu.memory_space<vmem>>, %arg21: memref<4x4x32xbf16, #tpu.memory_space<vmem>>, %arg22: memref<4x4x32xbf16, #tpu.memory_space<vmem>>) attributes {dimension_semantics = [#tpu.dimension_semantics<parallel>], iteration_bounds = array<i64: 2>, scalar_prefetch = 0 : i64, scratch_operands = 5 : i64, tpu.core_type = #tpu.core_type<tc>, window_params = [{transform_indices = @transform_0, window_bounds = array<i64: 1, 18, 18, 4>}, {pipeline_mode = #tpu.pipeline_mode<synchronous>, transform_indices = @transform_1, window_bounds = array<i64: 9, 4, 8>}, {pipeline_mode = #tpu.pipeline_mode<synchronous>, transform_indices = @transform_2, window_bounds = array<i64: 1, 8>}, {pipeline_mode = #tpu.pipeline_mode<synchronous>, transform_indices = @transform_3, window_bounds = array<i64: 9, 8, 16>}, {pipeline_mode = #tpu.pipeline_mode<synchronous>, transform_indices = @transform_4, window_bounds = array<i64: 1, 16>}, {pipeline_mode = #tpu.pipeline_mode<synchronous>, transform_indices = @transform_5, window_bounds = array<i64: 9, 16, 32>}, {pipeline_mode = #tpu.pipeline_mode<synchronous>, transform_indices = @transform_6, window_bounds = array<i64: 1, 32>}, {pipeline_mode = #tpu.pipeline_mode<synchronous>, transform_indices = @transform_7, window_bounds = array<i64: 9, 32, 32>}, {pipeline_mode = #tpu.pipeline_mode<synchronous>, transform_indices = @transform_8, window_bounds = array<i64: 1, 32>}, {pipeline_mode = #tpu.pipeline_mode<synchronous>, transform_indices = @transform_9, window_bounds = array<i64: 9, 32, 32>}, {pipeline_mode = #tpu.pipeline_mode<synchronous>, transform_indices = @transform_10, window_bounds = array<i64: 1, 32>}, {pipeline_mode = #tpu.pipeline_mode<synchronous>, transform_indices = @transform_11, window_bounds = array<i64: 9, 32, 32>}, {pipeline_mode = #tpu.pipeline_mode<synchronous>, transform_indices = @transform_12, window_bounds = array<i64: 1, 32>}, {transform_indices = @transform_13, window_bounds = array<i64: 1, 8, 8, 8>}, {transform_indices = @transform_14, window_bounds = array<i64: 1, 4, 4, 16>}, {transform_indices = @transform_15, window_bounds = array<i64: 1, 2, 2, 32>}, {transform_indices = @transform_16, window_bounds = array<i64: 1, 2, 2, 32>}]} {
    %c0 = arith.constant 0 : index
    %c0_0 = arith.constant 0 : index
    %c0_1 = arith.constant 0 : index
    %c0_2 = arith.constant 0 : index
    %0 = vector.load %arg1[%c0, %c0_0, %c0_1, %c0_2] : memref<1x18x18x4xbf16, #tpu.memory_space<vmem>>, vector<1x16x16x4xbf16>
    %1 = vector.shape_cast %0 : vector<1x16x16x4xbf16> to vector<16x16x4xbf16>
    %2 = vector.shape_cast %1 : vector<16x16x4xbf16> to vector<256x4xbf16>
    %c0_3 = arith.constant 0 : index
    %c0_4 = arith.constant 0 : index
    %c0_5 = arith.constant 0 : index
    %3 = vector.load %arg2[%c0_3, %c0_4, %c0_5] : memref<9x4x8xbf16, #tpu.memory_space<vmem>>, vector<1x4x8xbf16>
    %4 = vector.shape_cast %3 : vector<1x4x8xbf16> to vector<4x8xbf16>
    %cst = arith.constant dense<0.000000e+00> : vector<256x8xf32>
    %5 = tpu.matmul %2, %4, %cst {dimension_numbers = #tpu.dot_dimension_numbers<[1], [0], [0], [1], [0, 0, 1, 1], [], []>} : vector<256x4xbf16>, vector<4x8xbf16>, vector<256x8xf32> -> vector<256x8xf32>
    %c0_6 = arith.constant 0 : index
    %c0_7 = arith.constant 0 : index
    %c1 = arith.constant 1 : index
    %c0_8 = arith.constant 0 : index
    %6 = vector.load %arg1[%c0_6, %c0_7, %c1, %c0_8] : memref<1x18x18x4xbf16, #tpu.memory_space<vmem>>, vector<1x16x16x4xbf16>
    %7 = vector.shape_cast %6 : vector<1x16x16x4xbf16> to vector<16x16x4xbf16>
    %8 = vector.shape_cast %7 : vector<16x16x4xbf16> to vector<256x4xbf16>
    %c1_9 = arith.constant 1 : index
    %c0_10 = arith.constant 0 : index
    %c0_11 = arith.constant 0 : index
    %9 = vector.load %arg2[%c1_9, %c0_10, %c0_11] : memref<9x4x8xbf16, #tpu.memory_space<vmem>>, vector<1x4x8xbf16>
    %10 = vector.shape_cast %9 : vector<1x4x8xbf16> to vector<4x8xbf16>
    %cst_12 = arith.constant dense<0.000000e+00> : vector<256x8xf32>
    %11 = tpu.matmul %8, %10, %cst_12 {dimension_numbers = #tpu.dot_dimension_numbers<[1], [0], [0], [1], [0, 0, 1, 1], [], []>} : vector<256x4xbf16>, vector<4x8xbf16>, vector<256x8xf32> -> vector<256x8xf32>
    %12 = arith.addf %5, %11 : vector<256x8xf32>
    %c0_13 = arith.constant 0 : index
    %c0_14 = arith.constant 0 : index
    %c2 = arith.constant 2 : index
    %c0_15 = arith.constant 0 : index
    %13 = vector.load %arg1[%c0_13, %c0_14, %c2, %c0_15] : memref<1x18x18x4xbf16, #tpu.memory_space<vmem>>, vector<1x16x16x4xbf16>
    %14 = vector.shape_cast %13 : vector<1x16x16x4xbf16> to vector<16x16x4xbf16>
    %15 = vector.shape_cast %14 : vector<16x16x4xbf16> to vector<256x4xbf16>
    %c2_16 = arith.constant 2 : index
    %c0_17 = arith.constant 0 : index
    %c0_18 = arith.constant 0 : index
    %16 = vector.load %arg2[%c2_16, %c0_17, %c0_18] : memref<9x4x8xbf16, #tpu.memory_space<vmem>>, vector<1x4x8xbf16>
    %17 = vector.shape_cast %16 : vector<1x4x8xbf16> to vector<4x8xbf16>
    %cst_19 = arith.constant dense<0.000000e+00> : vector<256x8xf32>
    %18 = tpu.matmul %15, %17, %cst_19 {dimension_numbers = #tpu.dot_dimension_numbers<[1], [0], [0], [1], [0, 0, 1, 1], [], []>} : vector<256x4xbf16>, vector<4x8xbf16>, vector<256x8xf32> -> vector<256x8xf32>
    %19 = arith.addf %12, %18 : vector<256x8xf32>
    %c0_20 = arith.constant 0 : index
    %c1_21 = arith.constant 1 : index
    %c0_22 = arith.constant 0 : index
    %c0_23 = arith.constant 0 : index
    %20 = vector.load %arg1[%c0_20, %c1_21, %c0_22, %c0_23] : memref<1x18x18x4xbf16, #tpu.memory_space<vmem>>, vector<1x16x16x4xbf16>
    %21 = vector.shape_cast %20 : vector<1x16x16x4xbf16> to vector<16x16x4xbf16>
    %22 = vector.shape_cast %21 : vector<16x16x4xbf16> to vector<256x4xbf16>
    %c3 = arith.constant 3 : index
    %c0_24 = arith.constant 0 : index
    %c0_25 = arith.constant 0 : index
    %23 = vector.load %arg2[%c3, %c0_24, %c0_25] : memref<9x4x8xbf16, #tpu.memory_space<vmem>>, vector<1x4x8xbf16>
    %24 = vector.shape_cast %23 : vector<1x4x8xbf16> to vector<4x8xbf16>
    %cst_26 = arith.constant dense<0.000000e+00> : vector<256x8xf32>
    %25 = tpu.matmul %22, %24, %cst_26 {dimension_numbers = #tpu.dot_dimension_numbers<[1], [0], [0], [1], [0, 0, 1, 1], [], []>} : vector<256x4xbf16>, vector<4x8xbf16>, vector<256x8xf32> -> vector<256x8xf32>
    %26 = arith.addf %19, %25 : vector<256x8xf32>
    %c0_27 = arith.constant 0 : index
    %c1_28 = arith.constant 1 : index
    %c1_29 = arith.constant 1 : index
    %c0_30 = arith.constant 0 : index
    %27 = vector.load %arg1[%c0_27, %c1_28, %c1_29, %c0_30] : memref<1x18x18x4xbf16, #tpu.memory_space<vmem>>, vector<1x16x16x4xbf16>
    %28 = vector.shape_cast %27 : vector<1x16x16x4xbf16> to vector<16x16x4xbf16>
    %29 = vector.shape_cast %28 : vector<16x16x4xbf16> to vector<256x4xbf16>
    %c4 = arith.constant 4 : index
    %c0_31 = arith.constant 0 : index
    %c0_32 = arith.constant 0 : index
    %30 = vector.load %arg2[%c4, %c0_31, %c0_32] : memref<9x4x8xbf16, #tpu.memory_space<vmem>>, vector<1x4x8xbf16>
    %31 = vector.shape_cast %30 : vector<1x4x8xbf16> to vector<4x8xbf16>
    %cst_33 = arith.constant dense<0.000000e+00> : vector<256x8xf32>
    %32 = tpu.matmul %29, %31, %cst_33 {dimension_numbers = #tpu.dot_dimension_numbers<[1], [0], [0], [1], [0, 0, 1, 1], [], []>} : vector<256x4xbf16>, vector<4x8xbf16>, vector<256x8xf32> -> vector<256x8xf32>
    %33 = arith.addf %26, %32 : vector<256x8xf32>
    %c0_34 = arith.constant 0 : index
    %c1_35 = arith.constant 1 : index
    %c2_36 = arith.constant 2 : index
    %c0_37 = arith.constant 0 : index
    %34 = vector.load %arg1[%c0_34, %c1_35, %c2_36, %c0_37] : memref<1x18x18x4xbf16, #tpu.memory_space<vmem>>, vector<1x16x16x4xbf16>
    %35 = vector.shape_cast %34 : vector<1x16x16x4xbf16> to vector<16x16x4xbf16>
    %36 = vector.shape_cast %35 : vector<16x16x4xbf16> to vector<256x4xbf16>
    %c5 = arith.constant 5 : index
    %c0_38 = arith.constant 0 : index
    %c0_39 = arith.constant 0 : index
    %37 = vector.load %arg2[%c5, %c0_38, %c0_39] : memref<9x4x8xbf16, #tpu.memory_space<vmem>>, vector<1x4x8xbf16>
    %38 = vector.shape_cast %37 : vector<1x4x8xbf16> to vector<4x8xbf16>
    %cst_40 = arith.constant dense<0.000000e+00> : vector<256x8xf32>
    %39 = tpu.matmul %36, %38, %cst_40 {dimension_numbers = #tpu.dot_dimension_numbers<[1], [0], [0], [1], [0, 0, 1, 1], [], []>} : vector<256x4xbf16>, vector<4x8xbf16>, vector<256x8xf32> -> vector<256x8xf32>
    %40 = arith.addf %33, %39 : vector<256x8xf32>
    %c0_41 = arith.constant 0 : index
    %c2_42 = arith.constant 2 : index
    %c0_43 = arith.constant 0 : index
    %c0_44 = arith.constant 0 : index
    %41 = vector.load %arg1[%c0_41, %c2_42, %c0_43, %c0_44] : memref<1x18x18x4xbf16, #tpu.memory_space<vmem>>, vector<1x16x16x4xbf16>
    %42 = vector.shape_cast %41 : vector<1x16x16x4xbf16> to vector<16x16x4xbf16>
    %43 = vector.shape_cast %42 : vector<16x16x4xbf16> to vector<256x4xbf16>
    %c6 = arith.constant 6 : index
    %c0_45 = arith.constant 0 : index
    %c0_46 = arith.constant 0 : index
    %44 = vector.load %arg2[%c6, %c0_45, %c0_46] : memref<9x4x8xbf16, #tpu.memory_space<vmem>>, vector<1x4x8xbf16>
    %45 = vector.shape_cast %44 : vector<1x4x8xbf16> to vector<4x8xbf16>
    %cst_47 = arith.constant dense<0.000000e+00> : vector<256x8xf32>
    %46 = tpu.matmul %43, %45, %cst_47 {dimension_numbers = #tpu.dot_dimension_numbers<[1], [0], [0], [1], [0, 0, 1, 1], [], []>} : vector<256x4xbf16>, vector<4x8xbf16>, vector<256x8xf32> -> vector<256x8xf32>
    %47 = arith.addf %40, %46 : vector<256x8xf32>
    %c0_48 = arith.constant 0 : index
    %c2_49 = arith.constant 2 : index
    %c1_50 = arith.constant 1 : index
    %c0_51 = arith.constant 0 : index
    %48 = vector.load %arg1[%c0_48, %c2_49, %c1_50, %c0_51] : memref<1x18x18x4xbf16, #tpu.memory_space<vmem>>, vector<1x16x16x4xbf16>
    %49 = vector.shape_cast %48 : vector<1x16x16x4xbf16> to vector<16x16x4xbf16>
    %50 = vector.shape_cast %49 : vector<16x16x4xbf16> to vector<256x4xbf16>
    %c7 = arith.constant 7 : index
    %c0_52 = arith.constant 0 : index
    %c0_53 = arith.constant 0 : index
    %51 = vector.load %arg2[%c7, %c0_52, %c0_53] : memref<9x4x8xbf16, #tpu.memory_space<vmem>>, vector<1x4x8xbf16>
    %52 = vector.shape_cast %51 : vector<1x4x8xbf16> to vector<4x8xbf16>
    %cst_54 = arith.constant dense<0.000000e+00> : vector<256x8xf32>
    %53 = tpu.matmul %50, %52, %cst_54 {dimension_numbers = #tpu.dot_dimension_numbers<[1], [0], [0], [1], [0, 0, 1, 1], [], []>} : vector<256x4xbf16>, vector<4x8xbf16>, vector<256x8xf32> -> vector<256x8xf32>
    %54 = arith.addf %47, %53 : vector<256x8xf32>
    %c0_55 = arith.constant 0 : index
    %c2_56 = arith.constant 2 : index
    %c2_57 = arith.constant 2 : index
    %c0_58 = arith.constant 0 : index
    %55 = vector.load %arg1[%c0_55, %c2_56, %c2_57, %c0_58] : memref<1x18x18x4xbf16, #tpu.memory_space<vmem>>, vector<1x16x16x4xbf16>
    %56 = vector.shape_cast %55 : vector<1x16x16x4xbf16> to vector<16x16x4xbf16>
    %57 = vector.shape_cast %56 : vector<16x16x4xbf16> to vector<256x4xbf16>
    %c8 = arith.constant 8 : index
    %c0_59 = arith.constant 0 : index
    %c0_60 = arith.constant 0 : index
    %58 = vector.load %arg2[%c8, %c0_59, %c0_60] : memref<9x4x8xbf16, #tpu.memory_space<vmem>>, vector<1x4x8xbf16>
    %59 = vector.shape_cast %58 : vector<1x4x8xbf16> to vector<4x8xbf16>
    %cst_61 = arith.constant dense<0.000000e+00> : vector<256x8xf32>
    %60 = tpu.matmul %57, %59, %cst_61 {dimension_numbers = #tpu.dot_dimension_numbers<[1], [0], [0], [1], [0, 0, 1, 1], [], []>} : vector<256x4xbf16>, vector<4x8xbf16>, vector<256x8xf32> -> vector<256x8xf32>
    %61 = arith.addf %54, %60 : vector<256x8xf32>
    %c0_62 = arith.constant 0 : index
    %c0_63 = arith.constant 0 : index
    %62 = vector.load %arg3[%c0_62, %c0_63] : memref<1x8xf32, #tpu.memory_space<vmem>>, vector<1x8xf32>
    %63 = vector.broadcast %62 : vector<1x8xf32> to vector<256x8xf32>
    %64 = arith.addf %61, %63 : vector<256x8xf32>
    %cst_64 = arith.constant 2.000000e-01 : f32
    %65 = vector.broadcast %cst_64 : f32 to vector<256x8xf32>
    %66 = arith.mulf %65, %64 : vector<256x8xf32>
    %67 = arith.maximumf %64, %66 : vector<256x8xf32>
    %68 = vector.shape_cast %67 : vector<256x8xf32> to vector<128x2x8xf32>
    %69 = vector.extract_strided_slice %68 {offsets = [0, 0, 0], sizes = [128, 1, 8], strides = [1, 1, 1]} : vector<128x2x8xf32> to vector<128x1x8xf32>
    %70 = vector.shape_cast %69 : vector<128x1x8xf32> to vector<128x8xf32>
    %71 = vector.extract_strided_slice %68 {offsets = [0, 1, 0], sizes = [128, 1, 8], strides = [1, 1, 1]} : vector<128x2x8xf32> to vector<128x1x8xf32>
    %72 = vector.shape_cast %71 : vector<128x1x8xf32> to vector<128x8xf32>
    %73 = arith.addf %70, %72 : vector<128x8xf32>
    %74 = vector.shape_cast %73 : vector<128x8xf32> to vector<8x2x8x8xf32>
    %75 = vector.extract_strided_slice %74 {offsets = [0, 0, 0, 0], sizes = [8, 1, 8, 8], strides = [1, 1, 1, 1]} : vector<8x2x8x8xf32> to vector<8x1x8x8xf32>
    %76 = vector.shape_cast %75 : vector<8x1x8x8xf32> to vector<8x8x8xf32>
    %77 = vector.extract_strided_slice %74 {offsets = [0, 1, 0, 0], sizes = [8, 1, 8, 8], strides = [1, 1, 1, 1]} : vector<8x2x8x8xf32> to vector<8x1x8x8xf32>
    %78 = vector.shape_cast %77 : vector<8x1x8x8xf32> to vector<8x8x8xf32>
    %79 = arith.addf %76, %78 : vector<8x8x8xf32>
    %cst_65 = arith.constant 2.500000e-01 : f32
    %80 = vector.broadcast %cst_65 : f32 to vector<8x8x8xf32>
    %81 = arith.mulf %79, %80 : vector<8x8x8xf32>
    %c0_66 = arith.constant 0 : index
    %c0_67 = arith.constant 0 : index
    %c0_68 = arith.constant 0 : index
    %c0_69 = arith.constant 0 : index
    %82 = vector.load %arg14[%c0_66, %c0_67, %c0_68, %c0_69] : memref<1x8x8x8xf32, #tpu.memory_space<vmem>>, vector<1x8x8x8xf32>
    %83 = vector.shape_cast %82 : vector<1x8x8x8xf32> to vector<8x8x8xf32>
    %84 = vector.shape_cast %81 : vector<8x8x8xf32> to vector<1x8x8x8xf32>
    tpu.vector_store %arg14[%c0_66, %c0_67, %c0_68, %c0_69], %84 {strides = array<i32>} : memref<1x8x8x8xf32, #tpu.memory_space<vmem>>, vector<1x8x8x8xf32>,
    %cst_70 = arith.constant 0.000000e+00 : bf16
    %85 = vector.broadcast %cst_70 : bf16 to vector<10x10x8xbf16>
    %c0_71 = arith.constant 0 : index
    %c0_72 = arith.constant 0 : index
    %c0_73 = arith.constant 0 : index
    %86 = vector.load %arg18[%c0_71, %c0_72, %c0_73] : memref<10x10x8xbf16, #tpu.memory_space<vmem>>, vector<10x10x8xbf16>
    tpu.vector_store %arg18[%c0_71, %c0_72, %c0_73], %85 {strides = array<i32>} : memref<10x10x8xbf16, #tpu.memory_space<vmem>>, vector<10x10x8xbf16>,
    %87 = arith.truncf %81 : vector<8x8x8xf32> to vector<8x8x8xbf16>
    %c1_74 = arith.constant 1 : index
    %c1_75 = arith.constant 1 : index
    %c0_76 = arith.constant 0 : index
    %88 = vector.load %arg18[%c1_74, %c1_75, %c0_76] : memref<10x10x8xbf16, #tpu.memory_space<vmem>>, vector<8x8x8xbf16>
    tpu.vector_store %arg18[%c1_74, %c1_75, %c0_76], %87 {strides = array<i32>} : memref<10x10x8xbf16, #tpu.memory_space<vmem>>, vector<8x8x8xbf16>,
    %c0_77 = arith.constant 0 : index
    %c0_78 = arith.constant 0 : index
    %c0_79 = arith.constant 0 : index
    %89 = vector.load %arg18[%c0_77, %c0_78, %c0_79] : memref<10x10x8xbf16, #tpu.memory_space<vmem>>, vector<8x8x8xbf16>
    %90 = vector.shape_cast %89 : vector<8x8x8xbf16> to vector<64x8xbf16>
    %c0_80 = arith.constant 0 : index
    %c0_81 = arith.constant 0 : index
    %c0_82 = arith.constant 0 : index
    %91 = vector.load %arg4[%c0_80, %c0_81, %c0_82] : memref<9x8x16xbf16, #tpu.memory_space<vmem>>, vector<1x8x16xbf16>
    %92 = vector.shape_cast %91 : vector<1x8x16xbf16> to vector<8x16xbf16>
    %cst_83 = arith.constant dense<0.000000e+00> : vector<64x16xf32>
    %93 = tpu.matmul %90, %92, %cst_83 {dimension_numbers = #tpu.dot_dimension_numbers<[1], [0], [0], [1], [0, 0, 1, 1], [], []>} : vector<64x8xbf16>, vector<8x16xbf16>, vector<64x16xf32> -> vector<64x16xf32>
    %c0_84 = arith.constant 0 : index
    %c1_85 = arith.constant 1 : index
    %c0_86 = arith.constant 0 : index
    %94 = vector.load %arg18[%c0_84, %c1_85, %c0_86] : memref<10x10x8xbf16, #tpu.memory_space<vmem>>, vector<8x8x8xbf16>
    %95 = vector.shape_cast %94 : vector<8x8x8xbf16> to vector<64x8xbf16>
    %c1_87 = arith.constant 1 : index
    %c0_88 = arith.constant 0 : index
    %c0_89 = arith.constant 0 : index
    %96 = vector.load %arg4[%c1_87, %c0_88, %c0_89] : memref<9x8x16xbf16, #tpu.memory_space<vmem>>, vector<1x8x16xbf16>
    %97 = vector.shape_cast %96 : vector<1x8x16xbf16> to vector<8x16xbf16>
    %cst_90 = arith.constant dense<0.000000e+00> : vector<64x16xf32>
    %98 = tpu.matmul %95, %97, %cst_90 {dimension_numbers = #tpu.dot_dimension_numbers<[1], [0], [0], [1], [0, 0, 1, 1], [], []>} : vector<64x8xbf16>, vector<8x16xbf16>, vector<64x16xf32> -> vector<64x16xf32>
    %99 = arith.addf %93, %98 : vector<64x16xf32>
    %c0_91 = arith.constant 0 : index
    %c2_92 = arith.constant 2 : index
    %c0_93 = arith.constant 0 : index
    %100 = vector.load %arg18[%c0_91, %c2_92, %c0_93] : memref<10x10x8xbf16, #tpu.memory_space<vmem>>, vector<8x8x8xbf16>
    %101 = vector.shape_cast %100 : vector<8x8x8xbf16> to vector<64x8xbf16>
    %c2_94 = arith.constant 2 : index
    %c0_95 = arith.constant 0 : index
    %c0_96 = arith.constant 0 : index
    %102 = vector.load %arg4[%c2_94, %c0_95, %c0_96] : memref<9x8x16xbf16, #tpu.memory_space<vmem>>, vector<1x8x16xbf16>
    %103 = vector.shape_cast %102 : vector<1x8x16xbf16> to vector<8x16xbf16>
    %cst_97 = arith.constant dense<0.000000e+00> : vector<64x16xf32>
    %104 = tpu.matmul %101, %103, %cst_97 {dimension_numbers = #tpu.dot_dimension_numbers<[1], [0], [0], [1], [0, 0, 1, 1], [], []>} : vector<64x8xbf16>, vector<8x16xbf16>, vector<64x16xf32> -> vector<64x16xf32>
    %105 = arith.addf %99, %104 : vector<64x16xf32>
    %c1_98 = arith.constant 1 : index
    %c0_99 = arith.constant 0 : index
    %c0_100 = arith.constant 0 : index
    %106 = vector.load %arg18[%c1_98, %c0_99, %c0_100] : memref<10x10x8xbf16, #tpu.memory_space<vmem>>, vector<8x8x8xbf16>
    %107 = vector.shape_cast %106 : vector<8x8x8xbf16> to vector<64x8xbf16>
    %c3_101 = arith.constant 3 : index
    %c0_102 = arith.constant 0 : index
    %c0_103 = arith.constant 0 : index
    %108 = vector.load %arg4[%c3_101, %c0_102, %c0_103] : memref<9x8x16xbf16, #tpu.memory_space<vmem>>, vector<1x8x16xbf16>
    %109 = vector.shape_cast %108 : vector<1x8x16xbf16> to vector<8x16xbf16>
    %cst_104 = arith.constant dense<0.000000e+00> : vector<64x16xf32>
    %110 = tpu.matmul %107, %109, %cst_104 {dimension_numbers = #tpu.dot_dimension_numbers<[1], [0], [0], [1], [0, 0, 1, 1], [], []>} : vector<64x8xbf16>, vector<8x16xbf16>, vector<64x16xf32> -> vector<64x16xf32>
    %111 = arith.addf %105, %110 : vector<64x16xf32>
    %c1_105 = arith.constant 1 : index
    %c1_106 = arith.constant 1 : index
    %c0_107 = arith.constant 0 : index
    %112 = vector.load %arg18[%c1_105, %c1_106, %c0_107] : memref<10x10x8xbf16, #tpu.memory_space<vmem>>, vector<8x8x8xbf16>
    %113 = vector.shape_cast %112 : vector<8x8x8xbf16> to vector<64x8xbf16>
    %c4_108 = arith.constant 4 : index
    %c0_109 = arith.constant 0 : index
    %c0_110 = arith.constant 0 : index
    %114 = vector.load %arg4[%c4_108, %c0_109, %c0_110] : memref<9x8x16xbf16, #tpu.memory_space<vmem>>, vector<1x8x16xbf16>
    %115 = vector.shape_cast %114 : vector<1x8x16xbf16> to vector<8x16xbf16>
    %cst_111 = arith.constant dense<0.000000e+00> : vector<64x16xf32>
    %116 = tpu.matmul %113, %115, %cst_111 {dimension_numbers = #tpu.dot_dimension_numbers<[1], [0], [0], [1], [0, 0, 1, 1], [], []>} : vector<64x8xbf16>, vector<8x16xbf16>, vector<64x16xf32> -> vector<64x16xf32>
    %117 = arith.addf %111, %116 : vector<64x16xf32>
    %c1_112 = arith.constant 1 : index
    %c2_113 = arith.constant 2 : index
    %c0_114 = arith.constant 0 : index
    %118 = vector.load %arg18[%c1_112, %c2_113, %c0_114] : memref<10x10x8xbf16, #tpu.memory_space<vmem>>, vector<8x8x8xbf16>
    %119 = vector.shape_cast %118 : vector<8x8x8xbf16> to vector<64x8xbf16>
    %c5_115 = arith.constant 5 : index
    %c0_116 = arith.constant 0 : index
    %c0_117 = arith.constant 0 : index
    %120 = vector.load %arg4[%c5_115, %c0_116, %c0_117] : memref<9x8x16xbf16, #tpu.memory_space<vmem>>, vector<1x8x16xbf16>
    %121 = vector.shape_cast %120 : vector<1x8x16xbf16> to vector<8x16xbf16>
    %cst_118 = arith.constant dense<0.000000e+00> : vector<64x16xf32>
    %122 = tpu.matmul %119, %121, %cst_118 {dimension_numbers = #tpu.dot_dimension_numbers<[1], [0], [0], [1], [0, 0, 1, 1], [], []>} : vector<64x8xbf16>, vector<8x16xbf16>, vector<64x16xf32> -> vector<64x16xf32>
    %123 = arith.addf %117, %122 : vector<64x16xf32>
    %c2_119 = arith.constant 2 : index
    %c0_120 = arith.constant 0 : index
    %c0_121 = arith.constant 0 : index
    %124 = vector.load %arg18[%c2_119, %c0_120, %c0_121] : memref<10x10x8xbf16, #tpu.memory_space<vmem>>, vector<8x8x8xbf16>
    %125 = vector.shape_cast %124 : vector<8x8x8xbf16> to vector<64x8xbf16>
    %c6_122 = arith.constant 6 : index
    %c0_123 = arith.constant 0 : index
    %c0_124 = arith.constant 0 : index
    %126 = vector.load %arg4[%c6_122, %c0_123, %c0_124] : memref<9x8x16xbf16, #tpu.memory_space<vmem>>, vector<1x8x16xbf16>
    %127 = vector.shape_cast %126 : vector<1x8x16xbf16> to vector<8x16xbf16>
    %cst_125 = arith.constant dense<0.000000e+00> : vector<64x16xf32>
    %128 = tpu.matmul %125, %127, %cst_125 {dimension_numbers = #tpu.dot_dimension_numbers<[1], [0], [0], [1], [0, 0, 1, 1], [], []>} : vector<64x8xbf16>, vector<8x16xbf16>, vector<64x16xf32> -> vector<64x16xf32>
    %129 = arith.addf %123, %128 : vector<64x16xf32>
    %c2_126 = arith.constant 2 : index
    %c1_127 = arith.constant 1 : index
    %c0_128 = arith.constant 0 : index
    %130 = vector.load %arg18[%c2_126, %c1_127, %c0_128] : memref<10x10x8xbf16, #tpu.memory_space<vmem>>, vector<8x8x8xbf16>
    %131 = vector.shape_cast %130 : vector<8x8x8xbf16> to vector<64x8xbf16>
    %c7_129 = arith.constant 7 : index
    %c0_130 = arith.constant 0 : index
    %c0_131 = arith.constant 0 : index
    %132 = vector.load %arg4[%c7_129, %c0_130, %c0_131] : memref<9x8x16xbf16, #tpu.memory_space<vmem>>, vector<1x8x16xbf16>
    %133 = vector.shape_cast %132 : vector<1x8x16xbf16> to vector<8x16xbf16>
    %cst_132 = arith.constant dense<0.000000e+00> : vector<64x16xf32>
    %134 = tpu.matmul %131, %133, %cst_132 {dimension_numbers = #tpu.dot_dimension_numbers<[1], [0], [0], [1], [0, 0, 1, 1], [], []>} : vector<64x8xbf16>, vector<8x16xbf16>, vector<64x16xf32> -> vector<64x16xf32>
    %135 = arith.addf %129, %134 : vector<64x16xf32>
    %c2_133 = arith.constant 2 : index
    %c2_134 = arith.constant 2 : index
    %c0_135 = arith.constant 0 : index
    %136 = vector.load %arg18[%c2_133, %c2_134, %c0_135] : memref<10x10x8xbf16, #tpu.memory_space<vmem>>, vector<8x8x8xbf16>
    %137 = vector.shape_cast %136 : vector<8x8x8xbf16> to vector<64x8xbf16>
    %c8_136 = arith.constant 8 : index
    %c0_137 = arith.constant 0 : index
    %c0_138 = arith.constant 0 : index
    %138 = vector.load %arg4[%c8_136, %c0_137, %c0_138] : memref<9x8x16xbf16, #tpu.memory_space<vmem>>, vector<1x8x16xbf16>
    %139 = vector.shape_cast %138 : vector<1x8x16xbf16> to vector<8x16xbf16>
    %cst_139 = arith.constant dense<0.000000e+00> : vector<64x16xf32>
    %140 = tpu.matmul %137, %139, %cst_139 {dimension_numbers = #tpu.dot_dimension_numbers<[1], [0], [0], [1], [0, 0, 1, 1], [], []>} : vector<64x8xbf16>, vector<8x16xbf16>, vector<64x16xf32> -> vector<64x16xf32>
    %141 = arith.addf %135, %140 : vector<64x16xf32>
    %c0_140 = arith.constant 0 : index
    %c0_141 = arith.constant 0 : index
    %142 = vector.load %arg5[%c0_140, %c0_141] : memref<1x16xf32, #tpu.memory_space<vmem>>, vector<1x16xf32>
    %143 = vector.broadcast %142 : vector<1x16xf32> to vector<64x16xf32>
    %144 = arith.addf %141, %143 : vector<64x16xf32>
    %cst_142 = arith.constant 2.000000e-01 : f32
    %145 = vector.broadcast %cst_142 : f32 to vector<64x16xf32>
    %146 = arith.mulf %145, %144 : vector<64x16xf32>
    %147 = arith.maximumf %144, %146 : vector<64x16xf32>
    %148 = vector.shape_cast %147 : vector<64x16xf32> to vector<32x2x16xf32>
    %149 = vector.extract_strided_slice %148 {offsets = [0, 0, 0], sizes = [32, 1, 16], strides = [1, 1, 1]} : vector<32x2x16xf32> to vector<32x1x16xf32>
    %150 = vector.shape_cast %149 : vector<32x1x16xf32> to vector<32x16xf32>
    %151 = vector.extract_strided_slice %148 {offsets = [0, 1, 0], sizes = [32, 1, 16], strides = [1, 1, 1]} : vector<32x2x16xf32> to vector<32x1x16xf32>
    %152 = vector.shape_cast %151 : vector<32x1x16xf32> to vector<32x16xf32>
    %153 = arith.addf %150, %152 : vector<32x16xf32>
    %154 = vector.shape_cast %153 : vector<32x16xf32> to vector<4x2x4x16xf32>
    %155 = vector.extract_strided_slice %154 {offsets = [0, 0, 0, 0], sizes = [4, 1, 4, 16], strides = [1, 1, 1, 1]} : vector<4x2x4x16xf32> to vector<4x1x4x16xf32>
    %156 = vector.shape_cast %155 : vector<4x1x4x16xf32> to vector<4x4x16xf32>
    %157 = vector.extract_strided_slice %154 {offsets = [0, 1, 0, 0], sizes = [4, 1, 4, 16], strides = [1, 1, 1, 1]} : vector<4x2x4x16xf32> to vector<4x1x4x16xf32>
    %158 = vector.shape_cast %157 : vector<4x1x4x16xf32> to vector<4x4x16xf32>
    %159 = arith.addf %156, %158 : vector<4x4x16xf32>
    %cst_143 = arith.constant 2.500000e-01 : f32
    %160 = vector.broadcast %cst_143 : f32 to vector<4x4x16xf32>
    %161 = arith.mulf %159, %160 : vector<4x4x16xf32>
    %c0_144 = arith.constant 0 : index
    %c0_145 = arith.constant 0 : index
    %c0_146 = arith.constant 0 : index
    %c0_147 = arith.constant 0 : index
    %162 = vector.load %arg15[%c0_144, %c0_145, %c0_146, %c0_147] : memref<1x4x4x16xf32, #tpu.memory_space<vmem>>, vector<1x4x4x16xf32>
    %163 = vector.shape_cast %162 : vector<1x4x4x16xf32> to vector<4x4x16xf32>
    %164 = vector.shape_cast %161 : vector<4x4x16xf32> to vector<1x4x4x16xf32>
    tpu.vector_store %arg15[%c0_144, %c0_145, %c0_146, %c0_147], %164 {strides = array<i32>} : memref<1x4x4x16xf32, #tpu.memory_space<vmem>>, vector<1x4x4x16xf32>,
    %cst_148 = arith.constant 0.000000e+00 : bf16
    %165 = vector.broadcast %cst_148 : bf16 to vector<6x6x16xbf16>
    %c0_149 = arith.constant 0 : index
    %c0_150 = arith.constant 0 : index
    %c0_151 = arith.constant 0 : index
    %166 = vector.load %arg19[%c0_149, %c0_150, %c0_151] : memref<6x6x16xbf16, #tpu.memory_space<vmem>>, vector<6x6x16xbf16>
    tpu.vector_store %arg19[%c0_149, %c0_150, %c0_151], %165 {strides = array<i32>} : memref<6x6x16xbf16, #tpu.memory_space<vmem>>, vector<6x6x16xbf16>,
    %167 = arith.truncf %161 : vector<4x4x16xf32> to vector<4x4x16xbf16>
    %c1_152 = arith.constant 1 : index
    %c1_153 = arith.constant 1 : index
    %c0_154 = arith.constant 0 : index
    %168 = vector.load %arg19[%c1_152, %c1_153, %c0_154] : memref<6x6x16xbf16, #tpu.memory_space<vmem>>, vector<4x4x16xbf16>
    tpu.vector_store %arg19[%c1_152, %c1_153, %c0_154], %167 {strides = array<i32>} : memref<6x6x16xbf16, #tpu.memory_space<vmem>>, vector<4x4x16xbf16>,
    %c0_155 = arith.constant 0 : index
    %c0_156 = arith.constant 0 : index
    %c0_157 = arith.constant 0 : index
    %169 = vector.load %arg19[%c0_155, %c0_156, %c0_157] : memref<6x6x16xbf16, #tpu.memory_space<vmem>>, vector<4x4x16xbf16>
    %170 = vector.shape_cast %169 : vector<4x4x16xbf16> to vector<16x16xbf16>
    %c0_158 = arith.constant 0 : index
    %c0_159 = arith.constant 0 : index
    %c0_160 = arith.constant 0 : index
    %171 = vector.load %arg6[%c0_158, %c0_159, %c0_160] : memref<9x16x32xbf16, #tpu.memory_space<vmem>>, vector<1x16x32xbf16>
    %172 = vector.shape_cast %171 : vector<1x16x32xbf16> to vector<16x32xbf16>
    %cst_161 = arith.constant dense<0.000000e+00> : vector<16x32xf32>
    %173 = tpu.matmul %170, %172, %cst_161 {dimension_numbers = #tpu.dot_dimension_numbers<[1], [0], [0], [1], [0, 0, 1, 1], [], []>} : vector<16x16xbf16>, vector<16x32xbf16>, vector<16x32xf32> -> vector<16x32xf32>
    %c0_162 = arith.constant 0 : index
    %c1_163 = arith.constant 1 : index
    %c0_164 = arith.constant 0 : index
    %174 = vector.load %arg19[%c0_162, %c1_163, %c0_164] : memref<6x6x16xbf16, #tpu.memory_space<vmem>>, vector<4x4x16xbf16>
    %175 = vector.shape_cast %174 : vector<4x4x16xbf16> to vector<16x16xbf16>
    %c1_165 = arith.constant 1 : index
    %c0_166 = arith.constant 0 : index
    %c0_167 = arith.constant 0 : index
    %176 = vector.load %arg6[%c1_165, %c0_166, %c0_167] : memref<9x16x32xbf16, #tpu.memory_space<vmem>>, vector<1x16x32xbf16>
    %177 = vector.shape_cast %176 : vector<1x16x32xbf16> to vector<16x32xbf16>
    %cst_168 = arith.constant dense<0.000000e+00> : vector<16x32xf32>
    %178 = tpu.matmul %175, %177, %cst_168 {dimension_numbers = #tpu.dot_dimension_numbers<[1], [0], [0], [1], [0, 0, 1, 1], [], []>} : vector<16x16xbf16>, vector<16x32xbf16>, vector<16x32xf32> -> vector<16x32xf32>
    %179 = arith.addf %173, %178 : vector<16x32xf32>
    %c0_169 = arith.constant 0 : index
    %c2_170 = arith.constant 2 : index
    %c0_171 = arith.constant 0 : index
    %180 = vector.load %arg19[%c0_169, %c2_170, %c0_171] : memref<6x6x16xbf16, #tpu.memory_space<vmem>>, vector<4x4x16xbf16>
    %181 = vector.shape_cast %180 : vector<4x4x16xbf16> to vector<16x16xbf16>
    %c2_172 = arith.constant 2 : index
    %c0_173 = arith.constant 0 : index
    %c0_174 = arith.constant 0 : index
    %182 = vector.load %arg6[%c2_172, %c0_173, %c0_174] : memref<9x16x32xbf16, #tpu.memory_space<vmem>>, vector<1x16x32xbf16>
    %183 = vector.shape_cast %182 : vector<1x16x32xbf16> to vector<16x32xbf16>
    %cst_175 = arith.constant dense<0.000000e+00> : vector<16x32xf32>
    %184 = tpu.matmul %181, %183, %cst_175 {dimension_numbers = #tpu.dot_dimension_numbers<[1], [0], [0], [1], [0, 0, 1, 1], [], []>} : vector<16x16xbf16>, vector<16x32xbf16>, vector<16x32xf32> -> vector<16x32xf32>
    %185 = arith.addf %179, %184 : vector<16x32xf32>
    %c1_176 = arith.constant 1 : index
    %c0_177 = arith.constant 0 : index
    %c0_178 = arith.constant 0 : index
    %186 = vector.load %arg19[%c1_176, %c0_177, %c0_178] : memref<6x6x16xbf16, #tpu.memory_space<vmem>>, vector<4x4x16xbf16>
    %187 = vector.shape_cast %186 : vector<4x4x16xbf16> to vector<16x16xbf16>
    %c3_179 = arith.constant 3 : index
    %c0_180 = arith.constant 0 : index
    %c0_181 = arith.constant 0 : index
    %188 = vector.load %arg6[%c3_179, %c0_180, %c0_181] : memref<9x16x32xbf16, #tpu.memory_space<vmem>>, vector<1x16x32xbf16>
    %189 = vector.shape_cast %188 : vector<1x16x32xbf16> to vector<16x32xbf16>
    %cst_182 = arith.constant dense<0.000000e+00> : vector<16x32xf32>
    %190 = tpu.matmul %187, %189, %cst_182 {dimension_numbers = #tpu.dot_dimension_numbers<[1], [0], [0], [1], [0, 0, 1, 1], [], []>} : vector<16x16xbf16>, vector<16x32xbf16>, vector<16x32xf32> -> vector<16x32xf32>
    %191 = arith.addf %185, %190 : vector<16x32xf32>
    %c1_183 = arith.constant 1 : index
    %c1_184 = arith.constant 1 : index
    %c0_185 = arith.constant 0 : index
    %192 = vector.load %arg19[%c1_183, %c1_184, %c0_185] : memref<6x6x16xbf16, #tpu.memory_space<vmem>>, vector<4x4x16xbf16>
    %193 = vector.shape_cast %192 : vector<4x4x16xbf16> to vector<16x16xbf16>
    %c4_186 = arith.constant 4 : index
    %c0_187 = arith.constant 0 : index
    %c0_188 = arith.constant 0 : index
    %194 = vector.load %arg6[%c4_186, %c0_187, %c0_188] : memref<9x16x32xbf16, #tpu.memory_space<vmem>>, vector<1x16x32xbf16>
    %195 = vector.shape_cast %194 : vector<1x16x32xbf16> to vector<16x32xbf16>
    %cst_189 = arith.constant dense<0.000000e+00> : vector<16x32xf32>
    %196 = tpu.matmul %193, %195, %cst_189 {dimension_numbers = #tpu.dot_dimension_numbers<[1], [0], [0], [1], [0, 0, 1, 1], [], []>} : vector<16x16xbf16>, vector<16x32xbf16>, vector<16x32xf32> -> vector<16x32xf32>
    %197 = arith.addf %191, %196 : vector<16x32xf32>
    %c1_190 = arith.constant 1 : index
    %c2_191 = arith.constant 2 : index
    %c0_192 = arith.constant 0 : index
    %198 = vector.load %arg19[%c1_190, %c2_191, %c0_192] : memref<6x6x16xbf16, #tpu.memory_space<vmem>>, vector<4x4x16xbf16>
    %199 = vector.shape_cast %198 : vector<4x4x16xbf16> to vector<16x16xbf16>
    %c5_193 = arith.constant 5 : index
    %c0_194 = arith.constant 0 : index
    %c0_195 = arith.constant 0 : index
    %200 = vector.load %arg6[%c5_193, %c0_194, %c0_195] : memref<9x16x32xbf16, #tpu.memory_space<vmem>>, vector<1x16x32xbf16>
    %201 = vector.shape_cast %200 : vector<1x16x32xbf16> to vector<16x32xbf16>
    %cst_196 = arith.constant dense<0.000000e+00> : vector<16x32xf32>
    %202 = tpu.matmul %199, %201, %cst_196 {dimension_numbers = #tpu.dot_dimension_numbers<[1], [0], [0], [1], [0, 0, 1, 1], [], []>} : vector<16x16xbf16>, vector<16x32xbf16>, vector<16x32xf32> -> vector<16x32xf32>
    %203 = arith.addf %197, %202 : vector<16x32xf32>
    %c2_197 = arith.constant 2 : index
    %c0_198 = arith.constant 0 : index
    %c0_199 = arith.constant 0 : index
    %204 = vector.load %arg19[%c2_197, %c0_198, %c0_199] : memref<6x6x16xbf16, #tpu.memory_space<vmem>>, vector<4x4x16xbf16>
    %205 = vector.shape_cast %204 : vector<4x4x16xbf16> to vector<16x16xbf16>
    %c6_200 = arith.constant 6 : index
    %c0_201 = arith.constant 0 : index
    %c0_202 = arith.constant 0 : index
    %206 = vector.load %arg6[%c6_200, %c0_201, %c0_202] : memref<9x16x32xbf16, #tpu.memory_space<vmem>>, vector<1x16x32xbf16>
    %207 = vector.shape_cast %206 : vector<1x16x32xbf16> to vector<16x32xbf16>
    %cst_203 = arith.constant dense<0.000000e+00> : vector<16x32xf32>
    %208 = tpu.matmul %205, %207, %cst_203 {dimension_numbers = #tpu.dot_dimension_numbers<[1], [0], [0], [1], [0, 0, 1, 1], [], []>} : vector<16x16xbf16>, vector<16x32xbf16>, vector<16x32xf32> -> vector<16x32xf32>
    %209 = arith.addf %203, %208 : vector<16x32xf32>
    %c2_204 = arith.constant 2 : index
    %c1_205 = arith.constant 1 : index
    %c0_206 = arith.constant 0 : index
    %210 = vector.load %arg19[%c2_204, %c1_205, %c0_206] : memref<6x6x16xbf16, #tpu.memory_space<vmem>>, vector<4x4x16xbf16>
    %211 = vector.shape_cast %210 : vector<4x4x16xbf16> to vector<16x16xbf16>
    %c7_207 = arith.constant 7 : index
    %c0_208 = arith.constant 0 : index
    %c0_209 = arith.constant 0 : index
    %212 = vector.load %arg6[%c7_207, %c0_208, %c0_209] : memref<9x16x32xbf16, #tpu.memory_space<vmem>>, vector<1x16x32xbf16>
    %213 = vector.shape_cast %212 : vector<1x16x32xbf16> to vector<16x32xbf16>
    %cst_210 = arith.constant dense<0.000000e+00> : vector<16x32xf32>
    %214 = tpu.matmul %211, %213, %cst_210 {dimension_numbers = #tpu.dot_dimension_numbers<[1], [0], [0], [1], [0, 0, 1, 1], [], []>} : vector<16x16xbf16>, vector<16x32xbf16>, vector<16x32xf32> -> vector<16x32xf32>
    %215 = arith.addf %209, %214 : vector<16x32xf32>
    %c2_211 = arith.constant 2 : index
    %c2_212 = arith.constant 2 : index
    %c0_213 = arith.constant 0 : index
    %216 = vector.load %arg19[%c2_211, %c2_212, %c0_213] : memref<6x6x16xbf16, #tpu.memory_space<vmem>>, vector<4x4x16xbf16>
    %217 = vector.shape_cast %216 : vector<4x4x16xbf16> to vector<16x16xbf16>
    %c8_214 = arith.constant 8 : index
    %c0_215 = arith.constant 0 : index
    %c0_216 = arith.constant 0 : index
    %218 = vector.load %arg6[%c8_214, %c0_215, %c0_216] : memref<9x16x32xbf16, #tpu.memory_space<vmem>>, vector<1x16x32xbf16>
    %219 = vector.shape_cast %218 : vector<1x16x32xbf16> to vector<16x32xbf16>
    %cst_217 = arith.constant dense<0.000000e+00> : vector<16x32xf32>
    %220 = tpu.matmul %217, %219, %cst_217 {dimension_numbers = #tpu.dot_dimension_numbers<[1], [0], [0], [1], [0, 0, 1, 1], [], []>} : vector<16x16xbf16>, vector<16x32xbf16>, vector<16x32xf32> -> vector<16x32xf32>
    %221 = arith.addf %215, %220 : vector<16x32xf32>
    %c0_218 = arith.constant 0 : index
    %c0_219 = arith.constant 0 : index
    %222 = vector.load %arg7[%c0_218, %c0_219] : memref<1x32xf32, #tpu.memory_space<vmem>>, vector<1x32xf32>
    %223 = vector.broadcast %222 : vector<1x32xf32> to vector<16x32xf32>
    %224 = arith.addf %221, %223 : vector<16x32xf32>
    %cst_220 = arith.constant 2.000000e-01 : f32
    %225 = vector.broadcast %cst_220 : f32 to vector<16x32xf32>
    %226 = arith.mulf %225, %224 : vector<16x32xf32>
    %227 = arith.maximumf %224, %226 : vector<16x32xf32>
    %228 = vector.shape_cast %227 : vector<16x32xf32> to vector<8x2x32xf32>
    %229 = vector.extract_strided_slice %228 {offsets = [0, 0, 0], sizes = [8, 1, 32], strides = [1, 1, 1]} : vector<8x2x32xf32> to vector<8x1x32xf32>
    %230 = vector.shape_cast %229 : vector<8x1x32xf32> to vector<8x32xf32>
    %231 = vector.extract_strided_slice %228 {offsets = [0, 1, 0], sizes = [8, 1, 32], strides = [1, 1, 1]} : vector<8x2x32xf32> to vector<8x1x32xf32>
    %232 = vector.shape_cast %231 : vector<8x1x32xf32> to vector<8x32xf32>
    %233 = arith.addf %230, %232 : vector<8x32xf32>
    %234 = vector.shape_cast %233 : vector<8x32xf32> to vector<2x2x2x32xf32>
    %235 = vector.extract_strided_slice %234 {offsets = [0, 0, 0, 0], sizes = [2, 1, 2, 32], strides = [1, 1, 1, 1]} : vector<2x2x2x32xf32> to vector<2x1x2x32xf32>
    %236 = vector.shape_cast %235 : vector<2x1x2x32xf32> to vector<2x2x32xf32>
    %237 = vector.extract_strided_slice %234 {offsets = [0, 1, 0, 0], sizes = [2, 1, 2, 32], strides = [1, 1, 1, 1]} : vector<2x2x2x32xf32> to vector<2x1x2x32xf32>
    %238 = vector.shape_cast %237 : vector<2x1x2x32xf32> to vector<2x2x32xf32>
    %239 = arith.addf %236, %238 : vector<2x2x32xf32>
    %cst_221 = arith.constant 2.500000e-01 : f32
    %240 = vector.broadcast %cst_221 : f32 to vector<2x2x32xf32>
    %241 = arith.mulf %239, %240 : vector<2x2x32xf32>
    %c0_222 = arith.constant 0 : index
    %c0_223 = arith.constant 0 : index
    %c0_224 = arith.constant 0 : index
    %c0_225 = arith.constant 0 : index
    %242 = vector.load %arg16[%c0_222, %c0_223, %c0_224, %c0_225] : memref<1x2x2x32xf32, #tpu.memory_space<vmem>>, vector<1x2x2x32xf32>
    %243 = vector.shape_cast %242 : vector<1x2x2x32xf32> to vector<2x2x32xf32>
    %244 = vector.shape_cast %241 : vector<2x2x32xf32> to vector<1x2x2x32xf32>
    tpu.vector_store %arg16[%c0_222, %c0_223, %c0_224, %c0_225], %244 {strides = array<i32>} : memref<1x2x2x32xf32, #tpu.memory_space<vmem>>, vector<1x2x2x32xf32>,
    %cst_226 = arith.constant 0.000000e+00 : bf16
    %245 = vector.broadcast %cst_226 : bf16 to vector<4x4x32xbf16>
    %c0_227 = arith.constant 0 : index
    %c0_228 = arith.constant 0 : index
    %c0_229 = arith.constant 0 : index
    %246 = vector.load %arg20[%c0_227, %c0_228, %c0_229] : memref<4x4x32xbf16, #tpu.memory_space<vmem>>, vector<4x4x32xbf16>
    tpu.vector_store %arg20[%c0_227, %c0_228, %c0_229], %245 {strides = array<i32>} : memref<4x4x32xbf16, #tpu.memory_space<vmem>>, vector<4x4x32xbf16>,
    %247 = arith.truncf %241 : vector<2x2x32xf32> to vector<2x2x32xbf16>
    %c1_230 = arith.constant 1 : index
    %c1_231 = arith.constant 1 : index
    %c0_232 = arith.constant 0 : index
    %248 = vector.load %arg20[%c1_230, %c1_231, %c0_232] : memref<4x4x32xbf16, #tpu.memory_space<vmem>>, vector<2x2x32xbf16>
    tpu.vector_store %arg20[%c1_230, %c1_231, %c0_232], %247 {strides = array<i32>} : memref<4x4x32xbf16, #tpu.memory_space<vmem>>, vector<2x2x32xbf16>,
    %c0_233 = arith.constant 0 : index
    %c0_234 = arith.constant 0 : index
    %c0_235 = arith.constant 0 : index
    %249 = vector.load %arg20[%c0_233, %c0_234, %c0_235] : memref<4x4x32xbf16, #tpu.memory_space<vmem>>, vector<2x2x32xbf16>
    %250 = vector.shape_cast %249 : vector<2x2x32xbf16> to vector<4x32xbf16>
    %c0_236 = arith.constant 0 : index
    %c0_237 = arith.constant 0 : index
    %c0_238 = arith.constant 0 : index
    %251 = vector.load %arg8[%c0_236, %c0_237, %c0_238] : memref<9x32x32xbf16, #tpu.memory_space<vmem>>, vector<1x32x32xbf16>
    %252 = vector.shape_cast %251 : vector<1x32x32xbf16> to vector<32x32xbf16>
    %cst_239 = arith.constant dense<0.000000e+00> : vector<4x32xf32>
    %253 = tpu.matmul %250, %252, %cst_239 {dimension_numbers = #tpu.dot_dimension_numbers<[1], [0], [0], [1], [0, 0, 1, 1], [], []>} : vector<4x32xbf16>, vector<32x32xbf16>, vector<4x32xf32> -> vector<4x32xf32>
    %c0_240 = arith.constant 0 : index
    %c1_241 = arith.constant 1 : index
    %c0_242 = arith.constant 0 : index
    %254 = vector.load %arg20[%c0_240, %c1_241, %c0_242] : memref<4x4x32xbf16, #tpu.memory_space<vmem>>, vector<2x2x32xbf16>
    %255 = vector.shape_cast %254 : vector<2x2x32xbf16> to vector<4x32xbf16>
    %c1_243 = arith.constant 1 : index
    %c0_244 = arith.constant 0 : index
    %c0_245 = arith.constant 0 : index
    %256 = vector.load %arg8[%c1_243, %c0_244, %c0_245] : memref<9x32x32xbf16, #tpu.memory_space<vmem>>, vector<1x32x32xbf16>
    %257 = vector.shape_cast %256 : vector<1x32x32xbf16> to vector<32x32xbf16>
    %cst_246 = arith.constant dense<0.000000e+00> : vector<4x32xf32>
    %258 = tpu.matmul %255, %257, %cst_246 {dimension_numbers = #tpu.dot_dimension_numbers<[1], [0], [0], [1], [0, 0, 1, 1], [], []>} : vector<4x32xbf16>, vector<32x32xbf16>, vector<4x32xf32> -> vector<4x32xf32>
    %259 = arith.addf %253, %258 : vector<4x32xf32>
    %c0_247 = arith.constant 0 : index
    %c2_248 = arith.constant 2 : index
    %c0_249 = arith.constant 0 : index
    %260 = vector.load %arg20[%c0_247, %c2_248, %c0_249] : memref<4x4x32xbf16, #tpu.memory_space<vmem>>, vector<2x2x32xbf16>
    %261 = vector.shape_cast %260 : vector<2x2x32xbf16> to vector<4x32xbf16>
    %c2_250 = arith.constant 2 : index
    %c0_251 = arith.constant 0 : index
    %c0_252 = arith.constant 0 : index
    %262 = vector.load %arg8[%c2_250, %c0_251, %c0_252] : memref<9x32x32xbf16, #tpu.memory_space<vmem>>, vector<1x32x32xbf16>
    %263 = vector.shape_cast %262 : vector<1x32x32xbf16> to vector<32x32xbf16>
    %cst_253 = arith.constant dense<0.000000e+00> : vector<4x32xf32>
    %264 = tpu.matmul %261, %263, %cst_253 {dimension_numbers = #tpu.dot_dimension_numbers<[1], [0], [0], [1], [0, 0, 1, 1], [], []>} : vector<4x32xbf16>, vector<32x32xbf16>, vector<4x32xf32> -> vector<4x32xf32>
    %265 = arith.addf %259, %264 : vector<4x32xf32>
    %c1_254 = arith.constant 1 : index
    %c0_255 = arith.constant 0 : index
    %c0_256 = arith.constant 0 : index
    %266 = vector.load %arg20[%c1_254, %c0_255, %c0_256] : memref<4x4x32xbf16, #tpu.memory_space<vmem>>, vector<2x2x32xbf16>
    %267 = vector.shape_cast %266 : vector<2x2x32xbf16> to vector<4x32xbf16>
    %c3_257 = arith.constant 3 : index
    %c0_258 = arith.constant 0 : index
    %c0_259 = arith.constant 0 : index
    %268 = vector.load %arg8[%c3_257, %c0_258, %c0_259] : memref<9x32x32xbf16, #tpu.memory_space<vmem>>, vector<1x32x32xbf16>
    %269 = vector.shape_cast %268 : vector<1x32x32xbf16> to vector<32x32xbf16>
    %cst_260 = arith.constant dense<0.000000e+00> : vector<4x32xf32>
    %270 = tpu.matmul %267, %269, %cst_260 {dimension_numbers = #tpu.dot_dimension_numbers<[1], [0], [0], [1], [0, 0, 1, 1], [], []>} : vector<4x32xbf16>, vector<32x32xbf16>, vector<4x32xf32> -> vector<4x32xf32>
    %271 = arith.addf %265, %270 : vector<4x32xf32>
    %c1_261 = arith.constant 1 : index
    %c1_262 = arith.constant 1 : index
    %c0_263 = arith.constant 0 : index
    %272 = vector.load %arg20[%c1_261, %c1_262, %c0_263] : memref<4x4x32xbf16, #tpu.memory_space<vmem>>, vector<2x2x32xbf16>
    %273 = vector.shape_cast %272 : vector<2x2x32xbf16> to vector<4x32xbf16>
    %c4_264 = arith.constant 4 : index
    %c0_265 = arith.constant 0 : index
    %c0_266 = arith.constant 0 : index
    %274 = vector.load %arg8[%c4_264, %c0_265, %c0_266] : memref<9x32x32xbf16, #tpu.memory_space<vmem>>, vector<1x32x32xbf16>
    %275 = vector.shape_cast %274 : vector<1x32x32xbf16> to vector<32x32xbf16>
    %cst_267 = arith.constant dense<0.000000e+00> : vector<4x32xf32>
    %276 = tpu.matmul %273, %275, %cst_267 {dimension_numbers = #tpu.dot_dimension_numbers<[1], [0], [0], [1], [0, 0, 1, 1], [], []>} : vector<4x32xbf16>, vector<32x32xbf16>, vector<4x32xf32> -> vector<4x32xf32>
    %277 = arith.addf %271, %276 : vector<4x32xf32>
    %c1_268 = arith.constant 1 : index
    %c2_269 = arith.constant 2 : index
    %c0_270 = arith.constant 0 : index
    %278 = vector.load %arg20[%c1_268, %c2_269, %c0_270] : memref<4x4x32xbf16, #tpu.memory_space<vmem>>, vector<2x2x32xbf16>
    %279 = vector.shape_cast %278 : vector<2x2x32xbf16> to vector<4x32xbf16>
    %c5_271 = arith.constant 5 : index
    %c0_272 = arith.constant 0 : index
    %c0_273 = arith.constant 0 : index
    %280 = vector.load %arg8[%c5_271, %c0_272, %c0_273] : memref<9x32x32xbf16, #tpu.memory_space<vmem>>, vector<1x32x32xbf16>
    %281 = vector.shape_cast %280 : vector<1x32x32xbf16> to vector<32x32xbf16>
    %cst_274 = arith.constant dense<0.000000e+00> : vector<4x32xf32>
    %282 = tpu.matmul %279, %281, %cst_274 {dimension_numbers = #tpu.dot_dimension_numbers<[1], [0], [0], [1], [0, 0, 1, 1], [], []>} : vector<4x32xbf16>, vector<32x32xbf16>, vector<4x32xf32> -> vector<4x32xf32>
    %283 = arith.addf %277, %282 : vector<4x32xf32>
    %c2_275 = arith.constant 2 : index
    %c0_276 = arith.constant 0 : index
    %c0_277 = arith.constant 0 : index
    %284 = vector.load %arg20[%c2_275, %c0_276, %c0_277] : memref<4x4x32xbf16, #tpu.memory_space<vmem>>, vector<2x2x32xbf16>
    %285 = vector.shape_cast %284 : vector<2x2x32xbf16> to vector<4x32xbf16>
    %c6_278 = arith.constant 6 : index
    %c0_279 = arith.constant 0 : index
    %c0_280 = arith.constant 0 : index
    %286 = vector.load %arg8[%c6_278, %c0_279, %c0_280] : memref<9x32x32xbf16, #tpu.memory_space<vmem>>, vector<1x32x32xbf16>
    %287 = vector.shape_cast %286 : vector<1x32x32xbf16> to vector<32x32xbf16>
    %cst_281 = arith.constant dense<0.000000e+00> : vector<4x32xf32>
    %288 = tpu.matmul %285, %287, %cst_281 {dimension_numbers = #tpu.dot_dimension_numbers<[1], [0], [0], [1], [0, 0, 1, 1], [], []>} : vector<4x32xbf16>, vector<32x32xbf16>, vector<4x32xf32> -> vector<4x32xf32>
    %289 = arith.addf %283, %288 : vector<4x32xf32>
    %c2_282 = arith.constant 2 : index
    %c1_283 = arith.constant 1 : index
    %c0_284 = arith.constant 0 : index
    %290 = vector.load %arg20[%c2_282, %c1_283, %c0_284] : memref<4x4x32xbf16, #tpu.memory_space<vmem>>, vector<2x2x32xbf16>
    %291 = vector.shape_cast %290 : vector<2x2x32xbf16> to vector<4x32xbf16>
    %c7_285 = arith.constant 7 : index
    %c0_286 = arith.constant 0 : index
    %c0_287 = arith.constant 0 : index
    %292 = vector.load %arg8[%c7_285, %c0_286, %c0_287] : memref<9x32x32xbf16, #tpu.memory_space<vmem>>, vector<1x32x32xbf16>
    %293 = vector.shape_cast %292 : vector<1x32x32xbf16> to vector<32x32xbf16>
    %cst_288 = arith.constant dense<0.000000e+00> : vector<4x32xf32>
    %294 = tpu.matmul %291, %293, %cst_288 {dimension_numbers = #tpu.dot_dimension_numbers<[1], [0], [0], [1], [0, 0, 1, 1], [], []>} : vector<4x32xbf16>, vector<32x32xbf16>, vector<4x32xf32> -> vector<4x32xf32>
    %295 = arith.addf %289, %294 : vector<4x32xf32>
    %c2_289 = arith.constant 2 : index
    %c2_290 = arith.constant 2 : index
    %c0_291 = arith.constant 0 : index
    %296 = vector.load %arg20[%c2_289, %c2_290, %c0_291] : memref<4x4x32xbf16, #tpu.memory_space<vmem>>, vector<2x2x32xbf16>
    %297 = vector.shape_cast %296 : vector<2x2x32xbf16> to vector<4x32xbf16>
    %c8_292 = arith.constant 8 : index
    %c0_293 = arith.constant 0 : index
    %c0_294 = arith.constant 0 : index
    %298 = vector.load %arg8[%c8_292, %c0_293, %c0_294] : memref<9x32x32xbf16, #tpu.memory_space<vmem>>, vector<1x32x32xbf16>
    %299 = vector.shape_cast %298 : vector<1x32x32xbf16> to vector<32x32xbf16>
    %cst_295 = arith.constant dense<0.000000e+00> : vector<4x32xf32>
    %300 = tpu.matmul %297, %299, %cst_295 {dimension_numbers = #tpu.dot_dimension_numbers<[1], [0], [0], [1], [0, 0, 1, 1], [], []>} : vector<4x32xbf16>, vector<32x32xbf16>, vector<4x32xf32> -> vector<4x32xf32>
    %301 = arith.addf %295, %300 : vector<4x32xf32>
    %c0_296 = arith.constant 0 : index
    %c0_297 = arith.constant 0 : index
    %302 = vector.load %arg9[%c0_296, %c0_297] : memref<1x32xf32, #tpu.memory_space<vmem>>, vector<1x32xf32>
    %303 = vector.broadcast %302 : vector<1x32xf32> to vector<4x32xf32>
    %304 = arith.addf %301, %303 : vector<4x32xf32>
    %cst_298 = arith.constant 2.000000e-01 : f32
    %305 = vector.broadcast %cst_298 : f32 to vector<4x32xf32>
    %306 = arith.mulf %305, %304 : vector<4x32xf32>
    %307 = arith.maximumf %304, %306 : vector<4x32xf32>
    %308 = vector.shape_cast %307 : vector<4x32xf32> to vector<2x2x32xf32>
    %cst_299 = arith.constant 0.000000e+00 : bf16
    %309 = vector.broadcast %cst_299 : bf16 to vector<4x4x32xbf16>
    %c0_300 = arith.constant 0 : index
    %c0_301 = arith.constant 0 : index
    %c0_302 = arith.constant 0 : index
    %310 = vector.load %arg21[%c0_300, %c0_301, %c0_302] : memref<4x4x32xbf16, #tpu.memory_space<vmem>>, vector<4x4x32xbf16>
    tpu.vector_store %arg21[%c0_300, %c0_301, %c0_302], %309 {strides = array<i32>} : memref<4x4x32xbf16, #tpu.memory_space<vmem>>, vector<4x4x32xbf16>,
    %311 = arith.truncf %308 : vector<2x2x32xf32> to vector<2x2x32xbf16>
    %c1_303 = arith.constant 1 : index
    %c1_304 = arith.constant 1 : index
    %c0_305 = arith.constant 0 : index
    %312 = vector.load %arg21[%c1_303, %c1_304, %c0_305] : memref<4x4x32xbf16, #tpu.memory_space<vmem>>, vector<2x2x32xbf16>
    tpu.vector_store %arg21[%c1_303, %c1_304, %c0_305], %311 {strides = array<i32>} : memref<4x4x32xbf16, #tpu.memory_space<vmem>>, vector<2x2x32xbf16>,
    %c0_306 = arith.constant 0 : index
    %c0_307 = arith.constant 0 : index
    %c0_308 = arith.constant 0 : index
    %313 = vector.load %arg21[%c0_306, %c0_307, %c0_308] : memref<4x4x32xbf16, #tpu.memory_space<vmem>>, vector<2x2x32xbf16>
    %314 = vector.shape_cast %313 : vector<2x2x32xbf16> to vector<4x32xbf16>
    %c0_309 = arith.constant 0 : index
    %c0_310 = arith.constant 0 : index
    %c0_311 = arith.constant 0 : index
    %315 = vector.load %arg10[%c0_309, %c0_310, %c0_311] : memref<9x32x32xbf16, #tpu.memory_space<vmem>>, vector<1x32x32xbf16>
    %316 = vector.shape_cast %315 : vector<1x32x32xbf16> to vector<32x32xbf16>
    %cst_312 = arith.constant dense<0.000000e+00> : vector<4x32xf32>
    %317 = tpu.matmul %314, %316, %cst_312 {dimension_numbers = #tpu.dot_dimension_numbers<[1], [0], [0], [1], [0, 0, 1, 1], [], []>} : vector<4x32xbf16>, vector<32x32xbf16>, vector<4x32xf32> -> vector<4x32xf32>
    %c0_313 = arith.constant 0 : index
    %c1_314 = arith.constant 1 : index
    %c0_315 = arith.constant 0 : index
    %318 = vector.load %arg21[%c0_313, %c1_314, %c0_315] : memref<4x4x32xbf16, #tpu.memory_space<vmem>>, vector<2x2x32xbf16>
    %319 = vector.shape_cast %318 : vector<2x2x32xbf16> to vector<4x32xbf16>
    %c1_316 = arith.constant 1 : index
    %c0_317 = arith.constant 0 : index
    %c0_318 = arith.constant 0 : index
    %320 = vector.load %arg10[%c1_316, %c0_317, %c0_318] : memref<9x32x32xbf16, #tpu.memory_space<vmem>>, vector<1x32x32xbf16>
    %321 = vector.shape_cast %320 : vector<1x32x32xbf16> to vector<32x32xbf16>
    %cst_319 = arith.constant dense<0.000000e+00> : vector<4x32xf32>
    %322 = tpu.matmul %319, %321, %cst_319 {dimension_numbers = #tpu.dot_dimension_numbers<[1], [0], [0], [1], [0, 0, 1, 1], [], []>} : vector<4x32xbf16>, vector<32x32xbf16>, vector<4x32xf32> -> vector<4x32xf32>
    %323 = arith.addf %317, %322 : vector<4x32xf32>
    %c0_320 = arith.constant 0 : index
    %c2_321 = arith.constant 2 : index
    %c0_322 = arith.constant 0 : index
    %324 = vector.load %arg21[%c0_320, %c2_321, %c0_322] : memref<4x4x32xbf16, #tpu.memory_space<vmem>>, vector<2x2x32xbf16>
    %325 = vector.shape_cast %324 : vector<2x2x32xbf16> to vector<4x32xbf16>
    %c2_323 = arith.constant 2 : index
    %c0_324 = arith.constant 0 : index
    %c0_325 = arith.constant 0 : index
    %326 = vector.load %arg10[%c2_323, %c0_324, %c0_325] : memref<9x32x32xbf16, #tpu.memory_space<vmem>>, vector<1x32x32xbf16>
    %327 = vector.shape_cast %326 : vector<1x32x32xbf16> to vector<32x32xbf16>
    %cst_326 = arith.constant dense<0.000000e+00> : vector<4x32xf32>
    %328 = tpu.matmul %325, %327, %cst_326 {dimension_numbers = #tpu.dot_dimension_numbers<[1], [0], [0], [1], [0, 0, 1, 1], [], []>} : vector<4x32xbf16>, vector<32x32xbf16>, vector<4x32xf32> -> vector<4x32xf32>
    %329 = arith.addf %323, %328 : vector<4x32xf32>
    %c1_327 = arith.constant 1 : index
    %c0_328 = arith.constant 0 : index
    %c0_329 = arith.constant 0 : index
    %330 = vector.load %arg21[%c1_327, %c0_328, %c0_329] : memref<4x4x32xbf16, #tpu.memory_space<vmem>>, vector<2x2x32xbf16>
    %331 = vector.shape_cast %330 : vector<2x2x32xbf16> to vector<4x32xbf16>
    %c3_330 = arith.constant 3 : index
    %c0_331 = arith.constant 0 : index
    %c0_332 = arith.constant 0 : index
    %332 = vector.load %arg10[%c3_330, %c0_331, %c0_332] : memref<9x32x32xbf16, #tpu.memory_space<vmem>>, vector<1x32x32xbf16>
    %333 = vector.shape_cast %332 : vector<1x32x32xbf16> to vector<32x32xbf16>
    %cst_333 = arith.constant dense<0.000000e+00> : vector<4x32xf32>
    %334 = tpu.matmul %331, %333, %cst_333 {dimension_numbers = #tpu.dot_dimension_numbers<[1], [0], [0], [1], [0, 0, 1, 1], [], []>} : vector<4x32xbf16>, vector<32x32xbf16>, vector<4x32xf32> -> vector<4x32xf32>
    %335 = arith.addf %329, %334 : vector<4x32xf32>
    %c1_334 = arith.constant 1 : index
    %c1_335 = arith.constant 1 : index
    %c0_336 = arith.constant 0 : index
    %336 = vector.load %arg21[%c1_334, %c1_335, %c0_336] : memref<4x4x32xbf16, #tpu.memory_space<vmem>>, vector<2x2x32xbf16>
    %337 = vector.shape_cast %336 : vector<2x2x32xbf16> to vector<4x32xbf16>
    %c4_337 = arith.constant 4 : index
    %c0_338 = arith.constant 0 : index
    %c0_339 = arith.constant 0 : index
    %338 = vector.load %arg10[%c4_337, %c0_338, %c0_339] : memref<9x32x32xbf16, #tpu.memory_space<vmem>>, vector<1x32x32xbf16>
    %339 = vector.shape_cast %338 : vector<1x32x32xbf16> to vector<32x32xbf16>
    %cst_340 = arith.constant dense<0.000000e+00> : vector<4x32xf32>
    %340 = tpu.matmul %337, %339, %cst_340 {dimension_numbers = #tpu.dot_dimension_numbers<[1], [0], [0], [1], [0, 0, 1, 1], [], []>} : vector<4x32xbf16>, vector<32x32xbf16>, vector<4x32xf32> -> vector<4x32xf32>
    %341 = arith.addf %335, %340 : vector<4x32xf32>
    %c1_341 = arith.constant 1 : index
    %c2_342 = arith.constant 2 : index
    %c0_343 = arith.constant 0 : index
    %342 = vector.load %arg21[%c1_341, %c2_342, %c0_343] : memref<4x4x32xbf16, #tpu.memory_space<vmem>>, vector<2x2x32xbf16>
    %343 = vector.shape_cast %342 : vector<2x2x32xbf16> to vector<4x32xbf16>
    %c5_344 = arith.constant 5 : index
    %c0_345 = arith.constant 0 : index
    %c0_346 = arith.constant 0 : index
    %344 = vector.load %arg10[%c5_344, %c0_345, %c0_346] : memref<9x32x32xbf16, #tpu.memory_space<vmem>>, vector<1x32x32xbf16>
    %345 = vector.shape_cast %344 : vector<1x32x32xbf16> to vector<32x32xbf16>
    %cst_347 = arith.constant dense<0.000000e+00> : vector<4x32xf32>
    %346 = tpu.matmul %343, %345, %cst_347 {dimension_numbers = #tpu.dot_dimension_numbers<[1], [0], [0], [1], [0, 0, 1, 1], [], []>} : vector<4x32xbf16>, vector<32x32xbf16>, vector<4x32xf32> -> vector<4x32xf32>
    %347 = arith.addf %341, %346 : vector<4x32xf32>
    %c2_348 = arith.constant 2 : index
    %c0_349 = arith.constant 0 : index
    %c0_350 = arith.constant 0 : index
    %348 = vector.load %arg21[%c2_348, %c0_349, %c0_350] : memref<4x4x32xbf16, #tpu.memory_space<vmem>>, vector<2x2x32xbf16>
    %349 = vector.shape_cast %348 : vector<2x2x32xbf16> to vector<4x32xbf16>
    %c6_351 = arith.constant 6 : index
    %c0_352 = arith.constant 0 : index
    %c0_353 = arith.constant 0 : index
    %350 = vector.load %arg10[%c6_351, %c0_352, %c0_353] : memref<9x32x32xbf16, #tpu.memory_space<vmem>>, vector<1x32x32xbf16>
    %351 = vector.shape_cast %350 : vector<1x32x32xbf16> to vector<32x32xbf16>
    %cst_354 = arith.constant dense<0.000000e+00> : vector<4x32xf32>
    %352 = tpu.matmul %349, %351, %cst_354 {dimension_numbers = #tpu.dot_dimension_numbers<[1], [0], [0], [1], [0, 0, 1, 1], [], []>} : vector<4x32xbf16>, vector<32x32xbf16>, vector<4x32xf32> -> vector<4x32xf32>
    %353 = arith.addf %347, %352 : vector<4x32xf32>
    %c2_355 = arith.constant 2 : index
    %c1_356 = arith.constant 1 : index
    %c0_357 = arith.constant 0 : index
    %354 = vector.load %arg21[%c2_355, %c1_356, %c0_357] : memref<4x4x32xbf16, #tpu.memory_space<vmem>>, vector<2x2x32xbf16>
    %355 = vector.shape_cast %354 : vector<2x2x32xbf16> to vector<4x32xbf16>
    %c7_358 = arith.constant 7 : index
    %c0_359 = arith.constant 0 : index
    %c0_360 = arith.constant 0 : index
    %356 = vector.load %arg10[%c7_358, %c0_359, %c0_360] : memref<9x32x32xbf16, #tpu.memory_space<vmem>>, vector<1x32x32xbf16>
    %357 = vector.shape_cast %356 : vector<1x32x32xbf16> to vector<32x32xbf16>
    %cst_361 = arith.constant dense<0.000000e+00> : vector<4x32xf32>
    %358 = tpu.matmul %355, %357, %cst_361 {dimension_numbers = #tpu.dot_dimension_numbers<[1], [0], [0], [1], [0, 0, 1, 1], [], []>} : vector<4x32xbf16>, vector<32x32xbf16>, vector<4x32xf32> -> vector<4x32xf32>
    %359 = arith.addf %353, %358 : vector<4x32xf32>
    %c2_362 = arith.constant 2 : index
    %c2_363 = arith.constant 2 : index
    %c0_364 = arith.constant 0 : index
    %360 = vector.load %arg21[%c2_362, %c2_363, %c0_364] : memref<4x4x32xbf16, #tpu.memory_space<vmem>>, vector<2x2x32xbf16>
    %361 = vector.shape_cast %360 : vector<2x2x32xbf16> to vector<4x32xbf16>
    %c8_365 = arith.constant 8 : index
    %c0_366 = arith.constant 0 : index
    %c0_367 = arith.constant 0 : index
    %362 = vector.load %arg10[%c8_365, %c0_366, %c0_367] : memref<9x32x32xbf16, #tpu.memory_space<vmem>>, vector<1x32x32xbf16>
    %363 = vector.shape_cast %362 : vector<1x32x32xbf16> to vector<32x32xbf16>
    %cst_368 = arith.constant dense<0.000000e+00> : vector<4x32xf32>
    %364 = tpu.matmul %361, %363, %cst_368 {dimension_numbers = #tpu.dot_dimension_numbers<[1], [0], [0], [1], [0, 0, 1, 1], [], []>} : vector<4x32xbf16>, vector<32x32xbf16>, vector<4x32xf32> -> vector<4x32xf32>
    %365 = arith.addf %359, %364 : vector<4x32xf32>
    %c0_369 = arith.constant 0 : index
    %c0_370 = arith.constant 0 : index
    %366 = vector.load %arg11[%c0_369, %c0_370] : memref<1x32xf32, #tpu.memory_space<vmem>>, vector<1x32xf32>
    %367 = vector.broadcast %366 : vector<1x32xf32> to vector<4x32xf32>
    %368 = arith.addf %365, %367 : vector<4x32xf32>
    %cst_371 = arith.constant 2.000000e-01 : f32
    %369 = vector.broadcast %cst_371 : f32 to vector<4x32xf32>
    %370 = arith.mulf %369, %368 : vector<4x32xf32>
    %371 = arith.maximumf %368, %370 : vector<4x32xf32>
    %372 = vector.shape_cast %371 : vector<4x32xf32> to vector<2x2x32xf32>
    %cst_372 = arith.constant 0.000000e+00 : bf16
    %373 = vector.broadcast %cst_372 : bf16 to vector<4x4x32xbf16>
    %c0_373 = arith.constant 0 : index
    %c0_374 = arith.constant 0 : index
    %c0_375 = arith.constant 0 : index
    %374 = vector.load %arg22[%c0_373, %c0_374, %c0_375] : memref<4x4x32xbf16, #tpu.memory_space<vmem>>, vector<4x4x32xbf16>
    tpu.vector_store %arg22[%c0_373, %c0_374, %c0_375], %373 {strides = array<i32>} : memref<4x4x32xbf16, #tpu.memory_space<vmem>>, vector<4x4x32xbf16>,
    %375 = arith.truncf %372 : vector<2x2x32xf32> to vector<2x2x32xbf16>
    %c1_376 = arith.constant 1 : index
    %c1_377 = arith.constant 1 : index
    %c0_378 = arith.constant 0 : index
    %376 = vector.load %arg22[%c1_376, %c1_377, %c0_378] : memref<4x4x32xbf16, #tpu.memory_space<vmem>>, vector<2x2x32xbf16>
    tpu.vector_store %arg22[%c1_376, %c1_377, %c0_378], %375 {strides = array<i32>} : memref<4x4x32xbf16, #tpu.memory_space<vmem>>, vector<2x2x32xbf16>,
    %c0_379 = arith.constant 0 : index
    %c0_380 = arith.constant 0 : index
    %c0_381 = arith.constant 0 : index
    %377 = vector.load %arg22[%c0_379, %c0_380, %c0_381] : memref<4x4x32xbf16, #tpu.memory_space<vmem>>, vector<2x2x32xbf16>
    %378 = vector.shape_cast %377 : vector<2x2x32xbf16> to vector<4x32xbf16>
    %c0_382 = arith.constant 0 : index
    %c0_383 = arith.constant 0 : index
    %c0_384 = arith.constant 0 : index
    %379 = vector.load %arg12[%c0_382, %c0_383, %c0_384] : memref<9x32x32xbf16, #tpu.memory_space<vmem>>, vector<1x32x32xbf16>
    %380 = vector.shape_cast %379 : vector<1x32x32xbf16> to vector<32x32xbf16>
    %cst_385 = arith.constant dense<0.000000e+00> : vector<4x32xf32>
    %381 = tpu.matmul %378, %380, %cst_385 {dimension_numbers = #tpu.dot_dimension_numbers<[1], [0], [0], [1], [0, 0, 1, 1], [], []>} : vector<4x32xbf16>, vector<32x32xbf16>, vector<4x32xf32> -> vector<4x32xf32>
    %c0_386 = arith.constant 0 : index
    %c1_387 = arith.constant 1 : index
    %c0_388 = arith.constant 0 : index
    %382 = vector.load %arg22[%c0_386, %c1_387, %c0_388] : memref<4x4x32xbf16, #tpu.memory_space<vmem>>, vector<2x2x32xbf16>
    %383 = vector.shape_cast %382 : vector<2x2x32xbf16> to vector<4x32xbf16>
    %c1_389 = arith.constant 1 : index
    %c0_390 = arith.constant 0 : index
    %c0_391 = arith.constant 0 : index
    %384 = vector.load %arg12[%c1_389, %c0_390, %c0_391] : memref<9x32x32xbf16, #tpu.memory_space<vmem>>, vector<1x32x32xbf16>
    %385 = vector.shape_cast %384 : vector<1x32x32xbf16> to vector<32x32xbf16>
    %cst_392 = arith.constant dense<0.000000e+00> : vector<4x32xf32>
    %386 = tpu.matmul %383, %385, %cst_392 {dimension_numbers = #tpu.dot_dimension_numbers<[1], [0], [0], [1], [0, 0, 1, 1], [], []>} : vector<4x32xbf16>, vector<32x32xbf16>, vector<4x32xf32> -> vector<4x32xf32>
    %387 = arith.addf %381, %386 : vector<4x32xf32>
    %c0_393 = arith.constant 0 : index
    %c2_394 = arith.constant 2 : index
    %c0_395 = arith.constant 0 : index
    %388 = vector.load %arg22[%c0_393, %c2_394, %c0_395] : memref<4x4x32xbf16, #tpu.memory_space<vmem>>, vector<2x2x32xbf16>
    %389 = vector.shape_cast %388 : vector<2x2x32xbf16> to vector<4x32xbf16>
    %c2_396 = arith.constant 2 : index
    %c0_397 = arith.constant 0 : index
    %c0_398 = arith.constant 0 : index
    %390 = vector.load %arg12[%c2_396, %c0_397, %c0_398] : memref<9x32x32xbf16, #tpu.memory_space<vmem>>, vector<1x32x32xbf16>
    %391 = vector.shape_cast %390 : vector<1x32x32xbf16> to vector<32x32xbf16>
    %cst_399 = arith.constant dense<0.000000e+00> : vector<4x32xf32>
    %392 = tpu.matmul %389, %391, %cst_399 {dimension_numbers = #tpu.dot_dimension_numbers<[1], [0], [0], [1], [0, 0, 1, 1], [], []>} : vector<4x32xbf16>, vector<32x32xbf16>, vector<4x32xf32> -> vector<4x32xf32>
    %393 = arith.addf %387, %392 : vector<4x32xf32>
    %c1_400 = arith.constant 1 : index
    %c0_401 = arith.constant 0 : index
    %c0_402 = arith.constant 0 : index
    %394 = vector.load %arg22[%c1_400, %c0_401, %c0_402] : memref<4x4x32xbf16, #tpu.memory_space<vmem>>, vector<2x2x32xbf16>
    %395 = vector.shape_cast %394 : vector<2x2x32xbf16> to vector<4x32xbf16>
    %c3_403 = arith.constant 3 : index
    %c0_404 = arith.constant 0 : index
    %c0_405 = arith.constant 0 : index
    %396 = vector.load %arg12[%c3_403, %c0_404, %c0_405] : memref<9x32x32xbf16, #tpu.memory_space<vmem>>, vector<1x32x32xbf16>
    %397 = vector.shape_cast %396 : vector<1x32x32xbf16> to vector<32x32xbf16>
    %cst_406 = arith.constant dense<0.000000e+00> : vector<4x32xf32>
    %398 = tpu.matmul %395, %397, %cst_406 {dimension_numbers = #tpu.dot_dimension_numbers<[1], [0], [0], [1], [0, 0, 1, 1], [], []>} : vector<4x32xbf16>, vector<32x32xbf16>, vector<4x32xf32> -> vector<4x32xf32>
    %399 = arith.addf %393, %398 : vector<4x32xf32>
    %c1_407 = arith.constant 1 : index
    %c1_408 = arith.constant 1 : index
    %c0_409 = arith.constant 0 : index
    %400 = vector.load %arg22[%c1_407, %c1_408, %c0_409] : memref<4x4x32xbf16, #tpu.memory_space<vmem>>, vector<2x2x32xbf16>
    %401 = vector.shape_cast %400 : vector<2x2x32xbf16> to vector<4x32xbf16>
    %c4_410 = arith.constant 4 : index
    %c0_411 = arith.constant 0 : index
    %c0_412 = arith.constant 0 : index
    %402 = vector.load %arg12[%c4_410, %c0_411, %c0_412] : memref<9x32x32xbf16, #tpu.memory_space<vmem>>, vector<1x32x32xbf16>
    %403 = vector.shape_cast %402 : vector<1x32x32xbf16> to vector<32x32xbf16>
    %cst_413 = arith.constant dense<0.000000e+00> : vector<4x32xf32>
    %404 = tpu.matmul %401, %403, %cst_413 {dimension_numbers = #tpu.dot_dimension_numbers<[1], [0], [0], [1], [0, 0, 1, 1], [], []>} : vector<4x32xbf16>, vector<32x32xbf16>, vector<4x32xf32> -> vector<4x32xf32>
    %405 = arith.addf %399, %404 : vector<4x32xf32>
    %c1_414 = arith.constant 1 : index
    %c2_415 = arith.constant 2 : index
    %c0_416 = arith.constant 0 : index
    %406 = vector.load %arg22[%c1_414, %c2_415, %c0_416] : memref<4x4x32xbf16, #tpu.memory_space<vmem>>, vector<2x2x32xbf16>
    %407 = vector.shape_cast %406 : vector<2x2x32xbf16> to vector<4x32xbf16>
    %c5_417 = arith.constant 5 : index
    %c0_418 = arith.constant 0 : index
    %c0_419 = arith.constant 0 : index
    %408 = vector.load %arg12[%c5_417, %c0_418, %c0_419] : memref<9x32x32xbf16, #tpu.memory_space<vmem>>, vector<1x32x32xbf16>
    %409 = vector.shape_cast %408 : vector<1x32x32xbf16> to vector<32x32xbf16>
    %cst_420 = arith.constant dense<0.000000e+00> : vector<4x32xf32>
    %410 = tpu.matmul %407, %409, %cst_420 {dimension_numbers = #tpu.dot_dimension_numbers<[1], [0], [0], [1], [0, 0, 1, 1], [], []>} : vector<4x32xbf16>, vector<32x32xbf16>, vector<4x32xf32> -> vector<4x32xf32>
    %411 = arith.addf %405, %410 : vector<4x32xf32>
    %c2_421 = arith.constant 2 : index
    %c0_422 = arith.constant 0 : index
    %c0_423 = arith.constant 0 : index
    %412 = vector.load %arg22[%c2_421, %c0_422, %c0_423] : memref<4x4x32xbf16, #tpu.memory_space<vmem>>, vector<2x2x32xbf16>
    %413 = vector.shape_cast %412 : vector<2x2x32xbf16> to vector<4x32xbf16>
    %c6_424 = arith.constant 6 : index
    %c0_425 = arith.constant 0 : index
    %c0_426 = arith.constant 0 : index
    %414 = vector.load %arg12[%c6_424, %c0_425, %c0_426] : memref<9x32x32xbf16, #tpu.memory_space<vmem>>, vector<1x32x32xbf16>
    %415 = vector.shape_cast %414 : vector<1x32x32xbf16> to vector<32x32xbf16>
    %cst_427 = arith.constant dense<0.000000e+00> : vector<4x32xf32>
    %416 = tpu.matmul %413, %415, %cst_427 {dimension_numbers = #tpu.dot_dimension_numbers<[1], [0], [0], [1], [0, 0, 1, 1], [], []>} : vector<4x32xbf16>, vector<32x32xbf16>, vector<4x32xf32> -> vector<4x32xf32>
    %417 = arith.addf %411, %416 : vector<4x32xf32>
    %c2_428 = arith.constant 2 : index
    %c1_429 = arith.constant 1 : index
    %c0_430 = arith.constant 0 : index
    %418 = vector.load %arg22[%c2_428, %c1_429, %c0_430] : memref<4x4x32xbf16, #tpu.memory_space<vmem>>, vector<2x2x32xbf16>
    %419 = vector.shape_cast %418 : vector<2x2x32xbf16> to vector<4x32xbf16>
    %c7_431 = arith.constant 7 : index
    %c0_432 = arith.constant 0 : index
    %c0_433 = arith.constant 0 : index
    %420 = vector.load %arg12[%c7_431, %c0_432, %c0_433] : memref<9x32x32xbf16, #tpu.memory_space<vmem>>, vector<1x32x32xbf16>
    %421 = vector.shape_cast %420 : vector<1x32x32xbf16> to vector<32x32xbf16>
    %cst_434 = arith.constant dense<0.000000e+00> : vector<4x32xf32>
    %422 = tpu.matmul %419, %421, %cst_434 {dimension_numbers = #tpu.dot_dimension_numbers<[1], [0], [0], [1], [0, 0, 1, 1], [], []>} : vector<4x32xbf16>, vector<32x32xbf16>, vector<4x32xf32> -> vector<4x32xf32>
    %423 = arith.addf %417, %422 : vector<4x32xf32>
    %c2_435 = arith.constant 2 : index
    %c2_436 = arith.constant 2 : index
    %c0_437 = arith.constant 0 : index
    %424 = vector.load %arg22[%c2_435, %c2_436, %c0_437] : memref<4x4x32xbf16, #tpu.memory_space<vmem>>, vector<2x2x32xbf16>
    %425 = vector.shape_cast %424 : vector<2x2x32xbf16> to vector<4x32xbf16>
    %c8_438 = arith.constant 8 : index
    %c0_439 = arith.constant 0 : index
    %c0_440 = arith.constant 0 : index
    %426 = vector.load %arg12[%c8_438, %c0_439, %c0_440] : memref<9x32x32xbf16, #tpu.memory_space<vmem>>, vector<1x32x32xbf16>
    %427 = vector.shape_cast %426 : vector<1x32x32xbf16> to vector<32x32xbf16>
    %cst_441 = arith.constant dense<0.000000e+00> : vector<4x32xf32>
    %428 = tpu.matmul %425, %427, %cst_441 {dimension_numbers = #tpu.dot_dimension_numbers<[1], [0], [0], [1], [0, 0, 1, 1], [], []>} : vector<4x32xbf16>, vector<32x32xbf16>, vector<4x32xf32> -> vector<4x32xf32>
    %429 = arith.addf %423, %428 : vector<4x32xf32>
    %c0_442 = arith.constant 0 : index
    %c0_443 = arith.constant 0 : index
    %430 = vector.load %arg13[%c0_442, %c0_443] : memref<1x32xf32, #tpu.memory_space<vmem>>, vector<1x32xf32>
    %431 = vector.broadcast %430 : vector<1x32xf32> to vector<4x32xf32>
    %432 = arith.addf %429, %431 : vector<4x32xf32>
    %cst_444 = arith.constant 2.000000e-01 : f32
    %433 = vector.broadcast %cst_444 : f32 to vector<4x32xf32>
    %434 = arith.mulf %433, %432 : vector<4x32xf32>
    %435 = arith.maximumf %432, %434 : vector<4x32xf32>
    %436 = vector.shape_cast %435 : vector<4x32xf32> to vector<2x2x32xf32>
    %c0_445 = arith.constant 0 : index
    %c0_446 = arith.constant 0 : index
    %c0_447 = arith.constant 0 : index
    %c0_448 = arith.constant 0 : index
    %437 = vector.load %arg17[%c0_445, %c0_446, %c0_447, %c0_448] : memref<1x2x2x32xf32, #tpu.memory_space<vmem>>, vector<1x2x2x32xf32>
    %438 = vector.shape_cast %437 : vector<1x2x2x32xf32> to vector<2x2x32xf32>
    %439 = vector.shape_cast %436 : vector<2x2x32xf32> to vector<1x2x2x32xf32>
    tpu.vector_store %arg17[%c0_445, %c0_446, %c0_447, %c0_448], %439 {strides = array<i32>} : memref<1x2x2x32xf32, #tpu.memory_space<vmem>>, vector<1x2x2x32xf32>,
    return
  }
  func.func @transform_0(%arg0: i32) -> (i32, i32, i32, i32) {
    %c0_i32 = arith.constant 0 : i32
    %c0_i32_0 = arith.constant 0 : i32
    %c0_i32_1 = arith.constant 0 : i32
    %c0_i32_2 = arith.constant 0 : i32
    return %arg0, %c0_i32, %c0_i32_0, %c0_i32_1 : i32, i32, i32, i32
  }
  func.func @transform_1(%arg0: i32) -> (i32, i32, i32) {
    %c0_i32 = arith.constant 0 : i32
    %c0_i32_0 = arith.constant 0 : i32
    %c0_i32_1 = arith.constant 0 : i32
    %c0_i32_2 = arith.constant 0 : i32
    return %c0_i32, %c0_i32_0, %c0_i32_1 : i32, i32, i32
  }
  func.func @transform_2(%arg0: i32) -> (i32, i32) {
    %c0_i32 = arith.constant 0 : i32
    %c0_i32_0 = arith.constant 0 : i32
    %c0_i32_1 = arith.constant 0 : i32
    return %c0_i32, %c0_i32_0 : i32, i32
  }
  func.func @transform_3(%arg0: i32) -> (i32, i32, i32) {
    %c0_i32 = arith.constant 0 : i32
    %c0_i32_0 = arith.constant 0 : i32
    %c0_i32_1 = arith.constant 0 : i32
    %c0_i32_2 = arith.constant 0 : i32
    return %c0_i32, %c0_i32_0, %c0_i32_1 : i32, i32, i32
  }
  func.func @transform_4(%arg0: i32) -> (i32, i32) {
    %c0_i32 = arith.constant 0 : i32
    %c0_i32_0 = arith.constant 0 : i32
    %c0_i32_1 = arith.constant 0 : i32
    return %c0_i32, %c0_i32_0 : i32, i32
  }
  func.func @transform_5(%arg0: i32) -> (i32, i32, i32) {
    %c0_i32 = arith.constant 0 : i32
    %c0_i32_0 = arith.constant 0 : i32
    %c0_i32_1 = arith.constant 0 : i32
    %c0_i32_2 = arith.constant 0 : i32
    return %c0_i32, %c0_i32_0, %c0_i32_1 : i32, i32, i32
  }
  func.func @transform_6(%arg0: i32) -> (i32, i32) {
    %c0_i32 = arith.constant 0 : i32
    %c0_i32_0 = arith.constant 0 : i32
    %c0_i32_1 = arith.constant 0 : i32
    return %c0_i32, %c0_i32_0 : i32, i32
  }
  func.func @transform_7(%arg0: i32) -> (i32, i32, i32) {
    %c0_i32 = arith.constant 0 : i32
    %c0_i32_0 = arith.constant 0 : i32
    %c0_i32_1 = arith.constant 0 : i32
    %c0_i32_2 = arith.constant 0 : i32
    return %c0_i32, %c0_i32_0, %c0_i32_1 : i32, i32, i32
  }
  func.func @transform_8(%arg0: i32) -> (i32, i32) {
    %c0_i32 = arith.constant 0 : i32
    %c0_i32_0 = arith.constant 0 : i32
    %c0_i32_1 = arith.constant 0 : i32
    return %c0_i32, %c0_i32_0 : i32, i32
  }
  func.func @transform_9(%arg0: i32) -> (i32, i32, i32) {
    %c0_i32 = arith.constant 0 : i32
    %c0_i32_0 = arith.constant 0 : i32
    %c0_i32_1 = arith.constant 0 : i32
    %c0_i32_2 = arith.constant 0 : i32
    return %c0_i32, %c0_i32_0, %c0_i32_1 : i32, i32, i32
  }
  func.func @transform_10(%arg0: i32) -> (i32, i32) {
    %c0_i32 = arith.constant 0 : i32
    %c0_i32_0 = arith.constant 0 : i32
    %c0_i32_1 = arith.constant 0 : i32
    return %c0_i32, %c0_i32_0 : i32, i32
  }
  func.func @transform_11(%arg0: i32) -> (i32, i32, i32) {
    %c0_i32 = arith.constant 0 : i32
    %c0_i32_0 = arith.constant 0 : i32
    %c0_i32_1 = arith.constant 0 : i32
    %c0_i32_2 = arith.constant 0 : i32
    return %c0_i32, %c0_i32_0, %c0_i32_1 : i32, i32, i32
  }
  func.func @transform_12(%arg0: i32) -> (i32, i32) {
    %c0_i32 = arith.constant 0 : i32
    %c0_i32_0 = arith.constant 0 : i32
    %c0_i32_1 = arith.constant 0 : i32
    return %c0_i32, %c0_i32_0 : i32, i32
  }
  func.func @transform_13(%arg0: i32) -> (i32, i32, i32, i32) {
    %c0_i32 = arith.constant 0 : i32
    %c0_i32_0 = arith.constant 0 : i32
    %c0_i32_1 = arith.constant 0 : i32
    %c0_i32_2 = arith.constant 0 : i32
    return %arg0, %c0_i32, %c0_i32_0, %c0_i32_1 : i32, i32, i32, i32
  }
  func.func @transform_14(%arg0: i32) -> (i32, i32, i32, i32) {
    %c0_i32 = arith.constant 0 : i32
    %c0_i32_0 = arith.constant 0 : i32
    %c0_i32_1 = arith.constant 0 : i32
    %c0_i32_2 = arith.constant 0 : i32
    return %arg0, %c0_i32, %c0_i32_0, %c0_i32_1 : i32, i32, i32, i32
  }
  func.func @transform_15(%arg0: i32) -> (i32, i32, i32, i32) {
    %c0_i32 = arith.constant 0 : i32
    %c0_i32_0 = arith.constant 0 : i32
    %c0_i32_1 = arith.constant 0 : i32
    %c0_i32_2 = arith.constant 0 : i32
    return %arg0, %c0_i32, %c0_i32_0, %c0_i32_1 : i32, i32, i32, i32
  }
  func.func @transform_16(%arg0: i32) -> (i32, i32, i32, i32) {
    %c0_i32 = arith.constant 0 : i32
    %c0_i32_0 = arith.constant 0 : i32
    %c0_i32_1 = arith.constant 0 : i32
    %c0_i32_2 = arith.constant 0 : i32
    return %arg0, %c0_i32, %c0_i32_0, %c0_i32_1 : i32, i32, i32, i32
  }
}

</mosaic_0001>

<bundles_post_ra>
// kernel: perceptual_forward.1
= control target key start
LH: loop header
LB: loop body
LE: loop exit
PB: predicated region body
PF: predicated region fallthrough
CT: control target
= control target key end

     0   :  { %s20656_s0 = inlined_call_operand.vmem [shape: bf16[2,18,18,4], index: 0, kind: input, shape index: {}]   ;;  %s20657_s1 = inlined_call_operand.vmem [shape: bf16[9,4,8], index: 1, kind: input, shape index: {}]   ;;  %s20658_s2 = inlined_call_operand.vmem [shape: f32[1,8], index: 2, kind: input, shape index: {}]   ;;  %s20659_s3 = inlined_call_operand.vmem [shape: bf16[9,8,16], index: 3, kind: input, shape index: {}]   ;;  %s20660_s4 = inlined_call_operand.vmem [shape: f32[1,16], index: 4, kind: input, shape index: {}]   ;;  %s20661_s5 = inlined_call_operand.vmem [shape: bf16[9,16,32], index: 5, kind: input, shape index: {}]   ;;  %s20662_s6 = inlined_call_operand.vmem [shape: f32[1,32], index: 6, kind: input, shape index: {}]   ;;  %s20663_s7 = inlined_call_operand.vmem [shape: bf16[9,32,32], index: 7, kind: input, shape index: {}]   ;;  %s20664_s8 = inlined_call_operand.vmem [shape: f32[1,32], index: 8, kind: input, shape index: {}]   ;;  %s20665_s9 = inlined_call_operand.vmem [shape: bf16[9,32,32], index: 9, kind: input, shape index: {}]   ;;  %s20666_s10 = inlined_call_operand.vmem [shape: f32[1,32], index: 10, kind: input, shape index: {}]   ;;  %s20667_s11 = inlined_call_operand.vmem [shape: bf16[9,32,32], index: 11, kind: input, shape index: {}]   ;;  %s20668_s12 = inlined_call_operand.vmem [shape: f32[1,32], index: 12, kind: input, shape index: {}]   ;;  %s20669_s13 = inlined_call_operand.vmem [shape: f32[2,8,8,8], index: 13, kind: output, shape index: {0}]   ;;  %s20670_s14 = inlined_call_operand.hbm [shape: f32[2,4,4,16], index: 14, kind: output, shape index: {1}]   ;;  %s20671_s15 = inlined_call_operand.hbm [shape: f32[2,2,2,32], index: 15, kind: output, shape index: {2}]   ;;  %s20672_s16 = inlined_call_operand.hbm [shape: f32[2,2,2,32], index: 16, kind: output, shape index: {3}]  }
   0x1   :  { %20692 = sst [smem:[#allocation65_spill]] %s20656_s0 }
   0x2   :  { %20693 = sst [smem:[#allocation66_spill]] %s20657_s1 }
   0x3   :  { %20694 = sst [smem:[#allocation67_spill]] %s20658_s2 }
   0x4   :  { %20695 = sst [smem:[#allocation68_spill]] %s20659_s3 }
   0x5   :  { %20696 = sst [smem:[#allocation69_spill]] %s20660_s4 }
   0x6   :  { %20697 = sst [smem:[#allocation70_spill]] %s20661_s5 }
   0x7   :  { %20698 = sst [smem:[#allocation71_spill]] %s20662_s6 }
   0x8   :  { %20699 = sst [smem:[#allocation72_spill]] %s20663_s7 }
   0x9   :  { %22 = vsyncpa [#allocation8], 0 }
   0xa   :  { %24 = vsyncpa [#allocation8 + $0x1], 0 }
   0xb   :  { %25 = vsyncpa [#allocation10], 0 }
   0xc   :  { %27 = vsyncpa [#allocation10 + $0x1], 0  ;;  %s16669_s21 = smov 0   ;;  %s16671_s22 = smov 0  }
   0xd   :  { %s16673_s23 = smov 0   ;;  %s16675_s24 = smov 0  }
   0xe LB: > { %20700 = sst [smem:[#allocation14_spill]] %s16566_s23  ;;  %s16690_s25 = sadd.s32 4294967295, %s16570_s24   ;;  %s16570_s24 = sphi %s16675_s24, %s20889_s24   ;;  %s16566_s23 = sphi %s16673_s23, %s20888_s23   ;;  %s16562_s22 = sphi %s16671_s22, %s20887_s22   ;;  %s16558_s21 = sphi %s16669_s21, %s20886_s21  }
   0xf   : > { %s20673_s26 = sadd.s32 4294967294, %s16570_s24   ;;  %s16694_s27 = sadd.s32 1, %s16570_s24  }
  0x10   : > { %s344_s28 = sadd.s32 1, %s16566_s23  ;;  %s341_s29 = ssub.s32 %s16570_s24, %s16694_s27 }
  0x11   : > { %p354_p0 = scmp.ne.s32.totalorder %s16566_s23, %s16562_s22  ;;  %p342_p1 = scmp.eq.s32.totalorder %s341_s29, 0 }
  0x12   : > { %p355_p2 = scmp.eq.s32.totalorder %s16690_s25, 1  ;;  %p360_p3 = scmp.ne.s32.totalorder %s16562_s22, %s16558_s21 }
  0x13   : > { %p361_p4 = scmp.eq.s32.totalorder %s20673_s26, 1  ;;  %p13950_p7 = scmp.ge.s32.totalorder %s16570_s24, 1 }
  0x14   : > { %s16707_s30 = scalar_select %p342_p1, %s16566_s23, %s344_s28  }
  0x15   : > { %p16709_p5 = por %p355_p2, %p354_p0  ;;  %p16713_p6 = por %p361_p4, %p360_p3 }
  0x16   : > { %20701 = sst [smem:[#allocation15_spill]] %s16707_s30  ;;  %p475_p8 = scmp.lt.s32.totalorder %s16570_s24, 3 }
  0x18   : > { %p476_p9 = pnand %p13950_p7, %p475_p8 }
  0x1a   : > { %479 = sbr.rel (%p476_p9) target bundleno = 2259 (0x8d3), region = 72 }
  0x1f   : > { %s20704_s1 = sld [smem:[#allocation66_spill]]  ;;  %vm1086_vm0 = vcmask 1041408   ;;  %p540_p10 = scmp.lt.s32.totalorder %s16690_s25, 1  ;;  %vm600_vm1 = vsmask.f32 3328  ;;  %vm1037_vm3 = vcmask 31744  }
  0x20   : > { %vm601_vm2 = vsmask.f32 7440  ;;  %s20705_s28 = sld [smem:[#allocation65_spill]]  ;;  %v20706_v36 = vmov 0  ;;  %vm1591_vm5 = vcmask 1042432   ;;  %vm1592_vm6 = vcmask 1046532  }
  0x21   : > { %s16731_s29 = scalar_select %p540_p10, %s16690_s25, 1  ;;  %vm16786_vm4 = vmor %vm600_vm1, %vm601_vm2  ;;  %vm6959_vm8 = vcmask 57344   ;;  %vm6957_vm9 = vcmask 60416   ;;  %vm6877_vm10 = vcmask 1041409   ;;  %vm6879_vm11 = vcmask 1042434  }
  0x22   : > { %v20707_v36 = vsel %vm16786_vm4, 4294967295, %v20706_v36  ;;  %vm17048_vm7 = vmor %vm1591_vm5, %vm1592_vm6  ;;  %s20830_s2 = sld [smem:[#allocation67_spill]]  ;;  %vm6881_vm12 = vcmask 1043459   ;;  %vm6883_vm13 = vcmask 1044484   ;;  %vm7443_vm14 = vsmask.f32 256 }
  0x23   : > { %s16253_s18 = smul.u32 216, %s16731_s29  ;;  %20708 = vst [vmem:[#allocation16_spill] sm:$0xff] %v20707_v36  ;;  %vm6885_vm15 = vcmask 1045509   ;;  %vm6889_vm1 = vcmask 1047559   ;;  %vm6948_vm2 = vcmask 64512   ;;  %s15180_s19 = sshll.u32 %s16731_s29, 6  ;;  %vm18934_vm5 = vmand %vm6959_vm8, %vm7443_vm14 }
  0x24   : > { %s20857_s3 = sld [smem:[#allocation68_spill]]  ;;  %s19837_s20 = sand.u32 1, %s16562_s22  }
  0x25   : > { %v13957_v0 = vld [vmem:[%s20704_s1 + $0x2] sm:$0x3]  ;;  %v583_v1 = vld [vmem:[%s20704_s1] sm:$0x3]  ;;  %v14038_v4 = vld [vmem:[%s20704_s1 + $0x4] sm:$0x3] }
  0x26   : > { %16235 = vmatprep.subr.msk.bf16.mxu0 %vm1086_vm0, %v13957_v0  ;;  %v1088_v2 = vsel %vm1086_vm0, %v13957_v0, 0  ;;  %16236 = vmatprep.subr.msk.bf16.mxu1 %vm1086_vm0, %v583_v1  ;;  %v1380_v3 = vsel %vm1086_vm0, %v583_v1, 0  ;;  %v14103_v5 = vld [vmem:[%s20704_s1 + $0x6] sm:$0x3]  ;;  %v16741_v6 = vsel %vm1086_vm0, %v14038_v4, 0  ;;  %s16758_s23 = scalar_lea.vmem %s20705_s28, %s16253_s18  ;;  %s18945_s28 = scalar_lea.vmem %s20669_s13, %s15180_s19 }
  0x27   : > { %15570 = vmatpush3.bf16.msra.mxu0 %v1088_v2  ;;  %15604 = vmatpush3.bf16.msra.mxu1 %v1380_v3  ;;  %v2164_v7 = vsel %vm1086_vm0, %v14103_v5, 0  ;;  %v16748_v8 = vld [vmem:[%s20704_s1 + $0x8] sm:$0x3]  ;;  %v551_v10 = vld [vmem:[%s16758_s23] sm:$0xf]  ;;  %s20863_s5 = sld [smem:[#allocation70_spill]] }
  0x28   : > { %16237 = vmatprep.subr.msk.bf16.mxu0 %vm1086_vm0, %v14038_v4  ;;  %16238 = vmatprep.subr.msk.bf16.mxu1 %vm1086_vm0, %v14103_v5  ;;  %v16753_v9 = vsel %vm1086_vm0, %v16748_v8, 0  ;;  %v16762_v11 = vld [vmem:[%s16758_s23 + $0x4] sm:$0xf]  ;;  %v16765_v12 = vld [vmem:[%s16758_s23 + $0x8] sm:$0x1]  ;;  %v604_v13 = vshrl.u32 %v551_v10, 16 }
  0x29   : > { %v607_v14 = vshll.u32 %v551_v10, 16  ;;  %v613_v15 = vshll.u32 %v16762_v11, 16  ;;  %v617_v16 = vshrl.u32 %v16762_v11, 16  ;;  %v553_v17 = vld [vmem:[%s16758_s23 + $0xc] sm:$0xf]  ;;  %v623_v18 = vshll.u32 %v16765_v12, 16 }
  0x2a   : > { %v1599_v19 = vrot.slane %v16765_v12, 5  ;;  %v13990_v20 = vcombine.low %v551_v10, %v16762_v11  ;;  %v16774_v21 = vld [vmem:[%s16758_s23 + $0x10] sm:$0xf]  ;;  %v16777_v22 = vld [vmem:[%s16758_s23 + $0x14] sm:$0x1]  ;;  %v606_v23 = vrot.slane %v604_v13, 4 }
  0x2b   : > { %v609_v24 = vrot.slane %v607_v14, 5  ;;  %v615_v25 = vrot.slane %v613_v15, 5  ;;  %v619_v26 = vrot.slane %v617_v16, 4  ;;  %v625_v27 = vrot.slane %v623_v18, 5  ;;  %v555_v35 = vld [vmem:[%s16758_s23 + $0x18] sm:$0xf] }
  0x2c   : > { %15605 = vmatprep.mubr.msk.bf16.mxu1 %vm1037_vm3, %v13990_v20  ;;  %v628_v28 = vshrl.u32 %v553_v17, 16  ;;  %v631_v29 = vshll.u32 %v553_v17, 16  ;;  %v637_v30 = vshll.u32 %v16774_v21, 16  ;;  %v641_v33 = vshrl.u32 %v16774_v21, 16  ;;  %v16792_v45 = vld [vmem:[%s16758_s23 + $0x1c] sm:$0xf] }
  0x2d   : > { %v610_v31 = vor.u32 %v609_v24, %v606_v23  ;;  %v620_v32 = vor.u32 %v619_v26, %v615_v25  ;;  %v647_v34 = vshll.u32 %v16777_v22, 16  ;;  %v1603_v40 = vrot.slane %v16774_v21, 5  ;;  %v16797_v49 = vld [vmem:[%s16758_s23 + $0x20] sm:$0x1]  ;;  %v557_v55 = vld [vmem:[%s16758_s23 + $0x24] sm:$0xf] }
  0x2e   : > { %v630_v37 = vrot.slane %v628_v28, 4  ;;  %v633_v38 = vrot.slane %v631_v29, 5  ;;  %v639_v39 = vrot.slane %v637_v30, 5  ;;  %v643_v43 = vrot.slane %v641_v33, 4  ;;  %v16809_v0 = vld [vmem:[%s16758_s23 + $0x28] sm:$0xf] }
  0x2f   : > { %v611_v41 = vrot.slane %v610_v31, 4  ;;  %v621_v42 = vrot.slane %v620_v32, 4  ;;  %v649_v44 = vrot.slane %v647_v34, 5  ;;  %v1606_v47 = vrot.slane %v16777_v22, 5  ;;  %v16816_v4 = vld [vmem:[%s16758_s23 + $0x2c] sm:$0x1] }
  0x30   : > { %v634_v46 = vor.u32 %v633_v38, %v630_v37  ;;  %v13991_v48 = vcombine.low %v553_v17, %v16774_v21  ;;  %v652_v50 = vshrl.u32 %v555_v35, 16  ;;  %v644_v53 = vor.u32 %v643_v43, %v639_v39  ;;  %v16831_v31 = vld [vmem:[%s16758_s23 + $0x38] sm:$0x1]  ;;  %s20864_s4 = sld [smem:[#allocation69_spill]]  ;;  %s13951_s26 = sshll.u32 %s19837_s20, 4 }
  0x31   : > { %v616_v51 = vsel %vm16786_vm4, %v611_v41, %v615_v25  ;;  %v626_v52 = vsel %vm16786_vm4, %v621_v42, %v625_v27  ;;  %v655_v54 = vshll.u32 %v555_v35, 16  ;;  %v661_v59 = vshll.u32 %v16792_v45, 16  ;;  %v16826_v27 = vld [vmem:[%s16758_s23 + $0x34] sm:$0xf]  ;;  %s20873_s7 = sld [smem:[#allocation72_spill]]  ;;  %s20689_s29 = sshll.u32 %s19837_s20, 2 }
  0x32   : > { %v13958_v56 = vcombine.low %v616_v51, %v626_v52  ;;  %v635_v57 = vrot.slane %v634_v46, 4  ;;  %15606 = vmatmul.mubr.msk.bf16.vlgmr.msra.gmra.mxu1 %vm1037_vm3, %v13991_v48  ;;  %v654_v58 = vrot.slane %v652_v50, 4  ;;  %v645_v60 = vrot.slane %v644_v53, 4  ;;  %v561_v48 = vld [vmem:[%s16758_s23 + $0x3c] sm:$0xf]  ;;  %s20874_s6 = sld [smem:[#allocation71_spill]] }
  0x33   : > { %v657_v61 = vrot.slane %v655_v54, 5  ;;  %v665_v62 = vshrl.u32 %v16792_v45, 16  ;;  %v671_v63 = vshll.u32 %v16797_v49, 16  ;;  %15672 = vmatpush3.bf16.msra.mxu1 %v2164_v7  ;;  %v663_v2 = vrot.slane %v661_v59, 5  ;;  %v559_v7 = vld [vmem:[%s16758_s23 + $0x30] sm:$0xf] }
  0x34   : > { %15571 = vmatprep.mubr.msk.bf16.mxu0 %vm1037_vm3, %v13958_v56  ;;  %v640_v1 = vsel %vm16786_vm4, %v635_v57, %v639_v39  ;;  %v13992_v3 = vcombine.low %v555_v35, %v16792_v45  ;;  %v676_v5 = vshrl.u32 %v557_v55, 16  ;;  %v650_v10 = vsel %vm16786_vm4, %v645_v60, %v649_v44  ;;  %v16846_v54 = vld [vmem:[%s16758_s23 + $0x40] sm:$0xf]  ;;  %v16853_v60 = vld [vmem:[%s16758_s23 + $0x44] sm:$0x1]  ;;  %s13745_s18 = sand.u32 1, %s16690_s25  }
  0x35   : > { %v658_v13 = vor.u32 %v657_v61, %v654_v58  ;;  %v667_v14 = vrot.slane %v665_v62, 4  ;;  %v673_v15 = vrot.slane %v671_v63, 5  ;;  %v13959_v16 = vcombine.low %v640_v1, %v650_v10 }
  0x36   : > { %15609 = vmatprep.mubr.msk.bf16.mxu1 %vm1037_vm3, %v13992_v3  ;;  %v678_v17 = vrot.slane %v676_v5, 4  ;;  %v679_v18 = vshll.u32 %v557_v55, 16  ;;  %v685_v20 = vshll.u32 %v16809_v0, 16  ;;  %v689_v25 = vshrl.u32 %v16809_v0, 16  ;;  %v563_v5 = vld [vmem:[%s16758_s23 + $0x48] sm:$0xf] }
  0x37   : > { %v659_v23 = vrot.slane %v658_v13, 4  ;;  %v668_v24 = vor.u32 %v667_v14, %v663_v2  ;;  %v695_v26 = vshll.u32 %v16816_v4, 16  ;;  %15572 = vmatmul.mubr.msk.bf16.vlgmr.msra.gmra.mxu0 %vm1037_vm3, %v13959_v16  ;;  %v13993_v30 = vcombine.low %v557_v55, %v16809_v0 }
  0x38   : > { %v681_v28 = vrot.slane %v679_v18, 5  ;;  %v687_v29 = vrot.slane %v685_v20, 5  ;;  %v700_v32 = vshrl.u32 %v559_v7, 16  ;;  %15638 = vmatpush3.bf16.msra.mxu0 %v16741_v6  ;;  %v691_v35 = vrot.slane %v689_v25, 4  ;;  %v16863_v20 = vld [vmem:[%s16758_s23 + $0x4c] sm:$0xf] }
  0x39   : > { %v664_v33 = vsel %vm16786_vm4, %v659_v23, %v663_v2  ;;  %v669_v34 = vrot.slane %v668_v24, 4  ;;  %v697_v37 = vrot.slane %v695_v26, 5  ;;  %v703_v41 = vshll.u32 %v559_v7, 16  ;;  %16239 = vmatprep.subr.msk.bf16.mxu0 %vm1086_vm0, %v16748_v8  ;;  %v16870_v26 = vld [vmem:[%s16758_s23 + $0x50] sm:$0x1] }
  0x3a   : > { %v682_v38 = vor.u32 %v681_v28, %v678_v17  ;;  %15610 = vmatmul.mubr.msk.bf16.gmra.mxu1 %vm1037_vm3, %v13993_v30  ;;  %v702_v39 = vrot.slane %v700_v32, 4  ;;  %v709_v42 = vshll.u32 %v16826_v27, 16  ;;  %v692_v43 = vor.u32 %v691_v35, %v687_v29 }
  0x3b   : > { %v674_v6 = vsel %vm16786_vm4, %v669_v34, %v673_v15  ;;  %v713_v44 = vshrl.u32 %v16826_v27, 16  ;;  %v719_v46 = vshll.u32 %v16831_v31, 16  ;;  %v705_v52 = vrot.slane %v703_v41, 5  ;;  %v565_v34 = vld [vmem:[%s16758_s23 + $0x54] sm:$0xf] }
  0x3c   : > { %v13960_v50 = vcombine.low %v664_v33, %v674_v6  ;;  %v683_v51 = vrot.slane %v682_v38, 4  ;;  %v711_v53 = vrot.slane %v709_v42, 5  ;;  %v693_v55 = vrot.slane %v692_v43, 4 }
  0x3d   : > { %v715_v56 = vrot.slane %v713_v44, 4  ;;  %v721_v8 = vrot.slane %v719_v46, 5  ;;  %v13994_v57 = vcombine.low %v559_v7, %v16826_v27  ;;  %v706_v59 = vor.u32 %v705_v52, %v702_v39  ;;  %v16880_v44 = vld [vmem:[%s16758_s23 + $0x58] sm:$0xf] }
  0x3e   : > { %15575 = vmatprep.mubr.msk.bf16.mxu0 %vm1037_vm3, %v13960_v50  ;;  %v688_v58 = vsel %vm16786_vm4, %v683_v51, %v687_v29  ;;  %v724_v61 = vshrl.u32 %v561_v48, 16  ;;  %v727_v62 = vshll.u32 %v561_v48, 16  ;;  %v698_v63 = vsel %vm16786_vm4, %v693_v55, %v697_v37  ;;  %v16887_v51 = vld [vmem:[%s16758_s23 + $0x5c] sm:$0x1] }
  0x3f   : > { %v716_v1 = vor.u32 %v715_v56, %v711_v53  ;;  %15613 = vmatprep.mubr.msk.bf16.mxu1 %vm1037_vm3, %v13994_v57  ;;  %v733_v2 = vshll.u32 %v16846_v54, 16  ;;  %v737_v3 = vshrl.u32 %v16846_v54, 16  ;;  %v13961_v10 = vcombine.low %v688_v58, %v698_v63  ;;  %v567_v57 = vld [vmem:[%s16758_s23 + $0x60] sm:$0xf] }
  0x40   : > { %v707_v13 = vrot.slane %v706_v59, 4  ;;  %v726_v14 = vrot.slane %v724_v61, 4  ;;  %v729_v15 = vrot.slane %v727_v62, 5  ;;  %v743_v18 = vshll.u32 %v16853_v60, 16 }
  0x41   : > { %v717_v7 = vrot.slane %v716_v1, 4  ;;  %v735_v16 = vrot.slane %v733_v2, 5  ;;  %v739_v17 = vrot.slane %v737_v3, 4  ;;  %15576 = vmatmul.mubr.msk.bf16.gmra.mxu0 %vm1037_vm3, %v13961_v10  ;;  %v13995_v25 = vcombine.low %v561_v48, %v16846_v54 }
  0x42   : > { %v712_v23 = vsel %vm16786_vm4, %v707_v13, %v711_v53  ;;  %v730_v24 = vor.u32 %v729_v15, %v726_v14  ;;  %v748_v28 = vshrl.u32 %v563_v5, 16  ;;  %v745_v32 = vrot.slane %v743_v18, 5  ;;  %v16902_v15 = vld [vmem:[%s16758_s23 + $0x68] sm:$0x1] }
  0x43   : > { %v722_v29 = vsel %vm16786_vm4, %v717_v7, %v721_v8  ;;  %v740_v30 = vor.u32 %v739_v17, %v735_v16  ;;  %v751_v33 = vshll.u32 %v563_v5, 16  ;;  %15614 = vmatmul.mubr.msk.bf16.gmra.mxu1 %vm1037_vm3, %v13995_v25  ;;  %v757_v39 = vshll.u32 %v16863_v20, 16 }
  0x44   : > { %v13962_v35 = vcombine.low %v712_v23, %v722_v29  ;;  %v731_v37 = vrot.slane %v730_v24, 4  ;;  %v750_v38 = vrot.slane %v748_v28, 4  ;;  %v761_v6 = vshrl.u32 %v16863_v20, 16  ;;  %v569_v24 = vld [vmem:[%s16758_s23 + $0x6c] sm:$0xf] }
  0x45   : > { %v741_v41 = vrot.slane %v740_v30, 4  ;;  %v753_v42 = vrot.slane %v751_v33, 5  ;;  %v767_v43 = vshll.u32 %v16870_v26, 16  ;;  %v759_v48 = vrot.slane %v757_v39, 5 }
  0x46   : > { %15579 = vmatprep.mubr.msk.bf16.mxu0 %vm1037_vm3, %v13962_v35  ;;  %v736_v46 = vsel %vm16786_vm4, %v731_v37, %v735_v16  ;;  %v13996_v50 = vcombine.low %v563_v5, %v16863_v20  ;;  %v772_v52 = vshrl.u32 %v565_v34, 16  ;;  %v763_v56 = vrot.slane %v761_v6, 4  ;;  %v16897_v5 = vld [vmem:[%s16758_s23 + $0x64] sm:$0xf]  ;;  %v16917_v6 = vld [vmem:[%s16758_s23 + $0x74] sm:$0x1] }
  0x47   : > { %v746_v53 = vsel %vm16786_vm4, %v741_v41, %v745_v32  ;;  %v754_v55 = vor.u32 %v753_v42, %v750_v38  ;;  %v769_v8 = vrot.slane %v767_v43, 5  ;;  %v775_v61 = vshll.u32 %v565_v34, 16  ;;  %v16910_v32 = vld [vmem:[%s16758_s23 + $0x70] sm:$0xf] }
  0x48   : > { %v13963_v58 = vcombine.low %v736_v46, %v746_v53  ;;  %15617 = vmatprep.mubr.msk.bf16.mxu1 %vm1037_vm3, %v13996_v50  ;;  %v774_v59 = vrot.slane %v772_v52, 4  ;;  %v781_v62 = vshll.u32 %v16880_v44, 16  ;;  %v764_v1 = vor.u32 %v763_v56, %v759_v48  ;;  %v571_v52 = vld [vmem:[%s16758_s23 + $0x78] sm:$0xf] }
  0x49   : > { %v755_v63 = vrot.slane %v754_v55, 4  ;;  %v785_v2 = vshrl.u32 %v16880_v44, 16  ;;  %v791_v3 = vshll.u32 %v16887_v51, 16  ;;  %v777_v10 = vrot.slane %v775_v61, 5 }
  0x4a   : > { %15580 = vmatmul.mubr.msk.bf16.gmra.mxu0 %vm1037_vm3, %v13963_v58  ;;  %v783_v13 = vrot.slane %v781_v62, 5  ;;  %v13997_v14 = vcombine.low %v565_v34, %v16880_v44  ;;  %v796_v7 = vshrl.u32 %v567_v57, 16  ;;  %v765_v17 = vrot.slane %v764_v1, 4  ;;  %v16930_v62 = vld [vmem:[%s16758_s23 + $0x7c] sm:$0xf] }
  0x4b   : > { %v760_v16 = vsel %vm16786_vm4, %v755_v63, %v759_v48  ;;  %v787_v18 = vrot.slane %v785_v2, 4  ;;  %v793_v23 = vrot.slane %v791_v3, 5  ;;  %v778_v25 = vor.u32 %v777_v10, %v774_v59  ;;  %v16933_v10 = vld [vmem:[%s16758_s23 + $0x80] sm:$0x1] }
  0x4c   : > { %15618 = vmatmul.mubr.msk.bf16.gmra.mxu1 %vm1037_vm3, %v13997_v14  ;;  %v798_v28 = vrot.slane %v796_v7, 4  ;;  %v799_v29 = vshll.u32 %v567_v57, 16  ;;  %v805_v30 = vshll.u32 %v16897_v5, 16  ;;  %v770_v33 = vsel %vm16786_vm4, %v765_v17, %v769_v8  ;;  %v573_v17 = vld [vmem:[%s16758_s23 + $0x84] sm:$0xf] }
  0x4d   : > { %v788_v34 = vor.u32 %v787_v18, %v783_v13  ;;  %v809_v35 = vshrl.u32 %v16897_v5, 16  ;;  %v815_v37 = vshll.u32 %v16902_v15, 16  ;;  %v13964_v38 = vcombine.low %v760_v16, %v770_v33 }
  0x4e   : > { %v779_v39 = vrot.slane %v778_v25, 4  ;;  %v801_v41 = vrot.slane %v799_v29, 5  ;;  %v807_v42 = vrot.slane %v805_v30, 5  ;;  %v13998_v50 = vcombine.low %v567_v57, %v16897_v5 }
  0x4f   : > { %v789_v43 = vrot.slane %v788_v34, 4  ;;  %v811_v46 = vrot.slane %v809_v35, 4  ;;  %v817_v48 = vrot.slane %v815_v37, 5  ;;  %15583 = vmatprep.mubr.msk.bf16.mxu0 %vm1037_vm3, %v13964_v38  ;;  %v820_v56 = vshrl.u32 %v569_v24, 16  ;;  %v16944_v35 = vld [vmem:[%s16758_s23 + $0x88] sm:$0xf] }
  0x50   : > { %v784_v53 = vsel %vm16786_vm4, %v779_v39, %v783_v13  ;;  %v802_v55 = vor.u32 %v801_v41, %v798_v28  ;;  %v823_v8 = vshll.u32 %v569_v24, 16  ;;  %15621 = vmatprep.mubr.msk.bf16.mxu1 %vm1037_vm3, %v13998_v50  ;;  %v829_v61 = vshll.u32 %v16910_v32, 16  ;;  %v575_v50 = vld [vmem:[%s16758_s23 + $0x90] sm:$0xf] }
  0x51   : > { %v794_v58 = vsel %vm16786_vm4, %v789_v43, %v793_v23  ;;  %v812_v59 = vor.u32 %v811_v46, %v807_v42  ;;  %v833_v57 = vshrl.u32 %v16910_v32, 16  ;;  %v822_v2 = vrot.slane %v820_v56, 4 }
  0x52   : > { %v13965_v63 = vcombine.low %v784_v53, %v794_v58  ;;  %v803_v1 = vrot.slane %v802_v55, 4  ;;  %v825_v3 = vrot.slane %v823_v8, 5  ;;  %v831_v14 = vrot.slane %v829_v61, 5 }
  0x53   : > { %v813_v13 = vrot.slane %v812_v59, 4  ;;  %v835_v7 = vrot.slane %v833_v57, 4  ;;  %v839_v16 = vshll.u32 %v16917_v6, 16  ;;  %v13999_v25 = vcombine.low %v569_v24, %v16910_v32 }
  0x54   : > { %15584 = vmatmul.mubr.msk.bf16.gmra.mxu0 %vm1037_vm3, %v13965_v63  ;;  %v808_v18 = vsel %vm16786_vm4, %v803_v1, %v807_v42  ;;  %v826_v23 = vor.u32 %v825_v3, %v822_v2  ;;  %v844_v28 = vshrl.u32 %v571_v52, 16  ;;  %v847_v34 = vshll.u32 %v571_v52, 16  ;;  %v16949_v42 = vld [vmem:[%s16758_s23 + $0x8c] sm:$0x1] }
  0x55   : > { %v818_v29 = vsel %vm16786_vm4, %v813_v13, %v817_v48  ;;  %v836_v30 = vor.u32 %v835_v7, %v831_v14  ;;  %v841_v33 = vrot.slane %v839_v16, 5  ;;  %15622 = vmatmul.mubr.msk.bf16.gmra.mxu1 %vm1037_vm3, %v13999_v25  ;;  %v853_v41 = vshll.u32 %v16930_v62, 16  ;;  %v16963_v13 = vld [vmem:[%s16758_s23 + $0x94] sm:$0xf] }
  0x56   : > { %v13966_v37 = vcombine.low %v808_v18, %v818_v29  ;;  %v827_v38 = vrot.slane %v826_v23, 4  ;;  %v846_v39 = vrot.slane %v844_v28, 4  ;;  %v849_v43 = vrot.slane %v847_v34, 5  ;;  %v16968_v18 = vld [vmem:[%s16758_s23 + $0x98] sm:$0x1] }
  0x57   : > { %v837_v24 = vrot.slane %v836_v30, 4  ;;  %v857_v46 = vshrl.u32 %v16930_v62, 16  ;;  %v863_v48 = vshll.u32 %v16933_v10, 16  ;;  %v855_v55 = vrot.slane %v853_v41, 5 }
  0x58   : > { %15587 = vmatprep.mubr.msk.bf16.mxu0 %vm1037_vm3, %v13966_v37  ;;  %v832_v53 = vsel %vm16786_vm4, %v827_v38, %v831_v14  ;;  %v14000_v56 = vcombine.low %v571_v52, %v16930_v62  ;;  %v868_v8 = vshrl.u32 %v573_v17, 16  ;;  %v850_v59 = vor.u32 %v849_v43, %v846_v39  ;;  %v577_v38 = vld [vmem:[%s16758_s23 + $0x9c] sm:$0xf] }
  0x59   : > { %v842_v58 = vsel %vm16786_vm4, %v837_v24, %v841_v33  ;;  %v859_v61 = vrot.slane %v857_v46, 4  ;;  %v865_v57 = vrot.slane %v863_v48, 5  ;;  %v871_v2 = vshll.u32 %v573_v17, 16 }
  0x5a   : > { %v13967_v63 = vcombine.low %v832_v53, %v842_v58  ;;  %15625 = vmatprep.mubr.msk.bf16.mxu1 %vm1037_vm3, %v14000_v56  ;;  %v870_v1 = vrot.slane %v868_v8, 4  ;;  %v877_v3 = vshll.u32 %v16944_v35, 16  ;;  %v851_v14 = vrot.slane %v850_v59, 4 }
  0x5b   : > { %v860_v52 = vor.u32 %v859_v61, %v855_v55  ;;  %v881_v7 = vshrl.u32 %v16944_v35, 16  ;;  %v887_v16 = vshll.u32 %v16949_v42, 16  ;;  %v873_v23 = vrot.slane %v871_v2, 5  ;;  %v16985_v61 = vld [vmem:[%s16758_s23 + $0xa4] sm:$0x1] }
  0x5c   : > { %15588 = vmatmul.mubr.msk.bf16.gmra.mxu0 %vm1037_vm3, %v13967_v63  ;;  %v879_v25 = vrot.slane %v877_v3, 5  ;;  %v14001_v28 = vcombine.low %v573_v17, %v16944_v35  ;;  %v892_v29 = vshrl.u32 %v575_v50, 16  ;;  %v856_v30 = vsel %vm16786_vm4, %v851_v14, %v855_v55  ;;  %v16982_v55 = vld [vmem:[%s16758_s23 + $0xa0] sm:$0xf] }
  0x5d   : > { %v861_v33 = vrot.slane %v860_v52, 4  ;;  %v883_v34 = vrot.slane %v881_v7, 4  ;;  %v889_v37 = vrot.slane %v887_v16, 5  ;;  %v874_v39 = vor.u32 %v873_v23, %v870_v1 }
  0x5e   : > { %15626 = vmatmul.mubr.msk.bf16.gmra.mxu1 %vm1037_vm3, %v14001_v28  ;;  %v894_v41 = vrot.slane %v892_v29, 4  ;;  %v895_v24 = vshll.u32 %v575_v50, 16  ;;  %v901_v43 = vshll.u32 %v16963_v13, 16  ;;  %v905_v48 = vshrl.u32 %v16963_v13, 16 }
  0x5f   : > { %v866_v17 = vsel %vm16786_vm4, %v861_v33, %v865_v57  ;;  %v884_v46 = vor.u32 %v883_v34, %v879_v25  ;;  %v911_v53 = vshll.u32 %v16968_v18, 16  ;;  %v875_v8 = vrot.slane %v874_v39, 4  ;;  %v579_v57 = vld [vmem:[%s16758_s23 + $0xa8] sm:$0xf] }
  0x60   : > { %v13968_v56 = vcombine.low %v856_v30, %v866_v17  ;;  %v897_v58 = vrot.slane %v895_v24, 5  ;;  %v903_v59 = vrot.slane %v901_v43, 5  ;;  %v907_v1 = vrot.slane %v905_v48, 4  ;;  %v16998_v30 = vld [vmem:[%s16758_s23 + $0xac] sm:$0xf] }
  0x61   : > { %v885_v63 = vrot.slane %v884_v46, 4  ;;  %v913_v2 = vrot.slane %v911_v53, 5  ;;  %v14002_v3 = vcombine.low %v575_v50, %v16963_v13  ;;  %v880_v14 = vsel %vm16786_vm4, %v875_v8, %v879_v25  ;;  %v581_v46 = vld [vmem:[%s16758_s23 + $0xb4] sm:$0xf] }
  0x62   : > { %15591 = vmatprep.mubr.msk.bf16.mxu0 %vm1037_vm3, %v13968_v56  ;;  %v898_v52 = vor.u32 %v897_v58, %v894_v41  ;;  %v916_v7 = vshrl.u32 %v577_v38, 16  ;;  %v919_v16 = vshll.u32 %v577_v38, 16  ;;  %v908_v28 = vor.u32 %v907_v1, %v903_v59  ;;  %v17001_v41 = vld [vmem:[%s16758_s23 + $0xb0] sm:$0x1] }
  0x63   : > { %v890_v23 = vsel %vm16786_vm4, %v885_v63, %v889_v37  ;;  %15629 = vmatprep.mubr.msk.bf16.mxu1 %vm1037_vm3, %v14002_v3  ;;  %v925_v29 = vshll.u32 %v16982_v55, 16  ;;  %v929_v50 = vshrl.u32 %v16982_v55, 16  ;;  %v935_v17 = vshll.u32 %v16985_v61, 16 }
  0x64   : > { %v13969_v33 = vcombine.low %v880_v14, %v890_v23  ;;  %v899_v34 = vrot.slane %v898_v52, 4  ;;  %v918_v39 = vrot.slane %v916_v7, 4  ;;  %v921_v25 = vrot.slane %v919_v16, 5  ;;  %v17012_v14 = vld [vmem:[%s16758_s23 + $0xb8] sm:$0xf] }
  0x65   : > { %v909_v37 = vrot.slane %v908_v28, 4  ;;  %v927_v24 = vrot.slane %v925_v29, 5  ;;  %v931_v43 = vrot.slane %v929_v50, 4  ;;  %v14003_v56 = vcombine.low %v577_v38, %v16982_v55  ;;  %v17017_v23 = vld [vmem:[%s16758_s23 + $0xbc] sm:$0x1] }
  0x66   : > { %15592 = vmatmul.mubr.msk.bf16.gmra.mxu0 %vm1037_vm3, %v13969_v33  ;;  %v904_v48 = vsel %vm16786_vm4, %v899_v34, %v903_v59  ;;  %v922_v53 = vor.u32 %v921_v25, %v918_v39  ;;  %v940_v8 = vshrl.u32 %v579_v57, 16  ;;  %v937_v1 = vrot.slane %v935_v17, 5  ;;  %v1543_v50 = vld [vmem:[%s16758_s23] sm:$0xe] }
  0x67   : > { %v914_v58 = vsel %vm16786_vm4, %v909_v37, %v913_v2  ;;  %v932_v63 = vor.u32 %v931_v43, %v927_v24  ;;  %v943_v3 = vshll.u32 %v579_v57, 16  ;;  %15630 = vmatmul.mubr.msk.bf16.gmra.mxu1 %vm1037_vm3, %v14003_v56  ;;  %v949_v59 = vshll.u32 %v16998_v30, 16 }
  0x68   : > { %v13970_v52 = vcombine.low %v904_v48, %v914_v58  ;;  %v923_v7 = vrot.slane %v922_v53, 4  ;;  %v942_v16 = vrot.slane %v940_v8, 4  ;;  %v953_v29 = vshrl.u32 %v16998_v30, 16  ;;  %v17031_v53 = vld [vmem:[%s20704_s1 + $0xa] sm:$0x3] }
  0x69   : > { %v933_v38 = vrot.slane %v932_v63, 4  ;;  %v945_v28 = vrot.slane %v943_v3, 5  ;;  %v959_v2 = vshll.u32 %v17001_v41, 16  ;;  %v951_v34 = vrot.slane %v949_v59, 5  ;;  %16240 = vmatprep.subr.msk.bf16.mxu1 %vm1086_vm0, %v17031_v53 }
  0x6a   : > { %15595 = vmatprep.mubr.msk.bf16.mxu0 %vm1037_vm3, %v13970_v52  ;;  %v928_v33 = vsel %vm16786_vm4, %v923_v7, %v927_v24  ;;  %v14004_v39 = vcombine.low %v579_v57, %v16998_v30  ;;  %v964_v25 = vshrl.u32 %v581_v46, 16  ;;  %v955_v17 = vrot.slane %v953_v29, 4  ;;  %v1544_v52 = vld [vmem:[%s16758_s23 + $0xc] sm:$0xe]  ;;  %v1545_v29 = vld [vmem:[%s16758_s23 + $0x18] sm:$0xe] }
  0x6b   : > { %v938_v37 = vsel %vm16786_vm4, %v933_v38, %v937_v1  ;;  %v946_v43 = vor.u32 %v945_v28, %v942_v16  ;;  %v961_v48 = vrot.slane %v959_v2, 5  ;;  %v967_v57 = vshll.u32 %v581_v46, 16  ;;  %v16328_v7 = vld [vmem:[%s16758_s23 + $0xc] sm:$0xff]  }
  0x6c   : > { %v13971_v56 = vcombine.low %v928_v33, %v938_v37  ;;  %15633 = vmatprep.mubr.msk.bf16.mxu1 %vm1037_vm3, %v14004_v39  ;;  %v966_v24 = vrot.slane %v964_v25, 4  ;;  %v973_v8 = vshll.u32 %v17012_v14, 16  ;;  %v956_v63 = vor.u32 %v955_v17, %v951_v34 }
  0x6d   : > { %v947_v58 = vrot.slane %v946_v43, 4  ;;  %v977_v1 = vshrl.u32 %v17012_v14, 16  ;;  %v983_v3 = vshll.u32 %v17017_v23, 16  ;;  %v969_v16 = vrot.slane %v967_v57, 5 }
  0x6e   : > { %15596 = vmatmul.mubr.msk.bf16.gmra.mxu0 %vm1037_vm3, %v13971_v56  ;;  %v975_v59 = vrot.slane %v973_v8, 5  ;;  %v14005_v38 = vcombine.low %v581_v46, %v17012_v14  ;;  %v14022_v28 = vrot.slane %v1543_v50, 9  ;;  %v957_v33 = vrot.slane %v956_v63, 4 }
  0x6f   : > { %v952_v2 = vsel %vm16786_vm4, %v947_v58, %v951_v34  ;;  %v979_v39 = vrot.slane %v977_v1, 4  ;;  %v985_v25 = vrot.slane %v983_v3, 5  ;;  %v20709_v37 = vmov 0  ;;  %v1546_v1 = vld [vmem:[%s16758_s23 + $0x24] sm:$0xe] }
  0x70   : > { %v20710_v37 = vsel %vm17048_vm7, 4294967295, %v20709_v37  ;;  %v970_v43 = vor.u32 %v969_v16, %v966_v24  ;;  %15634 = vmatmul.mubr.msk.bf16.gmra.mxu1 %vm1037_vm3, %v14005_v38  ;;  %v1596_v46 = vrot.slane %v16762_v11, 5  ;;  %v14023_v50 = vrot.slane %v1544_v52, 9  ;;  %v1548_v38 = vld [vmem:[%s16758_s23 + $0x3c] sm:$0xe] }
  0x71   : > { %20711 = vst [vmem:[#allocation17_spill] sm:$0xff] %v20710_v37  ;;  %v1605_v34 = vrot.slane %v1603_v40, 4  ;;  %v962_v17 = vsel %vm16786_vm4, %v957_v33, %v961_v48  ;;  %v980_v56 = vor.u32 %v979_v39, %v975_v59  ;;  %15673 = vmatprep.mubr.msk.bf16.mxu1 %vm1037_vm3, %v16328_v7  ;;  %v14024_v57 = vrot.slane %v1545_v29, 9  ;;  %v1547_v7 = vld [vmem:[%s16758_s23 + $0x30] sm:$0xe]  ;;  %v16330_v39 = vld [vmem:[%s16758_s23 + $0x24] sm:$0xff]  }
  0x72   : > { %v1610_v8 = vrot.slane %v16792_v45, 5  ;;  %v13972_v24 = vcombine.low %v952_v2, %v962_v17  ;;  %v971_v58 = vrot.slane %v970_v43, 4  ;;  %v1597_v11 = vsel %vm17048_vm7, %v14022_v28, %v1596_v46 }
  0x73   : > { %v1598_v63 = vrot.slane %v1596_v46, 4  ;;  %v981_v3 = vrot.slane %v980_v56, 4  ;;  %v17067_v48 = vsel %vm17048_vm7, %v14023_v50, %v1603_v40  ;;  %v17073_v45 = vsel %vm17048_vm7, %v1605_v34, %v1606_v47  ;;  %v16329_v47 = vld [vmem:[%s16758_s23 + $0x18] sm:$0xff]   ;;  %v1549_v46 = vld [vmem:[%s16758_s23 + $0x48] sm:$0xe] }
  0x74   : > { %v17077_v52 = vsel %vm17048_vm7, %v14024_v57, %v1610_v8  ;;  %15599 = vmatprep.mubr.msk.bf16.mxu0 %vm1037_vm3, %v13972_v24  ;;  %v976_v21 = vsel %vm16786_vm4, %v971_v58, %v975_v59  ;;  %v14040_v40 = vcombine.low %v17067_v48, %v17073_v45  ;;  %v1612_v16 = vrot.slane %v1610_v8, 4  ;;  %v1550_v57 = vld [vmem:[%s16758_s23 + $0x54] sm:$0xe] }
  0x75   : > { %v1600_v22 = vsel %vm17048_vm7, %v1598_v63, %v1599_v19  ;;  %v986_v28 = vsel %vm16786_vm4, %v981_v3, %v985_v25  ;;  %v1613_v2 = vrot.slane %v16797_v49, 5  ;;  %v14025_v33 = vrot.slane %v1546_v1, 9  ;;  %v1551_v1 = vld [vmem:[%s16758_s23 + $0x60] sm:$0xe] }
  0x76   : > { %v14039_v29 = vcombine.low %v1597_v11, %v1600_v22  ;;  %v13973_v59 = vcombine.low %v976_v21, %v986_v28  ;;  %v1617_v12 = vrot.slane %v16809_v0, 5  ;;  %v1620_v19 = vrot.slane %v16816_v4, 5 }
  0x77   : > { %v14026_v43 = vrot.slane %v1547_v7, 9  ;;  %v1614_v50 = vsel %vm17048_vm7, %v1612_v16, %v1613_v2  ;;  %v1624_v34 = vrot.slane %v16826_v27, 5  ;;  %v1627_v25 = vrot.slane %v16831_v31, 5  ;;  %v16331_v7 = vld [vmem:[%s16758_s23 + $0x30] sm:$0xff]   ;;  %v16332_v2 = vld [vmem:[%s16758_s23 + $0x3c] sm:$0xff]  }
  0x78   : > { %v14027_v17 = vrot.slane %v1548_v38, 9  ;;  %15600 = vmatmul.mubr.msk.bf16.gmra.mxu0 %vm1037_vm3, %v13973_v59  ;;  %15674 = vmatmul.mubr.msk.bf16.vlgmr.msra.gmra.mxu1 %vm1037_vm3, %v16329_v47  ;;  %v14041_v49 = vcombine.low %v17077_v52, %v1614_v50  ;;  %v17107_v0 = vsel %vm17048_vm7, %v14025_v33, %v1617_v12  ;;  %v1619_v4 = vrot.slane %v1617_v12, 4  ;;  %v1552_v52 = vld [vmem:[%s16758_s23 + $0x6c] sm:$0xe] }
  0x79   : > { %v1631_v56 = vrot.slane %v16846_v54, 5  ;;  %15639 = vmatprep.mubr.msk.bf16.mxu0 %vm1037_vm3, %v14039_v29  ;;  %15677 = vmatprep.mubr.msk.bf16.mxu1 %vm1037_vm3, %v16330_v39  ;;  %v17115_v27 = vsel %vm17048_vm7, %v14026_v43, %v1624_v34  ;;  %v1626_v31 = vrot.slane %v1624_v34, 4  ;;  %v1634_v8 = vrot.slane %v16853_v60, 5  ;;  %v1553_v29 = vld [vmem:[%s16758_s23 + $0x78] sm:$0xe] }
  0x7a   : > { %v14028_v24 = vrot.slane %v1549_v46, 9  ;;  %v17120_v58 = vsel %vm17048_vm7, %v1619_v4, %v1620_v19  ;;  %v1638_v63 = vrot.slane %v16863_v20, 5  ;;  %v1641_v48 = vrot.slane %v16870_v26, 5  ;;  %v1554_v46 = vld [vmem:[%s16758_s23 + $0x84] sm:$0xe] }
  0x7b   : > { %v17124_v54 = vsel %vm17048_vm7, %v14027_v17, %v1631_v56  ;;  %v1633_v11 = vrot.slane %v1631_v56, 4  ;;  %v14042_v3 = vcombine.low %v17107_v0, %v17120_v58  ;;  %v17132_v60 = vsel %vm17048_vm7, %v1626_v31, %v1627_v25  ;;  %v17170_v50 = vld [vmem:[%s20704_s1 + $0xc] sm:$0x3]  ;;  %v1555_v56 = vld [vmem:[%s16758_s23 + $0x90] sm:$0xe] }
  0x7c   : > { %v14029_v45 = vrot.slane %v1550_v57, 9  ;;  %v14043_v21 = vcombine.low %v17115_v27, %v17132_v60  ;;  %v17145_v22 = vsel %vm17048_vm7, %v14028_v24, %v1638_v63  ;;  %v1640_v47 = vrot.slane %v1638_v63, 4  ;;  %v1556_v31 = vld [vmem:[%s16758_s23 + $0x9c] sm:$0xe]  ;;  %v16333_v63 = vld [vmem:[%s16758_s23 + $0x48] sm:$0xff]  }
  0x7d   : > { %v17141_v20 = vsel %vm17048_vm7, %v1633_v11, %v1634_v8  ;;  %v1645_v26 = vrot.slane %v16880_v44, 5  ;;  %v1648_v38 = vrot.slane %v16887_v51, 5  ;;  %v14030_v28 = vrot.slane %v1551_v1, 9 }
  0x7e   : > { %v14044_v16 = vcombine.low %v17124_v54, %v17141_v20  ;;  %v17155_v33 = vsel %vm17048_vm7, %v1640_v47, %v1641_v48  ;;  %v1652_v39 = vrot.slane %v16897_v5, 5  ;;  %v1655_v59 = vrot.slane %v16902_v15, 5 }
  0x7f   : > { %v14031_v12 = vrot.slane %v1552_v52, 9  ;;  %v14045_v19 = vcombine.low %v17145_v22, %v17155_v33  ;;  %v17163_v44 = vsel %vm17048_vm7, %v14029_v45, %v1645_v26  ;;  %v1647_v51 = vrot.slane %v1645_v26, 4  ;;  %v1557_v52 = vld [vmem:[%s16758_s23 + $0xa8] sm:$0xe]  ;;  %v14218_v22 = vld [vmem:[%s16758_s23 + $0x18] sm:$0xe] }
  0x80   : > { %v1659_v43 = vrot.slane %v16910_v32, 5  ;;  %15640 = vmatmul.mubr.msk.bf16.vlgmr.msra.gmra.mxu0 %vm1037_vm3, %v14040_v40  ;;  %15678 = vmatmul.mubr.msk.bf16.gmra.mxu1 %vm1037_vm3, %v16331_v7  ;;  %v17176_v5 = vsel %vm17048_vm7, %v14030_v28, %v1652_v39  ;;  %v1654_v15 = vrot.slane %v1652_v39, 4  ;;  %v1662_v34 = vrot.slane %v16917_v6, 5  ;;  %v16334_v7 = vld [vmem:[%s16758_s23 + $0x54] sm:$0xff]  }
  0x81   : > { %v14032_v25 = vrot.slane %v1553_v29, 9  ;;  %15706 = vmatpush3.bf16.msra.mxu0 %v16753_v9  ;;  %15643 = vmatprep.mubr.msk.bf16.mxu0 %vm1037_vm3, %v14041_v49  ;;  %v17183_v32 = vsel %vm17048_vm7, %v1647_v51, %v1648_v38  ;;  %v1666_v4 = vrot.slane %v16930_v62, 5  ;;  %v1669_v49 = vrot.slane %v16933_v10, 5  ;;  %v1558_v39 = vld [vmem:[%s16758_s23 + $0xb4] sm:$0xe] }
  0x82   : > { %v17187_v40 = vsel %vm17048_vm7, %v14031_v12, %v1659_v43  ;;  %v1661_v17 = vrot.slane %v1659_v43, 4  ;;  %15681 = vmatprep.mubr.msk.bf16.mxu1 %vm1037_vm3, %v16332_v2  ;;  %v14046_v9 = vcombine.low %v17163_v44, %v17183_v32  ;;  %v17196_v6 = vsel %vm17048_vm7, %v1654_v15, %v1655_v59  ;;  %16241 = vmatprep.subr.msk.bf16.mxu0 %vm1086_vm0, %v17170_v50  ;;  %v17266_v15 = vld [vmem:[%s16758_s23 + $0x10] sm:$0xf] }
  0x83   : > { %v14033_v57 = vrot.slane %v1554_v46, 9  ;;  %v14047_v62 = vcombine.low %v17176_v5, %v17196_v6  ;;  %v17210_v24 = vsel %vm17048_vm7, %v14032_v25, %v1666_v4  ;;  %v1668_v11 = vrot.slane %v1666_v4, 4  ;;  %v17281_v4 = vld [vmem:[%s16758_s23 + $0x14] sm:$0x1] }
  0x84   : > { %v17206_v8 = vsel %vm17048_vm7, %v1661_v17, %v1662_v34  ;;  %v1673_v1 = vrot.slane %v16944_v35, 5  ;;  %v1676_v48 = vrot.slane %v16949_v42, 5  ;;  %v14034_v45 = vrot.slane %v1555_v56, 9  ;;  %v16335_v56 = vld [vmem:[%s16758_s23 + $0x60] sm:$0xff]  }
  0x85   : > { %v14048_v10 = vcombine.low %v17187_v40, %v17206_v8  ;;  %v17221_v47 = vsel %vm17048_vm7, %v1668_v11, %v1669_v49  ;;  %v1680_v26 = vrot.slane %v16963_v13, 5  ;;  %v1683_v38 = vrot.slane %v16968_v18, 5 }
  0x86   : > { %v14035_v28 = vrot.slane %v1556_v31, 9  ;;  %v14049_v29 = vcombine.low %v17210_v24, %v17221_v47  ;;  %v17229_v35 = vsel %vm17048_vm7, %v14033_v57, %v1673_v1  ;;  %v1675_v42 = vrot.slane %v1673_v1, 4 }
  0x87   : > { %v1687_v2 = vrot.slane %v16982_v55, 5  ;;  %v17235_v59 = vsel %vm17048_vm7, %v14034_v45, %v1680_v26  ;;  %v1682_v13 = vrot.slane %v1680_v26, 4  ;;  %v1690_v18 = vrot.slane %v16985_v61, 5  ;;  %v17301_v45 = vld [vmem:[%s16758_s23 + $0x1c] sm:$0xf] }
  0x88   : > { %v14036_v12 = vrot.slane %v1557_v52, 9  ;;  %15644 = vmatmul.mubr.msk.bf16.gmra.mxu0 %vm1037_vm3, %v14042_v3  ;;  %15682 = vmatmul.mubr.msk.bf16.gmra.mxu1 %vm1037_vm3, %v16333_v63  ;;  %v17245_v55 = vsel %vm17048_vm7, %v1675_v42, %v1676_v48  ;;  %v1694_v46 = vrot.slane %v16998_v30, 5  ;;  %v1697_v58 = vrot.slane %v17001_v41, 5  ;;  %v14136_v30 = vld [vmem:[%s16758_s23 + $0xc] sm:$0xf] }
  0x89   : > { %v17249_v51 = vsel %vm17048_vm7, %v14035_v28, %v1687_v2  ;;  %v1689_v43 = vrot.slane %v1687_v2, 4  ;;  %15647 = vmatprep.mubr.msk.bf16.mxu0 %vm1037_vm3, %v14043_v21  ;;  %15685 = vmatprep.mubr.msk.bf16.mxu1 %vm1037_vm3, %v16334_v7  ;;  %v14050_v61 = vcombine.low %v17229_v35, %v17245_v55  ;;  %v17261_v0 = vsel %vm17048_vm7, %v1682_v13, %v1683_v38  ;;  %v16336_v63 = vld [vmem:[%s16758_s23 + $0x6c] sm:$0xff]   ;;  %v17309_v2 = vld [vmem:[%s16758_s23 + $0x20] sm:$0x1] }
  0x8a   : > { %v14037_v3 = vrot.slane %v1558_v39, 9  ;;  %v14051_v27 = vcombine.low %v17235_v59, %v17261_v0  ;;  %v1696_v21 = vrot.slane %v1694_v46, 4  ;;  %v1701_v25 = vrot.slane %v17012_v14, 5  ;;  %v14139_v14 = vld [vmem:[%s16758_s23 + $0x18] sm:$0xf] }
  0x8b   : > { %v17272_v60 = vsel %vm17048_vm7, %v1689_v43, %v1690_v18  ;;  %v1704_v41 = vrot.slane %v17017_v23, 5  ;;  %v3360_v17 = vsel %vm1086_vm0, %v17031_v53, 0  ;;  %v17286_v49 = vsel %vm17048_vm7, %v14036_v12, %v1694_v46 }
  0x8c   : > { %v14052_v34 = vcombine.low %v17249_v51, %v17272_v60  ;;  %15740 = vmatpush3.bf16.msra.mxu1 %v3360_v17  ;;  %v2408_v57 = vshrl.u32 %v14136_v30, 16  ;;  %v2411_v31 = vshll.u32 %v14136_v30, 16  ;;  %v2417_v11 = vshll.u32 %v17266_v15, 16 }
  0x8d   : > { %v17293_v23 = vsel %vm17048_vm7, %v1696_v21, %v1697_v58  ;;  %v17297_v53 = vsel %vm17048_vm7, %v14037_v3, %v1701_v25  ;;  %v1703_v1 = vrot.slane %v1701_v25, 4  ;;  %v2421_v48 = vshrl.u32 %v17266_v15, 16  ;;  %v14217_v58 = vld [vmem:[%s16758_s23 + $0xc] sm:$0xe] }
  0x8e   : > { %v2410_v52 = vrot.slane %v2408_v57, 4  ;;  %v2413_v7 = vrot.slane %v2411_v31, 5  ;;  %v2419_v26 = vrot.slane %v2417_v11, 5  ;;  %v2427_v38 = vshll.u32 %v17281_v4, 16  ;;  %v16337_v57 = vld [vmem:[%s16758_s23 + $0x78] sm:$0xff]  }
  0x8f   : > { %v17306_v28 = vsel %vm17048_vm7, %v1703_v1, %v1704_v41  ;;  %v2423_v42 = vrot.slane %v2421_v48, 4  ;;  %v2432_v39 = vshrl.u32 %v14139_v14, 16  ;;  %v2435_v13 = vshll.u32 %v14139_v14, 16  ;;  %v14142_v1 = vld [vmem:[%s16758_s23 + $0x24] sm:$0xf] }
  0x90   : > { %15648 = vmatmul.mubr.msk.bf16.gmra.mxu0 %vm1037_vm3, %v14044_v16  ;;  %15686 = vmatmul.mubr.msk.bf16.gmra.mxu1 %vm1037_vm3, %v16335_v56  ;;  %v14054_v18 = vcombine.low %v17297_v53, %v17306_v28  ;;  %v2414_v12 = vor.u32 %v2413_v7, %v2410_v52  ;;  %v2429_v43 = vrot.slane %v2427_v38, 5  ;;  %v2441_v46 = vshll.u32 %v17301_v45, 16  ;;  %v16338_v48 = vld [vmem:[%s16758_s23 + $0x84] sm:$0xff]  }
  0x91   : > { %15651 = vmatprep.mubr.msk.bf16.mxu0 %vm1037_vm3, %v14045_v19  ;;  %15689 = vmatprep.mubr.msk.bf16.mxu1 %vm1037_vm3, %v16336_v63  ;;  %v2424_v54 = vor.u32 %v2423_v42, %v2419_v26  ;;  %v2434_v20 = vrot.slane %v2432_v39, 4  ;;  %v2437_v16 = vrot.slane %v2435_v13, 5  ;;  %v2445_v3 = vshrl.u32 %v17301_v45, 16  ;;  %v17340_v39 = vld [vmem:[%s16758_s23 + $0x28] sm:$0xf] }
  0x92   : > { %v14053_v30 = vcombine.low %v17286_v49, %v17293_v23  ;;  %v2415_v21 = vrot.slane %v2414_v12, 4  ;;  %v2443_v25 = vrot.slane %v2441_v46, 5  ;;  %v2451_v41 = vshll.u32 %v17309_v2, 16  ;;  %v17352_v12 = vld [vmem:[%s16758_s23 + $0x2c] sm:$0x1] }
  0x93   : > { %v2425_v33 = vrot.slane %v2424_v54, 4  ;;  %v2438_v19 = vor.u32 %v2437_v16, %v2434_v20  ;;  %v2447_v17 = vrot.slane %v2445_v3, 4  ;;  %v14233_v56 = vrot.slane %v14217_v58, 9  ;;  %v14145_v46 = vld [vmem:[%s16758_s23 + $0x30] sm:$0xf] }
  0x94   : > { %v2420_v31 = vsel %vm16786_vm4, %v2415_v21, %v2419_v26  ;;  %v2453_v11 = vrot.slane %v2451_v41, 5  ;;  %v3151_v14 = vrot.slane %v17266_v15, 5  ;;  %v3154_v63 = vrot.slane %v17281_v4, 5  ;;  %v17390_v41 = vld [vmem:[%s16758_s23 + $0x38] sm:$0x1] }
  0x95   : > { %v2430_v52 = vsel %vm16786_vm4, %v2425_v33, %v2429_v43  ;;  %v2439_v7 = vrot.slane %v2438_v19, 4  ;;  %v2448_v38 = vor.u32 %v2447_v17, %v2443_v25  ;;  %v14234_v42 = vrot.slane %v14218_v22, 9 }
  0x96   : > { %v17344_v26 = vsel %vm1086_vm0, %v17170_v50, 0  ;;  %v17348_v15 = vsel %vm17048_vm7, %v14233_v56, %v3151_v14  ;;  %v3153_v4 = vrot.slane %v3151_v14, 4  ;;  %v3158_v13 = vrot.slane %v17301_v45, 5  ;;  %v17359_v50 = vld [vmem:[%s16758_s23 + $0x34] sm:$0xf] }
  0x97   : > { %v2444_v43 = vsel %vm16786_vm4, %v2439_v7, %v2443_v25  ;;  %v2449_v58 = vrot.slane %v2448_v38, 4  ;;  %v3161_v54 = vrot.slane %v17309_v2, 5  ;;  %v2456_v20 = vshrl.u32 %v14142_v1, 16  ;;  %v17375_v2 = vld [vmem:[%s20704_s1 + $0xe] sm:$0x3] }
  0x98   : > { %15652 = vmatmul.mubr.msk.bf16.gmra.mxu0 %vm1037_vm3, %v14046_v9  ;;  %15690 = vmatmul.mubr.msk.bf16.gmra.mxu1 %vm1037_vm3, %v16337_v57  ;;  %v17366_v45 = vcombine.low %v2420_v31, %v2430_v52  ;;  %v17370_v16 = vsel %vm17048_vm7, %v3153_v4, %v3154_v63  ;;  %v3160_v3 = vrot.slane %v3158_v13, 4  ;;  %v2459_v21 = vshll.u32 %v14142_v1, 16  ;;  %v16339_v57 = vld [vmem:[%s16758_s23 + $0x90] sm:$0xff]   ;;  %v14219_v1 = vld [vmem:[%s16758_s23 + $0x24] sm:$0xe] }
  0x99   : > { %15655 = vmatprep.mubr.msk.bf16.mxu0 %vm1037_vm3, %v14047_v62  ;;  %15693 = vmatprep.mubr.msk.bf16.mxu1 %vm1037_vm3, %v16338_v48  ;;  %v2454_v44 = vsel %vm16786_vm4, %v2449_v58, %v2453_v11  ;;  %v17386_v32 = vsel %vm17048_vm7, %v14234_v42, %v3158_v13  ;;  %v2458_v9 = vrot.slane %v2456_v20, 4  ;;  %v2465_v25 = vshll.u32 %v17340_v39, 16  ;;  %v16340_v48 = vld [vmem:[%s16758_s23 + $0x9c] sm:$0xff]  }
  0x9a   : > { %v17392_v5 = vcombine.low %v2444_v43, %v2454_v44  ;;  %v14250_v6 = vcombine.low %v17348_v15, %v17370_v16  ;;  %v2461_v62 = vrot.slane %v2459_v21, 5  ;;  %v2469_v22 = vshrl.u32 %v17340_v39, 16  ;;  %16242 = vmatprep.subr.msk.bf16.mxu1 %vm1086_vm0, %v17375_v2  ;;  %v14148_v44 = vld [vmem:[%s16758_s23 + $0x3c] sm:$0xf]  ;;  %v17552_v15 = vld [vmem:[%s16758_s23 + $0x68] sm:$0x1] }
  0x9b   : > { %v17401_v33 = vsel %vm17048_vm7, %v3160_v3, %v3161_v54  ;;  %v2467_v19 = vrot.slane %v2465_v25, 5  ;;  %v2475_v17 = vshll.u32 %v17352_v12, 16  ;;  %v2480_v56 = vshrl.u32 %v14145_v46, 16  ;;  %v14220_v54 = vld [vmem:[%s16758_s23 + $0x30] sm:$0xe] }
  0x9c   : > { %v2462_v31 = vor.u32 %v2461_v62, %v2458_v9  ;;  %v2471_v11 = vrot.slane %v2469_v22, 4  ;;  %v2483_v14 = vshll.u32 %v14145_v46, 16  ;;  %v2489_v63 = vshll.u32 %v17359_v50, 16 }
  0x9d   : > { %v2477_v52 = vrot.slane %v2475_v17, 5  ;;  %v2482_v7 = vrot.slane %v2480_v56, 4  ;;  %v2493_v38 = vshrl.u32 %v17359_v50, 16  ;;  %v2499_v42 = vshll.u32 %v17390_v41, 16  ;;  %v17422_v17 = vld [vmem:[%s16758_s23 + $0x40] sm:$0xf] }
  0x9e   : > { %v2463_v4 = vrot.slane %v2462_v31, 4  ;;  %v2472_v13 = vor.u32 %v2471_v11, %v2467_v19  ;;  %v2485_v43 = vrot.slane %v2483_v14, 5  ;;  %v2491_v58 = vrot.slane %v2489_v63, 5  ;;  %v17444_v31 = vld [vmem:[%s16758_s23 + $0x44] sm:$0x1]  ;;  %v16341_v14 = vld [vmem:[%s16758_s23 + $0xa8] sm:$0xff]  }
  0x9f   : > { %v14251_v46 = vcombine.low %v17386_v32, %v17401_v33  ;;  %v2495_v20 = vrot.slane %v2493_v38, 4  ;;  %v14235_v3 = vrot.slane %v14219_v1, 9  ;;  %v3165_v21 = vrot.slane %v17340_v39, 5  ;;  %v16342_v38 = vld [vmem:[%s16758_s23 + $0xb4] sm:$0xff]   ;;  %v17589_v33 = vld [vmem:[%s16758_s23 + $0x70] sm:$0xf] }
  0xa0   : > { %15656 = vmatmul.mubr.msk.bf16.gmra.mxu0 %vm1037_vm3, %v14048_v10  ;;  %15694 = vmatmul.mubr.msk.bf16.gmra.mxu1 %vm1037_vm3, %v16339_v57  ;;  %v2473_v9 = vrot.slane %v2472_v13, 4  ;;  %v2486_v25 = vor.u32 %v2485_v43, %v2482_v7  ;;  %v2501_v62 = vrot.slane %v2499_v42, 5  ;;  %v3168_v22 = vrot.slane %v17352_v12, 5  ;;  %v17455_v7 = vld [vmem:[%s16758_s23 + $0x4c] sm:$0xf] }
  0xa1   : > { %15659 = vmatprep.mubr.msk.bf16.mxu0 %vm1037_vm3, %v14049_v29  ;;  %15697 = vmatprep.mubr.msk.bf16.mxu1 %vm1037_vm3, %v16340_v48  ;;  %v2468_v40 = vsel %vm16786_vm4, %v2463_v4, %v2467_v19  ;;  %v2496_v8 = vor.u32 %v2495_v20, %v2491_v58  ;;  %v17433_v10 = vsel %vm17048_vm7, %v14235_v3, %v3165_v21  ;;  %v3167_v39 = vrot.slane %v3165_v21, 4  ;;  %v17462_v43 = vld [vmem:[%s16758_s23 + $0x50] sm:$0x1]  ;;  %v14221_v21 = vld [vmem:[%s16758_s23 + $0x3c] sm:$0xe] }
  0xa2   : > { %v2478_v12 = vsel %vm16786_vm4, %v2473_v9, %v2477_v52  ;;  %v2487_v24 = vrot.slane %v2486_v25, 4  ;;  %v14236_v47 = vrot.slane %v14220_v54, 9  ;;  %v3172_v29 = vrot.slane %v17359_v50, 5  ;;  %v14151_v52 = vld [vmem:[%s16758_s23 + $0x48] sm:$0xf] }
  0xa3   : > { %v2497_v56 = vrot.slane %v2496_v8, 4  ;;  %v17440_v19 = vsel %vm17048_vm7, %v3167_v39, %v3168_v22  ;;  %v3175_v57 = vrot.slane %v17390_v41, 5  ;;  %v2504_v11 = vshrl.u32 %v14148_v44, 16  ;;  %v14222_v22 = vld [vmem:[%s16758_s23 + $0x48] sm:$0xe] }
  0xa4   : > { %v17447_v63 = vcombine.low %v2468_v40, %v2478_v12  ;;  %v2492_v1 = vsel %vm16786_vm4, %v2487_v24, %v2491_v58  ;;  %v14252_v50 = vcombine.low %v17433_v10, %v17440_v19  ;;  %v3174_v48 = vrot.slane %v3172_v29, 4 }
  0xa5   : > { %v2502_v41 = vsel %vm16786_vm4, %v2497_v56, %v2501_v62  ;;  %v2506_v42 = vrot.slane %v2504_v11, 4  ;;  %v2507_v4 = vshll.u32 %v14148_v44, 16  ;;  %v2513_v13 = vshll.u32 %v17422_v17, 16 }
  0xa6   : > { %v17464_v54 = vcombine.low %v2492_v1, %v2502_v41  ;;  %v17468_v58 = vsel %vm17048_vm7, %v14236_v47, %v3172_v29  ;;  %v2517_v20 = vshrl.u32 %v17422_v17, 16  ;;  %v2523_v3 = vshll.u32 %v17444_v31, 16  ;;  %v14154_v41 = vld [vmem:[%s16758_s23 + $0x54] sm:$0xf] }
  0xa7   : > { %v17475_v9 = vsel %vm17048_vm7, %v3174_v48, %v3175_v57  ;;  %v2509_v44 = vrot.slane %v2507_v4, 5  ;;  %v2515_v25 = vrot.slane %v2513_v13, 5  ;;  %v2528_v62 = vshrl.u32 %v14151_v52, 16 }
  0xa8   : > { %15660 = vmatmul.mubr.msk.bf16.gmra.mxu0 %vm1037_vm3, %v14050_v61  ;;  %15698 = vmatmul.mubr.msk.bf16.gmra.mxu1 %vm1037_vm3, %v16341_v14  ;;  %v2519_v40 = vrot.slane %v2517_v20, 4  ;;  %v2525_v8 = vrot.slane %v2523_v3, 5  ;;  %v2531_v39 = vshll.u32 %v14151_v52, 16  ;;  %v2537_v12 = vshll.u32 %v17455_v7, 16  ;;  %v17502_v3 = vld [vmem:[%s16758_s23 + $0x58] sm:$0xf] }
  0xa9   : > { %15663 = vmatprep.mubr.msk.bf16.mxu0 %vm1037_vm3, %v14051_v27  ;;  %15701 = vmatprep.mubr.msk.bf16.mxu1 %vm1037_vm3, %v16342_v38  ;;  %v2510_v24 = vor.u32 %v2509_v44, %v2506_v42  ;;  %v2530_v47 = vrot.slane %v2528_v62, 4  ;;  %v2541_v35 = vshrl.u32 %v17455_v7, 16  ;;  %v2547_v55 = vshll.u32 %v17462_v43, 16  ;;  %v16343_v27 = vld [vmem:[%s16758_s23 + $0xc0] sm:$0xff]  }
  0xaa   : > { %v2520_v61 = vor.u32 %v2519_v40, %v2515_v25  ;;  %v2533_v29 = vrot.slane %v2531_v39, 5  ;;  %v2539_v56 = vrot.slane %v2537_v12, 5  ;;  %v14237_v57 = vrot.slane %v14221_v21, 9 }
  0xab   : > { %v2511_v11 = vrot.slane %v2510_v24, 4  ;;  %v2543_v14 = vrot.slane %v2541_v35, 4  ;;  %v2549_v59 = vrot.slane %v2547_v55, 5  ;;  %v3179_v0 = vrot.slane %v17422_v17, 5  ;;  %v17505_v17 = vld [vmem:[%s16758_s23 + $0x5c] sm:$0x1] }
  0xac   : > { %v2521_v1 = vrot.slane %v2520_v61, 4  ;;  %v2534_v48 = vor.u32 %v2533_v29, %v2530_v47  ;;  %v3182_v52 = vrot.slane %v17444_v31, 5  ;;  %v14238_v38 = vrot.slane %v14222_v22, 9  ;;  %v14157_v22 = vld [vmem:[%s16758_s23 + $0x60] sm:$0xf] }
  0xad   : > { %v2516_v42 = vsel %vm16786_vm4, %v2511_v11, %v2515_v25  ;;  %v2544_v4 = vor.u32 %v2543_v14, %v2539_v56  ;;  %v17499_v13 = vsel %vm17048_vm7, %v14237_v57, %v3179_v0  ;;  %v3181_v20 = vrot.slane %v3179_v0, 4  ;;  %v17541_v35 = vld [vmem:[%s16758_s23 + $0x64] sm:$0xf] }
  0xae   : > { %v2526_v21 = vsel %vm16786_vm4, %v2521_v1, %v2525_v8  ;;  %v2535_v44 = vrot.slane %v2534_v48, 4  ;;  %v3186_v31 = vrot.slane %v17455_v7, 5  ;;  %v3189_v62 = vrot.slane %v17462_v43, 5 }
  0xaf   : > { %v14253_v25 = vcombine.low %v17468_v58, %v17475_v9  ;;  %v2545_v40 = vrot.slane %v2544_v4, 4  ;;  %v17516_v39 = vsel %vm17048_vm7, %v3181_v20, %v3182_v52  ;;  %v2552_v12 = vshrl.u32 %v14154_v41, 16  ;;  %v14224_v52 = vld [vmem:[%s16758_s23 + $0x60] sm:$0xe]  ;;  %v14160_v20 = vld [vmem:[%s16758_s23 + $0x6c] sm:$0xf] }
  0xb0   : > { %15664 = vmatmul.mubr.msk.bf16.gmra.mxu0 %vm1037_vm3, %v14052_v34  ;;  %15702 = vmatmul.mubr.msk.bf16.gmra.mxu1 %vm1037_vm3, %v16343_v27  ;;  %v17523_v7 = vcombine.low %v2516_v42, %v2526_v21  ;;  %v2540_v43 = vsel %vm16786_vm4, %v2535_v44, %v2539_v56  ;;  %v14254_v8 = vcombine.low %v17499_v13, %v17516_v39  ;;  %v3188_v24 = vrot.slane %v3186_v31, 4  ;;  %v14223_v56 = vld [vmem:[%s16758_s23 + $0x54] sm:$0xe]  ;;  %v14226_v58 = vld [vmem:[%s16758_s23 + $0x78] sm:$0xe] }
  0xb1   : > { %15667 = vmatprep.mubr.msk.bf16.mxu0 %vm1037_vm3, %v14053_v30  ;;  %15741 = vmatprep.mubr.msk.bf16.mxu1 %vm1037_vm3, %v14250_v6  ;;  %v2550_v51 = vsel %vm16786_vm4, %v2545_v40, %v2549_v59  ;;  %v2554_v60 = vrot.slane %v2552_v12, 4  ;;  %v2555_v34 = vshll.u32 %v14154_v41, 16  ;;  %v2561_v47 = vshll.u32 %v17502_v3, 16 }
  0xb2   : > { %v17543_v55 = vcombine.low %v2540_v43, %v2550_v51  ;;  %v17547_v49 = vsel %vm17048_vm7, %v14238_v38, %v3186_v31  ;;  %v2565_v23 = vshrl.u32 %v17502_v3, 16  ;;  %v2571_v30 = vshll.u32 %v17505_v17, 16 }
  0xb3   : > { %v17556_v16 = vsel %vm17048_vm7, %v3188_v24, %v3189_v62  ;;  %v2557_v6 = vrot.slane %v2555_v34, 5  ;;  %v2563_v61 = vrot.slane %v2561_v47, 5  ;;  %v2576_v29 = vshrl.u32 %v14157_v22, 16 }
  0xb4   : > { %v2567_v57 = vrot.slane %v2565_v23, 4  ;;  %v2573_v11 = vrot.slane %v2571_v30, 5  ;;  %v2579_v14 = vshll.u32 %v14157_v22, 16  ;;  %v2585_v59 = vshll.u32 %v17541_v35, 16  ;;  %v17610_v30 = vld [vmem:[%s16758_s23 + $0x7c] sm:$0xf] }
  0xb5   : > { %v2558_v0 = vor.u32 %v2557_v6, %v2554_v60  ;;  %v2578_v27 = vrot.slane %v2576_v29, 4  ;;  %v2589_v1 = vshrl.u32 %v17541_v35, 16  ;;  %v2595_v48 = vshll.u32 %v17552_v15, 16  ;;  %v14163_v60 = vld [vmem:[%s16758_s23 + $0x78] sm:$0xf] }
  0xb6   : > { %v2568_v38 = vor.u32 %v2567_v57, %v2563_v61  ;;  %v2581_v41 = vrot.slane %v2579_v14, 5  ;;  %v2587_v42 = vrot.slane %v2585_v59, 5  ;;  %v14239_v4 = vrot.slane %v14223_v56, 9  ;;  %v17613_v6 = vld [vmem:[%s16758_s23 + $0x80] sm:$0x1] }
  0xb7   : > { %v14255_v21 = vcombine.low %v17547_v49, %v17556_v16  ;;  %v2559_v44 = vrot.slane %v2558_v0, 4  ;;  %v2591_v31 = vrot.slane %v2589_v1, 4  ;;  %v3193_v62 = vrot.slane %v17502_v3, 5  ;;  %v14225_v57 = vld [vmem:[%s16758_s23 + $0x6c] sm:$0xe] }
  0xb8   : > { %15668 = vmatmul.mubr.msk.bf16.gmra.mxu0 %vm1037_vm3, %v14054_v18  ;;  %15742 = vmatmul.mubr.msk.bf16.vlgmr.msra.gmra.mxu1 %vm1037_vm3, %v14251_v46  ;;  %v2569_v22 = vrot.slane %v2568_v38, 4  ;;  %v2582_v40 = vor.u32 %v2581_v41, %v2578_v27  ;;  %v2597_v12 = vrot.slane %v2595_v48, 5  ;;  %v3196_v43 = vrot.slane %v17505_v17, 5 }
  0xb9   : > { %15707 = vmatprep.mubr.msk.bf16.mxu0 %vm1037_vm3, %v17366_v45  ;;  %15745 = vmatprep.mubr.msk.bf16.mxu1 %vm1037_vm3, %v14252_v50  ;;  %v2564_v53 = vsel %vm16786_vm4, %v2559_v44, %v2563_v61  ;;  %v2592_v28 = vor.u32 %v2591_v31, %v2587_v42  ;;  %v17586_v18 = vsel %vm17048_vm7, %v14239_v4, %v3193_v62  ;;  %v3195_v32 = vrot.slane %v3193_v62, 4  ;;  %v17595_v50 = vld [vmem:[%s16758_s23 + $0x74] sm:$0x1] }
  0xba   : > { %v2574_v45 = vsel %vm16786_vm4, %v2569_v22, %v2573_v11  ;;  %v2583_v46 = vrot.slane %v2582_v40, 4  ;;  %v14240_v10 = vrot.slane %v14224_v52, 9  ;;  %v3200_v19 = vrot.slane %v17541_v35, 5  ;;  %v17622_v11 = vld [vmem:[%s20704_s1 + $0x10] sm:$0x3]  ;;  %s20690_s1 = sshll.u32 %s16690_s25, 6 }
  0xbb   : > { %v2593_v3 = vrot.slane %v2592_v28, 4  ;;  %v17599_v17 = vsel %vm17048_vm7, %v3195_v32, %v3196_v43  ;;  %v3203_v24 = vrot.slane %v17552_v15, 5  ;;  %v2600_v51 = vshrl.u32 %v14160_v20, 16  ;;  %s20533_s19 = scalar_lea.hbm %s20671_s15, %s20690_s1 }
  0xbc   : > { %v17603_v34 = vcombine.low %v2564_v53, %v2574_v45  ;;  %v2588_v47 = vsel %vm16786_vm4, %v2583_v46, %v2587_v42  ;;  %v14256_v35 = vcombine.low %v17586_v18, %v17599_v17  ;;  %v3202_v23 = vrot.slane %v3200_v19, 4  ;;  %v14166_v53 = vld [vmem:[%s16758_s23 + $0x84] sm:$0xf]  ;;  %v14171_v17 = vld [vmem:[%s16758_s23 + $0x98] sm:$0x1] }
  0xbd   : > { %v2598_v61 = vsel %vm16786_vm4, %v2593_v3, %v2597_v12  ;;  %v2602_v29 = vrot.slane %v2600_v51, 4  ;;  %v2603_v15 = vshll.u32 %v14160_v20, 16  ;;  %v2609_v56 = vshll.u32 %v17589_v33, 16  ;;  %v17666_v3 = vld [vmem:[%s16758_s23 + $0x8c] sm:$0x1] }
  0xbe   : > { %v17624_v14 = vcombine.low %v2588_v47, %v2598_v61  ;;  %v17628_v59 = vsel %vm17048_vm7, %v14240_v10, %v3200_v19  ;;  %v2613_v0 = vshrl.u32 %v17589_v33, 16  ;;  %v2619_v27 = vshll.u32 %v17595_v50, 16 }
  0xbf   : > { %v17634_v1 = vsel %vm17048_vm7, %v3202_v23, %v3203_v24  ;;  %v2605_v48 = vrot.slane %v2603_v15, 5  ;;  %v2611_v52 = vrot.slane %v2609_v56, 5  ;;  %v2624_v38 = vshrl.u32 %v14163_v60, 16  ;;  %v14169_v56 = vld [vmem:[%s16758_s23 + $0x90] sm:$0xf] }
  0xc0   : > { %15708 = vmatmul.mubr.msk.bf16.vlgmr.msra.gmra.mxu0 %vm1037_vm3, %v17392_v5  ;;  %15746 = vmatmul.mubr.msk.bf16.gmra.mxu1 %vm1037_vm3, %v14253_v25  ;;  %v2615_v41 = vrot.slane %v2613_v0, 4  ;;  %v2621_v42 = vrot.slane %v2619_v27, 5  ;;  %v2627_v4 = vshll.u32 %v14163_v60, 16  ;;  %v2633_v20 = vshll.u32 %v17610_v30, 16 }
  0xc1   : > { %15774 = vmatpush3.bf16.msra.mxu0 %v17344_v26  ;;  %15711 = vmatprep.mubr.msk.bf16.mxu0 %vm1037_vm3, %v17447_v63  ;;  %v2606_v44 = vor.u32 %v2605_v48, %v2602_v29  ;;  %v2626_v31 = vrot.slane %v2624_v38, 4  ;;  %v2637_v5 = vshrl.u32 %v17610_v30, 16  ;;  %v2643_v62 = vshll.u32 %v17613_v6, 16  ;;  %v14228_v38 = vld [vmem:[%s16758_s23 + $0x90] sm:$0xe] }
  0xc2   : > { %15749 = vmatprep.mubr.msk.bf16.mxu1 %vm1037_vm3, %v14254_v8  ;;  %v2616_v9 = vor.u32 %v2615_v41, %v2611_v52  ;;  %v2629_v25 = vrot.slane %v2627_v4, 5  ;;  %v2635_v26 = vrot.slane %v2633_v20, 5  ;;  %v14241_v22 = vrot.slane %v14225_v57, 9  ;;  %16243 = vmatprep.subr.msk.bf16.mxu0 %vm1086_vm0, %v17622_v11  ;;  %v17659_v8 = vld [vmem:[%s16758_s23 + $0x88] sm:$0xf] }
  0xc3   : > { %v2607_v63 = vrot.slane %v2606_v44, 4  ;;  %v2639_v40 = vrot.slane %v2637_v5, 4  ;;  %v2645_v12 = vrot.slane %v2643_v62, 5  ;;  %v3207_v43 = vrot.slane %v17589_v33, 5  ;;  %v14170_v57 = vld [vmem:[%s16758_s23 + $0x94] sm:$0xf] }
  0xc4   : > { %v2617_v28 = vrot.slane %v2616_v9, 4  ;;  %v2630_v32 = vor.u32 %v2629_v25, %v2626_v31  ;;  %v3210_v13 = vrot.slane %v17595_v50, 5  ;;  %v14242_v39 = vrot.slane %v14226_v58, 9 }
  0xc5   : > { %v2612_v45 = vsel %vm16786_vm4, %v2607_v63, %v2611_v52  ;;  %v2640_v46 = vor.u32 %v2639_v40, %v2635_v26  ;;  %v3208_v10 = vsel %vm17048_vm7, %v14241_v22, %v3207_v43  ;;  %v3209_v19 = vrot.slane %v3207_v43, 4 }
  0xc6   : > { %v2622_v33 = vsel %vm16786_vm4, %v2617_v28, %v2621_v42  ;;  %v2631_v24 = vrot.slane %v2630_v32, 4  ;;  %v3214_v50 = vrot.slane %v17610_v30, 5  ;;  %v3217_v51 = vrot.slane %v17613_v6, 5 }
  0xc7   : > { %v14257_v60 = vcombine.low %v17628_v59, %v17634_v1  ;;  %v2641_v47 = vrot.slane %v2640_v46, 4  ;;  %v3211_v23 = vsel %vm17048_vm7, %v3209_v19, %v3210_v13  ;;  %v2648_v61 = vshrl.u32 %v14166_v53, 16  ;;  %v14172_v13 = vld [vmem:[%s16758_s23 + $0x9c] sm:$0xf] }
  0xc8   : > { %15712 = vmatmul.mubr.msk.bf16.gmra.mxu0 %vm1037_vm3, %v17464_v54  ;;  %15750 = vmatmul.mubr.msk.bf16.gmra.mxu1 %vm1037_vm3, %v14255_v21  ;;  %v17682_v30 = vcombine.low %v2612_v45, %v2622_v33  ;;  %v2636_v6 = vsel %vm16786_vm4, %v2631_v24, %v2635_v26  ;;  %v14258_v29 = vcombine.low %v3208_v10, %v3211_v23  ;;  %v3216_v15 = vrot.slane %v3214_v50, 4 }
  0xc9   : > { %15715 = vmatprep.mubr.msk.bf16.mxu0 %vm1037_vm3, %v17523_v7  ;;  %15753 = vmatprep.mubr.msk.bf16.mxu1 %vm1037_vm3, %v14256_v35  ;;  %v2646_v54 = vsel %vm16786_vm4, %v2641_v47, %v2645_v12  ;;  %v2650_v49 = vrot.slane %v2648_v61, 4  ;;  %v2651_v16 = vshll.u32 %v14166_v53, 16  ;;  %v2657_v21 = vshll.u32 %v17659_v8, 16  ;;  %v14227_v35 = vld [vmem:[%s16758_s23 + $0x84] sm:$0xe] }
  0xca   : > { %v17697_v59 = vcombine.low %v2636_v6, %v2646_v54  ;;  %v17701_v0 = vsel %vm17048_vm7, %v14242_v39, %v3214_v50  ;;  %v2661_v7 = vshrl.u32 %v17659_v8, 16  ;;  %v2667_v18 = vshll.u32 %v17666_v3, 16 }
  0xcb   : > { %v17709_v27 = vsel %vm17048_vm7, %v3216_v15, %v3217_v51  ;;  %v2653_v1 = vrot.slane %v2651_v16, 5  ;;  %v2659_v48 = vrot.slane %v2657_v21, 5  ;;  %v2672_v52 = vshrl.u32 %v14169_v56, 16  ;;  %v17740_v51 = vld [vmem:[%s16758_s23 + $0xa4] sm:$0x1] }
  0xcc   : > { %v2663_v41 = vrot.slane %v2661_v7, 4  ;;  %v2669_v42 = vrot.slane %v2667_v18, 5  ;;  %v2675_v4 = vshll.u32 %v14169_v56, 16  ;;  %v2681_v20 = vshll.u32 %v14170_v57, 16  ;;  %v14176_v16 = vld [vmem:[%s16758_s23 + $0xac] sm:$0xf] }
  0xcd   : > { %v2654_v44 = vor.u32 %v2653_v1, %v2650_v49  ;;  %v2674_v31 = vrot.slane %v2672_v52, 4  ;;  %v2685_v5 = vshrl.u32 %v14170_v57, 16  ;;  %v2691_v62 = vshll.u32 %v14171_v17, 16  ;;  %v17759_v18 = vld [vmem:[%s16758_s23 + $0xb0] sm:$0x1] }
  0xce   : > { %v2664_v58 = vor.u32 %v2663_v41, %v2659_v48  ;;  %v2677_v9 = vrot.slane %v2675_v4, 5  ;;  %v17712_v25 = vrot.slane %v2681_v20, 5  ;;  %v14243_v26 = vrot.slane %v14227_v35, 9 }
  0xcf   : > { %v2655_v22 = vrot.slane %v2654_v44, 4  ;;  %v2687_v63 = vrot.slane %v2685_v5, 4  ;;  %v17714_v40 = vrot.slane %v2691_v62, 5  ;;  %v3221_v12 = vrot.slane %v17659_v8, 5  ;;  %v14230_v5 = vld [vmem:[%s16758_s23 + $0xa8] sm:$0xe] }
  0xd0   : > { %15716 = vmatmul.mubr.msk.bf16.gmra.mxu0 %vm1037_vm3, %v17543_v55  ;;  %15754 = vmatmul.mubr.msk.bf16.gmra.mxu1 %vm1037_vm3, %v14257_v60  ;;  %v2665_v43 = vrot.slane %v2664_v58, 4  ;;  %v2678_v53 = vor.u32 %v2677_v9, %v2674_v31  ;;  %v3224_v28 = vrot.slane %v17666_v3, 5  ;;  %v14244_v32 = vrot.slane %v14228_v38, 9 }
  0xd1   : > { %15719 = vmatprep.mubr.msk.bf16.mxu0 %vm1037_vm3, %v17603_v34  ;;  %15757 = vmatprep.mubr.msk.bf16.mxu1 %vm1037_vm3, %v14258_v29  ;;  %v2660_v39 = vsel %vm16786_vm4, %v2655_v22, %v2659_v48  ;;  %v2688_v55 = vor.u32 %v2687_v63, %v17712_v25  ;;  %v3222_v8 = vsel %vm17048_vm7, %v14243_v26, %v3221_v12  ;;  %v3223_v45 = vrot.slane %v3221_v12, 4  ;;  %v14173_v34 = vld [vmem:[%s16758_s23 + $0xa0] sm:$0xf]  ;;  %v14175_v29 = vld [vmem:[%s16758_s23 + $0xa8] sm:$0xf] }
  0xd2   : > { %v2670_v46 = vsel %vm16786_vm4, %v2665_v43, %v2669_v42  ;;  %v17732_v10 = vrot.slane %v2678_v53, 4  ;;  %v3228_v19 = vrot.slane %v14170_v57, 5  ;;  %v3231_v3 = vrot.slane %v14171_v17, 5  ;;  %v14229_v48 = vld [vmem:[%s16758_s23 + $0x9c] sm:$0xe] }
  0xd3   : > { %v14259_v33 = vcombine.low %v17701_v0, %v17709_v27  ;;  %v2689_v24 = vrot.slane %v2688_v55, 4  ;;  %v3225_v50 = vsel %vm17048_vm7, %v3223_v45, %v3224_v28  ;;  %v2696_v60 = vshrl.u32 %v14172_v13, 16  ;;  %v17777_v28 = vld [vmem:[%s16758_s23 + $0xb8] sm:$0xf] }
  0xd4   : > { %v17742_v47 = vcombine.low %v2660_v39, %v2670_v46  ;;  %v2684_v23 = vsel %vm16786_vm4, %v17732_v10, %v17712_v25  ;;  %v3229_v61 = vsel %vm17048_vm7, %v14244_v32, %v3228_v19  ;;  %v3230_v6 = vrot.slane %v3228_v19, 4  ;;  %v14178_v25 = vld [vmem:[%s16758_s23 + $0xb4] sm:$0xf] }
  0xd5   : > { %v14260_v15 = vcombine.low %v3222_v8, %v3225_v50  ;;  %v2698_v56 = vrot.slane %v2696_v60, 4  ;;  %v2699_v54 = vshll.u32 %v14172_v13, 16  ;;  %v2705_v49 = vshll.u32 %v14173_v34, 16  ;;  %v17785_v8 = vld [vmem:[%s16758_s23 + $0xbc] sm:$0x1] }
  0xd6   : > { %v2694_v21 = vsel %vm16786_vm4, %v2689_v24, %v17714_v40  ;;  %v3232_v57 = vsel %vm17048_vm7, %v3230_v6, %v3231_v3  ;;  %v2709_v0 = vshrl.u32 %v14173_v34, 16  ;;  %v2715_v7 = vshll.u32 %v17740_v51, 16  ;;  %v14181_v3 = vld [vmem:[%s16758_s23 + $0xc0] sm:$0xf] }
  0xd7   : > { %v14261_v17 = vcombine.low %v3229_v61, %v3232_v57  ;;  %v2701_v35 = vrot.slane %v2699_v54, 5  ;;  %v2707_v27 = vrot.slane %v2705_v49, 5  ;;  %v2720_v1 = vshrl.u32 %v14175_v29, 16  ;;  %v14231_v49 = vld [vmem:[%s16758_s23 + $0xb4] sm:$0xe] }
  0xd8   : > { %15720 = vmatmul.mubr.msk.bf16.gmra.mxu0 %vm1037_vm3, %v17624_v14  ;;  %15758 = vmatmul.mubr.msk.bf16.gmra.mxu1 %vm1037_vm3, %v14259_v33  ;;  %v2711_v52 = vrot.slane %v2709_v0, 4  ;;  %v2717_v38 = vrot.slane %v2715_v7, 5  ;;  %v2723_v41 = vshll.u32 %v14175_v29, 16  ;;  %v2729_v42 = vshll.u32 %v14176_v16, 16  ;;  %v17806_v29 = vld [vmem:[%s16758_s23 + $0xc8] sm:$0x1] }
  0xd9   : > { %15723 = vmatprep.mubr.msk.bf16.mxu0 %vm1037_vm3, %v17682_v30  ;;  %15761 = vmatprep.mubr.msk.bf16.mxu1 %vm1037_vm3, %v14260_v15  ;;  %v2702_v4 = vor.u32 %v2701_v35, %v2698_v56  ;;  %v2722_v20 = vrot.slane %v2720_v1, 4  ;;  %v2733_v44 = vshrl.u32 %v14176_v16, 16  ;;  %v2739_v31 = vshll.u32 %v17759_v18, 16  ;;  %v14232_v35 = vld [vmem:[%s16758_s23 + $0xc0] sm:$0xe] }
  0xda   : > { %v2712_v14 = vor.u32 %v2711_v52, %v2707_v27  ;;  %v2725_v62 = vrot.slane %v2723_v41, 5  ;;  %v17770_v58 = vrot.slane %v2729_v42, 5  ;;  %v14245_v9 = vrot.slane %v14229_v48, 9 }
  0xdb   : > { %v2703_v26 = vrot.slane %v2702_v4, 4  ;;  %v2735_v22 = vrot.slane %v2733_v44, 4  ;;  %v17773_v63 = vrot.slane %v2739_v31, 5  ;;  %v3235_v30 = vrot.slane %v14173_v34, 5 }
  0xdc   : > { %v2713_v40 = vrot.slane %v2712_v14, 4  ;;  %v2726_v12 = vor.u32 %v2725_v62, %v2722_v20  ;;  %v3238_v43 = vrot.slane %v17740_v51, 5  ;;  %v14246_v53 = vrot.slane %v14230_v5, 9  ;;  %v17798_v51 = vld [vmem:[%s16758_s23 + $0xc4] sm:$0xf] }
  0xdd   : > { %v2708_v32 = vsel %vm16786_vm4, %v2703_v26, %v2707_v27  ;;  %v2736_v13 = vor.u32 %v2735_v22, %v17770_v58  ;;  %v3236_v39 = vsel %vm17048_vm7, %v14245_v9, %v3235_v30  ;;  %v3237_v55 = vrot.slane %v3235_v30, 4  ;;  %v14347_v30 = vld [vmem:[%s16758_s23 + $0x18] sm:$0xf] }
  0xde   : > { %v2718_v45 = vsel %vm16786_vm4, %v2713_v40, %v2717_v38  ;;  %v17789_v46 = vrot.slane %v2726_v12, 4  ;;  %v3242_v10 = vrot.slane %v14176_v16, 5  ;;  %v3245_v19 = vrot.slane %v17759_v18, 5 }
  0xdf   : > { %v14196_v34 = vcombine.low %v2684_v23, %v2694_v21  ;;  %v17793_v33 = vrot.slane %v2736_v13, 4  ;;  %v3239_v24 = vsel %vm17048_vm7, %v3237_v55, %v3238_v43  ;;  %v2744_v50 = vshrl.u32 %v14178_v25, 16 }
  0xe0   : > { %15724 = vmatmul.mubr.msk.bf16.gmra.mxu0 %vm1037_vm3, %v17697_v59  ;;  %15762 = vmatmul.mubr.msk.bf16.gmra.mxu1 %vm1037_vm3, %v14261_v17  ;;  %v14197_v60 = vcombine.low %v2708_v32, %v2718_v45  ;;  %v14262_v61 = vcombine.low %v3236_v39, %v3239_v24  ;;  %v3243_v6 = vsel %vm17048_vm7, %v14246_v53, %v3242_v10  ;;  %v3244_v23 = vrot.slane %v3242_v10, 4 }
  0xe1   : > { %15727 = vmatprep.mubr.msk.bf16.mxu0 %vm1037_vm3, %v17742_v47  ;;  %v2732_v15 = vsel %vm16786_vm4, %v17789_v46, %v17770_v58  ;;  %v2746_v59 = vrot.slane %v2744_v50, 4  ;;  %v2747_v56 = vshll.u32 %v14178_v25, 16  ;;  %v2753_v54 = vshll.u32 %v17777_v28, 16 }
  0xe2   : > { %v2742_v16 = vsel %vm16786_vm4, %v17793_v33, %v17773_v63  ;;  %15765 = vmatprep.mubr.msk.bf16.mxu1 %vm1037_vm3, %v14262_v61  ;;  %v3246_v47 = vsel %vm17048_vm7, %v3244_v23, %v3245_v19  ;;  %v2757_v21 = vshrl.u32 %v17777_v28, 16  ;;  %v2763_v57 = vshll.u32 %v17785_v8, 16  ;;  %v14350_v19 = vld [vmem:[%s16758_s23 + $0x24] sm:$0xf] }
  0xe3   : > { %v14263_v0 = vcombine.low %v3243_v6, %v3246_v47  ;;  %v2749_v7 = vrot.slane %v2747_v56, 5  ;;  %v2755_v18 = vrot.slane %v2753_v54, 5  ;;  %v2768_v17 = vshrl.u32 %v14181_v3, 16  ;;  %v17861_v6 = vld [vmem:[%s16758_s23 + $0x28] sm:$0xf] }
  0xe4   : > { %v2759_v27 = vrot.slane %v2757_v21, 4  ;;  %v2765_v1 = vrot.slane %v2763_v57, 5  ;;  %v2771_v48 = vshll.u32 %v14181_v3, 16  ;;  %v2777_v52 = vshll.u32 %v17798_v51, 16 }
  0xe5   : > { %v2750_v38 = vor.u32 %v2749_v7, %v2746_v59  ;;  %v2770_v41 = vrot.slane %v2768_v17, 4  ;;  %v2781_v42 = vshrl.u32 %v17798_v51, 16  ;;  %v2787_v4 = vshll.u32 %v17806_v29, 16  ;;  %v14353_v7 = vld [vmem:[%s16758_s23 + $0x30] sm:$0xf] }
  0xe6   : > { %v2760_v20 = vor.u32 %v2759_v27, %v2755_v18  ;;  %v2773_v44 = vrot.slane %v2771_v48, 5  ;;  %v17829_v31 = vrot.slane %v2777_v52, 5  ;;  %v14247_v5 = vrot.slane %v14231_v49, 9 }
  0xe7   : > { %v2751_v14 = vrot.slane %v2750_v38, 4  ;;  %v2783_v62 = vrot.slane %v2781_v42, 4  ;;  %v17831_v58 = vrot.slane %v2787_v4, 5  ;;  %v3249_v9 = vrot.slane %v17777_v28, 5  ;;  %v14348_v28 = vld [vmem:[%s16758_s23 + $0x1c] sm:$0xf] }
  0xe8   : > { %15728 = vmatmul.mubr.msk.bf16.gmra.mxu0 %vm1037_vm3, %v14196_v34  ;;  %15766 = vmatmul.mubr.msk.bf16.gmra.mxu1 %vm1037_vm3, %v14263_v0  ;;  %v2761_v25 = vrot.slane %v2760_v20, 4  ;;  %v2774_v26 = vor.u32 %v2773_v44, %v2770_v41  ;;  %v3252_v22 = vrot.slane %v17785_v8, 5  ;;  %v14248_v63 = vrot.slane %v14232_v35, 9  ;;  %v14349_v8 = vld [vmem:[%s16758_s23 + $0x20] sm:$0x1]  ;;  %v16344_v4 = vld [vmem:[%s16758_s23 + $0x18] sm:$0xff]  }
  0xe9   : > { %15731 = vmatprep.mubr.msk.bf16.mxu0 %vm1037_vm3, %v14197_v60  ;;  %v2756_v40 = vsel %vm16786_vm4, %v2751_v14, %v2755_v18  ;;  %v2784_v12 = vor.u32 %v2783_v62, %v17829_v31  ;;  %v3250_v43 = vsel %vm17048_vm7, %v14247_v5, %v3249_v9  ;;  %v3251_v53 = vrot.slane %v3249_v9, 4  ;;  %v14355_v5 = vld [vmem:[%s16758_s23 + $0x38] sm:$0x1] }
  0xea   : > { %v2766_v32 = vsel %vm16786_vm4, %v2761_v25, %v2765_v1  ;;  %v2775_v13 = vrot.slane %v2774_v26, 4  ;;  %v3256_v39 = vrot.slane %v17798_v51, 5  ;;  %v3259_v55 = vrot.slane %v17806_v29, 5  ;;  %v14354_v1 = vld [vmem:[%s16758_s23 + $0x34] sm:$0xf] }
  0xeb   : > { %v2785_v45 = vrot.slane %v2784_v12, 4  ;;  %v3253_v46 = vsel %vm17048_vm7, %v3251_v53, %v3252_v22  ;;  %v4445_v10 = vsel %vm1086_vm0, %v17375_v2, 0  ;;  %v14198_v3 = vcombine.low %v2732_v15, %v2742_v16  ;;  %v17870_v16 = vld [vmem:[%s16758_s23 + $0x2c] sm:$0x1]  ;;  %v14356_v26 = vld [vmem:[%s16758_s23 + $0x3c] sm:$0xf] }
  0xec   : > { %v14264_v34 = vcombine.low %v3250_v43, %v3253_v46  ;;  %v3257_v33 = vsel %vm17048_vm7, %v14248_v63, %v3256_v39  ;;  %v3258_v24 = vrot.slane %v3256_v39, 4  ;;  %15808 = vmatpush3.bf16.msra.mxu1 %v4445_v10  ;;  %v14199_v50 = vcombine.low %v2756_v40, %v2766_v32 }
  0xed   : > { %v2780_v51 = vsel %vm16786_vm4, %v2775_v13, %v17829_v31  ;;  %v3963_v60 = vshrl.u32 %v14347_v30, 16  ;;  %v3966_v61 = vshll.u32 %v14347_v30, 16  ;;  %v2790_v2 = vsel %vm16786_vm4, %v2785_v45, %v17831_v58  ;;  %v14357_v45 = vld [vmem:[%s16758_s23 + $0x40] sm:$0xf] }
  0xee   : > { %15769 = vmatprep.mubr.msk.bf16.mxu1 %vm1037_vm3, %v14264_v34  ;;  %v3260_v23 = vsel %vm17048_vm7, %v3258_v24, %v3259_v55  ;;  %v3972_v29 = vshll.u32 %v14348_v28, 16  ;;  %v3976_v15 = vshrl.u32 %v14348_v28, 16  ;;  %v3982_v49 = vshll.u32 %v14349_v8, 16  ;;  %v17892_v24 = vld [vmem:[%s16758_s23 + $0x44] sm:$0x1] }
  0xef   : > { %v14265_v59 = vcombine.low %v3257_v33, %v3260_v23  ;;  %v3965_v56 = vrot.slane %v3963_v60, 4  ;;  %v3968_v54 = vrot.slane %v3966_v61, 5  ;;  %v3987_v57 = vshrl.u32 %v14350_v19, 16 }
  0xf0   : > { %15732 = vmatmul.mubr.msk.bf16.gmra.mxu0 %vm1037_vm3, %v14198_v3  ;;  %v3974_v47 = vrot.slane %v3972_v29, 5  ;;  %v3978_v21 = vrot.slane %v3976_v15, 4  ;;  %v3990_v0 = vshll.u32 %v14350_v19, 16  ;;  %v3984_v17 = vrot.slane %v3982_v49, 5  ;;  %v14359_v49 = vld [vmem:[%s16758_s23 + $0x48] sm:$0xf] }
  0xf1   : > { %15735 = vmatprep.mubr.msk.bf16.mxu0 %vm1037_vm3, %v14199_v50  ;;  %15770 = vmatmul.mubr.msk.bf16.gmra.mxu1 %vm1037_vm3, %v14265_v59  ;;  %v3969_v18 = vor.u32 %v3968_v54, %v3965_v56  ;;  %v3996_v35 = vshll.u32 %v17861_v6, 16  ;;  %v4000_v27 = vshrl.u32 %v17861_v6, 16  ;;  %v3989_v38 = vrot.slane %v3987_v57, 4 }
  0xf2   : > { %v15607_v48 = vpop.f32.mrf.mxu1  ;;  %v3979_v52 = vor.u32 %v3978_v21, %v3974_v47  ;;  %v3992_v41 = vrot.slane %v3990_v0, 5  ;;  %v4006_v42 = vshll.u32 %v17870_v16, 16  ;;  %v14200_v14 = vcombine.low %v2780_v51, %v2790_v2  ;;  %v16345_v2 = vld [vmem:[%s16758_s23 + $0x24] sm:$0xff]   ;;  %v16346_v21 = vld [vmem:[%s16758_s23 + $0x30] sm:$0xff]  }
  0xf3   : > { %v3970_v20 = vrot.slane %v3969_v18, 4  ;;  %v3998_v44 = vrot.slane %v3996_v35, 5  ;;  %v4002_v31 = vrot.slane %v4000_v27, 4  ;;  %v4011_v30 = vshrl.u32 %v14353_v7, 16  ;;  %v17906_v18 = vld [vmem:[%s16758_s23 + $0x4c] sm:$0xf] }
  0xf4   : > { %v3980_v62 = vrot.slane %v3979_v52, 4  ;;  %v1416_v58 = vpop.f32.mrf.mxu1  ;;  %v3993_v9 = vor.u32 %v3992_v41, %v3989_v38  ;;  %v4008_v25 = vrot.slane %v4006_v42, 5  ;;  %v4014_v40 = vshll.u32 %v14353_v7, 16  ;;  %v17911_v38 = vld [vmem:[%s16758_s23 + $0x50] sm:$0x1] }
  0xf5   : > { %v3975_v22 = vsel %vm16786_vm4, %v3970_v20, %v3974_v47  ;;  %v4003_v63 = vor.u32 %v4002_v31, %v3998_v44  ;;  %v4020_v28 = vshll.u32 %v14354_v1, 16  ;;  %v4024_v32 = vshrl.u32 %v14354_v1, 16  ;;  %v14362_v41 = vld [vmem:[%s16758_s23 + $0x54] sm:$0xf] }
  0xf6   : > { %v3985_v12 = vsel %vm16786_vm4, %v3980_v62, %v3984_v17  ;;  %v3994_v43 = vrot.slane %v3993_v9, 4  ;;  %v15608_v53 = vpop.f32.mrf.mxu1  ;;  %v4013_v55 = vrot.slane %v4011_v30, 4  ;;  %v4016_v8 = vrot.slane %v4014_v40, 5 }
  0xf7   : > { %v14396_v13 = vcombine.low %v3975_v22, %v3985_v12  ;;  %v4004_v39 = vrot.slane %v4003_v63, 4  ;;  %v15573_v46 = vpop.f32.mrf.mxu0  ;;  %v4022_v3 = vrot.slane %v4020_v28, 5  ;;  %v4026_v34 = vrot.slane %v4024_v32, 4  ;;  %v17925_v63 = vld [vmem:[%s16758_s23 + $0x58] sm:$0xf] }
  0xf8   : > { %15736 = vmatmul.mubr.msk.bf16.gmra.mxu0 %vm1037_vm3, %v14200_v14  ;;  %v3999_v10 = vsel %vm16786_vm4, %v3994_v43, %v3998_v44  ;;  %v1419_v19 = vpop.f32.mrf.mxu1  ;;  %v4030_v33 = vshll.u32 %v14355_v5, 16  ;;  %v17895_v50 = vadd.f32 %v15607_v48, %v15573_v46  ;;  %v4017_v60 = vor.u32 %v4016_v8, %v4013_v55 }
  0xf9   : > { %15775 = vmatprep.mubr.msk.bf16.mxu0 %vm1037_vm3, %v16344_v4  ;;  %15809 = vmatprep.mubr.msk.bf16.mxu1 %vm1037_vm3, %v14396_v13  ;;  %v4009_v51 = vsel %vm16786_vm4, %v4004_v39, %v4008_v25  ;;  %v4035_v61 = vshrl.u32 %v14356_v26, 16  ;;  %v1124_v23 = vpop.f32.mrf.mxu0  ;;  %v4027_v59 = vor.u32 %v4026_v34, %v4022_v3  ;;  %v4038_v54 = vshll.u32 %v14356_v26, 16  ;;  %v17933_v39 = vld [vmem:[%s16758_s23 + $0x5c] sm:$0x1] }
  0xfa   : > { %v14397_v29 = vcombine.low %v3999_v10, %v4009_v51  ;;  %v15611_v15 = vpop.f32.mrf.mxu1  ;;  %v4032_v56 = vrot.slane %v4030_v33, 5  ;;  %v17902_v47 = vadd.f32 %v1416_v58, %v1124_v23  ;;  %v4018_v57 = vrot.slane %v4017_v60, 4  ;;  %v16348_v33 = vld [vmem:[%s16758_s23 + $0x48] sm:$0xff]  }
  0xfb   : > { %v4037_v0 = vrot.slane %v4035_v61, 4  ;;  %v4044_v7 = vshll.u32 %v14357_v45, 16  ;;  %v15574_v17 = vpop.f32.mrf.mxu0  ;;  %v4028_v35 = vrot.slane %v4027_v59, 4  ;;  %v4040_v1 = vrot.slane %v4038_v54, 5 }
  0xfc   : > { %15810 = vmatmul.mubr.msk.bf16.vlgmr.msra.gmra.mxu1 %vm1037_vm3, %v14397_v29  ;;  %v1432_v27 = vpop.f32.mrf.mxu1  ;;  %v4048_v48 = vshrl.u32 %v14357_v45, 16  ;;  %v4054_v52 = vshll.u32 %v17892_v24, 16  ;;  %v4915_v42 = vsel %vm1086_vm0, %v17622_v11, 0  ;;  %v17916_v4 = vadd.f32 %v15608_v53, %v15574_v17  ;;  %v16347_v45 = vld [vmem:[%s16758_s23 + $0x3c] sm:$0xff]  }
  0xfd   : > { %v4023_v20 = vsel %vm16786_vm4, %v4018_v57, %v4022_v3  ;;  %v4046_v44 = vrot.slane %v4044_v7, 5  ;;  %v1127_v31 = vpop.f32.mrf.mxu0  ;;  %v4033_v5 = vsel %vm16786_vm4, %v4028_v35, %v4032_v56  ;;  %v4041_v14 = vor.u32 %v4040_v1, %v4037_v0  ;;  %v17950_v7 = vld [vmem:[%s16758_s23 + $0x64] sm:$0xf] }
  0xfe   : > { %v4050_v62 = vrot.slane %v4048_v48, 4  ;;  %v4056_v58 = vrot.slane %v4054_v52, 5  ;;  %v15612_v9 = vpop.f32.mrf.mxu1  ;;  %v17922_v25 = vadd.f32 %v1419_v19, %v1127_v31  ;;  %v14398_v26 = vcombine.low %v4023_v20, %v4033_v5  ;;  %v17954_v20 = vld [vmem:[%s16758_s23 + $0x68] sm:$0x1]  ;;  %v14368_v31 = vld [vmem:[%s16758_s23 + $0x6c] sm:$0xf] }
  0xff   : > { %v4059_v22 = vshrl.u32 %v14359_v49, 16  ;;  %v4062_v11 = vshll.u32 %v14359_v49, 16  ;;  %v4042_v30 = vrot.slane %v4041_v14, 4  ;;  %v4068_v43 = vshll.u32 %v17906_v18, 16 }
 0x100   : > { %15776 = vmatmul.mubr.msk.bf16.vlgmr.msra.gmra.mxu0 %vm1037_vm3, %v16345_v2  ;;  %v4051_v40 = vor.u32 %v4050_v62, %v4046_v44  ;;  %v1435_v12 = vpop.f32.mrf.mxu1  ;;  %v4072_v53 = vshrl.u32 %v17906_v18, 16  ;;  %v4078_v13 = vshll.u32 %v17911_v38, 16  ;;  %v4083_v55 = vshrl.u32 %v14362_v41, 16  ;;  %15813 = vmatprep.mubr.msk.bf16.mxu1 %vm1037_vm3, %v14398_v26  ;;  %v14365_v2 = vld [vmem:[%s16758_s23 + $0x60] sm:$0xf] }
 0x101   : > { %15842 = vmatpush3.bf16.msra.mxu0 %v4915_v42  ;;  %15779 = vmatprep.mubr.msk.bf16.mxu0 %vm1037_vm3, %v16346_v21  ;;  %v4061_v28 = vrot.slane %v4059_v22, 4  ;;  %v4064_v32 = vrot.slane %v4062_v11, 5  ;;  %v15577_v8 = vpop.f32.mrf.mxu0  ;;  %v4047_v46 = vsel %vm16786_vm4, %v4042_v30, %v4046_v44  ;;  %v4070_v19 = vrot.slane %v4068_v43, 5 }
 0x102   : > { %v4052_v10 = vrot.slane %v4051_v40, 4  ;;  %v4074_v3 = vrot.slane %v4072_v53, 4  ;;  %v17939_v34 = vadd.f32 %v15611_v15, %v15577_v8  ;;  %v4080_v60 = vrot.slane %v4078_v13, 5  ;;  %v17971_v8 = vld [vmem:[%s16758_s23 + $0x70] sm:$0xf] }
 0x103   : > { %v4065_v51 = vor.u32 %v4064_v32, %v4061_v28  ;;  %v4085_v61 = vrot.slane %v4083_v55, 4  ;;  %v1140_v23 = vpop.f32.mrf.mxu0  ;;  %v15615_v59 = vpop.f32.mrf.mxu1  ;;  %v4086_v54 = vshll.u32 %v14362_v41, 16  ;;  %v4092_v49 = vshll.u32 %v17925_v63, 16 }
 0x104   : > { %v4057_v29 = vsel %vm16786_vm4, %v4052_v10, %v4056_v58  ;;  %v4075_v56 = vor.u32 %v4074_v3, %v4070_v19  ;;  %v17946_v21 = vadd.f32 %v1432_v27, %v1140_v23  ;;  %v4096_v0 = vshrl.u32 %v17925_v63, 16  ;;  %v16349_v3 = vld [vmem:[%s16758_s23 + $0x54] sm:$0xff]  }
 0x105   : > { %v14399_v15 = vcombine.low %v4047_v46, %v4057_v29  ;;  %v4066_v57 = vrot.slane %v4065_v51, 4  ;;  %v15578_v17 = vpop.f32.mrf.mxu0  ;;  %v1448_v1 = vpop.f32.mrf.mxu1  ;;  %v4088_v48 = vrot.slane %v4086_v54, 5  ;;  %v4094_v52 = vrot.slane %v4092_v49, 5 }
 0x106   : > { %v4076_v35 = vrot.slane %v4075_v56, 4  ;;  %v4102_v42 = vshll.u32 %v17933_v39, 16  ;;  %v17957_v27 = vadd.f32 %v15612_v9, %v15578_v17  ;;  %v4098_v44 = vrot.slane %v4096_v0, 4  ;;  %v16350_v56 = vld [vmem:[%s16758_s23 + $0x60] sm:$0xff]  }
 0x107   : > { %15814 = vmatmul.mubr.msk.bf16.gmra.mxu1 %vm1037_vm3, %v14399_v15  ;;  %v4071_v41 = vsel %vm16786_vm4, %v4066_v57, %v4070_v19  ;;  %v1143_v5 = vpop.f32.mrf.mxu0  ;;  %v4089_v62 = vor.u32 %v4088_v48, %v4085_v61  ;;  %v15616_v26 = vpop.f32.mrf.mxu1  ;;  %v4107_v22 = vshrl.u32 %v14365_v2, 16  ;;  %v4110_v40 = vshll.u32 %v14365_v2, 16  ;;  %v17978_v19 = vld [vmem:[%s16758_s23 + $0x74] sm:$0x1]  ;;  %v14371_v15 = vld [vmem:[%s16758_s23 + $0x78] sm:$0xf] }
 0x108   : > { %15780 = vmatmul.mubr.msk.bf16.gmra.mxu0 %vm1037_vm3, %v16347_v45  ;;  %v4081_v14 = vsel %vm16786_vm4, %v4076_v35, %v4080_v60  ;;  %v4104_v58 = vrot.slane %v4102_v42, 5  ;;  %v17965_v11 = vadd.f32 %v1435_v12, %v1143_v5  ;;  %v4099_v30 = vor.u32 %v4098_v44, %v4094_v52  ;;  %v17990_v42 = vld [vmem:[%s16758_s23 + $0x7c] sm:$0xf] }
 0x109   : > { %15783 = vmatprep.mubr.msk.bf16.mxu0 %vm1037_vm3, %v16348_v33  ;;  %v14400_v9 = vcombine.low %v4071_v41, %v4081_v14  ;;  %v4090_v53 = vrot.slane %v4089_v62, 4  ;;  %v1451_v28 = vpop.f32.mrf.mxu1  ;;  %v4109_v32 = vrot.slane %v4107_v22, 4  ;;  %v4116_v13 = vshll.u32 %v17950_v7, 16  ;;  %v17997_v14 = vld [vmem:[%s16758_s23 + $0x80] sm:$0x1] }
 0x10a   : > { %v15581_v43 = vpop.f32.mrf.mxu0  ;;  %v4120_v55 = vshrl.u32 %v17950_v7, 16  ;;  %v4100_v45 = vrot.slane %v4099_v30, 4  ;;  %v4112_v46 = vrot.slane %v4110_v40, 5  ;;  %v4126_v10 = vshll.u32 %v17954_v20, 16 }
 0x10b   : > { %v17973_v12 = vadd.f32 %v15615_v59, %v15581_v43  ;;  %15817 = vmatprep.mubr.msk.bf16.mxu1 %vm1037_vm3, %v14400_v9  ;;  %v4095_v51 = vsel %vm16786_vm4, %v4090_v53, %v4094_v52  ;;  %v4118_v61 = vrot.slane %v4116_v13, 5  ;;  %v4131_v23 = vshrl.u32 %v14368_v31, 16  ;;  %v14374_v53 = vld [vmem:[%s16758_s23 + $0x84] sm:$0xf] }
 0x10c   : > { %v1156_v33 = vpop.f32.mrf.mxu0  ;;  %v15619_v60 = vpop.f32.mrf.mxu1  ;;  %v4122_v2 = vrot.slane %v4120_v55, 4  ;;  %v4105_v59 = vsel %vm16786_vm4, %v4100_v45, %v4104_v58  ;;  %v4113_v54 = vor.u32 %v4112_v46, %v4109_v32  ;;  %v4128_v49 = vrot.slane %v4126_v10, 5  ;;  %v16351_v32 = vld [vmem:[%s16758_s23 + $0x6c] sm:$0xff]  }
 0x10d   : > { %v17983_v29 = vadd.f32 %v1448_v1, %v1156_v33  ;;  %v14401_v57 = vcombine.low %v4095_v51, %v4105_v59  ;;  %v4133_v48 = vrot.slane %v4131_v23, 4  ;;  %v4134_v52 = vshll.u32 %v14368_v31, 16 }
 0x10e   : > { %v15582_v0 = vpop.f32.mrf.mxu0  ;;  %v4123_v17 = vor.u32 %v4122_v2, %v4118_v61  ;;  %v1464_v35 = vpop.f32.mrf.mxu1  ;;  %v4114_v1 = vrot.slane %v4113_v54, 4  ;;  %v4140_v44 = vshll.u32 %v17971_v8, 16  ;;  %v4144_v5 = vshrl.u32 %v17971_v8, 16 }
 0x10f   : > { %v17992_v41 = vadd.f32 %v15616_v26, %v15582_v0  ;;  %15818 = vmatmul.mubr.msk.bf16.gmra.mxu1 %vm1037_vm3, %v14401_v57  ;;  %v4136_v31 = vrot.slane %v4134_v52, 5  ;;  %v4150_v22 = vshll.u32 %v17978_v19, 16  ;;  %v4155_v10 = vshrl.u32 %v14371_v15, 16  ;;  %v16352_v0 = vld [vmem:[%s16758_s23 + $0x78] sm:$0xff]   ;;  %v14377_v52 = vld [vmem:[%s16758_s23 + $0x90] sm:$0xf] }
 0x110   : > { %15784 = vmatmul.mubr.msk.bf16.gmra.mxu0 %vm1037_vm3, %v16349_v3  ;;  %v1159_v62 = vpop.f32.mrf.mxu0  ;;  %v4124_v58 = vrot.slane %v4123_v17, 4  ;;  %v15620_v26 = vpop.f32.mrf.mxu1  ;;  %v4119_v30 = vsel %vm16786_vm4, %v4114_v1, %v4118_v61  ;;  %v4142_v40 = vrot.slane %v4140_v44, 5  ;;  %v4146_v43 = vrot.slane %v4144_v5, 4  ;;  %v18013_v61 = vld [vmem:[%s16758_s23 + $0x88] sm:$0xf] }
 0x111   : > { %v18002_v9 = vadd.f32 %v1451_v28, %v1159_v62  ;;  %15787 = vmatprep.mubr.msk.bf16.mxu0 %vm1037_vm3, %v16350_v56  ;;  %v4137_v55 = vor.u32 %v4136_v31, %v4133_v48  ;;  %v4152_v45 = vrot.slane %v4150_v22, 5  ;;  %v4158_v33 = vshll.u32 %v14371_v15, 16  ;;  %v18022_v15 = vld [vmem:[%s16758_s23 + $0x8c] sm:$0x1] }
 0x112   : > { %v4129_v13 = vsel %vm16786_vm4, %v4124_v58, %v4128_v49  ;;  %v1467_v46 = vpop.f32.mrf.mxu1  ;;  %v4147_v3 = vor.u32 %v4146_v43, %v4142_v40  ;;  %v4164_v51 = vshll.u32 %v17990_v42, 16  ;;  %v4157_v59 = vrot.slane %v4155_v10, 4 }
 0x113   : > { %v14402_v28 = vcombine.low %v4119_v30, %v4129_v13  ;;  %v4138_v23 = vrot.slane %v4137_v55, 4  ;;  %v4168_v56 = vshrl.u32 %v17990_v42, 16  ;;  %v4174_v54 = vshll.u32 %v17997_v14, 16 }
 0x114   : > { %v15585_v2 = vpop.f32.mrf.mxu0  ;;  %v4148_v57 = vrot.slane %v4147_v3, 4  ;;  %v4160_v17 = vrot.slane %v4158_v33, 5  ;;  %v4166_v48 = vrot.slane %v4164_v51, 5  ;;  %v4179_v31 = vshrl.u32 %v14374_v53, 16 }
 0x115   : > { %v18017_v49 = vadd.f32 %v15619_v60, %v15585_v2  ;;  %15821 = vmatprep.mubr.msk.bf16.mxu1 %vm1037_vm3, %v14402_v28  ;;  %v4143_v44 = vsel %vm16786_vm4, %v4138_v23, %v4142_v40  ;;  %v15623_v5 = vpop.f32.mrf.mxu1  ;;  %v4170_v62 = vrot.slane %v4168_v56, 4  ;;  %v4176_v58 = vrot.slane %v4174_v54, 5 }
 0x116   : > { %v1172_v1 = vpop.f32.mrf.mxu0  ;;  %v4153_v60 = vsel %vm16786_vm4, %v4148_v57, %v4152_v45  ;;  %v4161_v30 = vor.u32 %v4160_v17, %v4157_v59  ;;  %v4182_v43 = vshll.u32 %v14374_v53, 16  ;;  %v4181_v40 = vrot.slane %v4179_v31, 4  ;;  %v18038_v53 = vld [vmem:[%s16758_s23 + $0x94] sm:$0xf]  ;;  %v14380_v57 = vld [vmem:[%s16758_s23 + $0x9c] sm:$0xf] }
 0x117   : > { %v18027_v22 = vadd.f32 %v1464_v35, %v1172_v1  ;;  %v14403_v13 = vcombine.low %v4143_v44, %v4153_v60  ;;  %v4171_v10 = vor.u32 %v4170_v62, %v4166_v48  ;;  %v1480_v28 = vpop.f32.mrf.mxu1  ;;  %v4188_v3 = vshll.u32 %v18013_v61, 16  ;;  %v16353_v31 = vld [vmem:[%s16758_s23 + $0x84] sm:$0xff]  }
 0x118   : > { %15788 = vmatmul.mubr.msk.bf16.gmra.mxu0 %vm1037_vm3, %v16351_v32  ;;  %v15586_v55 = vpop.f32.mrf.mxu0  ;;  %v4162_v35 = vrot.slane %v4161_v30, 4  ;;  %v4184_v51 = vrot.slane %v4182_v43, 5  ;;  %v4192_v45 = vshrl.u32 %v18013_v61, 16  ;;  %v18041_v32 = vld [vmem:[%s16758_s23 + $0x98] sm:$0x1]  ;;  %v4198_v56 = vshll.u32 %v18022_v15, 16 }
 0x119   : > { %20712 = vst [vmem:[#allocation18_spill] sm:$0xff] %v18027_v22  ;;  %v18033_v33 = vadd.f32 %v15620_v26, %v15586_v55  ;;  %15791 = vmatprep.mubr.msk.bf16.mxu0 %vm1037_vm3, %v16352_v0  ;;  %15822 = vmatmul.mubr.msk.bf16.gmra.mxu1 %vm1037_vm3, %v14403_v13  ;;  %v4172_v23 = vrot.slane %v4171_v10, 4  ;;  %v4190_v59 = vrot.slane %v4188_v3, 5  ;;  %v15624_v26 = vpop.f32.mrf.mxu1  ;;  %v4203_v54 = vshrl.u32 %v14377_v52, 16  ;;  %v18110_v22 = vld [vmem:[%s16758_s23 + $0xbc] sm:$0x1] }
 0x11a   : > { %v1175_v2 = vpop.f32.mrf.mxu0  ;;  %v4167_v17 = vsel %vm16786_vm4, %v4162_v35, %v4166_v48  ;;  %v4185_v1 = vor.u32 %v4184_v51, %v4181_v40  ;;  %v4194_v44 = vrot.slane %v4192_v45, 4  ;;  %v4200_v30 = vrot.slane %v4198_v56, 5  ;;  %v16354_v48 = vld [vmem:[%s16758_s23 + $0x90] sm:$0xff]   ;;  %v18059_v40 = vld [vmem:[%s16758_s23 + $0xa0] sm:$0xf]  ;;  %20727 = vst [vmem:[#allocation33_spill] sm:$0xff] %v18110_v22 }
 0x11b   : > { %20713 = vst [vmem:[#allocation19_spill] sm:$0xff] %v18033_v33  ;;  %v18046_v0 = vadd.f32 %v1467_v46, %v1175_v2  ;;  %v4177_v60 = vsel %vm16786_vm4, %v4172_v23, %v4176_v58  ;;  %v18053_v43 = vpop.f32.mrf.mxu1  ;;  %v4205_v13 = vrot.slane %v4203_v54, 4  ;;  %v4206_v55 = vshll.u32 %v14377_v52, 16  ;;  %20717 = vst [vmem:[#allocation23_spill] sm:$0xff] %v18059_v40  ;;  %v18065_v54 = vld [vmem:[%s16758_s23 + $0xa4] sm:$0x1] }
 0x11c   : > { %v15589_v62 = vpop.f32.mrf.mxu0  ;;  %20715 = vst [vmem:[#allocation21_spill] sm:$0xff] %v18053_v43  ;;  %v14404_v46 = vcombine.low %v4167_v17, %v4177_v60  ;;  %v4186_v3 = vrot.slane %v4185_v1, 4  ;;  %v4195_v2 = vor.u32 %v4194_v44, %v4190_v59  ;;  %v4212_v58 = vshll.u32 %v18038_v53, 16  ;;  %20718 = vst [vmem:[#allocation24_spill] sm:$0xff] %v18065_v54  ;;  %v14383_v44 = vld [vmem:[%s16758_s23 + $0xa8] sm:$0xf] }
 0x11d   : > { %20714 = vst [vmem:[#allocation20_spill] sm:$0xff] %v18046_v0  ;;  %v18055_v10 = vadd.f32 %v15623_v5, %v15589_v62  ;;  %v4208_v45 = vrot.slane %v4206_v55, 5  ;;  %v4216_v23 = vshrl.u32 %v18038_v53, 16  ;;  %v4222_v56 = vshll.u32 %v18041_v32, 16 }
 0x11e   : > { %v1188_v35 = vpop.f32.mrf.mxu0  ;;  %v15627_v51 = vpop.f32.mrf.mxu1  ;;  %15825 = vmatprep.mubr.msk.bf16.mxu1 %vm1037_vm3, %v14404_v46  ;;  %v4191_v5 = vsel %vm16786_vm4, %v4186_v3, %v4190_v59  ;;  %v4196_v17 = vrot.slane %v4195_v2, 4  ;;  %v4227_v1 = vshrl.u32 %v14380_v57, 16  ;;  %v4214_v55 = vrot.slane %v4212_v58, 5  ;;  %v18080_v2 = vld [vmem:[%s16758_s23 + $0xac] sm:$0xf] }
 0x11f   : > { %20716 = vst [vmem:[#allocation22_spill] sm:$0xff] %v18055_v10  ;;  %v18068_v52 = vadd.f32 %v1480_v28, %v1188_v35  ;;  %v4209_v60 = vor.u32 %v4208_v45, %v4205_v13  ;;  %v4218_v43 = vrot.slane %v4216_v23, 4  ;;  %v4224_v10 = vrot.slane %v4222_v56, 5  ;;  %20721 = vst [vmem:[#allocation27_spill] sm:$0xff] %v18080_v2 }
 0x120   : > { %15792 = vmatmul.mubr.msk.bf16.gmra.mxu0 %vm1037_vm3, %v16353_v31  ;;  %v15590_v62 = vpop.f32.mrf.mxu0  ;;  %v1496_v0 = vpop.f32.mrf.mxu1  ;;  %v4201_v28 = vsel %vm16786_vm4, %v4196_v17, %v4200_v30  ;;  %v4229_v59 = vrot.slane %v4227_v1, 4  ;;  %v4230_v3 = vshll.u32 %v14380_v57, 16  ;;  %v4236_v58 = vshll.u32 %v18059_v40, 16  ;;  %v16355_v57 = vld [vmem:[%s16758_s23 + $0x9c] sm:$0xff]  }
 0x121   : > { %20719 = vst [vmem:[#allocation25_spill] sm:$0xff] %v18068_v52  ;;  %v18076_v46 = vadd.f32 %v15624_v26, %v15590_v62  ;;  %15795 = vmatprep.mubr.msk.bf16.mxu0 %vm1037_vm3, %v16354_v48  ;;  %v14405_v31 = vcombine.low %v4191_v5, %v4201_v28  ;;  %v4210_v13 = vrot.slane %v4209_v60, 4  ;;  %v4219_v45 = vor.u32 %v4218_v43, %v4214_v55  ;;  %v18088_v48 = vld [vmem:[%s16758_s23 + $0xb0] sm:$0x1]  ;;  %v14386_v60 = vld [vmem:[%s16758_s23 + $0xb4] sm:$0xf] }
 0x122   : > { %v18082_v35 = vpop.f32.mrf.mxu0  ;;  %v15628_v23 = vpop.f32.mrf.mxu1  ;;  %v4232_v30 = vrot.slane %v4230_v3, 5  ;;  %v4240_v26 = vshrl.u32 %v18059_v40, 16  ;;  %v4246_v56 = vshll.u32 %v18065_v54, 16  ;;  %20723 = vst [vmem:[#allocation29_spill] sm:$0xff] %v18088_v48  ;;  %v4238_v43 = vrot.slane %v4236_v58, 5 }
 0x123   : > { %20720 = vst [vmem:[#allocation26_spill] sm:$0xff] %v18076_v46  ;;  %20722 = vst [vmem:[#allocation28_spill] sm:$0xff] %v18082_v35  ;;  %15826 = vmatmul.mubr.msk.bf16.gmra.mxu1 %vm1037_vm3, %v14405_v31  ;;  %v4215_v5 = vsel %vm16786_vm4, %v4210_v13, %v4214_v55  ;;  %v4220_v17 = vrot.slane %v4219_v45, 4  ;;  %v4251_v62 = vshrl.u32 %v14383_v44, 16  ;;  %v16356_v46 = vld [vmem:[%s16758_s23 + $0xa8] sm:$0xff]   ;;  %v4254_v52 = vshll.u32 %v14383_v44, 16 }
 0x124   : > { %v18094_v1 = vpop.f32.mrf.mxu1  ;;  %v4233_v28 = vor.u32 %v4232_v30, %v4229_v59  ;;  %v4242_v3 = vrot.slane %v4240_v26, 4  ;;  %v4248_v35 = vrot.slane %v4246_v56, 5  ;;  %v4260_v55 = vshll.u32 %v18080_v2, 16  ;;  %v18103_v45 = vld [vmem:[%s16758_s23 + $0xb8] sm:$0xf] }
 0x125   : > { %20724 = vst [vmem:[#allocation30_spill] sm:$0xff] %v18094_v1  ;;  %v4225_v31 = vsel %vm16786_vm4, %v4220_v17, %v4224_v10  ;;  %v4253_v33 = vrot.slane %v4251_v62, 4  ;;  %v4264_v13 = vshrl.u32 %v18080_v2, 16  ;;  %20725 = vst [vmem:[#allocation31_spill] sm:$0xff] %v18103_v45  ;;  %v4256_v10 = vrot.slane %v4254_v52, 5 }
 0x126   : > { %v15593_v54 = vpop.f32.mrf.mxu0  ;;  %v14406_v1 = vcombine.low %v4215_v5, %v4225_v31  ;;  %v4234_v59 = vrot.slane %v4233_v28, 4  ;;  %v4243_v30 = vor.u32 %v4242_v3, %v4238_v43  ;;  %v4262_v56 = vrot.slane %v4260_v55, 5  ;;  %v14389_v28 = vld [vmem:[%s16758_s23 + $0xc0] sm:$0xf]  ;;  %v16357_v3 = vld [vmem:[%s16758_s23 + $0xb4] sm:$0xff]  }
 0x127   : > { %v18105_v58 = vadd.f32 %v15627_v51, %v15593_v54  ;;  %v15631_v26 = vpop.f32.mrf.mxu1  ;;  %v4266_v17 = vrot.slane %v4264_v13, 4  ;;  %v4270_v62 = vshll.u32 %v18088_v48, 16  ;;  %v4257_v31 = vor.u32 %v4256_v10, %v4253_v33  ;;  %v16358_v48 = vld [vmem:[%s16758_s23 + $0xc0] sm:$0xff]  }
 0x128   : > { %15796 = vmatmul.mubr.msk.bf16.gmra.mxu0 %vm1037_vm3, %v16355_v57  ;;  %v1204_v44 = vpop.f32.mrf.mxu0  ;;  %15829 = vmatprep.mubr.msk.bf16.mxu1 %vm1037_vm3, %v14406_v1  ;;  %v4239_v54 = vsel %vm16786_vm4, %v4234_v59, %v4238_v43  ;;  %v4244_v5 = vrot.slane %v4243_v30, 4  ;;  %v4275_v57 = vshrl.u32 %v14386_v60, 16  ;;  %v4278_v1 = vshll.u32 %v14386_v60, 16  ;;  %v18126_v59 = vld [vmem:[%s16758_s23 + $0xc4] sm:$0xf] }
 0x129   : > { %20726 = vst [vmem:[#allocation32_spill] sm:$0xff] %v18105_v58  ;;  %v18113_v51 = vadd.f32 %v1496_v0, %v1204_v44  ;;  %15799 = vmatprep.mubr.msk.bf16.mxu0 %vm1037_vm3, %v16356_v46  ;;  %v4267_v55 = vor.u32 %v4266_v17, %v4262_v56  ;;  %v4272_v13 = vrot.slane %v4270_v62, 5  ;;  %v1512_v58 = vpop.f32.mrf.mxu1  ;;  %v4284_v46 = vshll.u32 %v18103_v45, 16  ;;  %v18132_v60 = vld [vmem:[%s16758_s23 + $0xc8] sm:$0x1] }
 0x12a   : > { %v15594_v52 = vpop.f32.mrf.mxu0  ;;  %v4249_v0 = vsel %vm16786_vm4, %v4244_v5, %v4248_v35  ;;  %v4277_v43 = vrot.slane %v4275_v57, 4  ;;  %v4258_v33 = vrot.slane %v4257_v31, 4  ;;  %v4280_v17 = vrot.slane %v4278_v1, 5 }
 0x12b   : > { %20728 = vst [vmem:[#allocation34_spill] sm:$0xff] %v18113_v51  ;;  %v18122_v44 = vadd.f32 %v15628_v23, %v15594_v52  ;;  %v14407_v30 = vcombine.low %v4239_v54, %v4249_v0  ;;  %v4268_v10 = vrot.slane %v4267_v55, 4  ;;  %v15632_v62 = vpop.f32.mrf.mxu1  ;;  %v4286_v23 = vrot.slane %v4284_v46, 5  ;;  %v14392_v52 = vld [vmem:[%s16758_s23 + $0xcc] sm:$0xf] }
 0x12c   : > { %v18128_v51 = vpop.f32.mrf.mxu0  ;;  %v4288_v5 = vshrl.u32 %v18103_v45, 16  ;;  %v4294_v57 = vshll.u32 %v18110_v22, 16  ;;  %v4263_v31 = vsel %vm16786_vm4, %v4258_v33, %v4262_v56  ;;  %v4281_v1 = vor.u32 %v4280_v17, %v4277_v43 }
 0x12d   : > { %20729 = vst [vmem:[#allocation35_spill] sm:$0xff] %v18122_v44  ;;  %20730 = vst [vmem:[#allocation36_spill] sm:$0xff] %v18128_v51  ;;  %15830 = vmatmul.mubr.msk.bf16.gmra.mxu1 %vm1037_vm3, %v14407_v30  ;;  %v4273_v55 = vsel %vm16786_vm4, %v4268_v10, %v4272_v13  ;;  %v18143_v0 = vpop.f32.mrf.mxu1  ;;  %v4299_v51 = vshrl.u32 %v14389_v28, 16  ;;  %v4302_v56 = vshll.u32 %v14389_v28, 16  ;;  %v4308_v33 = vshll.u32 %v18126_v59, 16 }
 0x12e   : > { %v15597_v54 = vpop.f32.mrf.mxu0  ;;  %20731 = vst [vmem:[#allocation37_spill] sm:$0xff] %v18143_v0  ;;  %v14408_v46 = vcombine.low %v4263_v31, %v4273_v55  ;;  %v4290_v44 = vrot.slane %v4288_v5, 4  ;;  %v4296_v22 = vrot.slane %v4294_v57, 5  ;;  %v4282_v45 = vrot.slane %v4281_v1, 4  ;;  %v18156_v10 = vld [vmem:[%s16758_s23 + $0xd0] sm:$0xf] }
 0x12f   : > { %v18145_v35 = vadd.f32 %v15631_v26, %v15597_v54  ;;  %v4301_v40 = vrot.slane %v4299_v51, 4  ;;  %v4312_v43 = vshrl.u32 %v18126_v59, 16  ;;  %v4304_v17 = vrot.slane %v4302_v56, 5  ;;  %v18164_v55 = vld [vmem:[%s16758_s23 + $0xd4] sm:$0x1] }
 0x130   : > { %15800 = vmatmul.mubr.msk.bf16.gmra.mxu0 %vm1037_vm3, %v16357_v3  ;;  %v1220_v30 = vpop.f32.mrf.mxu0  ;;  %v15635_v2 = vpop.f32.mrf.mxu1  ;;  %15833 = vmatprep.mubr.msk.bf16.mxu1 %vm1037_vm3, %v14408_v46  ;;  %v4291_v26 = vor.u32 %v4290_v44, %v4286_v23  ;;  %v4318_v3 = vshll.u32 %v18132_v60, 16  ;;  %v4310_v5 = vrot.slane %v4308_v33, 5  ;;  %v4287_v44 = vsel %vm16786_vm4, %v4282_v45, %v4286_v23  ;;  %20735 = vst [vmem:[#allocation41_spill] sm:$0xff] %v18164_v55  ;;  %v16359_v46 = vld [vmem:[%s16758_s23 + $0xcc] sm:$0xff]  }
 0x131   : > { %20732 = vst [vmem:[#allocation38_spill] sm:$0xff] %v18145_v35  ;;  %v18150_v13 = vadd.f32 %v1512_v58, %v1220_v30  ;;  %15803 = vmatprep.mubr.msk.bf16.mxu0 %vm1037_vm3, %v16358_v48  ;;  %v4323_v58 = vshrl.u32 %v14392_v52, 16  ;;  %v4314_v31 = vrot.slane %v4312_v43, 4  ;;  %v4305_v30 = vor.u32 %v4304_v17, %v4301_v40 }
 0x132   : > { %v15598_v28 = vpop.f32.mrf.mxu0  ;;  %v1528_v57 = vpop.f32.mrf.mxu1  ;;  %v4292_v54 = vrot.slane %v4291_v26, 4  ;;  %v4326_v0 = vshll.u32 %v14392_v52, 16  ;;  %v4332_v56 = vshll.u32 %v18156_v10, 16  ;;  %v4320_v23 = vrot.slane %v4318_v3, 5 }
 0x133   : > { %20733 = vst [vmem:[#allocation39_spill] sm:$0xff] %v18150_v13  ;;  %v18161_v48 = vadd.f32 %v15632_v62, %v15598_v28  ;;  %v4325_v51 = vrot.slane %v4323_v58, 4  ;;  %v14428_v13 = vld [vmem:[%s16758_s23 + $0x18] sm:$0xe]  ;;  %v4315_v45 = vor.u32 %v4314_v31, %v4310_v5  ;;  %v4336_v62 = vshrl.u32 %v18156_v10, 16 }
 0x134   : > { %v18166_v1 = vpop.f32.mrf.mxu0  ;;  %v15636_v33 = vpop.f32.mrf.mxu1  ;;  %v4297_v35 = vsel %vm16786_vm4, %v4292_v54, %v4296_v22  ;;  %v4306_v43 = vrot.slane %v4305_v30, 4  ;;  %v4328_v28 = vrot.slane %v4326_v0, 5  ;;  %v4334_v40 = vrot.slane %v4332_v56, 5  ;;  %v16440_v0 = vld [vmem:[%s16758_s23 + $0x1c] sm:$0xf] }
 0x135   : > { %20734 = vst [vmem:[#allocation40_spill] sm:$0xff] %v18161_v48  ;;  %20736 = vst [vmem:[#allocation42_spill] sm:$0xff] %v18166_v1  ;;  %v14409_v26 = vcombine.low %v4287_v44, %v4297_v35  ;;  %v4316_v52 = vrot.slane %v4315_v45, 4  ;;  %v4338_v58 = vrot.slane %v4336_v62, 4  ;;  %v4342_v1 = vshll.u32 %v18164_v55, 16 }
 0x136   : > { %v18174_v17 = vpop.f32.mrf.mxu1  ;;  %v14444_v48 = vrot.slane %v14428_v13, 9  ;;  %v4311_v35 = vsel %vm16786_vm4, %v4306_v43, %v4310_v5  ;;  %v4329_v3 = vor.u32 %v4328_v28, %v4325_v51  ;;  %v4706_v44 = vrot.slane %v16440_v0, 5  ;;  %v16441_v54 = vld [vmem:[%s16758_s23 + $0x20] sm:$0x1]  ;;  %v14429_v30 = vld [vmem:[%s16758_s23 + $0x24] sm:$0xe] }
 0x137   : > { %20737 = vst [vmem:[#allocation43_spill] sm:$0xff] %v18174_v17  ;;  %15834 = vmatmul.mubr.msk.bf16.gmra.mxu1 %vm1037_vm3, %v14409_v26  ;;  %v4709_v31 = vrot.slane %v16441_v54, 5  ;;  %v4321_v13 = vsel %vm16786_vm4, %v4316_v52, %v4320_v23  ;;  %v4339_v62 = vor.u32 %v4338_v58, %v4334_v40  ;;  %v4344_v26 = vrot.slane %v4342_v1, 5  ;;  %v14430_v17 = vld [vmem:[%s16758_s23 + $0x30] sm:$0xe] }
 0x138   : > { %v15601_v22 = vpop.f32.mrf.mxu0  ;;  %15804 = vmatmul.mubr.msk.bf16.gmra.mxu0 %vm1037_vm3, %v16359_v46  ;;  %v18184_v56 = vpop.f32.mrf.mxu1  ;;  %v14410_v46 = vcombine.low %v4311_v35, %v4321_v13  ;;  %v4330_v5 = vrot.slane %v4329_v3, 4  ;;  %v4707_v51 = vsel %vm17048_vm7, %v14444_v48, %v4706_v44  ;;  %v4708_v43 = vrot.slane %v4706_v44, 4  ;;  %v14431_v44 = vld [vmem:[%s16758_s23 + $0x3c] sm:$0xe] }
 0x139   : > { %v18186_v45 = vadd.f32 %v15635_v2, %v15601_v22  ;;  %v4340_v2 = vrot.slane %v4339_v62, 4  ;;  %v14445_v22 = vrot.slane %v14429_v30, 9  ;;  %v20738_v23 = vrot.slane %v17861_v6, 5 }
 0x13a   : > { %v1236_v55 = vpop.f32.mrf.mxu0  ;;  %v18193_v28 = vpop.f32.mrf.mxu1  ;;  %15837 = vmatprep.mubr.msk.bf16.mxu1 %vm1037_vm3, %v14410_v46  ;;  %v4335_v52 = vsel %vm16786_vm4, %v4330_v5, %v4334_v40  ;;  %v4710_v48 = vsel %vm17048_vm7, %v4708_v43, %v4709_v31  ;;  %v14432_v31 = vld [vmem:[%s16758_s23 + $0x48] sm:$0xe]  ;;  %v4730_v46 = vrot.slane %v17892_v24, 5  ;;  %v20740_v43 = vrot.slane %v17870_v16, 5  ;;  %v16444_v16 = vld [vmem:[%s16758_s23 + $0x40] sm:$0xf] }
 0x13b   : > { %v18195_v0 = vadd.f32 %v1528_v57, %v1236_v55  ;;  %v4715_v1 = vrot.slane %v20738_v23, 4  ;;  %v14446_v57 = vrot.slane %v14430_v17, 9  ;;  %v16442_v55 = vld [vmem:[%s16758_s23 + $0x34] sm:$0xf]  ;;  %v4345_v54 = vsel %vm16786_vm4, %v4340_v2, %v4344_v26 }
 0x13c   : > { %v15602_v58 = vpop.f32.mrf.mxu0  ;;  %v18204_v35 = vpop.f32.mrf.mxu1  ;;  %v4720_v3 = vrot.slane %v16442_v55, 5  ;;  %v14461_v13 = vcombine.low %v4707_v51, %v4710_v48  ;;  %v20739_v40 = vmov %v20738_v23  ;;  %v14411_v17 = vcombine.low %v4335_v52, %v4345_v54  ;;  %v14433_v51 = vld [vmem:[%s16758_s23 + $0x54] sm:$0xe]  ;;  %v16443_v23 = vld [vmem:[%s16758_s23 + $0x38] sm:$0x1] }
 0x13d   : > { %v18210_v30 = vadd.f32 %v15636_v33, %v15602_v58  ;;  %v4714_v62 = vsel %vm17048_vm7, %v14445_v22, %v20739_v40  ;;  %v4717_v26 = vsel %vm17048_vm7, %v4715_v1, %v20740_v43  ;;  %v4723_v24 = vrot.slane %v16443_v23, 5 }
 0x13e   : > { %v18218_v5 = vpop.f32.mrf.mxu0  ;;  %v4722_v33 = vrot.slane %v4720_v3, 4  ;;  %v18224_v2 = vpop.f32.mrf.mxu1  ;;  %15843 = vmatprep.mubr.msk.bf16.mxu0 %vm1037_vm3, %v14461_v13  ;;  %v14462_v6 = vcombine.low %v4714_v62, %v4717_v26  ;;  %v4721_v22 = vsel %vm17048_vm7, %v14446_v57, %v4720_v3  ;;  %v14447_v52 = vrot.slane %v14431_v44, 9 }
 0x13f   : > { %15838 = vmatmul.mubr.msk.bf16.gmra.mxu1 %vm1037_vm3, %v14411_v17  ;;  %v4727_v48 = vrot.slane %v16444_v16, 5  ;;  %v14448_v1 = vrot.slane %v14432_v31, 9  ;;  %v4734_v54 = vrot.slane %v17906_v18, 5  ;;  %v4737_v40 = vrot.slane %v17911_v38, 5 }
 0x140   : > { %v15641_v58 = vpop.f32.mrf.mxu0  ;;  %v15679_v55 = vpop.f32.mrf.mxu1  ;;  %15844 = vmatmul.mubr.msk.bf16.vlgmr.msra.gmra.mxu0 %vm1037_vm3, %v14462_v6  ;;  %v4724_v57 = vsel %vm17048_vm7, %v4722_v33, %v4723_v24  ;;  %v14449_v3 = vrot.slane %v14433_v51, 9  ;;  %v4741_v44 = vrot.slane %v17925_v63, 5  ;;  %v4744_v62 = vrot.slane %v17933_v39, 5  ;;  %v14434_v63 = vld [vmem:[%s16758_s23 + $0x60] sm:$0xe] }
 0x141   : > { %v1970_v13 = vadd.f32 %v15641_v58, %v17895_v50  ;;  %v14463_v43 = vcombine.low %v4721_v22, %v4724_v57  ;;  %v4728_v18 = vsel %vm17048_vm7, %v14447_v52, %v4727_v48  ;;  %v4729_v31 = vrot.slane %v4727_v48, 4  ;;  %v14435_v48 = vld [vmem:[%s16758_s23 + $0x6c] sm:$0xe] }
 0x142   : > { %v1841_v17 = vpop.f32.mrf.mxu0  ;;  %v2216_v38 = vpop.f32.mrf.mxu1  ;;  %v4735_v33 = vsel %vm17048_vm7, %v14448_v1, %v4734_v54  ;;  %v4736_v51 = vrot.slane %v4734_v54, 4  ;;  %v4742_v23 = vsel %vm17048_vm7, %v14449_v3, %v4741_v44  ;;  %v4748_v24 = vrot.slane %v17950_v7, 5 }
 0x143   : > { %v1968_v26 = vadd.f32 %v1841_v17, %v17902_v47  ;;  %v18245_v50 = vadd.f32 %v18184_v56, %v1970_v13  ;;  %15847 = vmatprep.mubr.msk.bf16.mxu0 %vm1037_vm3, %v14463_v43  ;;  %v4731_v39 = vsel %vm17048_vm7, %v4729_v31, %v4730_v46  ;;  %v4743_v47 = vrot.slane %v4741_v44, 4 }
 0x144   : > { %v15642_v6 = vpop.f32.mrf.mxu0  ;;  %v15680_v22 = vpop.f32.mrf.mxu1  ;;  %v14464_v58 = vcombine.low %v4728_v18, %v4731_v39  ;;  %v4738_v16 = vsel %vm17048_vm7, %v4736_v51, %v4737_v40  ;;  %v14450_v57 = vrot.slane %v14434_v63, 9  ;;  %v4750_v3 = vrot.slane %v4748_v24, 4 }
 0x145   : > { %v1971_v56 = vadd.f32 %v15642_v6, %v17916_v4  ;;  %v18258_v52 = vadd.f32 %v18193_v28, %v1968_v26  ;;  %v14465_v54 = vcombine.low %v4735_v33, %v4738_v16  ;;  %v4745_v13 = vsel %vm17048_vm7, %v4743_v47, %v4744_v62 }
 0x146   : > { %v1844_v1 = vpop.f32.mrf.mxu0  ;;  %v18263_v46 = vpop.f32.mrf.mxu1  ;;  %v14466_v28 = vcombine.low %v4742_v23, %v4745_v13  ;;  %v4751_v44 = vrot.slane %v17954_v20, 5  ;;  %v4758_v40 = vrot.slane %v17978_v19, 5  ;;  %v14451_v18 = vrot.slane %v14435_v48, 9 }
 0x147   : > { %v18268_v7 = vadd.f32 %v1844_v1, %v17922_v25  ;;  %v18271_v4 = vadd.f32 %v18204_v35, %v1971_v56  ;;  %v4755_v31 = vrot.slane %v17971_v8, 5  ;;  %v4749_v26 = vsel %vm17048_vm7, %v14450_v57, %v4748_v24  ;;  %v14436_v8 = vld [vmem:[%s16758_s23 + $0x78] sm:$0xe] }
 0x148   : > { %v15645_v17 = vpop.f32.mrf.mxu0  ;;  %v15683_v43 = vpop.f32.mrf.mxu1  ;;  %15848 = vmatmul.mubr.msk.bf16.gmra.mxu0 %vm1037_vm3, %v14464_v58  ;;  %v4762_v63 = vrot.slane %v17990_v42, 5  ;;  %v14452_v16 = vrot.slane %v14436_v8, 9  ;;  %vm6887_vm0 = vcmask 1046534  }
 0x149   : > { %v1974_v62 = vadd.f32 %v15645_v17, %v17939_v34  ;;  %15851 = vmatprep.mubr.msk.bf16.mxu0 %vm1037_vm3, %v14465_v54  ;;  %v4756_v20 = vsel %vm17048_vm7, %v14451_v18, %v4755_v31  ;;  %v4757_v19 = vrot.slane %v4755_v31, 4  ;;  %v4752_v34 = vsel %vm17048_vm7, %v4750_v3, %v4751_v44  ;;  %v14437_v44 = vld [vmem:[%s16758_s23 + $0x84] sm:$0xe] }
 0x14a   : > { %v1857_v25 = vpop.f32.mrf.mxu0  ;;  %v2232_v35 = vpop.f32.mrf.mxu1  ;;  %v4764_v1 = vrot.slane %v4762_v63, 4  ;;  %v4765_v54 = vrot.slane %v17997_v14, 5 }
 0x14b   : > { %v1972_v33 = vadd.f32 %v1857_v25, %v17946_v21  ;;  %v18284_v51 = vadd.f32 %v15679_v55, %v1974_v62  ;;  %v4759_v23 = vsel %vm17048_vm7, %v4757_v19, %v4758_v40  ;;  %v14467_v21 = vcombine.low %v4749_v26, %v4752_v34 }
 0x14c   : > { %v15646_v6 = vpop.f32.mrf.mxu0  ;;  %v15684_v39 = vpop.f32.mrf.mxu1  ;;  %v14468_v56 = vcombine.low %v4756_v20, %v4759_v23  ;;  %v4766_v14 = vsel %vm17048_vm7, %v4764_v1, %v4765_v54  ;;  %v14453_v26 = vrot.slane %v14437_v44, 9  ;;  %v14440_v54 = vld [vmem:[%s16758_s23 + $0xa8] sm:$0xe] }
 0x14d   : > { %v1975_v47 = vadd.f32 %v15646_v6, %v17957_v27  ;;  %v18293_v24 = vadd.f32 %v2216_v38, %v1972_v33  ;;  %v20744_v44 = vld [vmem:[#allocation19_spill] sm:$0xff] }
 0x14e   : > { %v1860_v58 = vpop.f32.mrf.mxu0  ;;  %v18295_v55 = vpop.f32.mrf.mxu1 }
 0x14f   : > { %v18298_v48 = vadd.f32 %v1860_v58, %v17965_v11  ;;  %v18300_v42 = vadd.f32 %v15680_v22, %v1975_v47  ;;  %v4763_v11 = vsel %vm17048_vm7, %v14452_v16, %v4762_v63  ;;  %v4769_v22 = vrot.slane %v18013_v61, 5  ;;  %v14439_v47 = vld [vmem:[%s16758_s23 + $0x9c] sm:$0xe]  ;;  %v20741_v58 = vld [vmem:[#allocation23_spill] sm:$0xff]  ;;  %v20742_v16 = vld [vmem:[#allocation18_spill] sm:$0xff] }
 0x150   : > { %v15649_v13 = vpop.f32.mrf.mxu0  ;;  %v15687_v27 = vpop.f32.mrf.mxu1  ;;  %15852 = vmatmul.mubr.msk.bf16.gmra.mxu0 %vm1037_vm3, %v14466_v28  ;;  %v4776_v28 = vrot.slane %v18038_v53, 5  ;;  %v14469_v19 = vcombine.low %v4763_v11, %v4766_v14 }
 0x151   : > { %v1978_v38 = vadd.f32 %v15649_v13, %v17973_v12  ;;  %15855 = vmatprep.mubr.msk.bf16.mxu0 %vm1037_vm3, %v14467_v21  ;;  %v14438_v12 = vld [vmem:[%s16758_s23 + $0x90] sm:$0xe]  ;;  %v4783_v21 = vrot.slane %v20741_v58, 5  ;;  %v20743_v13 = vld [vmem:[#allocation27_spill] sm:$0xff] }
 0x152   : > { %v1873_v57 = vpop.f32.mrf.mxu0  ;;  %v2248_v3 = vpop.f32.mrf.mxu1  ;;  %v14454_v33 = vrot.slane %v14438_v12, 9  ;;  %v4778_v8 = vrot.slane %v4776_v28, 4  ;;  %v14455_v12 = vrot.slane %v14439_v47, 9 }
 0x153   : > { %v1976_v40 = vadd.f32 %v1873_v57, %v17983_v29  ;;  %v18311_v17 = vadd.f32 %v15683_v43, %v1978_v38  ;;  %v4771_v29 = vrot.slane %v4769_v22, 4  ;;  %v4772_v43 = vrot.slane %v18022_v15, 5 }
 0x154   : > { %v15650_v18 = vpop.f32.mrf.mxu0  ;;  %v15688_v31 = vpop.f32.mrf.mxu1  ;;  %v4770_v15 = vsel %vm17048_vm7, %v14453_v26, %v4769_v22  ;;  %v4790_v38 = vrot.slane %v20743_v13, 5  ;;  %v20745_v26 = vld [vmem:[#allocation24_spill] sm:$0xff] }
 0x155   : > { %v1979_v62 = vadd.f32 %v15650_v18, %v17992_v41  ;;  %v18318_v25 = vadd.f32 %v2232_v35, %v1976_v40  ;;  %v4779_v41 = vrot.slane %v18041_v32, 5  ;;  %v4777_v32 = vsel %vm17048_vm7, %v14454_v33, %v4776_v28 }
 0x156   : > { %v1876_v20 = vpop.f32.mrf.mxu0  ;;  %v18320_v61 = vpop.f32.mrf.mxu1 }
 0x157   : > { %v18324_v34 = vadd.f32 %v1876_v20, %v18002_v9  ;;  %v18326_v53 = vadd.f32 %v15684_v39, %v1979_v62  ;;  %v4773_v9 = vsel %vm17048_vm7, %v4771_v29, %v4772_v43  ;;  %v4786_v20 = vrot.slane %v20745_v26, 5  ;;  %v20746_v29 = vld [vmem:[#allocation20_spill] sm:$0xff] }
 0x158   : > { %v15653_v35 = vpop.f32.mrf.mxu0  ;;  %v15691_v63 = vpop.f32.mrf.mxu1  ;;  %15856 = vmatmul.mubr.msk.bf16.gmra.mxu0 %vm1037_vm3, %v14468_v56  ;;  %v4780_v56 = vsel %vm17048_vm7, %v4778_v8, %v4779_v41  ;;  %v14470_v14 = vcombine.low %v4770_v15, %v4773_v9  ;;  %v4792_v8 = vrot.slane %v4790_v38, 4  ;;  %v20747_v41 = vld [vmem:[#allocation29_spill] sm:$0xff] }
 0x159   : > { %v1982_v6 = vadd.f32 %v15653_v35, %v18017_v49  ;;  %15859 = vmatprep.mubr.msk.bf16.mxu0 %vm1037_vm3, %v14469_v19  ;;  %v14471_v18 = vcombine.low %v4777_v32, %v4780_v56  ;;  %v14456_v19 = vrot.slane %v14440_v54, 9  ;;  %v4784_v32 = vsel %vm17048_vm7, %v14455_v12, %v4783_v21  ;;  %v20750_v56 = vld [vmem:[#allocation25_spill] sm:$0xff]  ;;  %v14442_v12 = vld [vmem:[%s16758_s23 + $0xc0] sm:$0xe] }
 0x15a   : > { %v1889_v23 = vpop.f32.mrf.mxu0  ;;  %v2264_v39 = vpop.f32.mrf.mxu1 }
 0x15b   : > { %v1980_v49 = vadd.f32 %v1889_v23, %v20742_v16  ;;  %v18341_v1 = vadd.f32 %v15687_v27, %v1982_v6  ;;  %v4785_v27 = vrot.slane %v4783_v21, 4  ;;  %v20748_v23 = vld [vmem:[#allocation22_spill] sm:$0xff]  ;;  %v4791_v58 = vsel %vm17048_vm7, %v14456_v19, %v4790_v38  ;;  %v20749_v16 = vld [vmem:[#allocation31_spill] sm:$0xff] }
 0x15c   : > { %v15654_v57 = vpop.f32.mrf.mxu0  ;;  %v15692_v11 = vpop.f32.mrf.mxu1 }
 0x15d   : > { %v1983_v22 = vadd.f32 %v15654_v57, %v20744_v44  ;;  %v18348_v40 = vadd.f32 %v2248_v3, %v1980_v49  ;;  %v4793_v3 = vrot.slane %v20747_v41, 5  ;;  %v4797_v49 = vrot.slane %v20749_v16, 5  ;;  %v14441_v44 = vld [vmem:[%s16758_s23 + $0xb4] sm:$0xe]  ;;  %v20752_v41 = vld [vmem:[#allocation33_spill] sm:$0xff] }
 0x15e   : > { %v1892_v28 = vpop.f32.mrf.mxu0  ;;  %v18350_v62 = vpop.f32.mrf.mxu1 }
 0x15f   : > { %v18354_v43 = vadd.f32 %v1892_v28, %v20746_v29  ;;  %v18356_v33 = vadd.f32 %v15688_v31, %v1983_v22  ;;  %v4787_v31 = vsel %vm17048_vm7, %v4785_v27, %v4786_v20  ;;  %v4794_v57 = vsel %vm17048_vm7, %v4792_v8, %v4793_v3  ;;  %v20751_v28 = vld [vmem:[#allocation26_spill] sm:$0xff] }
 0x160   : > { %v15657_v35 = vpop.f32.mrf.mxu0  ;;  %v15695_v6 = vpop.f32.mrf.mxu1  ;;  %15860 = vmatmul.mubr.msk.bf16.gmra.mxu0 %vm1037_vm3, %v14470_v14  ;;  %v4804_v22 = vrot.slane %v18126_v59, 5  ;;  %v14472_v38 = vcombine.low %v4784_v32, %v4787_v31  ;;  %v14473_v20 = vcombine.low %v4791_v58, %v4794_v57  ;;  %v4799_v29 = vrot.slane %v4797_v49, 4 }
 0x161   : > { %v1986_v15 = vadd.f32 %v15657_v35, %v20748_v23  ;;  %15863 = vmatprep.mubr.msk.bf16.mxu0 %vm1037_vm3, %v14471_v18  ;;  %v4800_v8 = vrot.slane %v20752_v41, 5  ;;  %v14458_v59 = vrot.slane %v14442_v12, 9  ;;  %v4807_v23 = vrot.slane %v18132_v60, 5  ;;  %v14443_v12 = vld [vmem:[%s16758_s23 + $0xcc] sm:$0xe]  ;;  %s20538_s23 = scalar_lea.sflag [#allocation10], %s13745_s18 }
 0x162   : > { %v1905_v9 = vpop.f32.mrf.mxu0  ;;  %v2280_v47 = vpop.f32.mrf.mxu1  ;;  %v4806_v35 = vrot.slane %v4804_v22, 4 }
 0x163   : > { %v1984_v54 = vadd.f32 %v1905_v9, %v20750_v56  ;;  %v18370_v13 = vadd.f32 %v15691_v63, %v1986_v15  ;;  %v14457_v63 = vrot.slane %v14441_v44, 9  ;;  %v20753_v9 = vld [vmem:[#allocation32_spill] sm:$0xff]  ;;  %v4811_v56 = vrot.slane %v18156_v10, 5 }
 0x164   : > { %v15658_v21 = vpop.f32.mrf.mxu0  ;;  %v15696_v14 = vpop.f32.mrf.mxu1  ;;  %v4805_v44 = vsel %vm17048_vm7, %v14458_v59, %v4804_v22 }
 0x165   : > { %v1987_v18 = vadd.f32 %v15658_v21, %v20751_v28  ;;  %v18378_v27 = vadd.f32 %v2264_v39, %v1984_v54  ;;  %v4798_v58 = vsel %vm17048_vm7, %v14457_v63, %v4797_v49  ;;  %v20754_v54 = vld [vmem:[#allocation34_spill] sm:$0xff]  ;;  %v4808_v21 = vsel %vm17048_vm7, %v4806_v35, %v4807_v23  ;;  %v20755_v49 = vld [vmem:[#allocation35_spill] sm:$0xff] }
 0x166   : > { %v18380_v26 = vpop.f32.mrf.mxu0  ;;  %v18382_v19 = vpop.f32.mrf.mxu1  ;;  %v14475_v10 = vcombine.low %v4805_v44, %v4808_v21 }
 0x167   : > { %v18385_v3 = vadd.f32 %v15692_v11, %v1987_v18  ;;  %v4801_v11 = vsel %vm17048_vm7, %v4799_v29, %v4800_v8  ;;  %v4813_v8 = vrot.slane %v4811_v56, 4 }
 0x168   : > { %v15661_v15 = vpop.f32.mrf.mxu0  ;;  %v15699_v39 = vpop.f32.mrf.mxu1  ;;  %15864 = vmatmul.mubr.msk.bf16.gmra.mxu0 %vm1037_vm3, %v14472_v38  ;;  %v14474_v63 = vcombine.low %v4798_v58, %v4801_v11 }
 0x169   : > { %v1990_v32 = vadd.f32 %v15661_v15, %v20753_v9  ;;  %15867 = vmatprep.mubr.msk.bf16.mxu0 %vm1037_vm3, %v14473_v20  ;;  %v20756_v15 = vld [vmem:[#allocation41_spill] sm:$0xff]  ;;  %v20757_v9 = vld [vmem:[#allocation38_spill] sm:$0xff] }
 0x16a   : > { %v1921_v31 = vpop.f32.mrf.mxu0  ;;  %v2296_v16 = vpop.f32.mrf.mxu1  ;;  %v4814_v22 = vrot.slane %v20756_v15, 5 }
 0x16b   : > { %v1988_v60 = vadd.f32 %v1921_v31, %v20754_v54  ;;  %v18397_v57 = vadd.f32 %v15695_v6, %v1990_v32  ;;  %v14459_v6 = vrot.slane %v14443_v12, 9  ;;  %v20758_v54 = vld [vmem:[#allocation39_spill] sm:$0xff]  ;;  %v20759_v12 = vld [vmem:[#allocation40_spill] sm:$0xff] }
 0x16c   : > { %v15662_v28 = vpop.f32.mrf.mxu0  ;;  %v15700_v18 = vpop.f32.mrf.mxu1  ;;  %v4815_v58 = vsel %vm17048_vm7, %v4813_v8, %v4814_v22 }
 0x16d   : > { %v1991_v38 = vadd.f32 %v15662_v28, %v20755_v49  ;;  %v18405_v20 = vadd.f32 %v2280_v47, %v1988_v60  ;;  %v4812_v31 = vsel %vm17048_vm7, %v14459_v6, %v4811_v56 }
 0x16e   : > { %v18407_v29 = vpop.f32.mrf.mxu0  ;;  %v18409_v41 = vpop.f32.mrf.mxu1 }
 0x16f   : > { %v18412_v59 = vadd.f32 %v15696_v14, %v1991_v38  ;;  %v14476_v38 = vcombine.low %v4812_v31, %v4815_v58 }
 0x170   : > { %v15665_v35 = vpop.f32.mrf.mxu0  ;;  %v15703_v23 = vpop.f32.mrf.mxu1  ;;  %15868 = vmatmul.mubr.msk.bf16.gmra.mxu0 %vm1037_vm3, %v14474_v63 }
 0x171   : > { %v1994_v32 = vadd.f32 %v15665_v35, %v20757_v9  ;;  %15871 = vmatprep.mubr.msk.bf16.mxu0 %vm1037_vm3, %v14475_v10 }
 0x172   : > { %v1937_v47 = vpop.f32.mrf.mxu0  ;;  %v2312_v11 = vpop.f32.mrf.mxu1 }
 0x173   : > { %v1992_v60 = vadd.f32 %v1937_v47, %v20758_v54  ;;  %v18422_v14 = vadd.f32 %v15699_v39, %v1994_v32 }
 0x174   : > { %v15666_v44 = vpop.f32.mrf.mxu0  ;;  %v15704_v21 = vpop.f32.mrf.mxu1 }
 0x175   : > { %v1995_v28 = vadd.f32 %v15666_v44, %v20759_v12  ;;  %v18425_v49 = vadd.f32 %v2296_v16, %v1992_v60 }
 0x176   : > { %v18427_v63 = vpop.f32.mrf.mxu0  ;;  %v18429_v10 = vpop.f32.mrf.mxu1 }
 0x177   : > { %v18431_v56 = vadd.f32 %v15700_v18, %v1995_v28 }
 0x178   : > { %v15669_v6 = vpop.f32.mrf.mxu0  ;;  %v15743_v8 = vpop.f32.mrf.mxu1  ;;  %15872 = vmatmul.mubr.msk.bf16.gmra.mxu0 %vm1037_vm3, %v14476_v38  ;;  %vm7437_vm3 = vsmask.f32 7938 }
 0x179   : > { %v1998_v15 = vadd.f32 %v15669_v6, %v18186_v45  ;;  %vm18960_vm6 = vmand %vm6957_vm9, %vm7437_vm3 }
 0x17a   : > { %v1953_v39 = vpop.f32.mrf.mxu0  ;;  %v18435_v22 = vpop.f32.mrf.mxu1 }
 0x17b   : > { %v1996_v35 = vadd.f32 %v1953_v39, %v18195_v0  ;;  %v18438_v16 = vadd.f32 %v15703_v23, %v1998_v15 }
 0x17c   : > { %v15670_v9 = vpop.f32.mrf.mxu0  ;;  %v18440_v32 = vpop.f32.mrf.mxu1 }
 0x17d   : > { %20760 = vst [vmem:[#allocation23_spill] sm:$0xff] %v18440_v32  ;;  %v1999_v47 = vadd.f32 %v15670_v9, %v18210_v30  ;;  %v18443_v18 = vadd.f32 %v2312_v11, %v1996_v35 }
 0x17e   : > { %v18445_v31 = vpop.f32.mrf.mxu0  ;;  %v18447_v58 = vpop.f32.mrf.mxu1 }
 0x17f   : > { %20761 = vst [vmem:[#allocation18_spill] sm:$0xff] %v18447_v58  ;;  %v18449_v45 = vadd.f32 %v15704_v21, %v1999_v47 }
 0x180   : > { %v15709_v54 = vpop.f32.mrf.mxu0  ;;  %v15747_v60 = vpop.f32.mrf.mxu1 }
 0x181   : > { %v3055_v44 = vadd.f32 %v15709_v54, %v18245_v50 }
 0x182   : > { %v2926_v0 = vpop.f32.mrf.mxu0  ;;  %v3412_v23 = vpop.f32.mrf.mxu1 }
 0x183   : > { %v18453_v12 = vadd.f32 %v2926_v0, %v18258_v52  ;;  %v18455_v28 = vadd.f32 %v15743_v8, %v3055_v44 }
 0x184   : > { %v15710_v30 = vpop.f32.mrf.mxu0  ;;  %v15748_v11 = vpop.f32.mrf.mxu1 }
 0x185   : > { %v18458_v38 = vadd.f32 %v15710_v30, %v18271_v4 }
 0x186   : > { %v18460_v6 = vpop.f32.mrf.mxu0  ;;  %v18462_v21 = vpop.f32.mrf.mxu1 }
 0x187   : > { %20762 = vst [vmem:[#allocation27_spill] sm:$0xff] %v18462_v21 }
 0x188   : > { %v15713_v15 = vpop.f32.mrf.mxu0  ;;  %v15751_v39 = vpop.f32.mrf.mxu1 }
 0x189   : > { %v3059_v50 = vadd.f32 %v15713_v15, %v18284_v51 }
 0x18a   : > { %v2942_v35 = vpop.f32.mrf.mxu0  ;;  %v3428_v9 = vpop.f32.mrf.mxu1 }
 0x18b   : > { %v3057_v52 = vadd.f32 %v2942_v35, %v18293_v24  ;;  %v18466_v47 = vadd.f32 %v15747_v60, %v3059_v50 }
 0x18c   : > { %v15714_v8 = vpop.f32.mrf.mxu0  ;;  %v15752_v54 = vpop.f32.mrf.mxu1 }
 0x18d   : > { %v3060_v44 = vadd.f32 %v15714_v8, %v18300_v42  ;;  %v18469_v4 = vadd.f32 %v3412_v23, %v3057_v52 }
 0x18e   : > { %v18471_v0 = vpop.f32.mrf.mxu0  ;;  %v18473_v30 = vpop.f32.mrf.mxu1 }
 0x18f   : > { %20763 = vst [vmem:[#allocation19_spill] sm:$0xff] %v18473_v30  ;;  %v18475_v37 = vadd.f32 %v15748_v11, %v3060_v44 }
 0x190   : > { %v15717_v36 = vpop.f32.mrf.mxu0  ;;  %v15755_v51 = vpop.f32.mrf.mxu1 }
 0x191   : > { %v3063_v15 = vadd.f32 %v15717_v36, %v18311_v17 }
 0x192   : > { %v2958_v21 = vpop.f32.mrf.mxu0  ;;  %v3444_v24 = vpop.f32.mrf.mxu1 }
 0x193   : > { %v3061_v60 = vadd.f32 %v2958_v21, %v18318_v25  ;;  %v18479_v50 = vadd.f32 %v15751_v39, %v3063_v15 }
 0x194   : > { %v15718_v35 = vpop.f32.mrf.mxu0  ;;  %v15756_v42 = vpop.f32.mrf.mxu1 }
 0x195   : > { %v3064_v23 = vadd.f32 %v15718_v35, %v18326_v53  ;;  %v18482_v52 = vadd.f32 %v3428_v9, %v3061_v60 }
 0x196   : > { %v18484_v8 = vpop.f32.mrf.mxu0  ;;  %v18486_v11 = vpop.f32.mrf.mxu1 }
 0x197   : > { %20764 = vst [vmem:[#allocation24_spill] sm:$0xff] %v18486_v11  ;;  %v18488_v44 = vadd.f32 %v15752_v54, %v3064_v23 }
 0x198   : > { %v15721_v30 = vpop.f32.mrf.mxu0  ;;  %v15759_v36 = vpop.f32.mrf.mxu1 }
 0x199   : > { %v3067_v17 = vadd.f32 %v15721_v30, %v18341_v1 }
 0x19a   : > { %v2974_v58 = vpop.f32.mrf.mxu0  ;;  %v3460_v25 = vpop.f32.mrf.mxu1 }
 0x19b   : > { %v3065_v21 = vadd.f32 %v2974_v58, %v18348_v40  ;;  %v18492_v39 = vadd.f32 %v15755_v51, %v3067_v17 }
 0x19c   : > { %v15722_v15 = vpop.f32.mrf.mxu0  ;;  %v15760_v53 = vpop.f32.mrf.mxu1 }
 0x19d   : > { %v3068_v9 = vadd.f32 %v15722_v15, %v18356_v33  ;;  %v18495_v60 = vadd.f32 %v3444_v24, %v3065_v21  ;;  %v20686_v33 = vmov 0  }
 0x19e   : > { %v18497_v35 = vpop.f32.mrf.mxu0  ;;  %v18499_v54 = vpop.f32.mrf.mxu1  ;;  %6962 = vst.msk [vmem:[#allocation2 + $0xc] sm:$0x1] %vm6959_vm8, %v20686_v33  ;;  %6960 = vst.msk [vmem:[#allocation2 + $0x4] sm:$0x1] %vm6959_vm8, %v20686_v33 }
 0x19f   : > { %20765 = vst [vmem:[#allocation20_spill] sm:$0xff] %v18497_v35  ;;  %20766 = vst [vmem:[#allocation29_spill] sm:$0xff] %v18499_v54  ;;  %v18501_v23 = vadd.f32 %v15756_v42, %v3068_v9 }
 0x1a0   : > { %v15725_v11 = vpop.f32.mrf.mxu0  ;;  %v15763_v1 = vpop.f32.mrf.mxu1  ;;  %6964 = vst.msk [vmem:[#allocation2 + $0x14] sm:$0x1] %vm6959_vm8, %v20686_v33  ;;  %6966 = vst.msk [vmem:[#allocation2 + $0x1c] sm:$0x1] %vm6959_vm8, %v20686_v33 }
 0x1a1   : > { %v3071_v30 = vadd.f32 %v15725_v11, %v18370_v13  ;;  %6968 = vst.msk [vmem:[#allocation2 + $0x24] sm:$0x1] %vm6959_vm8, %v20686_v33  ;;  %6970 = vst.msk [vmem:[#allocation2 + $0x2c] sm:$0x1] %vm6959_vm8, %v20686_v33 }
 0x1a2   : > { %v2990_v32 = vpop.f32.mrf.mxu0  ;;  %v3476_v40 = vpop.f32.mrf.mxu1  ;;  %6972 = vst.msk [vmem:[#allocation2 + $0x34] sm:$0x1] %vm6959_vm8, %v20686_v33  ;;  %6974 = vst.msk [vmem:[#allocation2 + $0x3c] sm:$0x1] %vm6959_vm8, %v20686_v33 }
 0x1a3   : > { %v3069_v58 = vadd.f32 %v2990_v32, %v18378_v27  ;;  %v18505_v51 = vadd.f32 %v15759_v36, %v3071_v30  ;;  %6976 = vst.msk [vmem:[#allocation2 + $0x44] sm:$0x1] %vm6959_vm8, %v20686_v33  ;;  %6978 = vst.msk [vmem:[#allocation2 + $0x4c] sm:$0x1] %vm6959_vm8, %v20686_v33  ;;  %vm7645_vm8 = vcmask 1043456  }
 0x1a4   : > { %v15726_v13 = vpop.f32.mrf.mxu0  ;;  %v15764_v27 = vpop.f32.mrf.mxu1  ;;  %6961 = vst.msk [vmem:[#allocation2 + $0x8] sm:$0xf] %vm6957_vm9, %v20686_v33  ;;  %6958 = vst.msk [vmem:[#allocation2] sm:$0xf] %vm6957_vm9, %v20686_v33 }
 0x1a5   : > { %v3072_v32 = vadd.f32 %v15726_v13, %v18385_v3  ;;  %v18528_v24 = vadd.f32 %v3460_v25, %v3069_v58  ;;  %6963 = vst.msk [vmem:[#allocation2 + $0x10] sm:$0xf] %vm6957_vm9, %v20686_v33  ;;  %6965 = vst.msk [vmem:[#allocation2 + $0x18] sm:$0xf] %vm6957_vm9, %v20686_v33 }
 0x1a6   : > { %v18530_v42 = vpop.f32.mrf.mxu0  ;;  %v18532_v11 = vpop.f32.mrf.mxu1  ;;  %6967 = vst.msk [vmem:[#allocation2 + $0x20] sm:$0xf] %vm6957_vm9, %v20686_v33  ;;  %6969 = vst.msk [vmem:[#allocation2 + $0x28] sm:$0xf] %vm6957_vm9, %v20686_v33 }
 0x1a7   : > { %20767 = vst [vmem:[#allocation22_spill] sm:$0xff] %v18530_v42  ;;  %20768 = vst [vmem:[#allocation31_spill] sm:$0xff] %v18532_v11  ;;  %v18534_v36 = vadd.f32 %v15760_v53, %v3072_v32 }
 0x1a8   : > { %v15729_v17 = vpop.f32.mrf.mxu0  ;;  %v15767_v21 = vpop.f32.mrf.mxu1  ;;  %6971 = vst.msk [vmem:[#allocation2 + $0x30] sm:$0xf] %vm6957_vm9, %v20686_v33  ;;  %6973 = vst.msk [vmem:[#allocation2 + $0x38] sm:$0xf] %vm6957_vm9, %v20686_v33 }
 0x1a9   : > { %v3075_v15 = vadd.f32 %v15729_v17, %v18397_v57  ;;  %6975 = vst.msk [vmem:[#allocation2 + $0x40] sm:$0xf] %vm6957_vm9, %v20686_v33  ;;  %6977 = vst.msk [vmem:[#allocation2 + $0x48] sm:$0xf] %vm6957_vm9, %v20686_v33  ;;  %vm9578_vm9 = vsmask.f32 2306 }
 0x1aa   : > { %v3006_v3 = vpop.f32.mrf.mxu0  ;;  %v3492_v57 = vpop.f32.mrf.mxu1 }
 0x1ab   : > { %v3073_v25 = vadd.f32 %v3006_v3, %v18405_v20  ;;  %v18558_v53 = vadd.f32 %v15763_v1, %v3075_v15 }
 0x1ac   : > { %v15730_v9 = vpop.f32.mrf.mxu0  ;;  %v15768_v30 = vpop.f32.mrf.mxu1 }
 0x1ad   : > { %v3076_v58 = vadd.f32 %v15730_v9, %v18412_v59  ;;  %v18561_v13 = vadd.f32 %v3476_v40, %v3073_v25 }
 0x1ae   : > { %v18563_v32 = vpop.f32.mrf.mxu0  ;;  %v18565_v17 = vpop.f32.mrf.mxu1 }
 0x1af   : > { %20769 = vst [vmem:[#allocation25_spill] sm:$0xff] %v18565_v17  ;;  %v18567_v11 = vadd.f32 %v15764_v27, %v3076_v58 }
 0x1b0   : > { %v15733_v54 = vpop.f32.mrf.mxu0 }
 0x1b1   : > { %v3079_v33 = vadd.f32 %v15733_v54, %v18422_v14  ;;  %v15771_v42 = vpop.f32.mrf.mxu1 }
 0x1b2   : > { %v3022_v35 = vpop.f32.mrf.mxu0 }
 0x1b3   : > { %v3077_v20 = vadd.f32 %v3022_v35, %v18425_v49  ;;  %v18571_v1 = vadd.f32 %v15767_v21, %v3079_v33  ;;  %v3508_v15 = vpop.f32.mrf.mxu1 }
 0x1b4   : > { %v15734_v3 = vpop.f32.mrf.mxu0 }
 0x1b5   : > { %v3080_v59 = vadd.f32 %v15734_v3, %v18431_v56  ;;  %v18574_v40 = vadd.f32 %v3492_v57, %v3077_v20  ;;  %v15772_v25 = vpop.f32.mrf.mxu1 }
 0x1b6   : > { %v18576_v9 = vpop.f32.mrf.mxu0 }
 0x1b7   : > { %v18578_v27 = vadd.f32 %v15768_v30, %v3080_v59  ;;  %v18580_v17 = vpop.f32.mrf.mxu1 }
 0x1b8   : > { %v15737_v58 = vpop.f32.mrf.mxu0 }
 0x1b9   : > { %v3083_v14 = vadd.f32 %v15737_v58, %v18438_v16 }
 0x1ba   : > { %v3038_v54 = vpop.f32.mrf.mxu0 }
 0x1bb   : > { %v3081_v49 = vadd.f32 %v3038_v54, %v18443_v18  ;;  %v18584_v35 = vadd.f32 %v15771_v42, %v3083_v14 }
 0x1bc   : > { %v15738_v33 = vpop.f32.mrf.mxu0  ;;  %v18586_v21 = vpop.f32.mrf.mxu1 }
 0x1bd   : > { %20770 = vst [vmem:[#allocation26_spill] sm:$0xff] %v18586_v21  ;;  %v3084_v56 = vadd.f32 %v15738_v33, %v18449_v45  ;;  %v18589_v57 = vadd.f32 %v3508_v15, %v3081_v49 }
 0x1be   : > { %v18591_v20 = vpop.f32.mrf.mxu0  ;;  %v18593_v30 = vpop.f32.mrf.mxu1 }
 0x1bf   : > { %20771 = vst [vmem:[#allocation33_spill] sm:$0xff] %v18593_v30  ;;  %v18595_v3 = vadd.f32 %v15772_v25, %v3084_v56 }
 0x1c0   : > { %v15777_v59 = vpop.f32.mrf.mxu0  ;;  %v18597_v16 = vpop.f32.mrf.mxu1 }
 0x1c1   : > { %20772 = vst [vmem:[#allocation32_spill] sm:$0xff] %v18597_v16  ;;  %v18600_v18 = vadd.f32 %v15777_v59, %v18455_v28 }
 0x1c2   : > { %v18602_v42 = vpop.f32.mrf.mxu0  ;;  %v18604_v58 = vpop.f32.mrf.mxu1 }
 0x1c3   : > { %20773 = vst [vmem:[#allocation34_spill] sm:$0xff] %v18604_v58 }
 0x1c4   : > { %v18606_v14 = vpop.f32.mrf.mxu0 }
 0x1c6   : > { %v18608_v45 = vpop.f32.mrf.mxu0 }
 0x1c7   : > { %v18610_v15 = vpop.f32.mrf.mxu1 }
 0x1c8   : > { %20774 = vst [vmem:[#allocation35_spill] sm:$0xff] %v18610_v15  ;;  %v15781_v54 = vpop.f32.mrf.mxu0 }
 0x1c9   : > { %v18613_v25 = vadd.f32 %v15781_v54, %v18466_v47  ;;  %v18615_v49 = vpop.f32.mrf.mxu1 }
 0x1ca   : > { %20775 = vst [vmem:[#allocation41_spill] sm:$0xff] %v18615_v49  ;;  %v3771_v33 = vpop.f32.mrf.mxu0 }
 0x1cb   : > { %v18618_v28 = vadd.f32 %v3771_v33, %v18469_v4  ;;  %v18620_v56 = vpop.f32.mrf.mxu1 }
 0x1cc   : > { %20776 = vst [vmem:[#allocation38_spill] sm:$0xff] %v18620_v56  ;;  %v15782_v59 = vpop.f32.mrf.mxu0 }
 0x1cd   : > { %v18623_v58 = vadd.f32 %v15782_v59, %v18475_v37  ;;  %v18625_v16 = vpop.f32.mrf.mxu1 }
 0x1ce   : > { %20777 = vst [vmem:[#allocation39_spill] sm:$0xff] %v18625_v16  ;;  %v18627_v30 = vpop.f32.mrf.mxu0 }
 0x1cf   : > { %v18629_v21 = vpop.f32.mrf.mxu1 }
 0x1d0   : > { %v15785_v15 = vpop.f32.mrf.mxu0  ;;  %20778 = vst [vmem:[#allocation40_spill] sm:$0xff] %v18629_v21 }
 0x1d1   : > { %v18632_v47 = vadd.f32 %v15785_v15, %v18479_v50  ;;  %v18634_v49 = vpop.f32.mrf.mxu1 }
 0x1d2   : > { %v3787_v54 = vpop.f32.mrf.mxu0  ;;  %20780 = vst [vmem:[#allocation45_spill] sm:$0xff] %v18634_v49 }
 0x1d3   : > { %20779 = vst [vmem:[#allocation44_spill] sm:$0xff] %v18632_v47  ;;  %v18637_v4 = vadd.f32 %v3787_v54, %v18482_v52  ;;  %v18639_v56 = vpop.f32.mrf.mxu1 }
 0x1d4   : > { %v15786_v33 = vpop.f32.mrf.mxu0  ;;  %20781 = vst [vmem:[#allocation46_spill] sm:$0xff] %v18639_v56 }
 0x1d5   : > { %v18642_v37 = vadd.f32 %v15786_v33, %v18488_v44  ;;  %v18646_v16 = vpop.f32.mrf.mxu1 }
 0x1d6   : > { %v18644_v59 = vpop.f32.mrf.mxu0  ;;  %20783 = vst [vmem:[#allocation48_spill] sm:$0xff] %v18646_v16 }
 0x1d7   : > { %20782 = vst [vmem:[#allocation47_spill] sm:$0xff] %v18642_v37 }
 0x1d8   : > { %v15789_v21 = vpop.f32.mrf.mxu0 }
 0x1d9   : > { %v18649_v50 = vadd.f32 %v15789_v21, %v18492_v39  ;;  %v18651_v47 = vpop.f32.mrf.mxu1 }
 0x1da   : > { %v3803_v15 = vpop.f32.mrf.mxu0 }
 0x1db   : > { %v18654_v52 = vadd.f32 %v3803_v15, %v18495_v60  ;;  %v18656_v49 = vpop.f32.mrf.mxu1 }
 0x1dc   : > { %v15790_v54 = vpop.f32.mrf.mxu0  ;;  %20785 = vst [vmem:[#allocation50_spill] sm:$0xff] %v18656_v49 }
 0x1dd   : > { %20784 = vst [vmem:[#allocation49_spill] sm:$0xff] %v18654_v52  ;;  %v18659_v44 = vadd.f32 %v15790_v54, %v18501_v23  ;;  %v18663_v56 = vpop.f32.mrf.mxu1  ;;  %v20805_v52 = vld [vmem:[#allocation42_spill] sm:$0xff] }
 0x1de   : > { %v18661_v33 = vpop.f32.mrf.mxu0  ;;  %20787 = vst [vmem:[#allocation52_spill] sm:$0xff] %v18663_v56 }
 0x1df   : > { %20786 = vst [vmem:[#allocation51_spill] sm:$0xff] %v18659_v44  ;;  %v18665_v37 = vpop.f32.mrf.mxu1 }
 0x1e0   : > { %v15793_v16 = vpop.f32.mrf.mxu0  ;;  %20788 = vst [vmem:[#allocation53_spill] sm:$0xff] %v18665_v37 }
 0x1e1   : > { %v18668_v39 = vadd.f32 %v15793_v16, %v18505_v51 }
 0x1e2   : > { %v3819_v21 = vpop.f32.mrf.mxu0 }
 0x1e3   : > { %20789 = vst [vmem:[#allocation54_spill] sm:$0xff] %v18668_v39  ;;  %v18671_v60 = vadd.f32 %v3819_v21, %v18528_v24  ;;  %v18673_v15 = vpop.f32.mrf.mxu1  ;;  %v20802_v39 = vld [vmem:[#allocation36_spill] sm:$0xff] }
 0x1e4   : > { %20791 = vst [vmem:[#allocation56_spill] sm:$0xff] %v18673_v15  ;;  %v15794_v49 = vpop.f32.mrf.mxu0 }
 0x1e5   : > { %20790 = vst [vmem:[#allocation55_spill] sm:$0xff] %v18671_v60  ;;  %v18676_v23 = vadd.f32 %v15794_v49, %v18534_v36  ;;  %v18678_v54 = vpop.f32.mrf.mxu1 }
 0x1e6   : > { %20793 = vst [vmem:[#allocation58_spill] sm:$0xff] %v18678_v54  ;;  %v18680_v44 = vpop.f32.mrf.mxu0  ;;  %v20800_v54 = vld [vmem:[#allocation28_spill] sm:$0xff] }
 0x1e7   : > { %20792 = vst [vmem:[#allocation57_spill] sm:$0xff] %v18676_v23  ;;  %v18682_v56 = vpop.f32.mrf.mxu1 }
 0x1e8   : > { %20794 = vst [vmem:[#allocation59_spill] sm:$0xff] %v18682_v56  ;;  %v15797_v37 = vpop.f32.mrf.mxu0  ;;  %v20801_v56 = vld [vmem:[#allocation21_spill] sm:$0xff] }
 0x1e9   : > { %v18685_v51 = vadd.f32 %v15797_v37, %v18558_v53  ;;  %v18687_v16 = vpop.f32.mrf.mxu1  ;;  %v1484_v15 = vadd.f32 %v20801_v56, %v20800_v54  ;;  %v20803_v53 = vld [vmem:[#allocation30_spill] sm:$0xff] }
 0x1ea   : > { %20796 = vst [vmem:[#allocation61_spill] sm:$0xff] %v18687_v16  ;;  %v3835_v24 = vpop.f32.mrf.mxu0  ;;  %v1500_v37 = vadd.f32 %v20803_v53, %v20802_v39 }
 0x1eb   : > { %20795 = vst [vmem:[#allocation60_spill] sm:$0xff] %v18685_v51  ;;  %v18690_v21 = vadd.f32 %v3835_v24, %v18561_v13  ;;  %v20806_v13 = vld [vmem:[#allocation37_spill] sm:$0xff] }
 0x1ec   : > { %v15798_v60 = vpop.f32.mrf.mxu0  ;;  %v1516_v24 = vadd.f32 %v20806_v13, %v20805_v52  ;;  %v1989_v54 = vadd.f32 %v18407_v29, %v1500_v37 }
 0x1ed   : > { %20797 = vst [vmem:[#allocation62_spill] sm:$0xff] %v18690_v21  ;;  %v18693_v36 = vadd.f32 %v15798_v60, %v18567_v11  ;;  %v18695_v49 = vpop.f32.mrf.mxu1  ;;  %v20807_v21 = vld [vmem:[#allocation43_spill] sm:$0xff] }
 0x1ee   : > { %20799 = vst [vmem:[#allocation64_spill] sm:$0xff] %v18695_v49  ;;  %v18697_v23 = vpop.f32.mrf.mxu0  ;;  %v1532_v11 = vadd.f32 %v20807_v21, %v18218_v5  ;;  %v1993_v39 = vadd.f32 %v18427_v63, %v1516_v24  ;;  %v2328_v5 = vadd.f32 %v18224_v2, %v18268_v7  ;;  %v2332_v21 = vadd.f32 %v18263_v46, %v18298_v48  ;;  %v20811_v24 = vld [vmem:[#allocation22_spill] sm:$0xff] }
 0x1ef   : > { %20798 = vst [vmem:[#allocation63_spill] sm:$0xff] %v18693_v36  ;;  %v18703_v51 = vpop.f32.mrf.mxu1  ;;  %v1985_v36 = vadd.f32 %v18380_v26, %v1484_v15  ;;  %v5249_v15 = vlaneseq  ;;  %v2336_v63 = vadd.f32 %v18295_v55, %v18324_v34  ;;  %v2348_v37 = vadd.f32 %v18382_v19, %v1989_v54 }
 0x1f0   : > { %20804 = vst [vmem:[#allocation28_spill] sm:$0xff] %v18703_v51  ;;  %v15801_v16 = vpop.f32.mrf.mxu0  ;;  %v1997_v53 = vadd.f32 %v18445_v31, %v1532_v11  ;;  %v2340_v31 = vadd.f32 %v18320_v61, %v18354_v43  ;;  %v3054_v7 = vadd.f32 %v18460_v6, %v2328_v5  ;;  %v2352_v13 = vadd.f32 %v18409_v41, %v1993_v39  ;;  %v20812_v11 = vld [vmem:[#allocation18_spill] sm:$0xff] }
 0x1f1   : > { %v18710_v60 = vadd.f32 %v15801_v16, %v18571_v1  ;;  %v18713_v49 = vpop.f32.mrf.mxu1  ;;  %v16573_v16 = vmov 1983009808   ;;  %v2344_v2 = vadd.f32 %v18350_v62, %v1985_v36  ;;  %v3058_v48 = vadd.f32 %v18471_v0, %v2332_v21  ;;  %v20810_v36 = vld [vmem:[#allocation20_spill] sm:$0xff] }
 0x1f2   : > { %v3851_v56 = vpop.f32.mrf.mxu0  ;;  %v5247_v26 = vunpack.c.l.s4 %v16573_v16  ;;  %v2356_v46 = vadd.f32 %v18429_v10, %v1997_v53  ;;  %v3523_v55 = vadd.f32 %v18435_v22, %v18453_v12  ;;  %v3062_v34 = vadd.f32 %v18484_v8, %v2336_v63  ;;  %v20813_v53 = vld [vmem:[#allocation27_spill] sm:$0xff]  ;;  %v20815_v63 = vld [vmem:[#allocation24_spill] sm:$0xff] }
 0x1f3   : > { %v18719_v51 = vadd.f32 %v3851_v56, %v18574_v40  ;;  %v18723_v52 = vpop.f32.mrf.mxu1  ;;  %v18747_v6 = vshrl.u32 %v5249_v15, 7  ;;  %v3066_v41 = vadd.f32 %v20810_v36, %v2340_v31  ;;  %v3070_v10 = vadd.f32 %v20811_v24, %v2344_v2  ;;  %v20814_v16 = vld [vmem:[#allocation19_spill] sm:$0xff]  ;;  %v20821_v36 = vld [vmem:[#allocation32_spill] sm:$0xff] }
 0x1f4   : > { %v15802_v1 = vpop.f32.mrf.mxu0  ;;  %v5248_v43 = vunpack.c.0.s8 %v5247_v26  ;;  %v3524_v22 = vadd.f32 %v20812_v11, %v3054_v7  ;;  %v3074_v12 = vadd.f32 %v18563_v32, %v2348_v37  ;;  %v3078_v8 = vadd.f32 %v18576_v9, %v2352_v13  ;;  %v20817_v7 = vld [vmem:[#allocation31_spill] sm:$0xff] }
 0x1f5   : > { %v18728_v29 = vadd.f32 %v15802_v1, %v18578_v27  ;;  %20808 = vst [vmem:[#allocation21_spill] sm:$0xff] %v18747_v6  ;;  %v20809_v27 = vld [vmem:[#allocation23_spill] sm:$0xff]  ;;  %v3082_v56 = vadd.f32 %v18591_v20, %v2356_v46  ;;  %v3882_v5 = vadd.f32 %v18602_v42, %v3523_v55  ;;  %v3532_v26 = vadd.f32 %v20814_v16, %v3062_v34  ;;  %v20816_v42 = vld [vmem:[#allocation29_spill] sm:$0xff]  ;;  %v20832_v16 = vld [vmem:[#allocation46_spill] sm:$0xff] }
 0x1f6   : > { %v18736_v40 = vpop.f32.mrf.mxu0  ;;  %v3526_v19 = vadd.f32 %v20809_v27, %v18458_v38  ;;  %v3528_v38 = vadd.f32 %v20813_v53, %v3058_v48  ;;  %v3883_v32 = vadd.f32 %v18608_v45, %v3524_v22  ;;  %v18771_v20 = vsub.s32 %v5248_v43, %v18747_v6  ;;  %v20818_v45 = vld [vmem:[#allocation25_spill] sm:$0xff]  ;;  %v20828_v53 = vld [vmem:[#allocation40_spill] sm:$0xff] }
 0x1f7   : > { %v18745_v61 = vpop.f32.mrf.mxu1  ;;  %v18774_v21 = vsub.s32 0, %v18747_v6  ;;  %v3536_v31 = vadd.f32 %v20815_v63, %v3066_v41  ;;  %v3540_v2 = vadd.f32 %v20816_v42, %v3070_v10  ;;  %v3544_v37 = vadd.f32 %v20817_v7, %v3074_v12  ;;  %v20820_v27 = vld [vmem:[#allocation33_spill] sm:$0xff]  ;;  %v20822_v41 = vld [vmem:[#allocation34_spill] sm:$0xff]  ;;  %v20823_v10 = vld [vmem:[#allocation35_spill] sm:$0xff] }
 0x1f8   : > { %v15805_v62 = vpop.f32.mrf.mxu0  ;;  %v3885_v1 = vadd.f32 %v18606_v14, %v3526_v19  ;;  %v3887_v14 = vadd.f32 %v18627_v30, %v3528_v38  ;;  %v3548_v13 = vadd.f32 %v20818_v45, %v3078_v8  ;;  %v3552_v46 = vadd.f32 %v18580_v17, %v3082_v56  ;;  %v20824_v17 = vld [vmem:[#allocation41_spill] sm:$0xff]  ;;  %v20826_v8 = vld [vmem:[#allocation39_spill] sm:$0xff] }
 0x1f9   : > { %v18754_v0 = vadd.f32 %v15805_v62, %v18584_v35  ;;  %v18760_v54 = vpop.f32.mrf.mxu1  ;;  %v3891_v48 = vadd.f32 %v18644_v59, %v3532_v26  ;;  %v20819_v62 = vld [vmem:[#allocation26_spill] sm:$0xff]  ;;  %v4608_v19 = vadd.f32 %v20820_v27, %v3882_v5  ;;  %v4609_v24 = vadd.f32 %v20822_v41, %v3883_v32  ;;  %v20829_v38 = vld [vmem:[#allocation45_spill] sm:$0xff]  ;;  %v20833_v32 = vld [vmem:[#allocation48_spill] sm:$0xff] }
 0x1fa   : > { %v3867_v39 = vpop.f32.mrf.mxu0  ;;  %v4610_v43 = vadd.f32 %v20819_v62, %v18600_v18  ;;  %v4611_v30 = vadd.f32 %v20821_v36, %v3885_v1  ;;  %v4614_v11 = vadd.f32 %v20823_v10, %v18613_v25  ;;  %v18796_v22 = vadd.f32 %v20824_v17, %v18618_v28  ;;  %v20825_v59 = vld [vmem:[#allocation38_spill] sm:$0xff]  ;;  %v20831_v1 = vld [vmem:[#allocation47_spill] sm:$0xff]  ;;  %v20838_v45 = vld [vmem:[#allocation53_spill] sm:$0xff] }
 0x1fb   : > { %v18766_v35 = vadd.f32 %v3867_v39, %v18589_v57  ;;  %v15836_v15 = vpop.f32.mrf.mxu1  ;;  %v18800_v12 = vadd.f32 %v20825_v59, %v18623_v58  ;;  %v18803_v56 = vadd.f32 %v20826_v8, %v3887_v14  ;;  %v20827_v39 = vld [vmem:[#allocation44_spill] sm:$0xff]  ;;  %v18811_v5 = vadd.f32 %v20829_v38, %v18637_v4  ;;  %v18817_v58 = vld [vmem:[%s20830_s2] ss:$0 sm:$0xff] }
 0x1fc   : > { %v15806_v9 = vpop.f32.mrf.mxu0  ;;  %v3899_v25 = vadd.f32 %v18680_v44, %v3540_v2  ;;  %v18821_v26 = vadd.f32 %v20832_v16, %v20831_v1  ;;  %v18828_v63 = vadd.f32 %v18651_v47, %v18649_v50  ;;  %v20835_v44 = vld [vmem:[#allocation50_spill] sm:$0xff]  ;;  %v20836_v2 = vld [vmem:[#allocation51_spill] sm:$0xff]  ;;  %v20837_v14 = vld [vmem:[#allocation52_spill] sm:$0xff]  ;;  %v3903_v27 = vadd.f32 %v18697_v23, %v3544_v37 }
 0x1fd   : > { %v18780_v57 = vadd.f32 %v15806_v9, %v18595_v3  ;;  %v4580_v55 = vpop.f32.mrf.mxu1  ;;  %v3895_v3 = vadd.f32 %v18661_v33, %v3536_v31  ;;  %v18807_v33 = vadd.f32 %v20828_v53, %v20827_v39  ;;  %v18824_v9 = vadd.f32 %v20833_v32, %v3891_v48  ;;  %v20834_v31 = vld [vmem:[#allocation49_spill] sm:$0xff]  ;;  %v20839_v36 = vld [vmem:[#allocation54_spill] sm:$0xff]  ;;  %v20840_v41 = vld [vmem:[#allocation56_spill] sm:$0xff] }
 0x1fe   : > { %v3870_v34 = vpop.f32.mrf.mxu0  ;;  %v18832_v42 = vadd.f32 %v20835_v44, %v20834_v31  ;;  %v18836_v7 = vadd.f32 %v20837_v14, %v20836_v2  ;;  %v18844_v10 = vadd.f32 %v20840_v41, %v20839_v36  ;;  %v20841_v47 = vld [vmem:[#allocation55_spill] sm:$0xff]  ;;  %v20842_v50 = vld [vmem:[#allocation58_spill] sm:$0xff]  ;;  %v20843_v39 = vld [vmem:[#allocation57_spill] sm:$0xff]  ;;  %v3907_v16 = vadd.f32 %v18736_v40, %v3548_v13 }
 0x1ff   : > { %v15839_v18 = vpop.f32.mrf.mxu1  ;;  %v18839_v62 = vadd.f32 %v20838_v45, %v3895_v3  ;;  %v20844_v53 = vld [vmem:[#allocation59_spill] sm:$0xff]  ;;  %v20845_v3 = vld [vmem:[#allocation61_spill] sm:$0xff]  ;;  %v20846_v23 = vld [vmem:[#allocation60_spill] sm:$0xff]  ;;  %v18877_v36 = vadd.f32 %v18745_v61, %v18710_v60  ;;  %v18881_v40 = vadd.f32 %v18760_v54, %v18719_v51  ;;  %v18892_v60 = vadd.f32 %v3870_v34, %v3552_v46 }
 0x200   : > { %v15845_v28 = vpop.f32.mrf.mxu0  ;;  %v18853_v38 = vadd.f32 %v20844_v53, %v20843_v39  ;;  %v20847_v37 = vld [vmem:[#allocation64_spill] sm:$0xff]  ;;  %v20848_v31 = vld [vmem:[#allocation62_spill] sm:$0xff]  ;;  %v20850_v45 = vld [vmem:[#allocation63_spill] sm:$0xff] }
 0x201   : > { %v5080_v4 = vadd.f32 %v15845_v28, %v4610_v43  ;;  %v18848_v43 = vadd.f32 %v20842_v50, %v20841_v47  ;;  %v4593_v17 = vpop.f32.mrf.mxu1  ;;  %v18856_v28 = vadd.f32 %v20845_v3, %v3899_v25  ;;  %v18860_v1 = vadd.f32 %v20847_v37, %v20846_v23  ;;  %v20849_v44 = vld [vmem:[#allocation28_spill] sm:$0xff] }
 0x202   : > { %v4951_v48 = vpop.f32.mrf.mxu0  ;;  %v18865_v2 = vadd.f32 %v20849_v44, %v20848_v31  ;;  %v18873_v25 = vadd.f32 %v18723_v52, %v3903_v27  ;;  %v18887_v52 = vadd.f32 %v4580_v55, %v3907_v16  ;;  %v18890_v27 = vadd.f32 %v15839_v18, %v18754_v0 }
 0x203   : > { %v5119_v59 = vadd.f32 %v18817_v58, %v5080_v4  ;;  %v5078_v8 = vadd.f32 %v4951_v48, %v4608_v19  ;;  %v18870_v48 = vadd.f32 %v18713_v49, %v20850_v45  ;;  %v15840_v41 = vpop.f32.mrf.mxu1  ;;  %v18885_v49 = vadd.f32 %v15836_v15, %v18728_v29 }
 0x204   : > { %v15846_v32 = vpop.f32.mrf.mxu0  ;;  %v18896_v53 = vadd.f32 %v4593_v17, %v18766_v35 }
 0x205   : > { %v5151_v4 = vmul.f32 0.2, %v5119_v59  ;;  %v5117_v19 = vadd.f32 %v18817_v58, %v5078_v8  ;;  %v5081_v14 = vadd.f32 %v15846_v32, %v4611_v30 }
 0x206   : > { %v4954_v13 = vpop.f32.mrf.mxu0  ;;  %20851 = vst [vmem:[#allocation36_spill] sm:$0xff] %v18896_v53 }
 0x207   : > { %v5183_v47 = vmax.f32 %v5119_v59, %v5151_v4  ;;  %v5149_v50 = vmul.f32 0.2, %v5117_v19  ;;  %v5120_v30 = vadd.f32 %v18817_v58, %v5081_v14  ;;  %v5079_v8 = vadd.f32 %v4954_v13, %v4609_v24 }
 0x208   : > { %v15849_v61 = vpop.f32.mrf.mxu0  ;;  %v18899_v24 = vadd.f32 %v15840_v41, %v18780_v57 }
 0x209   : > { %v5279_v51 = vcombine.high %v5183_v47, %v5183_v47  ;;  %v5286_v54 = vrot.slane %v5183_v47, %v18771_v20  ;;  %v5181_v39 = vmax.f32 %v5117_v19, %v5149_v50  ;;  %v5152_v59 = vmul.f32 0.2, %v5120_v30 }
 0x20a   : > { %20852 = vst [vmem:[#allocation30_spill] sm:$0xff] %v18899_v24  ;;  %v5118_v29 = vadd.f32 %v18817_v58, %v5079_v8  ;;  %v5084_v15 = vadd.f32 %v15849_v61, %v4614_v11 }
 0x20b   : > { %v5293_v0 = vrot.slane %v5279_v51, %v18771_v20  ;;  %v5294_v55 = vcombine.high %v5286_v54, %v5286_v54  ;;  %v14502_v46 = vrot.slane %v5286_v54, 9  ;;  %v5245_v34 = vcombine.high %v5181_v39, %v5181_v39 }
 0x20c   : > { %v5252_v18 = vrot.slane %v5181_v39, %v18771_v20  ;;  %v5184_v3 = vmax.f32 %v5120_v30, %v5152_v59  ;;  %v5150_v23 = vmul.f32 0.2, %v5118_v29  ;;  %v18905_v37 = vadd.f32 %v18817_v58, %v5084_v15 }
 0x20d   : > { %v5295_v35 = vcombine.high %v5293_v0, %v5293_v0  ;;  %v14503_v17 = vrot.slane %v5294_v55, 9  ;;  %v14504_v16 = vrot.slane %v5293_v0, 9  ;;  %v6309_v57 = vadd.f32 %v14502_v46, %v5286_v54 }
 0x20e   : > { %v5259_v32 = vrot.slane %v5245_v34, %v18771_v20  ;;  %v5260_v31 = vcombine.high %v5252_v18, %v5252_v18  ;;  %v14494_v11 = vrot.slane %v5252_v18, 9  ;;  %v5296_v44 = vcombine.high %v5184_v3, %v5184_v3 }
 0x20f   : > { %v14505_v4 = vrot.slane %v5295_v35, 9  ;;  %v6310_v19 = vadd.f32 %v14503_v17, %v5294_v55  ;;  %v6311_v14 = vadd.f32 %v14504_v16, %v5293_v0  ;;  %v5303_v45 = vrot.slane %v5184_v3, %v18771_v20 }
 0x210   : > { %v5261_v13 = vcombine.high %v5259_v32, %v5259_v32  ;;  %v14495_v41 = vrot.slane %v5260_v31, 9  ;;  %v14496_v47 = vrot.slane %v5259_v32, 9  ;;  %v6301_v50 = vadd.f32 %v14494_v11, %v5252_v18 }
 0x211   : > { %v6312_v30 = vadd.f32 %v14505_v4, %v5295_v35  ;;  %v5310_v8 = vrot.slane %v5296_v44, %v18771_v20  ;;  %v5311_v61 = vcombine.high %v5303_v45, %v5303_v45  ;;  %v14506_v51 = vrot.slane %v5303_v45, 9 }
 0x212   : > { %v14497_v54 = vrot.slane %v5261_v13, 9  ;;  %v6302_v39 = vadd.f32 %v14495_v41, %v5260_v31  ;;  %v6303_v59 = vadd.f32 %v14496_v47, %v5259_v32  ;;  %v6429_v15 = vadd.f32 %v6309_v57, %v6301_v50 }
 0x213   : > { %v5312_v55 = vcombine.high %v5310_v8, %v5310_v8  ;;  %v14507_v0 = vrot.slane %v5311_v61, 9  ;;  %v14508_v46 = vrot.slane %v5310_v8, 9  ;;  %v6313_v34 = vadd.f32 %v14506_v51, %v5303_v45  ;;  %v4967_v45 = vpop.f32.mrf.mxu0 }
 0x214   : > { %v6304_v3 = vadd.f32 %v14497_v54, %v5261_v13  ;;  %v6430_v17 = vadd.f32 %v6310_v19, %v6302_v39  ;;  %v6431_v16 = vadd.f32 %v6311_v14, %v6303_v59  ;;  %v6493_v6 = vmul.f32 0.25, %v6429_v15 }
 0x215   : > { %v14509_v18 = vrot.slane %v5312_v55, 9  ;;  %v6314_v11 = vadd.f32 %v14507_v0, %v5311_v61  ;;  %v6315_v35 = vadd.f32 %v14508_v46, %v5310_v8  ;;  %v5182_v4 = vmax.f32 %v5118_v29, %v5150_v23  ;;  %v15850_v0 = vpop.f32.mrf.mxu0 }
 0x216   : > { %v6432_v44 = vadd.f32 %v6312_v30, %v6304_v3  ;;  %v6494_v24 = vmul.f32 0.25, %v6430_v17  ;;  %v6495_v53 = vmul.f32 0.25, %v6431_v16  ;;  %v6624_v31 = vrot.slane %v6493_v6, %v18774_v21 }
 0x217   : > { %v15181_v32 = vpack.c.bf16 %v6493_v6, %v6493_v6  ;;  %v6316_v57 = vadd.f32 %v14509_v18, %v5312_v55  ;;  %v5262_v41 = vcombine.high %v5182_v4, %v5182_v4  ;;  %v5269_v47 = vrot.slane %v5182_v4, %v18771_v20 }
 0x218   : > { %v6496_v13 = vmul.f32 0.25, %v6432_v44  ;;  %v6628_v19 = vrot.slane %v6494_v24, %v18774_v21  ;;  %v6632_v14 = vrot.slane %v6495_v53, %v18774_v21  ;;  %v15182_v50 = vpack.c.bf16 %v6494_v24, %v6494_v24 }
 0x219   : > { %v15183_v8 = vpack.c.bf16 %v6495_v53, %v6495_v53  ;;  %v7235_v29 = vunpack.c.l.b16 %v15181_v32  ;;  %v5276_v23 = vrot.slane %v5262_v41, %v18771_v20  ;;  %v5277_v30 = vcombine.high %v5269_v47, %v5269_v47 }
 0x21a   : > { %v6636_v6 = vrot.slane %v6496_v13, %v18774_v21  ;;  %v6878_v61 = vsel %vm6877_vm10, %v6628_v19, %v6624_v31  ;;  %v15184_v51 = vpack.c.bf16 %v6496_v13, %v6496_v13  ;;  %v7236_v54 = vunpack.c.l.b16 %v15182_v50 }
 0x21b   : > { %v6880_v39 = vsel %vm6879_vm11, %v6632_v14, %v6878_v61  ;;  %v7237_v59 = vunpack.c.l.b16 %v15183_v8  ;;  %v7299_v15 = vrot.slane %v7235_v29, 7  ;;  %v5278_v55 = vcombine.high %v5276_v23, %v5276_v23  ;;  %v4970_v8 = vpop.f32.mrf.mxu0 }
 0x21c   : > { %v7238_v46 = vunpack.c.l.b16 %v15184_v51  ;;  %v7300_v24 = vrot.slane %v7236_v54, 6  ;;  %v14498_v53 = vrot.slane %v5269_v47, 9  ;;  %v14499_v3 = vrot.slane %v5277_v30, 9 }
 0x21d   : > { %v7302_v17 = vrot.slane %v7237_v59, 5  ;;  %v14500_v16 = vrot.slane %v5276_v23, 9  ;;  %v14501_v18 = vrot.slane %v5278_v55, 9  ;;  %v6882_v4 = vsel %vm6881_vm12, %v6636_v6, %v6880_v39 }
 0x21e   : > { %v7301_v44 = vsel %vm6879_vm11, %v7300_v24, %v7299_v15  ;;  %v7304_v31 = vrot.slane %v7238_v46, 4  ;;  %v6305_v32 = vadd.f32 %v14498_v53, %v5269_v47  ;;  %v6306_v41 = vadd.f32 %v14499_v3, %v5277_v30  ;;  %v15853_v53 = vpop.f32.mrf.mxu0 }
 0x21f   : > { %v7303_v13 = vsel %vm6881_vm12, %v7302_v17, %v7301_v44  ;;  %v6307_v19 = vadd.f32 %v14500_v16, %v5276_v23  ;;  %v6308_v14 = vadd.f32 %v14501_v18, %v5278_v55  ;;  %v5155_v50 = vmul.f32 0.2, %v18905_v37 }
 0x220   : > { %v6433_v29 = vadd.f32 %v6313_v34, %v6305_v32  ;;  %v6434_v61 = vadd.f32 %v6314_v11, %v6306_v41  ;;  %v7305_v51 = vsel %vm6883_vm13, %v7304_v31, %v7303_v13  ;;  %v5082_v6 = vadd.f32 %v4967_v45, %v18796_v22 }
 0x221   : > { %v6435_v54 = vadd.f32 %v6315_v35, %v6307_v19  ;;  %v6436_v39 = vadd.f32 %v6316_v57, %v6308_v14  ;;  %v5187_v47 = vmax.f32 %v18905_v37, %v5155_v50  ;;  %v5085_v30 = vadd.f32 %v15850_v0, %v18800_v12  ;;  %v4983_v14 = vpop.f32.mrf.mxu0 }
 0x222   : > { %v6497_v23 = vmul.f32 0.25, %v6433_v29  ;;  %v6498_v59 = vmul.f32 0.25, %v6434_v61  ;;  %v5121_v15 = vadd.f32 %v18817_v58, %v5082_v6  ;;  %v5083_v55 = vadd.f32 %v4970_v8, %v18803_v56  ;;  %v7445_v56 = vld [vmem:[#allocation2 + $0xc] sm:$0x1] }
 0x223   : > { %v6499_v34 = vmul.f32 0.25, %v6435_v54  ;;  %v6500_v11 = vmul.f32 0.25, %v6436_v39  ;;  %v5347_v46 = vcombine.high %v5187_v47, %v5187_v47  ;;  %v5354_v24 = vrot.slane %v5187_v47, %v18771_v20 }
 0x224   : > { %v6640_v22 = vrot.slane %v6497_v23, %v18774_v21  ;;  %v6644_v35 = vrot.slane %v6498_v59, %v18774_v21  ;;  %v15185_v37 = vpack.c.bf16 %v6497_v23, %v6497_v23  ;;  %v15186_v57 = vpack.c.bf16 %v6498_v59, %v6498_v59 }
 0x225   : > { %v6648_v45 = vrot.slane %v6499_v34, %v18774_v21  ;;  %v6652_v0 = vrot.slane %v6500_v11, %v18774_v21  ;;  %v15187_v3 = vpack.c.bf16 %v6499_v34, %v6499_v34  ;;  %v15245_v17 = vpack.c.bf16 %v6500_v11, %v6500_v11 }
 0x226   : > { %v6884_v16 = vsel %vm6883_vm13, %v6640_v22, %v6882_v4  ;;  %v7239_v18 = vunpack.c.l.b16 %v15185_v37  ;;  %v7240_v44 = vunpack.c.l.b16 %v15186_v57  ;;  %v5361_v31 = vrot.slane %v5347_v46, %v18771_v20  ;;  %v15854_v37 = vpop.f32.mrf.mxu0 }
 0x227   : > { %v6886_v32 = vsel %vm6885_vm15, %v6644_v35, %v6884_v16  ;;  %v7241_v41 = vunpack.c.l.b16 %v15187_v3  ;;  %v7446_v13 = vsel %vm18934_vm5, %v15245_v17, %v7445_v56  ;;  %v5362_v19 = vcombine.high %v5354_v24, %v5354_v24 }
 0x228   : > { %v6888_v4 = vsel %vm6887_vm0, %v6648_v45, %v6886_v32  ;;  %v7306_v50 = vrot.slane %v7239_v18, 3  ;;  %v7308_v8 = vrot.slane %v7240_v44, 2  ;;  %7447 = vst [vmem:[#allocation2 + $0xc] sm:$0x1] %v7446_v13  ;;  %v5363_v29 = vcombine.high %v5361_v31, %v5361_v31  ;;  %v7439_v45 = vld [vmem:[#allocation2 + $0x8] sm:$0xf] }
 0x229   : > { %v6890_v61 = vsel %vm6889_vm1, %v6652_v0, %v6888_v4  ;;  %v7310_v6 = vrot.slane %v7241_v41, 1  ;;  %v14518_v54 = vrot.slane %v5354_v24, 9  ;;  %v14519_v39 = vrot.slane %v5362_v19, 9 }
 0x22a   : > { %6949 = vst.msk [vmem:[%s18945_s28] sm:$0xff] %vm6948_vm2, %v6890_v61  ;;  %v7307_v47 = vsel %vm6885_vm15, %v7306_v50, %v7305_v51  ;;  %v14520_v23 = vrot.slane %v5361_v31, 9  ;;  %v14521_v59 = vrot.slane %v5363_v29, 9  ;;  %v5153_v34 = vmul.f32 0.2, %v5121_v15 }
 0x22b   : > { %v7309_v11 = vsel %vm6887_vm0, %v7308_v8, %v7307_v47  ;;  %v6325_v46 = vadd.f32 %v14518_v54, %v5354_v24  ;;  %v6326_v22 = vadd.f32 %v14519_v39, %v5362_v19  ;;  %v5124_v35 = vadd.f32 %v18817_v58, %v5085_v30 }
 0x22c   : > { %v7311_v57 = vsel %vm6889_vm1, %v7310_v6, %v7309_v11  ;;  %v6327_v51 = vadd.f32 %v14520_v23, %v5361_v31  ;;  %v6328_v0 = vadd.f32 %v14521_v59, %v5363_v29  ;;  %v5185_v3 = vmax.f32 %v5121_v15, %v5153_v34 }
 0x22d   : > { %v7403_v17 = vpack.c.b16 %v7311_v57, %v7311_v57  ;;  %v5156_v16 = vmul.f32 0.2, %v5124_v35  ;;  %v5122_v24 = vadd.f32 %v18817_v58, %v5083_v55  ;;  %v5088_v18 = vadd.f32 %v15853_v53, %v18807_v33 }
 0x22e   : > { %v5313_v30 = vcombine.high %v5185_v3, %v5185_v3  ;;  %v5320_v44 = vrot.slane %v5185_v3, %v18771_v20  ;;  %v5086_v32 = vadd.f32 %v4983_v14, %v18811_v5  ;;  %v18969_v41 = vadd.f32 %v15854_v37, %v18821_v26 }
 0x22f   : > { %v7440_v13 = vsel %vm18960_vm6, %v7403_v17, %v7439_v45  ;;  %v5188_v31 = vmax.f32 %v5124_v35, %v5156_v16  ;;  %v5154_v19 = vmul.f32 0.2, %v5122_v24  ;;  %v18974_v15 = vadd.f32 %v18817_v58, %v5088_v18 }
 0x230   : > { %7441 = vst [vmem:[#allocation2 + $0x8] sm:$0xf] %v7440_v13  ;;  %v5327_v55 = vrot.slane %v5313_v30, %v18771_v20  ;;  %v5328_v33 = vcombine.high %v5320_v44, %v5320_v44  ;;  %v14510_v53 = vrot.slane %v5320_v44, 9  ;;  %v18978_v4 = vadd.f32 %v18817_v58, %v5086_v32 }
 0x231   : > { %v5364_v5 = vcombine.high %v5188_v31, %v5188_v31  ;;  %v5371_v26 = vrot.slane %v5188_v31, %v18771_v20  ;;  %v5186_v14 = vmax.f32 %v5122_v24, %v5154_v19  ;;  %v18982_v50 = vmul.f32 0.2, %v18974_v15 }
 0x232   : > { %v5329_v8 = vcombine.high %v5327_v55, %v5327_v55  ;;  %v14511_v29 = vrot.slane %v5328_v33, 9  ;;  %v14512_v61 = vrot.slane %v5327_v55, 9  ;;  %v6317_v6 = vadd.f32 %v14510_v53, %v5320_v44 }
 0x233   : > { %v5378_v54 = vrot.slane %v5364_v5, %v18771_v20  ;;  %v5379_v39 = vcombine.high %v5371_v26, %v5371_v26  ;;  %v14522_v47 = vrot.slane %v5371_v26, 9  ;;  %v5330_v23 = vcombine.high %v5186_v14, %v5186_v14 }
 0x234   : > { %v14513_v59 = vrot.slane %v5329_v8, 9  ;;  %v6318_v34 = vadd.f32 %v14511_v29, %v5328_v33  ;;  %v6319_v11 = vadd.f32 %v14512_v61, %v5327_v55  ;;  %v6437_v35 = vadd.f32 %v6325_v46, %v6317_v6 }
 0x235   : > { %v5380_v37 = vcombine.high %v5378_v54, %v5378_v54  ;;  %v14523_v57 = vrot.slane %v5379_v39, 9  ;;  %v14524_v45 = vrot.slane %v5378_v54, 9  ;;  %v6329_v3 = vadd.f32 %v14522_v47, %v5371_v26 }
 0x236   : > { %v6320_v17 = vadd.f32 %v14513_v59, %v5329_v8  ;;  %v6438_v16 = vadd.f32 %v6326_v22, %v6318_v34  ;;  %v6439_v24 = vadd.f32 %v6327_v51, %v6319_v11  ;;  %v6501_v18 = vmul.f32 0.25, %v6437_v35 }
 0x237   : > { %v14525_v30 = vrot.slane %v5380_v37, 9  ;;  %v6330_v32 = vadd.f32 %v14523_v57, %v5379_v39  ;;  %v6331_v44 = vadd.f32 %v14524_v45, %v5378_v54  ;;  %v5337_v13 = vrot.slane %v5186_v14, %v18771_v20 }
 0x238   : > { %v6440_v31 = vadd.f32 %v6328_v0, %v6320_v17  ;;  %v6502_v19 = vmul.f32 0.25, %v6438_v16  ;;  %v6503_v53 = vmul.f32 0.25, %v6439_v24  ;;  %v6656_v33 = vrot.slane %v6501_v18, %v18774_v21 }
 0x239   : > { %v15189_v55 = vpack.c.bf16 %v6501_v18, %v6501_v18  ;;  %v6332_v46 = vadd.f32 %v14525_v30, %v5380_v37  ;;  %v5344_v5 = vrot.slane %v5330_v23, %v18771_v20  ;;  %v5345_v29 = vcombine.high %v5337_v13, %v5337_v13 }
 0x23a   : > { %v6504_v26 = vmul.f32 0.25, %v6440_v31  ;;  %v6660_v22 = vrot.slane %v6502_v19, %v18774_v21  ;;  %v6664_v51 = vrot.slane %v6503_v53, %v18774_v21  ;;  %v15190_v8 = vpack.c.bf16 %v6502_v19, %v6502_v19 }
 0x23b   : > { %v15191_v61 = vpack.c.bf16 %v6503_v53, %v6503_v53  ;;  %v7243_v6 = vunpack.c.l.b16 %v15189_v55  ;;  %v5346_v54 = vcombine.high %v5344_v5, %v5344_v5  ;;  %v14514_v14 = vrot.slane %v5337_v13, 9 }
 0x23c   : > { %v6668_v0 = vrot.slane %v6504_v26, %v18774_v21  ;;  %v6891_v39 = vsel %vm6877_vm10, %v6660_v22, %v6656_v33  ;;  %v15192_v47 = vpack.c.bf16 %v6504_v26, %v6504_v26  ;;  %v7244_v59 = vunpack.c.l.b16 %v15190_v8 }
 0x23d   : > { %v6892_v34 = vsel %vm6879_vm11, %v6664_v51, %v6891_v39  ;;  %v7245_v23 = vunpack.c.l.b16 %v15191_v61  ;;  %v7312_v11 = vrot.slane %v7243_v6, 7  ;;  %v14515_v35 = vrot.slane %v5345_v29, 9 }
 0x23e   : > { %v7246_v37 = vunpack.c.l.b16 %v15192_v47  ;;  %v7313_v57 = vrot.slane %v7244_v59, 6  ;;  %v14516_v45 = vrot.slane %v5344_v5, 9  ;;  %v14517_v17 = vrot.slane %v5346_v54, 9 }
 0x23f   : > { %v7315_v16 = vrot.slane %v7245_v23, 5  ;;  %v6321_v24 = vadd.f32 %v14514_v14, %v5337_v13  ;;  %v6322_v18 = vadd.f32 %v14515_v35, %v5345_v29  ;;  %v6893_v30 = vsel %vm6881_vm12, %v6668_v0, %v6892_v34 }
 0x240   : > { %v7314_v31 = vsel %vm6879_vm11, %v7313_v57, %v7312_v11  ;;  %v7317_v19 = vrot.slane %v7246_v37, 4  ;;  %v6323_v53 = vadd.f32 %v14516_v45, %v5344_v5  ;;  %v6324_v33 = vadd.f32 %v14517_v17, %v5346_v54 }
 0x241   : > { %v7316_v55 = vsel %vm6881_vm12, %v7315_v16, %v7314_v31  ;;  %v6441_v26 = vadd.f32 %v6329_v3, %v6321_v24  ;;  %v6442_v22 = vadd.f32 %v6330_v32, %v6322_v18  ;;  %v5191_v51 = vmax.f32 %v18974_v15, %v18982_v50  ;;  %v4986_v24 = vpop.f32.mrf.mxu0 }
 0x242   : > { %v6443_v8 = vadd.f32 %v6331_v44, %v6323_v53  ;;  %v6444_v61 = vadd.f32 %v6332_v46, %v6324_v33  ;;  %v7318_v6 = vsel %vm6883_vm13, %v7317_v19, %v7316_v55  ;;  %v5157_v13 = vmul.f32 0.2, %v18978_v4  ;;  %v7451_v46 = vld [vmem:[#allocation2 + $0x14] sm:$0x1] }
 0x243   : > { %v6505_v29 = vmul.f32 0.25, %v6441_v26  ;;  %v6506_v14 = vmul.f32 0.25, %v6442_v22  ;;  %v5415_v0 = vcombine.high %v5191_v51, %v5191_v51  ;;  %v5422_v39 = vrot.slane %v5191_v51, %v18771_v20 }
 0x244   : > { %v6507_v5 = vmul.f32 0.25, %v6443_v8  ;;  %v6508_v54 = vmul.f32 0.25, %v6444_v61  ;;  %v5189_v47 = vmax.f32 %v18978_v4, %v5157_v13  ;;  %v5128_v3 = vadd.f32 %v18817_v58, %v18969_v41 }
 0x245   : > { %v6672_v15 = vrot.slane %v6505_v29, %v18774_v21  ;;  %v6676_v50 = vrot.slane %v6506_v14, %v18774_v21  ;;  %v15193_v32 = vpack.c.bf16 %v6505_v29, %v6505_v29  ;;  %v15194_v44 = vpack.c.bf16 %v6506_v14, %v6506_v14 }
 0x246   : > { %v6680_v59 = vrot.slane %v6507_v5, %v18774_v21  ;;  %v6684_v34 = vrot.slane %v6508_v54, %v18774_v21  ;;  %v15195_v23 = vpack.c.bf16 %v6507_v5, %v6507_v5  ;;  %v15246_v11 = vpack.c.bf16 %v6508_v54, %v6508_v54  ;;  %v15857_v5 = vpop.f32.mrf.mxu0 }
 0x247   : > { %v6894_v35 = vsel %vm6883_vm13, %v6672_v15, %v6893_v30  ;;  %v7247_v37 = vunpack.c.l.b16 %v15193_v32  ;;  %v7248_v4 = vunpack.c.l.b16 %v15194_v44  ;;  %v5429_v41 = vrot.slane %v5415_v0, %v18771_v20  ;;  %v7448_v15 = vld [vmem:[#allocation2 + $0x10] sm:$0xf] }
 0x248   : > { %v6895_v57 = vsel %vm6885_vm15, %v6676_v50, %v6894_v35  ;;  %v7249_v45 = vunpack.c.l.b16 %v15195_v23  ;;  %v7452_v17 = vsel %vm18934_vm5, %v15246_v11, %v7451_v46  ;;  %v5430_v16 = vcombine.high %v5422_v39, %v5422_v39 }
 0x249   : > { %v6896_v18 = vsel %vm6887_vm0, %v6680_v59, %v6895_v57  ;;  %v7319_v31 = vrot.slane %v7247_v37, 3  ;;  %v7321_v19 = vrot.slane %v7248_v4, 2  ;;  %7453 = vst [vmem:[#allocation2 + $0x14] sm:$0x1] %v7452_v17  ;;  %v5431_v53 = vcombine.high %v5429_v41, %v5429_v41 }
 0x24a   : > { %v6897_v30 = vsel %vm6889_vm1, %v6684_v34, %v6896_v18  ;;  %v7323_v33 = vrot.slane %v7249_v45, 1  ;;  %v14534_v55 = vrot.slane %v5422_v39, 9  ;;  %v14535_v26 = vrot.slane %v5430_v16, 9 }
 0x24b   : > { %6950 = vst.msk [vmem:[%s18945_s28 + $0x8] sm:$0xff] %vm6948_vm2, %v6897_v30  ;;  %v7320_v22 = vsel %vm6885_vm15, %v7319_v31, %v7318_v6  ;;  %v14536_v51 = vrot.slane %v5429_v41, 9  ;;  %v14537_v8 = vrot.slane %v5431_v53, 9  ;;  %v5381_v61 = vcombine.high %v5189_v47, %v5189_v47 }
 0x24c   : > { %v7322_v13 = vsel %vm6887_vm0, %v7321_v19, %v7320_v22  ;;  %v6341_v29 = vadd.f32 %v14534_v55, %v5422_v39  ;;  %v6342_v14 = vadd.f32 %v14535_v26, %v5430_v16  ;;  %v5388_v0 = vrot.slane %v5189_v47, %v18771_v20 }
 0x24d   : > { %v7324_v54 = vsel %vm6889_vm1, %v7323_v33, %v7322_v13  ;;  %v6343_v50 = vadd.f32 %v14536_v51, %v5429_v41  ;;  %v6344_v32 = vadd.f32 %v14537_v8, %v5431_v53  ;;  %v5395_v44 = vrot.slane %v5381_v61, %v18771_v20 }
 0x24e   : > { %v7405_v46 = vpack.c.b16 %v7324_v54, %v7324_v54  ;;  %v5396_v59 = vcombine.high %v5388_v0, %v5388_v0  ;;  %v14526_v6 = vrot.slane %v5388_v0, 9  ;;  %v5160_v34 = vmul.f32 0.2, %v5128_v3 }
 0x24f   : > { %v5397_v23 = vcombine.high %v5395_v44, %v5395_v44  ;;  %v14528_v11 = vrot.slane %v5395_v44, 9  ;;  %v5087_v35 = vadd.f32 %v4986_v24, %v18824_v9  ;;  %v5092_v39 = vadd.f32 %v15857_v5, %v18828_v63 }
 0x250   : > { %v7449_v47 = vsel %vm18960_vm6, %v7405_v46, %v7448_v15  ;;  %v14527_v37 = vrot.slane %v5396_v59, 9  ;;  %v6333_v4 = vadd.f32 %v14526_v6, %v5388_v0  ;;  %v5192_v57 = vmax.f32 %v5128_v3, %v5160_v34  ;;  %v4999_v46 = vpop.f32.mrf.mxu0 }
 0x251   : > { %7450 = vst [vmem:[#allocation2 + $0x10] sm:$0xf] %v7449_v47  ;;  %v14529_v41 = vrot.slane %v5397_v23, 9  ;;  %v6335_v45 = vadd.f32 %v14528_v11, %v5395_v44  ;;  %v5126_v17 = vadd.f32 %v18817_v58, %v5087_v35  ;;  %v5131_v16 = vadd.f32 %v18817_v58, %v5092_v39 }
 0x252   : > { %v6334_v18 = vadd.f32 %v14527_v37, %v5396_v59  ;;  %v6445_v31 = vadd.f32 %v6341_v29, %v6333_v4  ;;  %v5432_v19 = vcombine.high %v5192_v57, %v5192_v57  ;;  %v5439_v9 = vrot.slane %v5192_v57, %v18771_v20 }
 0x253   : > { %v6336_v24 = vadd.f32 %v14529_v41, %v5397_v23  ;;  %v6447_v63 = vadd.f32 %v6343_v50, %v6335_v45  ;;  %v5158_v53 = vmul.f32 0.2, %v5126_v17  ;;  %v5163_v30 = vmul.f32 0.2, %v5131_v16 }
 0x254   : > { %v6446_v33 = vadd.f32 %v6342_v14, %v6334_v18  ;;  %v6509_v55 = vmul.f32 0.25, %v6445_v31  ;;  %v5446_v3 = vrot.slane %v5432_v19, %v18771_v20  ;;  %v5447_v26 = vcombine.high %v5439_v9, %v5439_v9  ;;  %v15858_v18 = vpop.f32.mrf.mxu0 }
 0x255   : > { %v6448_v22 = vadd.f32 %v6344_v32, %v6336_v24  ;;  %v6511_v51 = vmul.f32 0.25, %v6447_v63  ;;  %v14538_v8 = vrot.slane %v5439_v9, 9  ;;  %v5190_v61 = vmax.f32 %v5126_v17, %v5158_v53 }
 0x256   : > { %v6510_v13 = vmul.f32 0.25, %v6446_v33  ;;  %v6688_v0 = vrot.slane %v6509_v55, %v18774_v21  ;;  %v15197_v29 = vpack.c.bf16 %v6509_v55, %v6509_v55  ;;  %v5448_v5 = vcombine.high %v5446_v3, %v5446_v3 }
 0x257   : > { %v6512_v54 = vmul.f32 0.25, %v6448_v22  ;;  %v6696_v15 = vrot.slane %v6511_v51, %v18774_v21  ;;  %v15199_v50 = vpack.c.bf16 %v6511_v51, %v6511_v51  ;;  %v14539_v44 = vrot.slane %v5447_v26, 9 }
 0x258   : > { %v6692_v14 = vrot.slane %v6510_v13, %v18774_v21  ;;  %v15198_v59 = vpack.c.bf16 %v6510_v13, %v6510_v13  ;;  %v7251_v6 = vunpack.c.l.b16 %v15197_v29  ;;  %v14540_v34 = vrot.slane %v5446_v3, 9 }
 0x259   : > { %v6700_v32 = vrot.slane %v6512_v54, %v18774_v21  ;;  %v15200_v23 = vpack.c.bf16 %v6512_v54, %v6512_v54  ;;  %v7253_v11 = vunpack.c.l.b16 %v15199_v50  ;;  %v14541_v35 = vrot.slane %v5448_v5, 9 }
 0x25a   : > { %v6898_v39 = vsel %vm6877_vm10, %v6692_v14, %v6688_v0  ;;  %v7252_v47 = vunpack.c.l.b16 %v15198_v59  ;;  %v7325_v37 = vrot.slane %v7251_v6, 7  ;;  %v6345_v4 = vadd.f32 %v14538_v8, %v5439_v9 }
 0x25b   : > { %v6899_v57 = vsel %vm6879_vm11, %v6696_v15, %v6898_v39  ;;  %v7254_v41 = vunpack.c.l.b16 %v15200_v23  ;;  %v7328_v45 = vrot.slane %v7253_v11, 5  ;;  %v6346_v17 = vadd.f32 %v14539_v44, %v5447_v26 }
 0x25c   : > { %v7326_v31 = vrot.slane %v7252_v47, 6  ;;  %v6347_v19 = vadd.f32 %v14540_v34, %v5446_v3  ;;  %v6348_v24 = vadd.f32 %v14541_v35, %v5448_v5  ;;  %v5398_v63 = vcombine.high %v5190_v61, %v5190_v61 }
 0x25d   : > { %v7330_v53 = vrot.slane %v7254_v41, 4  ;;  %v5405_v33 = vrot.slane %v5190_v61, %v18771_v20  ;;  %v6900_v55 = vsel %vm6881_vm12, %v6700_v32, %v6899_v57  ;;  %v5195_v22 = vmax.f32 %v5131_v16, %v5163_v30 }
 0x25e   : > { %v7327_v51 = vsel %vm6879_vm11, %v7326_v31, %v7325_v37  ;;  %v5412_v9 = vrot.slane %v5398_v63, %v18771_v20  ;;  %v5090_v8 = vadd.f32 %v4999_v46, %v18832_v42  ;;  %v19042_v13 = vadd.f32 %v15858_v18, %v18836_v7 }
 0x25f   : > { %v7329_v26 = vsel %vm6881_vm12, %v7328_v45, %v7327_v51  ;;  %v5413_v3 = vcombine.high %v5405_v33, %v5405_v33  ;;  %v14530_v0 = vrot.slane %v5405_v33, 9  ;;  %v5483_v29 = vcombine.high %v5195_v22, %v5195_v22 }
 0x260   : > { %v5414_v5 = vcombine.high %v5412_v9, %v5412_v9  ;;  %v14532_v54 = vrot.slane %v5412_v9, 9  ;;  %v7331_v61 = vsel %vm6883_vm13, %v7330_v53, %v7329_v26  ;;  %v5490_v16 = vrot.slane %v5195_v22, %v18771_v20  ;;  %v5002_v26 = vpop.f32.mrf.mxu0 }
 0x261   : > { %v14531_v30 = vrot.slane %v5413_v3, 9  ;;  %v6337_v15 = vadd.f32 %v14530_v0, %v5405_v33  ;;  %v5497_v50 = vrot.slane %v5483_v29, %v18771_v20  ;;  %v5129_v42 = vadd.f32 %v18817_v58, %v5090_v8  ;;  %v7457_v29 = vld [vmem:[#allocation2 + $0x1c] sm:$0x1] }
 0x262   : > { %v14533_v44 = vrot.slane %v5414_v5, 9  ;;  %v6339_v7 = vadd.f32 %v14532_v54, %v5412_v9  ;;  %v5498_v46 = vcombine.high %v5490_v16, %v5490_v16  ;;  %v14550_v14 = vrot.slane %v5490_v16, 9 }
 0x263   : > { %v6338_v59 = vadd.f32 %v14531_v30, %v5413_v3  ;;  %v6449_v6 = vadd.f32 %v6345_v4, %v6337_v15  ;;  %v5499_v34 = vcombine.high %v5497_v50, %v5497_v50  ;;  %v14552_v32 = vrot.slane %v5497_v50, 9 }
 0x264   : > { %v6340_v23 = vadd.f32 %v14533_v44, %v5414_v5  ;;  %v6451_v11 = vadd.f32 %v6347_v19, %v6339_v7  ;;  %v14551_v35 = vrot.slane %v5498_v46, 9  ;;  %v6357_v39 = vadd.f32 %v14550_v14, %v5490_v16 }
 0x265   : > { %v6450_v47 = vadd.f32 %v6346_v17, %v6338_v59  ;;  %v6513_v37 = vmul.f32 0.25, %v6449_v6  ;;  %v14553_v57 = vrot.slane %v5499_v34, 9  ;;  %v6359_v41 = vadd.f32 %v14552_v32, %v5497_v50  ;;  %v15861_v59 = vpop.f32.mrf.mxu0 }
 0x266   : > { %v6452_v45 = vadd.f32 %v6348_v24, %v6340_v23  ;;  %v6515_v18 = vmul.f32 0.25, %v6451_v11  ;;  %v6358_v31 = vadd.f32 %v14551_v35, %v5498_v46  ;;  %v5161_v63 = vmul.f32 0.2, %v5129_v42 }
 0x267   : > { %v6514_v53 = vmul.f32 0.25, %v6450_v47  ;;  %v6704_v33 = vrot.slane %v6513_v37, %v18774_v21  ;;  %v15201_v22 = vpack.c.bf16 %v6513_v37, %v6513_v37  ;;  %v6360_v51 = vadd.f32 %v14553_v57, %v5499_v34 }
 0x268   : > { %v6516_v4 = vmul.f32 0.25, %v6452_v45  ;;  %v6712_v9 = vrot.slane %v6515_v18, %v18774_v21  ;;  %v15203_v8 = vpack.c.bf16 %v6515_v18, %v6515_v18  ;;  %v5193_v19 = vmax.f32 %v5129_v42, %v5161_v63 }
 0x269   : > { %v6708_v17 = vrot.slane %v6514_v53, %v18774_v21  ;;  %v6901_v3 = vsel %vm6883_vm13, %v6704_v33, %v6900_v55  ;;  %v15202_v0 = vpack.c.bf16 %v6514_v53, %v6514_v53  ;;  %v7255_v24 = vunpack.c.l.b16 %v15201_v22  ;;  %v7454_v53 = vld [vmem:[#allocation2 + $0x18] sm:$0xf] }
 0x26a   : > { %v6716_v5 = vrot.slane %v6516_v4, %v18774_v21  ;;  %v7257_v54 = vunpack.c.l.b16 %v15203_v8  ;;  %v15247_v16 = vpack.c.bf16 %v6516_v4, %v6516_v4  ;;  %v5449_v30 = vcombine.high %v5193_v19, %v5193_v19 }
 0x26b   : > { %v6902_v15 = vsel %vm6885_vm15, %v6708_v17, %v6901_v3  ;;  %v7256_v50 = vunpack.c.l.b16 %v15202_v0  ;;  %v7332_v44 = vrot.slane %v7255_v24, 3  ;;  %v5456_v42 = vrot.slane %v5193_v19, %v18771_v20 }
 0x26c   : > { %v6903_v7 = vsel %vm6887_vm0, %v6712_v9, %v6902_v15  ;;  %v7336_v46 = vrot.slane %v7257_v54, 1  ;;  %v7458_v55 = vsel %vm18934_vm5, %v15247_v16, %v7457_v29  ;;  %v5463_v14 = vrot.slane %v5449_v30, %v18771_v20 }
 0x26d   : > { %v6904_v6 = vsel %vm6889_vm1, %v6716_v5, %v6903_v7  ;;  %v7333_v34 = vsel %vm6885_vm15, %v7332_v44, %v7331_v61  ;;  %v7334_v32 = vrot.slane %v7256_v50, 2  ;;  %7459 = vst [vmem:[#allocation2 + $0x1c] sm:$0x1] %v7458_v55  ;;  %v5464_v23 = vcombine.high %v5456_v42, %v5456_v42 }
 0x26e   : > { %6951 = vst.msk [vmem:[%s18945_s28 + $0x10] sm:$0xff] %vm6948_vm2, %v6904_v6  ;;  %v5465_v11 = vcombine.high %v5463_v14, %v5463_v14  ;;  %v14542_v35 = vrot.slane %v5456_v42, 9  ;;  %v14544_v47 = vrot.slane %v5463_v14, 9  ;;  %v5132_v37 = vadd.f32 %v18817_v58, %v19042_v13 }
 0x26f   : > { %v7335_v57 = vsel %vm6887_vm0, %v7334_v32, %v7333_v34  ;;  %v14543_v45 = vrot.slane %v5464_v23, 9  ;;  %v5091_v18 = vadd.f32 %v5002_v26, %v18839_v62  ;;  %v5096_v63 = vadd.f32 %v15861_v59, %v18844_v10  ;;  %v5015_v32 = vpop.f32.mrf.mxu0 }
 0x270   : > { %v7337_v61 = vsel %vm6889_vm1, %v7336_v46, %v7335_v57  ;;  %v14545_v33 = vrot.slane %v5465_v11, 9  ;;  %v6349_v22 = vadd.f32 %v14542_v35, %v5456_v42  ;;  %v6351_v4 = vadd.f32 %v14544_v47, %v5463_v14 }
 0x271   : > { %v7407_v9 = vpack.c.b16 %v7337_v61, %v7337_v61  ;;  %v6350_v8 = vadd.f32 %v14543_v45, %v5464_v23  ;;  %v5164_v19 = vmul.f32 0.2, %v5132_v37  ;;  %v5130_v17 = vadd.f32 %v18817_v58, %v5091_v18 }
 0x272   : > { %v6352_v3 = vadd.f32 %v14545_v33, %v5465_v11  ;;  %v6453_v13 = vadd.f32 %v6357_v39, %v6349_v22  ;;  %v6455_v0 = vadd.f32 %v6359_v41, %v6351_v4  ;;  %v5135_v24 = vadd.f32 %v18817_v58, %v5096_v63 }
 0x273   : > { %v7455_v62 = vsel %vm18960_vm6, %v7407_v9, %v7454_v53  ;;  %v6454_v10 = vadd.f32 %v6358_v31, %v6350_v8  ;;  %v5196_v26 = vmax.f32 %v5132_v37, %v5164_v19  ;;  %v5162_v29 = vmul.f32 0.2, %v5130_v17  ;;  %v19082_v19 = vpop.f32.mrf.mxu0 }
 0x274   : > { %7456 = vst [vmem:[#allocation2 + $0x18] sm:$0xf] %v7455_v62  ;;  %v6456_v5 = vadd.f32 %v6360_v51, %v6352_v3  ;;  %v6517_v54 = vmul.f32 0.25, %v6453_v13  ;;  %v6519_v16 = vmul.f32 0.25, %v6455_v0  ;;  %v5167_v30 = vmul.f32 0.2, %v5135_v24 }
 0x275   : > { %v6518_v15 = vmul.f32 0.25, %v6454_v10  ;;  %v5500_v50 = vcombine.high %v5196_v26, %v5196_v26  ;;  %v5507_v44 = vrot.slane %v5196_v26, %v18771_v20  ;;  %v5194_v42 = vmax.f32 %v5130_v17, %v5162_v29 }
 0x276   : > { %v6520_v39 = vmul.f32 0.25, %v6456_v5  ;;  %v6720_v41 = vrot.slane %v6517_v54, %v18774_v21  ;;  %v6728_v58 = vrot.slane %v6519_v16, %v18774_v21  ;;  %v15205_v7 = vpack.c.bf16 %v6517_v54, %v6517_v54  ;;  %v14694_v5 = vld [vmem:[%s20857_s3 + $0x4] sm:$0xf] }
 0x277   : > { %v6724_v31 = vrot.slane %v6518_v15, %v18774_v21  ;;  %v15206_v46 = vpack.c.bf16 %v6518_v15, %v6518_v15  ;;  %v15207_v55 = vpack.c.bf16 %v6519_v16, %v6519_v16  ;;  %v5514_v51 = vrot.slane %v5500_v50, %v18771_v20  ;;  %16244 = vmatprep.subr.msk.bf16.mxu1 %vm7645_vm8, %v14694_v5 }
 0x278   : > { %v6732_v14 = vrot.slane %v6520_v39, %v18774_v21  ;;  %v15208_v59 = vpack.c.bf16 %v6520_v39, %v6520_v39  ;;  %v7259_v6 = vunpack.c.l.b16 %v15205_v7  ;;  %v5515_v34 = vcombine.high %v5507_v44, %v5507_v44 }
 0x279   : > { %v6905_v23 = vsel %vm6877_vm10, %v6724_v31, %v6720_v41  ;;  %v7260_v11 = vunpack.c.l.b16 %v15206_v46  ;;  %v7261_v35 = vunpack.c.l.b16 %v15207_v55  ;;  %v5516_v47 = vcombine.high %v5514_v51, %v5514_v51  ;;  %v19096_v41 = vpop.f32.mrf.mxu0 }
 0x27a   : > { %v6906_v37 = vsel %vm6879_vm11, %v6728_v58, %v6905_v23  ;;  %v7262_v57 = vunpack.c.l.b16 %v15208_v59  ;;  %v7338_v45 = vrot.slane %v7259_v6, 7  ;;  %v14554_v18 = vrot.slane %v5507_v44, 9 }
 0x27b   : > { %v7339_v63 = vrot.slane %v7260_v11, 6  ;;  %v7341_v61 = vrot.slane %v7261_v35, 5  ;;  %v14555_v53 = vrot.slane %v5515_v34, 9  ;;  %v14556_v33 = vrot.slane %v5514_v51, 9 }
 0x27c   : > { %v7343_v22 = vrot.slane %v7262_v57, 4  ;;  %v14557_v4 = vrot.slane %v5516_v47, 9  ;;  %v6361_v9 = vadd.f32 %v14554_v18, %v5507_v44  ;;  %v5466_v8 = vcombine.high %v5194_v42, %v5194_v42 }
 0x27d   : > { %v7340_v17 = vsel %vm6879_vm11, %v7339_v63, %v7338_v45  ;;  %v6362_v3 = vadd.f32 %v14555_v53, %v5515_v34  ;;  %v6363_v13 = vadd.f32 %v14556_v33, %v5514_v51  ;;  %v5473_v0 = vrot.slane %v5194_v42, %v18771_v20 }
 0x27e   : > { %v7342_v62 = vsel %vm6881_vm12, %v7341_v61, %v7340_v17  ;;  %v6364_v10 = vadd.f32 %v14557_v4, %v5516_v47  ;;  %v5480_v26 = vrot.slane %v5466_v8, %v18771_v20  ;;  %v6907_v29 = vsel %vm6881_vm12, %v6732_v14, %v6906_v37  ;;  %v15865_v47 = vpop.f32.mrf.mxu0 }
 0x27f   : > { %v5481_v54 = vcombine.high %v5473_v0, %v5473_v0  ;;  %v14546_v16 = vrot.slane %v5473_v0, 9  ;;  %v19093_v15 = vsel %vm6883_vm13, %v7343_v22, %v7342_v62  ;;  %v5199_v50 = vmax.f32 %v5135_v24, %v5167_v30  ;;  %v19104_v24 = vld [vmem:[%s20830_s2] ss:$0 sm:$0xff] }
 0x280   : > { %v5482_v44 = vcombine.high %v5480_v26, %v5480_v26  ;;  %v14548_v39 = vrot.slane %v5480_v26, 9  ;;  %v5094_v42 = vadd.f32 %v5015_v32, %v18848_v43  ;;  %v7647_v14 = vsel %vm7645_vm8, %v14694_v5, 0 }
 0x281   : > { %v14547_v58 = vrot.slane %v5481_v54, 9  ;;  %v6353_v7 = vadd.f32 %v14546_v16, %v5473_v0  ;;  %v5551_v31 = vcombine.high %v5199_v50, %v5199_v50  ;;  %v5558_v46 = vrot.slane %v5199_v50, %v18771_v20  ;;  %15876 = vmatpush3.bf16.msra.mxu1 %v7647_v14  ;;  %v7463_v16 = vld [vmem:[#allocation2 + $0x24] sm:$0x1] }
 0x282   : > { %v14549_v55 = vrot.slane %v5482_v44, 9  ;;  %v6355_v51 = vadd.f32 %v14548_v39, %v5480_v26  ;;  %v5133_v43 = vadd.f32 %v19104_v24, %v5094_v42  ;;  %v5031_v26 = vpop.f32.mrf.mxu0 }
 0x283   : > { %v6354_v30 = vadd.f32 %v14547_v58, %v5481_v54  ;;  %v6457_v59 = vadd.f32 %v6361_v9, %v6353_v7  ;;  %v5565_v6 = vrot.slane %v5551_v31, %v18771_v20  ;;  %v5566_v34 = vcombine.high %v5558_v46, %v5558_v46 }
 0x284   : > { %v6356_v32 = vadd.f32 %v14549_v55, %v5482_v44  ;;  %v6459_v23 = vadd.f32 %v6363_v13, %v6355_v51  ;;  %v14566_v11 = vrot.slane %v5558_v46, 9  ;;  %v5165_v35 = vmul.f32 0.2, %v5133_v43 }
 0x285   : > { %v6458_v37 = vadd.f32 %v6362_v3, %v6354_v30  ;;  %v6521_v57 = vmul.f32 0.25, %v6457_v59  ;;  %v5567_v45 = vcombine.high %v5565_v6, %v5565_v6  ;;  %v14567_v18 = vrot.slane %v5566_v34, 9  ;;  %v15866_v30 = vpop.f32.mrf.mxu0 }
 0x286   : > { %v6460_v63 = vadd.f32 %v6364_v10, %v6356_v32  ;;  %v6523_v61 = vmul.f32 0.25, %v6459_v23  ;;  %v14568_v53 = vrot.slane %v5565_v6, 9  ;;  %v19108_v33 = vadd.f32 %v14566_v11, %v5558_v46 }
 0x287   : > { %v6522_v22 = vmul.f32 0.25, %v6458_v37  ;;  %v6736_v4 = vrot.slane %v6521_v57, %v18774_v21  ;;  %v15209_v9 = vpack.c.bf16 %v6521_v57, %v6521_v57  ;;  %v14569_v8 = vrot.slane %v5567_v45, 9 }
 0x288   : > { %v6524_v17 = vmul.f32 0.25, %v6460_v63  ;;  %v6744_v13 = vrot.slane %v6523_v61, %v18774_v21  ;;  %v15211_v0 = vpack.c.bf16 %v6523_v61, %v6523_v61  ;;  %v6374_v62 = vadd.f32 %v14567_v18, %v5566_v34 }
 0x289   : > { %v6740_v3 = vrot.slane %v6522_v22, %v18774_v21  ;;  %v6908_v5 = vsel %vm6883_vm13, %v6736_v4, %v6907_v29  ;;  %v15210_v10 = vpack.c.bf16 %v6522_v22, %v6522_v22  ;;  %v7263_v54 = vunpack.c.l.b16 %v15209_v9 }
 0x28a   : > { %v6748_v50 = vrot.slane %v6524_v17, %v18774_v21  ;;  %v7265_v44 = vunpack.c.l.b16 %v15211_v0  ;;  %v15248_v39 = vpack.c.bf16 %v6524_v17, %v6524_v17  ;;  %v6375_v42 = vadd.f32 %v14568_v53, %v5565_v6 }
 0x28b   : > { %v6909_v58 = vsel %vm6885_vm15, %v6740_v3, %v6908_v5  ;;  %v7264_v7 = vunpack.c.l.b16 %v15210_v10  ;;  %v7345_v31 = vrot.slane %v7263_v54, 3  ;;  %v6376_v46 = vadd.f32 %v14569_v8, %v5567_v45 }
 0x28c   : > { %v6910_v55 = vsel %vm6887_vm0, %v6744_v13, %v6909_v58  ;;  %v7349_v51 = vrot.slane %v7265_v44, 1  ;;  %v7464_v29 = vsel %vm18934_vm5, %v15248_v39, %v7463_v16  ;;  %v5197_v14 = vmax.f32 %v5133_v43, %v5165_v35 }
 0x28d   : > { %v6911_v59 = vsel %vm6889_vm1, %v6748_v50, %v6910_v55  ;;  %v7346_v34 = vsel %vm6885_vm15, %v7345_v31, %v19093_v15  ;;  %v7347_v32 = vrot.slane %v7264_v7, 2  ;;  %7465 = vst [vmem:[#allocation2 + $0x24] sm:$0x1] %v7464_v29  ;;  %v5097_v6 = vadd.f32 %v19082_v19, %v18853_v38  ;;  %v7460_v19 = vld [vmem:[#allocation2 + $0x20] sm:$0xf] }
 0x28e   : > { %6952 = vst.msk [vmem:[%s18945_s28 + $0x18] sm:$0xff] %vm6948_vm2, %v6911_v59  ;;  %v5517_v23 = vcombine.high %v5197_v14, %v5197_v14  ;;  %v5524_v11 = vrot.slane %v5197_v14, %v18771_v20  ;;  %v5095_v37 = vadd.f32 %v19096_v41, %v18856_v28  ;;  %v5100_v43 = vadd.f32 %v15865_v47, %v18860_v1 }
 0x28f   : > { %v7348_v35 = vsel %vm6887_vm0, %v7347_v32, %v7346_v34  ;;  %v5136_v57 = vadd.f32 %v19104_v24, %v5097_v6  ;;  %v19133_v15 = vadd.f32 %v5031_v26, %v18865_v2  ;;  %v19136_v45 = vadd.f32 %v15866_v30, %v18870_v48 }
 0x290   : > { %v7350_v38 = vsel %vm6889_vm1, %v7349_v51, %v7348_v35  ;;  %v5531_v18 = vrot.slane %v5517_v23, %v18771_v20  ;;  %v5532_v63 = vcombine.high %v5524_v11, %v5524_v11  ;;  %v14558_v61 = vrot.slane %v5524_v11, 9 }
 0x291   : > { %v7409_v28 = vpack.c.b16 %v7350_v38, %v7350_v38  ;;  %v5168_v41 = vmul.f32 0.2, %v5136_v57  ;;  %v5134_v1 = vadd.f32 %v19104_v24, %v5095_v37  ;;  %v5139_v47 = vadd.f32 %v19104_v24, %v5100_v43 }
 0x292   : > { %v5533_v53 = vcombine.high %v5531_v18, %v5531_v18  ;;  %v14559_v22 = vrot.slane %v5532_v63, 9  ;;  %v14560_v2 = vrot.slane %v5531_v18, 9  ;;  %v6365_v4 = vadd.f32 %v14558_v61, %v5524_v11 }
 0x293   : > { %v7461_v48 = vsel %vm18960_vm6, %v7409_v28, %v7460_v19  ;;  %v5200_v9 = vmax.f32 %v5136_v57, %v5168_v41  ;;  %v5166_v8 = vmul.f32 0.2, %v5134_v1  ;;  %v5171_v17 = vmul.f32 0.2, %v5139_v47 }
 0x294   : > { %7462 = vst [vmem:[#allocation2 + $0x20] sm:$0xf] %v7461_v48  ;;  %v14561_v13 = vrot.slane %v5533_v53, 9  ;;  %v6366_v0 = vadd.f32 %v14559_v22, %v5532_v63  ;;  %v6367_v26 = vadd.f32 %v14560_v2, %v5531_v18  ;;  %v6461_v3 = vadd.f32 %v19108_v33, %v6365_v4 }
 0x295   : > { %v5568_v5 = vcombine.high %v5200_v9, %v5200_v9  ;;  %v5575_v10 = vrot.slane %v5200_v9, %v18771_v20  ;;  %v5198_v54 = vmax.f32 %v5134_v1, %v5166_v8  ;;  %v5203_v16 = vmax.f32 %v5139_v47, %v5171_v17 }
 0x296   : > { %v6368_v50 = vadd.f32 %v14561_v13, %v5533_v53  ;;  %v6462_v44 = vadd.f32 %v6374_v62, %v6366_v0  ;;  %v6463_v39 = vadd.f32 %v6375_v42, %v6367_v26  ;;  %v6525_v58 = vmul.f32 0.25, %v6461_v3  ;;  %v14737_v26 = vld [vmem:[%s20857_s3 + $0x10] sm:$0xf] }
 0x297   : > { %v5582_v7 = vrot.slane %v5568_v5, %v18771_v20  ;;  %v5583_v31 = vcombine.high %v5575_v10, %v5575_v10  ;;  %v14570_v55 = vrot.slane %v5575_v10, 9  ;;  %v5534_v51 = vcombine.high %v5198_v54, %v5198_v54  ;;  %16248 = vmatprep.subr.msk.bf16.mxu0 %vm7645_vm8, %v14737_v26 }
 0x298   : > { %v6464_v29 = vadd.f32 %v6376_v46, %v6368_v50  ;;  %v6526_v14 = vmul.f32 0.25, %v6462_v44  ;;  %v6527_v30 = vmul.f32 0.25, %v6463_v39  ;;  %v6752_v59 = vrot.slane %v6525_v58, %v18774_v21 }
 0x299   : > { %v15213_v33 = vpack.c.bf16 %v6525_v58, %v6525_v58  ;;  %v5584_v34 = vcombine.high %v5582_v7, %v5582_v7  ;;  %v14571_v32 = vrot.slane %v5583_v31, 9  ;;  %v14572_v6 = vrot.slane %v5582_v7, 9 }
 0x29a   : > { %v6528_v23 = vmul.f32 0.25, %v6464_v29  ;;  %v6756_v11 = vrot.slane %v6526_v14, %v18774_v21  ;;  %v6760_v62 = vrot.slane %v6527_v30, %v18774_v21  ;;  %v15214_v42 = vpack.c.bf16 %v6526_v14, %v6526_v14 }
 0x29b   : > { %v15215_v37 = vpack.c.bf16 %v6527_v30, %v6527_v30  ;;  %v7267_v43 = vunpack.c.l.b16 %v15213_v33  ;;  %v14573_v35 = vrot.slane %v5584_v34, 9  ;;  %v6377_v57 = vadd.f32 %v14570_v55, %v5575_v10 }
 0x29c   : > { %v6764_v46 = vrot.slane %v6528_v23, %v18774_v21  ;;  %v6912_v38 = vsel %vm6877_vm10, %v6756_v11, %v6752_v59  ;;  %v15216_v19 = vpack.c.bf16 %v6528_v23, %v6528_v23  ;;  %v7268_v18 = vunpack.c.l.b16 %v15214_v42 }
 0x29d   : > { %v6913_v63 = vsel %vm6879_vm11, %v6760_v62, %v6912_v38  ;;  %v7269_v61 = vunpack.c.l.b16 %v15215_v37  ;;  %v7351_v28 = vrot.slane %v7267_v43, 7  ;;  %v6378_v41 = vadd.f32 %v14571_v32, %v5583_v31 }
 0x29e   : > { %v7270_v1 = vunpack.c.l.b16 %v15216_v19  ;;  %v7352_v47 = vrot.slane %v7268_v18, 6  ;;  %v6379_v53 = vadd.f32 %v14572_v6, %v5582_v7  ;;  %v6380_v22 = vadd.f32 %v14573_v35, %v5584_v34  ;;  %v5034_v6 = vpop.f32.mrf.mxu0 }
 0x29f   : > { %v7354_v2 = vrot.slane %v7269_v61, 5  ;;  %v5541_v4 = vrot.slane %v5198_v54, %v18771_v20  ;;  %v5548_v48 = vrot.slane %v5534_v51, %v18771_v20  ;;  %v6914_v9 = vsel %vm6881_vm12, %v6764_v46, %v6913_v63 }
 0x2a0   : > { %v7353_v8 = vsel %vm6879_vm11, %v7352_v47, %v7351_v28  ;;  %v7356_v17 = vrot.slane %v7270_v1, 4  ;;  %v5619_v13 = vcombine.high %v5203_v16, %v5203_v16  ;;  %v5626_v0 = vrot.slane %v5203_v16, %v18771_v20 }
 0x2a1   : > { %v7355_v3 = vsel %vm6881_vm12, %v7354_v2, %v7353_v8  ;;  %v5549_v5 = vcombine.high %v5541_v4, %v5541_v4  ;;  %v5550_v10 = vcombine.high %v5548_v48, %v5548_v48  ;;  %v14562_v50 = vrot.slane %v5541_v4, 9 }
 0x2a2   : > { %v14564_v54 = vrot.slane %v5548_v48, 9  ;;  %v7357_v44 = vsel %vm6883_vm13, %v7356_v17, %v7355_v3  ;;  %v5633_v39 = vrot.slane %v5619_v13, %v18771_v20  ;;  %v5634_v58 = vcombine.high %v5626_v0, %v5626_v0 }
 0x2a3   : > { %v14563_v7 = vrot.slane %v5549_v5, 9  ;;  %v14565_v31 = vrot.slane %v5550_v10, 9  ;;  %v6369_v16 = vadd.f32 %v14562_v50, %v5541_v4  ;;  %v14582_v55 = vrot.slane %v5626_v0, 9 }
 0x2a4   : > { %v6371_v51 = vadd.f32 %v14564_v54, %v5548_v48  ;;  %v5635_v29 = vcombine.high %v5633_v39, %v5633_v39  ;;  %v14583_v14 = vrot.slane %v5634_v58, 9  ;;  %v14584_v30 = vrot.slane %v5633_v39, 9  ;;  %v7469_v48 = vld [vmem:[#allocation2 + $0x2c] sm:$0x1] }
 0x2a5   : > { %v6370_v59 = vadd.f32 %v14563_v7, %v5549_v5  ;;  %v6372_v33 = vadd.f32 %v14565_v31, %v5550_v10  ;;  %v6465_v34 = vadd.f32 %v6377_v57, %v6369_v16  ;;  %v19165_v32 = vadd.f32 %v14582_v55, %v5626_v0 }
 0x2a6   : > { %v6467_v23 = vadd.f32 %v6379_v53, %v6371_v51  ;;  %v14585_v11 = vrot.slane %v5635_v29, 9  ;;  %v19167_v62 = vadd.f32 %v14583_v14, %v5634_v58  ;;  %v19169_v42 = vadd.f32 %v14584_v30, %v5633_v39 }
 0x2a7   : > { %v6466_v37 = vadd.f32 %v6378_v41, %v6370_v59  ;;  %v6468_v43 = vadd.f32 %v6380_v22, %v6372_v33  ;;  %v6529_v35 = vmul.f32 0.25, %v6465_v34  ;;  %v5137_v46 = vadd.f32 %v19104_v24, %v19133_v15  ;;  %v7498_v15 = vld [vmem:[%s20857_s3] sm:$0xf] }
 0x2a8   : > { %v6531_v38 = vmul.f32 0.25, %v6467_v23  ;;  %v19173_v19 = vadd.f32 %v14585_v11, %v5635_v29  ;;  %v5140_v57 = vadd.f32 %v19104_v24, %v19136_v45  ;;  %v5099_v18 = vadd.f32 %v5034_v6, %v18873_v25  ;;  %16245 = vmatprep.subr.msk.bf16.mxu1 %vm7645_vm8, %v7498_v15  ;;  %v7466_v23 = vld [vmem:[#allocation2 + $0x28] sm:$0xf] }
 0x2a9   : > { %v6530_v63 = vmul.f32 0.25, %v6466_v37  ;;  %v6532_v61 = vmul.f32 0.25, %v6468_v43  ;;  %v6768_v28 = vrot.slane %v6529_v35, %v18774_v21  ;;  %v15217_v1 = vpack.c.bf16 %v6529_v35, %v6529_v35  ;;  %v15869_v35 = vpop.f32.mrf.mxu0 }
 0x2aa   : > { %v6776_v41 = vrot.slane %v6531_v38, %v18774_v21  ;;  %v15219_v47 = vpack.c.bf16 %v6531_v38, %v6531_v38  ;;  %v5169_v53 = vmul.f32 0.2, %v5137_v46  ;;  %v5172_v22 = vmul.f32 0.2, %v5140_v57 }
 0x2ab   : > { %v6772_v2 = vrot.slane %v6530_v63, %v18774_v21  ;;  %v6780_v45 = vrot.slane %v6532_v61, %v18774_v21  ;;  %v6915_v25 = vsel %vm6883_vm13, %v6768_v28, %v6914_v9  ;;  %v15218_v4 = vpack.c.bf16 %v6530_v63, %v6530_v63 }
 0x2ac   : > { %v7271_v8 = vunpack.c.l.b16 %v15217_v1  ;;  %v7273_v17 = vunpack.c.l.b16 %v15219_v47  ;;  %v15249_v13 = vpack.c.bf16 %v6532_v61, %v6532_v61  ;;  %v5201_v0 = vmax.f32 %v5137_v46, %v5169_v53 }
 0x2ad   : > { %v6916_v26 = vsel %vm6885_vm15, %v6772_v2, %v6915_v25  ;;  %v7272_v3 = vunpack.c.l.b16 %v15218_v4  ;;  %v5204_v5 = vmax.f32 %v5140_v57, %v5172_v22  ;;  %v5138_v10 = vadd.f32 %v19104_v24, %v5099_v18  ;;  %v5047_v25 = vpop.f32.mrf.mxu0 }
 0x2ae   : > { %v6917_v50 = vsel %vm6887_vm0, %v6776_v41, %v6916_v26  ;;  %v7358_v54 = vrot.slane %v7271_v8, 3  ;;  %v7362_v39 = vrot.slane %v7273_v17, 1  ;;  %v7470_v9 = vsel %vm18934_vm5, %v15249_v13, %v7469_v48 }
 0x2af   : > { %v6918_v58 = vsel %vm6889_vm1, %v6780_v45, %v6917_v50  ;;  %v7360_v7 = vrot.slane %v7272_v3, 2  ;;  %7471 = vst [vmem:[#allocation2 + $0x2c] sm:$0x1] %v7470_v9  ;;  %v5585_v31 = vcombine.high %v5201_v0, %v5201_v0  ;;  %v5592_v16 = vrot.slane %v5201_v0, %v18771_v20 }
 0x2b0   : > { %6953 = vst.msk [vmem:[%s18945_s28 + $0x20] sm:$0xff] %vm6948_vm2, %v6918_v58  ;;  %v7359_v55 = vsel %vm6885_vm15, %v7358_v54, %v7357_v44  ;;  %v5636_v51 = vcombine.high %v5204_v5, %v5204_v5  ;;  %v5643_v29 = vrot.slane %v5204_v5, %v18771_v20  ;;  %v5170_v14 = vmul.f32 0.2, %v5138_v10 }
 0x2b1   : > { %v7361_v30 = vsel %vm6887_vm0, %v7360_v7, %v7359_v55  ;;  %v5599_v59 = vrot.slane %v5585_v31, %v18771_v20  ;;  %v5600_v33 = vcombine.high %v5592_v16, %v5592_v16  ;;  %v14574_v34 = vrot.slane %v5592_v16, 9 }
 0x2b2   : > { %v7363_v6 = vsel %vm6889_vm1, %v7362_v39, %v7361_v30  ;;  %v5650_v11 = vrot.slane %v5636_v51, %v18771_v20  ;;  %v5651_v37 = vcombine.high %v5643_v29, %v5643_v29  ;;  %v14586_v43 = vrot.slane %v5643_v29, 9 }
 0x2b3   : > { %v7411_v46 = vpack.c.b16 %v7363_v6, %v7363_v6  ;;  %v5601_v44 = vcombine.high %v5599_v59, %v5599_v59  ;;  %v14575_v38 = vrot.slane %v5600_v33, 9  ;;  %v14576_v57 = vrot.slane %v5599_v59, 9  ;;  %v15870_v6 = vpop.f32.mrf.mxu0 }
 0x2b4   : > { %v6381_v18 = vadd.f32 %v14574_v34, %v5592_v16  ;;  %v5652_v63 = vcombine.high %v5650_v11, %v5650_v11  ;;  %v14587_v61 = vrot.slane %v5651_v37, 9  ;;  %v14588_v28 = vrot.slane %v5650_v11, 9 }
 0x2b5   : > { %v7467_v1 = vsel %vm18960_vm6, %v7411_v46, %v7466_v23  ;;  %v14577_v41 = vrot.slane %v5601_v44, 9  ;;  %v6382_v47 = vadd.f32 %v14575_v38, %v5600_v33  ;;  %v6383_v53 = vadd.f32 %v14576_v57, %v5599_v59 }
 0x2b6   : > { %7468 = vst [vmem:[#allocation2 + $0x28] sm:$0xf] %v7467_v1  ;;  %v6469_v22 = vadd.f32 %v19165_v32, %v6381_v18  ;;  %v14589_v15 = vrot.slane %v5652_v63, 9  ;;  %v6393_v2 = vadd.f32 %v14586_v43, %v5643_v29  ;;  %v6394_v45 = vadd.f32 %v14587_v61, %v5651_v37 }
 0x2b7   : > { %v6384_v4 = vadd.f32 %v14577_v41, %v5601_v44  ;;  %v6470_v48 = vadd.f32 %v19167_v62, %v6382_v47  ;;  %v6471_v8 = vadd.f32 %v19169_v42, %v6383_v53  ;;  %v6395_v17 = vadd.f32 %v14588_v28, %v5650_v11  ;;  %v5050_v53 = vpop.f32.mrf.mxu0 }
 0x2b8   : > { %v6533_v13 = vmul.f32 0.25, %v6469_v22  ;;  %v6396_v0 = vadd.f32 %v14589_v15, %v5652_v63  ;;  %v5202_v26 = vmax.f32 %v5138_v10, %v5170_v14  ;;  %v5104_v3 = vadd.f32 %v15869_v35, %v18877_v36 }
 0x2b9   : > { %v6472_v5 = vadd.f32 %v19173_v19, %v6384_v4  ;;  %v6534_v50 = vmul.f32 0.25, %v6470_v48  ;;  %v6535_v54 = vmul.f32 0.25, %v6471_v8  ;;  %v5102_v32 = vadd.f32 %v5047_v25, %v18881_v40 }
 0x2ba   : > { %v6784_v39 = vrot.slane %v6533_v13, %v18774_v21  ;;  %v15221_v9 = vpack.c.bf16 %v6533_v13, %v6533_v13  ;;  %v5602_v58 = vcombine.high %v5202_v26, %v5202_v26  ;;  %v5609_v62 = vrot.slane %v5202_v26, %v18771_v20 }
 0x2bb   : > { %v6536_v7 = vmul.f32 0.25, %v6472_v5  ;;  %v6788_v42 = vrot.slane %v6534_v50, %v18774_v21  ;;  %v6792_v31 = vrot.slane %v6535_v54, %v18774_v21  ;;  %v15222_v10 = vpack.c.bf16 %v6534_v50, %v6534_v50 }
 0x2bc   : > { %v15223_v16 = vpack.c.bf16 %v6535_v54, %v6535_v54  ;;  %v7275_v36 = vunpack.c.l.b16 %v15221_v9  ;;  %v5616_v19 = vrot.slane %v5602_v58, %v18771_v20  ;;  %v5617_v55 = vcombine.high %v5609_v62, %v5609_v62 }
 0x2bd   : > { %v6796_v51 = vrot.slane %v6536_v7, %v18774_v21  ;;  %v6919_v40 = vsel %vm6877_vm10, %v6788_v42, %v6784_v39  ;;  %v15224_v29 = vpack.c.bf16 %v6536_v7, %v6536_v7  ;;  %v7276_v14 = vunpack.c.l.b16 %v15222_v10 }
 0x2be   : > { %v6920_v30 = vsel %vm6879_vm11, %v6792_v31, %v6919_v40  ;;  %v7277_v59 = vunpack.c.l.b16 %v15223_v16  ;;  %v7364_v33 = vrot.slane %v7275_v36, 7  ;;  %v5618_v34 = vcombine.high %v5616_v19, %v5616_v19 }
 0x2bf   : > { %v7278_v23 = vunpack.c.l.b16 %v15224_v29  ;;  %v7365_v11 = vrot.slane %v7276_v14, 6  ;;  %v14578_v37 = vrot.slane %v5609_v62, 9  ;;  %v14579_v43 = vrot.slane %v5617_v55, 9  ;;  %v4596_v29 = vpop.f32.mrf.mxu1 }
 0x2c0   : > { %v7367_v35 = vrot.slane %v7277_v59, 5  ;;  %v14580_v46 = vrot.slane %v5616_v19, 9  ;;  %v14581_v44 = vrot.slane %v5618_v34, 9  ;;  %v6921_v38 = vsel %vm6881_vm12, %v6796_v51, %v6920_v30 }
 0x2c1   : > { %v7366_v57 = vsel %vm6879_vm11, %v7365_v11, %v7364_v33  ;;  %v7369_v18 = vrot.slane %v7278_v23, 4  ;;  %v6385_v63 = vadd.f32 %v14578_v37, %v5609_v62  ;;  %v6386_v61 = vadd.f32 %v14579_v43, %v5617_v55 }
 0x2c2   : > { %v7368_v28 = vsel %vm6881_vm12, %v7367_v35, %v7366_v57  ;;  %v6387_v1 = vadd.f32 %v14580_v46, %v5616_v19  ;;  %v6388_v41 = vadd.f32 %v14581_v44, %v5618_v34  ;;  %v5143_v47 = vadd.f32 %v19104_v24, %v5104_v3 }
 0x2c3   : > { %v6473_v22 = vadd.f32 %v6393_v2, %v6385_v63  ;;  %v6474_v15 = vadd.f32 %v6394_v45, %v6386_v61  ;;  %v7370_v25 = vsel %vm6883_vm13, %v7369_v18, %v7368_v28  ;;  %v5141_v4 = vadd.f32 %v19104_v24, %v5102_v32  ;;  %v7472_v61 = vld [vmem:[#allocation2 + $0x30] sm:$0xf] }
 0x2c4   : > { %v6475_v48 = vadd.f32 %v6395_v17, %v6387_v1  ;;  %v6476_v8 = vadd.f32 %v6396_v0, %v6388_v41  ;;  %v5175_v13 = vmul.f32 0.2, %v5143_v47  ;;  %v5105_v26 = vadd.f32 %v15870_v6, %v18885_v49  ;;  %v7475_v0 = vld [vmem:[#allocation2 + $0x34] sm:$0x1] }
 0x2c5   : > { %v6537_v5 = vmul.f32 0.25, %v6473_v22  ;;  %v6538_v50 = vmul.f32 0.25, %v6474_v15  ;;  %v5173_v54 = vmul.f32 0.2, %v5141_v4  ;;  %v5103_v39 = vadd.f32 %v5050_v53, %v18887_v52 }
 0x2c6   : > { %v6539_v9 = vmul.f32 0.25, %v6475_v48  ;;  %v6540_v58 = vmul.f32 0.25, %v6476_v8  ;;  %v5207_v3 = vmax.f32 %v5143_v47, %v5175_v13  ;;  %v5144_v2 = vadd.f32 %v19104_v24, %v5105_v26 }
 0x2c7   : > { %v6800_v45 = vrot.slane %v6537_v5, %v18774_v21  ;;  %v6804_v62 = vrot.slane %v6538_v50, %v18774_v21  ;;  %v15225_v32 = vpack.c.bf16 %v6537_v5, %v6537_v5  ;;  %v15226_v17 = vpack.c.bf16 %v6538_v50, %v6538_v50 }
 0x2c8   : > { %v6808_v7 = vrot.slane %v6539_v9, %v18774_v21  ;;  %v6812_v49 = vrot.slane %v6540_v58, %v18774_v21  ;;  %v15227_v42 = vpack.c.bf16 %v6539_v9, %v6539_v9  ;;  %v15250_v31 = vpack.c.bf16 %v6540_v58, %v6540_v58 }
 0x2c9   : > { %v6922_v52 = vsel %vm6883_vm13, %v6800_v45, %v6921_v38  ;;  %v7279_v10 = vunpack.c.l.b16 %v15225_v32  ;;  %v7280_v16 = vunpack.c.l.b16 %v15226_v17  ;;  %v5687_v36 = vcombine.high %v5207_v3, %v5207_v3 }
 0x2ca   : > { %v6923_v19 = vsel %vm6885_vm15, %v6804_v62, %v6922_v52  ;;  %v7281_v55 = vunpack.c.l.b16 %v15227_v42  ;;  %v7476_v51 = vsel %vm18934_vm5, %v15250_v31, %v7475_v0  ;;  %v5694_v40 = vrot.slane %v5207_v3, %v18771_v20 }
 0x2cb   : > { %v6924_v14 = vsel %vm6887_vm0, %v6808_v7, %v6923_v19  ;;  %v7371_v30 = vrot.slane %v7279_v10, 3  ;;  %v7373_v59 = vrot.slane %v7280_v16, 2  ;;  %7477 = vst [vmem:[#allocation2 + $0x34] sm:$0x1] %v7476_v51  ;;  %v5701_v33 = vrot.slane %v5687_v36, %v18771_v20 }
 0x2cc   : > { %v6925_v34 = vsel %vm6889_vm1, %v6812_v49, %v6924_v14  ;;  %v7375_v6 = vrot.slane %v7281_v55, 1  ;;  %v5702_v23 = vcombine.high %v5694_v40, %v5694_v40  ;;  %v14598_v11 = vrot.slane %v5694_v40, 9 }
 0x2cd   : > { %6954 = vst.msk [vmem:[%s18945_s28 + $0x28] sm:$0xff] %vm6948_vm2, %v6925_v34  ;;  %v7372_v37 = vsel %vm6885_vm15, %v7371_v30, %v7370_v25  ;;  %v5703_v43 = vcombine.high %v5701_v33, %v5701_v33  ;;  %v14600_v35 = vrot.slane %v5701_v33, 9  ;;  %v5205_v46 = vmax.f32 %v5141_v4, %v5173_v54  ;;  %v15873_v25 = vpop.f32.mrf.mxu0 }
 0x2ce   : > { %v19243_v44 = vadd.f32 %v4596_v29, %v18892_v60  ;;  %v7374_v38 = vsel %vm6887_vm0, %v7373_v59, %v7372_v37  ;;  %v14599_v57 = vrot.slane %v5702_v23, 9  ;;  %v5176_v18 = vmul.f32 0.2, %v5144_v2 }
 0x2cf   : > { %v7376_v63 = vsel %vm6889_vm1, %v7375_v6, %v7374_v38  ;;  %v14601_v28 = vrot.slane %v5703_v43, 9  ;;  %v6405_v1 = vadd.f32 %v14598_v11, %v5694_v40  ;;  %v5653_v41 = vcombine.high %v5205_v46, %v5205_v46 }
 0x2d0   : > { %v7413_v47 = vpack.c.b16 %v7376_v63, %v7376_v63  ;;  %v6407_v53 = vadd.f32 %v14600_v35, %v5701_v33  ;;  %v5660_v22 = vrot.slane %v5205_v46, %v18771_v20  ;;  %v5208_v15 = vmax.f32 %v5144_v2, %v5176_v18 }
 0x2d1   : > { %v6406_v4 = vadd.f32 %v14599_v57, %v5702_v23  ;;  %v6408_v48 = vadd.f32 %v14601_v28, %v5703_v43  ;;  %v5667_v60 = vrot.slane %v5653_v41, %v18771_v20  ;;  %v5142_v8 = vadd.f32 %v19104_v24, %v5103_v39 }
 0x2d2   : > { %v7473_v13 = vsel %vm18960_vm6, %v7413_v47, %v7472_v61  ;;  %v5668_v26 = vcombine.high %v5660_v22, %v5660_v22  ;;  %v14590_v5 = vrot.slane %v5660_v22, 9  ;;  %v5704_v50 = vcombine.high %v5208_v15, %v5208_v15 }
 0x2d3   : > { %7474 = vst [vmem:[#allocation2 + $0x30] sm:$0xf] %v7473_v13  ;;  %v5669_v54 = vcombine.high %v5667_v60, %v5667_v60  ;;  %v14592_v9 = vrot.slane %v5667_v60, 9  ;;  %v5711_v58 = vrot.slane %v5208_v15, %v18771_v20  ;;  %v5108_v3 = vadd.f32 %v15873_v25, %v18890_v27 }
 0x2d4   : > { %v14591_v2 = vrot.slane %v5668_v26, 9  ;;  %v6397_v45 = vadd.f32 %v14590_v5, %v5660_v22  ;;  %v5718_v62 = vrot.slane %v5704_v50, %v18771_v20  ;;  %v5174_v32 = vmul.f32 0.2, %v5142_v8 }
 0x2d5   : > { %v14593_v17 = vrot.slane %v5669_v54, 9  ;;  %v6399_v39 = vadd.f32 %v14592_v9, %v5667_v60  ;;  %v5719_v0 = vcombine.high %v5711_v58, %v5711_v58  ;;  %v14602_v7 = vrot.slane %v5711_v58, 9 }
 0x2d6   : > { %v6398_v49 = vadd.f32 %v14591_v2, %v5668_v26  ;;  %v6477_v42 = vadd.f32 %v6405_v1, %v6397_v45  ;;  %v5720_v31 = vcombine.high %v5718_v62, %v5718_v62  ;;  %v14604_v52 = vrot.slane %v5718_v62, 9 }
 0x2d7   : > { %v6400_v10 = vadd.f32 %v14593_v17, %v5669_v54  ;;  %v6479_v16 = vadd.f32 %v6407_v53, %v6399_v39  ;;  %v14603_v36 = vrot.slane %v5719_v0, 9  ;;  %v5147_v19 = vadd.f32 %v19104_v24, %v5108_v3 }
 0x2d8   : > { %v6478_v55 = vadd.f32 %v6406_v4, %v6398_v49  ;;  %v6541_v27 = vmul.f32 0.25, %v6477_v42  ;;  %v14605_v51 = vrot.slane %v5720_v31, 9  ;;  %v6409_v40 = vadd.f32 %v14602_v7, %v5711_v58 }
 0x2d9   : > { %v6480_v29 = vadd.f32 %v6408_v48, %v6400_v10  ;;  %v6543_v14 = vmul.f32 0.25, %v6479_v16  ;;  %v6411_v30 = vadd.f32 %v14604_v52, %v5718_v62  ;;  %v5206_v59 = vmax.f32 %v5142_v8, %v5174_v32  ;;  %v19266_v62 = vld [vmem:[#allocation2] sm:$0xf] }
 0x2da   : > { %v6542_v33 = vmul.f32 0.25, %v6478_v55  ;;  %v6816_v34 = vrot.slane %v6541_v27, %v18774_v21  ;;  %v15229_v6 = vpack.c.bf16 %v6541_v27, %v6541_v27  ;;  %v6410_v23 = vadd.f32 %v14603_v36, %v5719_v0 }
 0x2db   : > { %v6544_v11 = vmul.f32 0.25, %v6480_v29  ;;  %v6824_v37 = vrot.slane %v6543_v14, %v18774_v21  ;;  %v15231_v43 = vpack.c.bf16 %v6543_v14, %v6543_v14  ;;  %v5670_v35 = vcombine.high %v5206_v59, %v5206_v59 }
 0x2dc   : > { %v6820_v46 = vrot.slane %v6542_v33, %v18774_v21  ;;  %v15230_v38 = vpack.c.bf16 %v6542_v33, %v6542_v33  ;;  %v7283_v57 = vunpack.c.l.b16 %v15229_v6  ;;  %v5677_v18 = vrot.slane %v5206_v59, %v18771_v20 }
 0x2dd   : > { %v6828_v63 = vrot.slane %v6544_v11, %v18774_v21  ;;  %v15232_v61 = vpack.c.bf16 %v6544_v11, %v6544_v11  ;;  %v7285_v28 = vunpack.c.l.b16 %v15231_v43  ;;  %v5684_v1 = vrot.slane %v5670_v35, %v18771_v20  ;;  %v5063_v11 = vpop.f32.mrf.mxu0 }
 0x2de   : > { %v6926_v41 = vsel %vm6877_vm10, %v6820_v46, %v6816_v34  ;;  %v7284_v47 = vunpack.c.l.b16 %v15230_v38  ;;  %v7377_v53 = vrot.slane %v7283_v57, 7  ;;  %v5685_v22 = vcombine.high %v5677_v18, %v5677_v18 }
 0x2df   : > { %v6927_v15 = vsel %vm6879_vm11, %v6824_v37, %v6926_v41  ;;  %v7286_v25 = vunpack.c.l.b16 %v15232_v61  ;;  %v7380_v4 = vrot.slane %v7285_v28, 5  ;;  %v5686_v48 = vcombine.high %v5684_v1, %v5684_v1 }
 0x2e0   : > { %v7378_v60 = vrot.slane %v7284_v47, 6  ;;  %v14594_v8 = vrot.slane %v5677_v18, 9  ;;  %v14595_v13 = vrot.slane %v5685_v22, 9  ;;  %v14596_v26 = vrot.slane %v5684_v1, 9 }
 0x2e1   : > { %v7382_v5 = vrot.slane %v7286_v25, 4  ;;  %v14597_v50 = vrot.slane %v5686_v48, 9  ;;  %v6928_v54 = vsel %vm6881_vm12, %v6828_v63, %v6927_v15  ;;  %v5179_v9 = vmul.f32 0.2, %v5147_v19  ;;  %v19283_v15 = vld [vmem:[#allocation2 + $0x8] sm:$0xf] }
 0x2e2   : > { %v7379_v58 = vsel %vm6879_vm11, %v7378_v60, %v7377_v53  ;;  %v6401_v3 = vadd.f32 %v14594_v8, %v5677_v18  ;;  %v6402_v2 = vadd.f32 %v14595_v13, %v5685_v22  ;;  %v6403_v45 = vadd.f32 %v14596_v26, %v5684_v1  ;;  %v19286_v26 = vld [vmem:[#allocation2 + $0xc] sm:$0x1] }
 0x2e3   : > { %v7381_v32 = vsel %vm6881_vm12, %v7380_v4, %v7379_v58  ;;  %v6412_v17 = vadd.f32 %v14605_v51, %v5720_v31  ;;  %v6404_v39 = vadd.f32 %v14597_v50, %v5686_v48  ;;  %v5211_v0 = vmax.f32 %v5147_v19, %v5179_v9  ;;  %v15874_v4 = vpop.f32.mrf.mxu0  ;;  %v19297_v58 = vld [vmem:[#allocation2 + $0x4] sm:$0x1] }
 0x2e4   : > { %v6481_v7 = vadd.f32 %v6409_v40, %v6401_v3  ;;  %v6482_v49 = vadd.f32 %v6410_v23, %v6402_v2  ;;  %v6483_v42 = vadd.f32 %v6411_v30, %v6403_v45  ;;  %v7383_v52 = vsel %vm6883_vm13, %v7382_v5, %v7381_v32  ;;  %v7481_v23 = vld [vmem:[#allocation2 + $0x3c] sm:$0x1] }
 0x2e5   : > { %v6484_v10 = vadd.f32 %v6412_v17, %v6404_v39  ;;  %v5755_v16 = vcombine.high %v5211_v0, %v5211_v0  ;;  %v5762_v36 = vrot.slane %v5211_v0, %v18771_v20  ;;  %v7508_v55 = vshrl.u32 %v19266_v62, 16  ;;  %v7478_v39 = vld [vmem:[#allocation2 + $0x38] sm:$0xf] }
 0x2e6   : > { %v6545_v27 = vmul.f32 0.25, %v6481_v7  ;;  %v6546_v29 = vmul.f32 0.25, %v6482_v49  ;;  %v6547_v14 = vmul.f32 0.25, %v6483_v42  ;;  %v7511_v59 = vshll.u32 %v19266_v62, 16  ;;  %v20858_v49 = vld [vmem:[#allocation36_spill] sm:$0xff] }
 0x2e7   : > { %v6548_v33 = vmul.f32 0.25, %v6484_v10  ;;  %v5769_v31 = vrot.slane %v5755_v16, %v18771_v20  ;;  %v5770_v19 = vcombine.high %v5762_v36, %v5762_v36  ;;  %v14614_v51 = vrot.slane %v5762_v36, 9  ;;  %v8090_v10 = vld [vmem:[#allocation2 + $0x8] sm:$0xf] }
 0x2e8   : > { %v6832_v40 = vrot.slane %v6545_v27, %v18774_v21  ;;  %v6836_v30 = vrot.slane %v6546_v29, %v18774_v21  ;;  %v6840_v34 = vrot.slane %v6547_v14, %v18774_v21  ;;  %v15233_v6 = vpack.c.bf16 %v6545_v27, %v6545_v27 }
 0x2e9   : > { %v6844_v37 = vrot.slane %v6548_v33, %v18774_v21  ;;  %v15234_v43 = vpack.c.bf16 %v6546_v29, %v6546_v29  ;;  %v15235_v35 = vpack.c.bf16 %v6547_v14, %v6547_v14  ;;  %v15251_v46 = vpack.c.bf16 %v6548_v33, %v6548_v33  ;;  %v20859_v33 = vld [vmem:[#allocation30_spill] sm:$0xff] }
 0x2ea   : > { %v6929_v38 = vsel %vm6883_vm13, %v6832_v40, %v6928_v54  ;;  %v7287_v57 = vunpack.c.l.b16 %v15233_v6  ;;  %v5771_v18 = vcombine.high %v5769_v31, %v5769_v31  ;;  %v14615_v63 = vrot.slane %v5770_v19, 9 }
 0x2eb   : > { %v6930_v61 = vsel %vm6885_vm15, %v6836_v30, %v6929_v38  ;;  %v7288_v28 = vunpack.c.l.b16 %v15234_v43  ;;  %v7289_v1 = vunpack.c.l.b16 %v15235_v35  ;;  %v7482_v41 = vsel %vm18934_vm5, %v15251_v46, %v7481_v23 }
 0x2ec   : > { %v6931_v47 = vsel %vm6887_vm0, %v6840_v34, %v6930_v61  ;;  %v7384_v53 = vrot.slane %v7287_v57, 3  ;;  %7483 = vst [vmem:[#allocation2 + $0x3c] sm:$0x1] %v7482_v41  ;;  %v14616_v22 = vrot.slane %v5769_v31, 9  ;;  %v7510_v25 = vrot.slane %v7508_v55, 4 }
 0x2ed   : > { %v6932_v48 = vsel %vm6889_vm1, %v6844_v37, %v6931_v47  ;;  %v7386_v60 = vrot.slane %v7288_v28, 2  ;;  %v7388_v8 = vrot.slane %v7289_v1, 1  ;;  %v14617_v13 = vrot.slane %v5771_v18, 9  ;;  %v19314_v37 = vld [vmem:[#allocation2 + $0x10] sm:$0xf] }
 0x2ee   : > { %6955 = vst.msk [vmem:[%s18945_s28 + $0x30] sm:$0xff] %vm6948_vm2, %v6932_v48  ;;  %v7385_v5 = vsel %vm6885_vm15, %v7384_v53, %v7383_v52  ;;  %v19291_v50 = vadd.f32 %v14614_v51, %v5762_v36  ;;  %v19293_v54 = vadd.f32 %v14615_v63, %v5770_v19  ;;  %v19295_v9 = vadd.f32 %v14616_v22, %v5769_v31  ;;  %v5066_v52 = vpop.f32.mrf.mxu0  ;;  %v19308_v19 = vld [vmem:[#allocation2 + $0xc] sm:$0x1] }
 0x2ef   : > { %v7387_v3 = vsel %vm6887_vm0, %v7386_v60, %v7385_v5  ;;  %v7513_v2 = vrot.slane %v7511_v59, 5  ;;  %v7517_v45 = vshll.u32 %v19297_v58, 16  ;;  %v7522_v32 = vshrl.u32 %v19283_v15, 16 }
 0x2f0   : > { %v7389_v17 = vsel %vm6889_vm1, %v7388_v8, %v7387_v3  ;;  %v7525_v0 = vshll.u32 %v19283_v15, 16  ;;  %v7531_v7 = vshll.u32 %v19286_v26, 16  ;;  %v5106_v42 = vadd.f32 %v5063_v11, %v20858_v49 }
 0x2f1   : > { %v7415_v16 = vpack.c.b16 %v7389_v17, %v7389_v17  ;;  %v7514_v36 = vor.u32 %v7513_v2, %v7510_v25  ;;  %v7519_v55 = vrot.slane %v7517_v45, 5  ;;  %v7524_v27 = vrot.slane %v7522_v32, 4 }
 0x2f2   : > { %v7527_v29 = vrot.slane %v7525_v0, 5  ;;  %v7533_v14 = vrot.slane %v7531_v7, 5  ;;  %v5145_v59 = vadd.f32 %v19104_v24, %v5106_v42  ;;  %v5109_v31 = vadd.f32 %v15874_v4, %v20859_v33 }
 0x2f3   : > { %v7479_v51 = vsel %vm18960_vm6, %v7415_v16, %v7478_v39  ;;  %v7515_v40 = vrot.slane %v7514_v36, 4  ;;  %v5107_v30 = vadd.f32 %v5066_v52, %v19243_v44  ;;  %v8107_v34 = vshrl.u32 %v8090_v10, 16 }
 0x2f4   : > { %7480 = vst [vmem:[#allocation2 + $0x38] sm:$0xf] %v7479_v51  ;;  %v7528_v6 = vor.u32 %v7527_v29, %v7524_v27  ;;  %v5177_v23 = vmul.f32 0.2, %v5145_v59  ;;  %v5148_v11 = vadd.f32 %v19104_v24, %v5109_v31  ;;  %v8110_v43 = vshll.u32 %v8090_v10, 16 }
 0x2f5   : > { %v7520_v46 = vsel %vm16786_vm4, %v7515_v40, %v7519_v55  ;;  %v5146_v38 = vadd.f32 %v19104_v24, %v5107_v30  ;;  %v19319_v57 = vrot.slane %v8107_v34, 4  ;;  %v8116_v63 = vshll.u32 %v19308_v19, 16 }
 0x2f6   : > { %v7529_v61 = vrot.slane %v7528_v6, 4  ;;  %v5209_v44 = vmax.f32 %v5145_v59, %v5177_v23  ;;  %v5180_v28 = vmul.f32 0.2, %v5148_v11  ;;  %v19322_v1 = vrot.slane %v8110_v43, 5 }
 0x2f7   : > { %v6424_v41 = vadd.f32 %v14617_v13, %v5771_v18  ;;  %v5178_v47 = vmul.f32 0.2, %v5146_v38  ;;  %v19324_v53 = vrot.slane %v8116_v63, 5  ;;  %v8121_v22 = vshrl.u32 %v19314_v37, 16 }
 0x2f8   : > { %v7534_v25 = vsel %vm16786_vm4, %v7529_v61, %v7533_v14  ;;  %v5721_v4 = vcombine.high %v5209_v44, %v5209_v44  ;;  %v5728_v24 = vrot.slane %v5209_v44, %v18771_v20  ;;  %v5212_v48 = vmax.f32 %v5148_v11, %v5180_v28 }
 0x2f9   : > { %v14695_v60 = vcombine.low %v7520_v46, %v7534_v25  ;;  %v5210_v8 = vmax.f32 %v5146_v38, %v5178_v47  ;;  %v8113_v5 = vor.u32 %v19322_v1, %v19319_v57  ;;  %v8124_v3 = vshll.u32 %v19314_v37, 16  ;;  %v7487_v1 = vld [vmem:[#allocation2 + $0x44] sm:$0x1] }
 0x2fa   : > { %v5735_v18 = vrot.slane %v5721_v4, %v18771_v20  ;;  %v5736_v13 = vcombine.high %v5728_v24, %v5728_v24  ;;  %v14606_v2 = vrot.slane %v5728_v24, 9  ;;  %v5772_v45 = vcombine.high %v5212_v48, %v5212_v48 }
 0x2fb   : > { %15877 = vmatprep.mubr.msk.bf16.mxu1 %vm6948_vm2, %v14695_v60  ;;  %v5779_v32 = vrot.slane %v5212_v48, %v18771_v20  ;;  %v5738_v17 = vcombine.high %v5210_v8, %v5210_v8  ;;  %v5745_v39 = vrot.slane %v5210_v8, %v18771_v20  ;;  %v19337_v0 = vrot.slane %v8121_v22, 4 }
 0x2fc   : > { %v5737_v7 = vcombine.high %v5735_v18, %v5735_v18  ;;  %v14607_v49 = vrot.slane %v5736_v13, 9  ;;  %v14608_v42 = vrot.slane %v5735_v18, 9  ;;  %v6413_v52 = vadd.f32 %v14606_v2, %v5728_v24 }
 0x2fd   : > { %v5786_v10 = vrot.slane %v5772_v45, %v18771_v20  ;;  %v5787_v16 = vcombine.high %v5779_v32, %v5779_v32  ;;  %v14618_v36 = vrot.slane %v5779_v32, 9  ;;  %v5752_v55 = vrot.slane %v5738_v17, %v18771_v20 }
 0x2fe   : > { %v14609_v27 = vrot.slane %v5737_v7, 9  ;;  %v6414_v29 = vadd.f32 %v14607_v49, %v5736_v13  ;;  %v6415_v14 = vadd.f32 %v14608_v42, %v5735_v18  ;;  %v6485_v59 = vadd.f32 %v19291_v50, %v6413_v52 }
 0x2ff   : > { %v5788_v33 = vcombine.high %v5786_v10, %v5786_v10  ;;  %v14619_v31 = vrot.slane %v5787_v16, 9  ;;  %v14620_v51 = vrot.slane %v5786_v10, 9  ;;  %v6425_v40 = vadd.f32 %v14618_v36, %v5779_v32 }
 0x300   : > { %v6416_v30 = vadd.f32 %v14609_v27, %v5737_v7  ;;  %v6486_v34 = vadd.f32 %v19293_v54, %v6414_v29  ;;  %v6487_v6 = vadd.f32 %v19295_v9, %v6415_v14  ;;  %v6549_v23 = vmul.f32 0.25, %v6485_v59 }
 0x301   : > { %v14621_v11 = vrot.slane %v5788_v33, 9  ;;  %v6426_v43 = vadd.f32 %v14619_v31, %v5787_v16  ;;  %v6427_v46 = vadd.f32 %v14620_v51, %v5786_v10  ;;  %v5753_v38 = vcombine.high %v5745_v39, %v5745_v39 }
 0x302   : > { %v6488_v63 = vadd.f32 %v6424_v41, %v6416_v30  ;;  %v6550_v61 = vmul.f32 0.25, %v6486_v34  ;;  %v6551_v44 = vmul.f32 0.25, %v6487_v6  ;;  %v6848_v28 = vrot.slane %v6549_v23, %v18774_v21  ;;  %v19352_v30 = vld [vmem:[#allocation2 + $0x14] sm:$0x1]  ;;  %v19354_v34 = vld [vmem:[#allocation2 + $0x10] sm:$0xf] }
 0x303   : > { %v15237_v50 = vpack.c.bf16 %v6549_v23, %v6549_v23  ;;  %v6428_v47 = vadd.f32 %v14621_v11, %v5788_v33  ;;  %v5754_v22 = vcombine.high %v5752_v55, %v5752_v55  ;;  %v14610_v25 = vrot.slane %v5745_v39, 9 }
 0x304   : > { %v6552_v4 = vmul.f32 0.25, %v6488_v63  ;;  %v6852_v24 = vrot.slane %v6550_v61, %v18774_v21  ;;  %v6856_v54 = vrot.slane %v6551_v44, %v18774_v21  ;;  %v15238_v9 = vpack.c.bf16 %v6550_v61, %v6550_v61 }
 0x305   : > { %v15239_v48 = vpack.c.bf16 %v6551_v44, %v6551_v44  ;;  %v7291_v60 = vunpack.c.l.b16 %v15237_v50  ;;  %v14611_v8 = vrot.slane %v5753_v38, 9  ;;  %v14612_v18 = vrot.slane %v5752_v55, 9 }
 0x306   : > { %v6860_v41 = vrot.slane %v6552_v4, %v18774_v21  ;;  %v6933_v13 = vsel %vm6877_vm10, %v6852_v24, %v6848_v28  ;;  %v15240_v2 = vpack.c.bf16 %v6552_v4, %v6552_v4  ;;  %v7292_v45 = vunpack.c.l.b16 %v15238_v9 }
 0x307   : > { %v6934_v32 = vsel %vm6879_vm11, %v6856_v54, %v6933_v13  ;;  %v7293_v17 = vunpack.c.l.b16 %v15239_v48  ;;  %v7390_v7 = vrot.slane %v7291_v60, 7  ;;  %v14613_v49 = vrot.slane %v5754_v22, 9 }
 0x308   : > { %v7294_v42 = vunpack.c.l.b16 %v15240_v2  ;;  %v7391_v52 = vrot.slane %v7292_v45, 6  ;;  %v6417_v10 = vadd.f32 %v14610_v25, %v5745_v39  ;;  %v6418_v16 = vadd.f32 %v14611_v8, %v5753_v38 }
 0x309   : > { %v7393_v36 = vrot.slane %v7293_v17, 5  ;;  %v6419_v27 = vadd.f32 %v14612_v18, %v5752_v55  ;;  %v6420_v29 = vadd.f32 %v14613_v49, %v5754_v22  ;;  %v6935_v14 = vsel %vm6881_vm12, %v6860_v41, %v6934_v32  ;;  %v19374_v18 = vld [vmem:[#allocation2 + $0x18] sm:$0xf]  ;;  %v19377_v32 = vld [vmem:[#allocation2 + $0x14] sm:$0x1] }
 0x30a   : > { %v7392_v59 = vsel %vm6879_vm11, %v7391_v52, %v7390_v7  ;;  %v7395_v33 = vrot.slane %v7294_v42, 4  ;;  %v6489_v31 = vadd.f32 %v6425_v40, %v6417_v10  ;;  %v6490_v51 = vadd.f32 %v6426_v43, %v6418_v16  ;;  %v19380_v7 = vld [vmem:[#allocation2 + $0x1c] sm:$0x1]  ;;  %v7484_v52 = vld [vmem:[#allocation2 + $0x40] sm:$0xf] }
 0x30b   : > { %v7394_v6 = vsel %vm6881_vm12, %v7393_v36, %v7392_v59  ;;  %v6491_v23 = vadd.f32 %v6427_v46, %v6419_v27  ;;  %v6492_v11 = vadd.f32 %v6428_v47, %v6420_v29  ;;  %v8114_v39 = vrot.slane %v8113_v5, 4  ;;  %v19392_v27 = vld [vmem:[#allocation2 + $0x1c] sm:$0x1] }
 0x30c   : > { %v6553_v55 = vmul.f32 0.25, %v6489_v31  ;;  %v6554_v38 = vmul.f32 0.25, %v6490_v51  ;;  %v7396_v63 = vsel %vm6883_vm13, %v7395_v33, %v7394_v6  ;;  %v8126_v40 = vrot.slane %v8124_v3, 5  ;;  %v8094_v31 = vld [vmem:[#allocation2 + $0x18] sm:$0xf] }
 0x30d   : > { %v6555_v43 = vmul.f32 0.25, %v6491_v23  ;;  %v6556_v61 = vmul.f32 0.25, %v6492_v11  ;;  %v8130_v44 = vshll.u32 %v19352_v30, 16  ;;  %v7536_v28 = vshrl.u32 %v19354_v34, 16  ;;  %v8096_v51 = vld [vmem:[#allocation2 + $0x20] sm:$0xf] }
 0x30e   : > { %v6864_v46 = vrot.slane %v6553_v55, %v18774_v21  ;;  %v6868_v50 = vrot.slane %v6554_v38, %v18774_v21  ;;  %v15241_v47 = vpack.c.bf16 %v6553_v55, %v6553_v55  ;;  %v15242_v57 = vpack.c.bf16 %v6554_v38, %v6554_v38 }
 0x30f   : > { %v6872_v5 = vrot.slane %v6555_v43, %v18774_v21  ;;  %v6876_v22 = vrot.slane %v6556_v61, %v18774_v21  ;;  %v15243_v25 = vpack.c.bf16 %v6555_v43, %v6555_v43  ;;  %v15252_v37 = vpack.c.bf16 %v6556_v61, %v6556_v61  ;;  %v19409_v61 = vld [vmem:[#allocation2 + $0x24] sm:$0x1] }
 0x310   : > { %v6936_v3 = vsel %vm6883_vm13, %v6864_v46, %v6935_v14  ;;  %v7295_v4 = vunpack.c.l.b16 %v15241_v47  ;;  %v7296_v24 = vunpack.c.l.b16 %v15242_v57  ;;  %v8127_v54 = vor.u32 %v8126_v40, %v19337_v0  ;;  %v16446_v40 = vld [vmem:[%s20857_s3 + $0x10] sm:$0xf] }
 0x311   : > { %v6937_v9 = vsel %vm6885_vm15, %v6868_v50, %v6936_v3  ;;  %v7297_v48 = vunpack.c.l.b16 %v15243_v25  ;;  %v7488_v60 = vsel %vm18934_vm5, %v15252_v37, %v7487_v1  ;;  %v8132_v8 = vrot.slane %v8130_v44, 5 }
 0x312   : > { %v6938_v41 = vsel %vm6887_vm0, %v6872_v5, %v6937_v9  ;;  %v7397_v13 = vrot.slane %v7295_v4, 3  ;;  %v7399_v2 = vrot.slane %v7296_v24, 2  ;;  %7489 = vst [vmem:[#allocation2 + $0x44] sm:$0x1] %v7488_v60  ;;  %v8128_v45 = vrot.slane %v8127_v54, 4 }
 0x313   : > { %v6939_v0 = vsel %vm6889_vm1, %v6876_v22, %v6938_v41  ;;  %v7401_v17 = vrot.slane %v7297_v48, 1  ;;  %v7538_v49 = vrot.slane %v7536_v28, 4  ;;  %v7539_v12 = vshll.u32 %v19354_v34, 16  ;;  %v19414_v5 = vld [vmem:[#allocation2 + $0x20] sm:$0xf] }
 0x314   : > { %6956 = vst.msk [vmem:[%s18945_s28 + $0x38] sm:$0xff] %vm6948_vm2, %v6939_v0  ;;  %v7398_v42 = vsel %vm6885_vm15, %v7397_v13, %v7396_v63  ;;  %v8119_v10 = vsel %vm16786_vm4, %v8114_v39, %v19324_v53  ;;  %v8133_v16 = vsel %vm16786_vm4, %v8128_v45, %v8132_v8  ;;  %v7550_v36 = vshrl.u32 %v19374_v18, 16  ;;  %v19402_v39 = vld [vmem:[%s20857_s3 + $0x18] sm:$0xf]  ;;  %v19418_v4 = vld [vmem:[#allocation2 + $0x28] sm:$0xf] }
 0x315   : > { %v7400_v29 = vsel %vm6887_vm0, %v7399_v2, %v7398_v42  ;;  %v14738_v14 = vcombine.low %v8119_v10, %v8133_v16  ;;  %v7541_v59 = vrot.slane %v7539_v12, 5  ;;  %v7553_v33 = vshll.u32 %v19374_v18, 16  ;;  %v19427_v0 = vld [vmem:[#allocation2 + $0x24] sm:$0x1]  ;;  %v8098_v16 = vld [vmem:[#allocation2 + $0x28] sm:$0xf] }
 0x316   : > { %v7402_v6 = vsel %vm6889_vm1, %v7401_v17, %v7400_v29  ;;  %v7545_v23 = vshll.u32 %v19377_v32, 16  ;;  %v7552_v53 = vrot.slane %v7550_v36, 4  ;;  %v7559_v11 = vshll.u32 %v19380_v7, 16  ;;  %v19429_v17 = vld [vmem:[#allocation2 + $0x2c] sm:$0x1]  ;;  %s19861_s28 = scalar_lea.vmem [#allocation7], %s13951_s26 }
 0x317   : > { %v7417_v55 = vpack.c.b16 %v7402_v6, %v7402_v6  ;;  %15917 = vmatprep.mubr.msk.bf16.mxu0 %vm6948_vm2, %v14738_v14  ;;  %v7542_v38 = vor.u32 %v7541_v59, %v7538_v49  ;;  %v7555_v63 = vrot.slane %v7553_v33, 5  ;;  %v8245_v43 = vsel %vm7645_vm8, %v16446_v40, 0  ;;  %v19435_v36 = vld [vmem:[%s20857_s3 + $0x8] sm:$0xf]  ;;  %s20106_s26 = scalar_lea.vmem [#allocation9], %s20689_s29 }
 0x318   : > { %15916 = vmatpush3.bf16.msra.mxu0 %v8245_v43  ;;  %v8135_v44 = vshrl.u32 %v8094_v31, 16  ;;  %v8138_v28 = vshll.u32 %v8094_v31, 16  ;;  %v8144_v46 = vshll.u32 %v19392_v27, 16  ;;  %v8149_v1 = vshrl.u32 %v8096_v51, 16  ;;  %v8100_v31 = vld [vmem:[#allocation2 + $0x30] sm:$0xf] }
 0x319   : > { %v7485_v50 = vsel %vm18960_vm6, %v7417_v55, %v7484_v52  ;;  %v7543_v47 = vrot.slane %v7542_v38, 4  ;;  %v7556_v57 = vor.u32 %v7555_v63, %v7552_v53  ;;  %16250 = vmatprep.subr.msk.bf16.mxu0 %vm7645_vm8, %v19402_v39  ;;  %v7547_v22 = vrot.slane %v7545_v23, 5  ;;  %v16447_v53 = vld [vmem:[%s20857_s3] sm:$0xf]  ;;  %v19445_v63 = vld [vmem:[#allocation2 + $0x2c] sm:$0x1] }
 0x31a   : > { %7486 = vst [vmem:[#allocation2 + $0x40] sm:$0xf] %v7485_v50  ;;  %v8137_v25 = vrot.slane %v8135_v44, 4  ;;  %v8140_v37 = vrot.slane %v8138_v28, 5  ;;  %v8152_v3 = vshll.u32 %v8096_v51, 16  ;;  %v7561_v54 = vrot.slane %v7559_v11, 5 }
 0x31b   : > { %v7557_v24 = vrot.slane %v7556_v57, 4  ;;  %v8151_v9 = vrot.slane %v8149_v1, 4  ;;  %v8158_v56 = vshll.u32 %v19409_v61, 16  ;;  %v7564_v8 = vshrl.u32 %v19414_v5, 16  ;;  %v19451_v50 = vld [vmem:[#allocation2 + $0x30] sm:$0xf] }
 0x31c   : > { %v8141_v48 = vor.u32 %v8140_v37, %v8137_v25  ;;  %v8154_v60 = vrot.slane %v8152_v3, 5  ;;  %v7567_v41 = vshll.u32 %v19414_v5, 16  ;;  %v7548_v13 = vsel %vm16786_vm4, %v7543_v47, %v7547_v22  ;;  %v19455_v22 = vld [vmem:[#allocation2 + $0x34] sm:$0x1]  ;;  %v19457_v37 = vld [vmem:[#allocation2 + $0x38] sm:$0xf] }
 0x31d   : > { %v7562_v2 = vsel %vm16786_vm4, %v7557_v24, %v7561_v54  ;;  %v8146_v45 = vrot.slane %v8144_v46, 5  ;;  %v7578_v49 = vshrl.u32 %v19418_v4, 16  ;;  %v7566_v10 = vrot.slane %v7564_v8, 4  ;;  %s13783_s30 = sshll.u32 %s20106_s26, 4  ;;  %s20536_s30 = int_to_ptr.vmem [resolvable:$true] %s13783_s30 }
 0x31e   : > { %v14696_v12 = vcombine.low %v7548_v13, %v7562_v2  ;;  %v8142_v42 = vrot.slane %v8141_v48, 4  ;;  %v8155_v52 = vor.u32 %v8154_v60, %v8151_v9  ;;  %v8160_v29 = vrot.slane %v8158_v56, 5 }
 0x31f   : > { %v7569_v14 = vrot.slane %v7567_v41, 5  ;;  %v7580_v59 = vrot.slane %v7578_v49, 4  ;;  %v7581_v33 = vshll.u32 %v19418_v4, 16  ;;  %v7573_v6 = vshll.u32 %v19427_v0, 16 }
 0x320   : > { %15878 = vmatmul.mubr.msk.bf16.vlgmr.msra.gmra.mxu1 %vm6948_vm2, %v14696_v12  ;;  %v8156_v51 = vrot.slane %v8155_v52, 4  ;;  %v7587_v23 = vshll.u32 %v19429_v17, 16  ;;  %v7747_v11 = vsel %vm7645_vm8, %v16447_v53, 0  ;;  %v8163_v40 = vshrl.u32 %v8098_v16, 16 }
 0x321   : > { %v7570_v55 = vor.u32 %v7569_v14, %v7566_v10  ;;  %v7583_v38 = vrot.slane %v7581_v33, 5  ;;  %15886 = vmatpush3.bf16.msra.mxu1 %v7747_v11  ;;  %v8166_v43 = vshll.u32 %v8098_v16, 16  ;;  %v8147_v44 = vsel %vm16786_vm4, %v8142_v42, %v8146_v45  ;;  %v19468_v42 = vld [vmem:[#allocation2 + $0x34] sm:$0x1] }
 0x322   : > { %v8161_v28 = vsel %vm16786_vm4, %v8156_v51, %v8160_v29  ;;  %v8177_v46 = vshrl.u32 %v8100_v31, 16  ;;  %16246 = vmatprep.subr.msk.bf16.mxu1 %vm7645_vm8, %v19435_v36  ;;  %v8165_v25 = vrot.slane %v8163_v40, 4  ;;  %v7575_v3 = vrot.slane %v7573_v6, 5  ;;  %v8104_v40 = vld [vmem:[#allocation2 + $0x40] sm:$0xf] }
 0x323   : > { %v14739_v47 = vcombine.low %v8147_v44, %v8161_v28  ;;  %v7571_v57 = vrot.slane %v7570_v55, 4  ;;  %v7584_v1 = vor.u32 %v7583_v38, %v7580_v59  ;;  %v8168_v24 = vrot.slane %v8166_v43, 5  ;;  %v19471_v59 = vld [vmem:[#allocation2 + $0x3c] sm:$0x1] }
 0x324   : > { %v8179_v54 = vrot.slane %v8177_v46, 4  ;;  %v8180_v9 = vshll.u32 %v8100_v31, 16  ;;  %v7589_v48 = vrot.slane %v7587_v23, 5  ;;  %v8172_v60 = vshll.u32 %v19445_v63, 16  ;;  %v8102_v23 = vld [vmem:[#allocation2 + $0x38] sm:$0xf] }
 0x325   : > { %15918 = vmatmul.mubr.msk.bf16.vlgmr.msra.gmra.mxu0 %vm6948_vm2, %v14739_v47  ;;  %v7585_v56 = vrot.slane %v7584_v1, 4  ;;  %v7592_v8 = vshrl.u32 %v19451_v50, 16  ;;  %v8169_v41 = vor.u32 %v8168_v24, %v8165_v25  ;;  %v8186_v2 = vshll.u32 %v19455_v22, 16  ;;  %v19481_v47 = vld [vmem:[#allocation2 + $0x3c] sm:$0x1] }
 0x326   : > { %v8182_v13 = vrot.slane %v8180_v9, 5  ;;  %v7595_v45 = vshll.u32 %v19451_v50, 16  ;;  %v7576_v49 = vsel %vm16786_vm4, %v7571_v57, %v7575_v3  ;;  %v7606_v10 = vshrl.u32 %v19457_v37, 16 }
 0x327   : > { %v7590_v12 = vsel %vm16786_vm4, %v7585_v56, %v7589_v48  ;;  %v7594_v52 = vrot.slane %v7592_v8, 4  ;;  %v8170_v29 = vrot.slane %v8169_v41, 4  ;;  %v8174_v31 = vrot.slane %v8172_v60, 5 }
 0x328   : > { %v14697_v16 = vcombine.low %v7576_v49, %v7590_v12  ;;  %v8183_v14 = vor.u32 %v8182_v13, %v8179_v54  ;;  %v7597_v33 = vrot.slane %v7595_v45, 5  ;;  %v7608_v51 = vrot.slane %v7606_v10, 4  ;;  %v19483_v54 = vld [vmem:[#allocation2 + $0x44] sm:$0x1]  ;;  %v14789_v49 = vld [vmem:[%s20857_s3 + $0x20] sm:$0xf] }
 0x329   : > { %v7609_v6 = vshll.u32 %v19457_v37, 16  ;;  %v8188_v11 = vrot.slane %v8186_v2, 5  ;;  %v7601_v38 = vshll.u32 %v19468_v42, 16  ;;  %v7615_v44 = vshll.u32 %v19471_v59, 16 }
 0x32a   : > { %15881 = vmatprep.mubr.msk.bf16.mxu1 %vm6948_vm2, %v14697_v16  ;;  %v8184_v53 = vrot.slane %v8183_v14, 4  ;;  %v7598_v55 = vor.u32 %v7597_v33, %v7594_v52  ;;  %v8175_v28 = vsel %vm16786_vm4, %v8170_v29, %v8174_v31  ;;  %v8191_v57 = vshrl.u32 %v8102_v23, 16 }
 0x32b   : > { %v7611_v43 = vrot.slane %v7609_v6, 5  ;;  %v8194_v1 = vshll.u32 %v8102_v23, 16  ;;  %v8205_v9 = vshrl.u32 %v8104_v40, 16  ;;  %v7603_v56 = vrot.slane %v7601_v38, 5 }
 0x32c   : > { %v8189_v46 = vsel %vm16786_vm4, %v8184_v53, %v8188_v11  ;;  %v7599_v3 = vrot.slane %v7598_v55, 4  ;;  %v8193_v48 = vrot.slane %v8191_v57, 4  ;;  %v8208_v8 = vshll.u32 %v8104_v40, 16  ;;  %v16362_v40 = vld [vmem:[#allocation2 + $0x10] ss:$8 sps:$4 sm:$0xff]  }
 0x32d   : > { %v14740_v25 = vcombine.low %v8175_v28, %v8189_v46  ;;  %v7612_v24 = vor.u32 %v7611_v43, %v7608_v51  ;;  %v8196_v60 = vrot.slane %v8194_v1, 5  ;;  %v7617_v13 = vrot.slane %v7615_v44, 5  ;;  %v7814_v43 = vld [vmem:[#allocation2] sm:$0xe]  ;;  %v7815_v44 = vld [vmem:[#allocation2 + $0x8] sm:$0xe] }
 0x32e   : > { %v8200_v2 = vshll.u32 %v19481_v47, 16  ;;  %v8207_v45 = vrot.slane %v8205_v9, 4  ;;  %v8210_v52 = vrot.slane %v8208_v8, 5  ;;  %v8214_v10 = vshll.u32 %v19483_v54, 16  ;;  %v16365_v8 = vld [vmem:[#allocation2 + $0x30] ss:$8 sps:$4 sm:$0xff]  }
 0x32f   : > { %15921 = vmatprep.mubr.msk.bf16.mxu0 %vm6948_vm2, %v14740_v25  ;;  %v7613_v41 = vrot.slane %v7612_v24, 4  ;;  %v8197_v12 = vor.u32 %v8196_v60, %v8193_v48  ;;  %v8522_v16 = vsel %vm7645_vm8, %v19402_v39, 0  ;;  %v7604_v29 = vsel %vm16786_vm4, %v7599_v3, %v7603_v56  ;;  %v19518_v25 = vld [vmem:[%s20857_s3 + $0xc] sm:$0xf]  ;;  %v7819_v56 = vld [vmem:[#allocation2 + $0x28] sm:$0xe] }
 0x330   : > { %15936 = vmatpush3.bf16.msra.mxu0 %v8522_v16  ;;  %v8211_v51 = vor.u32 %v8210_v52, %v8207_v45  ;;  %v14703_v6 = vcombine.low %v19266_v62, %v19283_v15  ;;  %v8202_v23 = vrot.slane %v8200_v2, 5  ;;  %v8216_v39 = vrot.slane %v8214_v10, 5  ;;  %v8322_v60 = vld [vmem:[#allocation2 + $0x18] sm:$0xe]  ;;  %v8323_v2 = vld [vmem:[#allocation2 + $0x20] sm:$0xe] }
 0x331   : > { %v7618_v14 = vsel %vm16786_vm4, %v7613_v41, %v7617_v13  ;;  %v8198_v31 = vrot.slane %v8197_v12, 4  ;;  %16252 = vmatprep.subr.msk.bf16.mxu0 %vm7645_vm8, %v14789_v49  ;;  %v14704_v62 = vcombine.low %v19354_v34, %v19374_v18  ;;  %v7897_v15 = vsel %vm7645_vm8, %v19435_v36, 0  ;;  %v19523_v18 = vld [vmem:[#allocation2 + $0x10] sm:$0xe]  ;;  %v16364_v36 = vld [vmem:[#allocation2 + $0x20] ss:$8 sps:$4 sm:$0xff]  }
 0x332   : > { %v14698_v33 = vcombine.low %v7604_v29, %v7618_v14  ;;  %v8212_v53 = vrot.slane %v8211_v51, 4  ;;  %v14705_v28 = vcombine.low %v19414_v5, %v19418_v4  ;;  %v14711_v46 = vrot.slane %v7814_v43, 9  ;;  %v8827_v5 = vld [vmem:[#allocation2 + $0x10] sm:$0xe]  ;;  %v8828_v4 = vld [vmem:[#allocation2 + $0x18] sm:$0xe] }
 0x333   : > { %v8203_v11 = vsel %vm16786_vm4, %v8198_v31, %v8202_v23  ;;  %v7840_v57 = vrot.slane %v19297_v58, 5  ;;  %v14712_v1 = vrot.slane %v7815_v44, 9  ;;  %v7844_v34 = vrot.slane %v19286_v26, 5  ;;  %v7817_v58 = vld [vmem:[#allocation2 + $0x18] sm:$0xe] }
 0x334   : > { %15882 = vmatmul.mubr.msk.bf16.gmra.mxu1 %vm6948_vm2, %v14698_v33  ;;  %v8217_v55 = vsel %vm16786_vm4, %v8212_v53, %v8216_v39  ;;  %v8910_v48 = vsel %vm7645_vm8, %v14789_v49, 0  ;;  %v14706_v26 = vcombine.low %v19451_v50, %v19457_v37  ;;  %v19534_v41 = vld [vmem:[#allocation2 + $0x14] sm:$0x1]  ;;  %v19536_v13 = vld [vmem:[#allocation2 + $0x1c] sm:$0x1]  ;;  %v14713_v45 = vrot.slane %v19523_v18, 9 }
 0x335   : > { %15887 = vmatprep.mubr.msk.bf16.mxu1 %vm6948_vm2, %v14703_v6  ;;  %v14741_v38 = vcombine.low %v8203_v11, %v8217_v55  ;;  %v7841_v24 = vsel %vm17048_vm7, %v14711_v46, %v7840_v57  ;;  %v7845_v9 = vsel %vm17048_vm7, %v14712_v1, %v7844_v34  ;;  %v7848_v12 = vrot.slane %v19377_v32, 5  ;;  %v7818_v10 = vld [vmem:[#allocation2 + $0x20] sm:$0xe]  ;;  %v8324_v14 = vld [vmem:[#allocation2 + $0x28] sm:$0xe] }
 0x336   : > { %v14714_v52 = vrot.slane %v7817_v58, 9  ;;  %v14782_v16 = vrot.slane %v8828_v4, 9  ;;  %v14720_v49 = vcombine.low %v7841_v24, %v7845_v9  ;;  %v7852_v50 = vrot.slane %v19380_v7, 5  ;;  %v8325_v23 = vld [vmem:[#allocation2 + $0x30] sm:$0xe] }
 0x337   : > { %15922 = vmatmul.mubr.msk.bf16.gmra.mxu0 %vm6948_vm2, %v14741_v38  ;;  %v14716_v37 = vrot.slane %v7819_v56, 9  ;;  %v14748_v29 = vrot.slane %v8322_v60, 9  ;;  %v14781_v33 = vrot.slane %v8827_v5, 9  ;;  %v8857_v31 = vrot.slane %v19536_v13, 5  ;;  %v8829_v38 = vld [vmem:[#allocation2 + $0x20] sm:$0xe] }
 0x338   : > { %15937 = vmatprep.mubr.msk.bf16.mxu0 %vm6948_vm2, %v16362_v40  ;;  %v8354_v51 = vrot.slane %v19392_v27, 5  ;;  %v14749_v6 = vrot.slane %v8323_v2, 9  ;;  %v14715_v32 = vrot.slane %v7818_v10, 9  ;;  %v7856_v53 = vrot.slane %v19427_v0, 5  ;;  %v8830_v27 = vld [vmem:[#allocation2 + $0x28] sm:$0xe] }
 0x339   : > { %v7860_v39 = vrot.slane %v19429_v17, 5  ;;  %v8358_v7 = vrot.slane %v19409_v61, 5  ;;  %v8853_v11 = vrot.slane %v19534_v41, 5  ;;  %v8858_v55 = vsel %vm17048_vm7, %v14782_v16, %v8857_v31  ;;  %v8832_v44 = vld [vmem:[#allocation2 + $0x38] sm:$0xe] }
 0x33a   : > { %v19555_v40 = vsel %vm17048_vm7, %v14748_v29, %v8354_v51  ;;  %v14750_v43 = vrot.slane %v8324_v14, 9  ;;  %v8362_v61 = vrot.slane %v19445_v63, 5  ;;  %v14751_v17 = vrot.slane %v8325_v23, 9  ;;  %v19569_v1 = vld [vmem:[#allocation2 + $0x2c] sm:$0x1] }
 0x33b   : > { %v19559_v0 = vsel %vm17048_vm7, %v14749_v6, %v8358_v7  ;;  %v7861_v46 = vsel %vm17048_vm7, %v14716_v37, %v7860_v39  ;;  %v8854_v57 = vsel %vm17048_vm7, %v14781_v33, %v8853_v11  ;;  %v8831_v34 = vld [vmem:[#allocation2 + $0x30] sm:$0xe]  ;;  %v14784_v58 = vrot.slane %v8830_v27, 9  ;;  %v19588_v56 = vld [vmem:[#allocation2 + $0x24] sm:$0x1] }
 0x33c   : > { %15888 = vmatmul.mubr.msk.bf16.vlgmr.msra.gmra.mxu1 %vm6948_vm2, %v14704_v62  ;;  %v8366_v62 = vrot.slane %v19455_v22, 5  ;;  %v14756_v18 = vcombine.low %v19555_v40, %v19559_v0  ;;  %v14790_v63 = vcombine.low %v8854_v57, %v8858_v55  ;;  %v19573_v22 = vld [vmem:[#allocation2 + $0x3c] sm:$0x1]  ;;  %v19577_v5 = vsel %vm17048_vm7, %v14750_v43, %v8362_v61  ;;  %v7820_v2 = vld [vmem:[#allocation2 + $0x30] sm:$0xe] }
 0x33d   : > { %15896 = vmatpush3.bf16.msra.mxu1 %v7897_v15  ;;  %15891 = vmatprep.mubr.msk.bf16.mxu1 %vm6948_vm2, %v14705_v28  ;;  %v7853_v15 = vsel %vm17048_vm7, %v14714_v52, %v7852_v50  ;;  %v16366_v28 = vld [vmem:[#allocation2 + $0x40] ss:$8 sps:$4 sm:$0xff]   ;;  %v7849_v24 = vsel %vm17048_vm7, %v14713_v45, %v7848_v12  ;;  %v8015_v9 = vsel %vm7645_vm8, %v19518_v25, 0  ;;  %v14783_v52 = vrot.slane %v8829_v38, 9  ;;  %v19596_v12 = vld [vmem:[#allocation2 + $0x34] sm:$0x1] }
 0x33e   : > { %16247 = vmatprep.subr.msk.bf16.mxu1 %vm7645_vm8, %v19518_v25  ;;  %v19581_v4 = vsel %vm17048_vm7, %v14751_v17, %v8366_v62  ;;  %v8865_v45 = vrot.slane %v19569_v1, 5  ;;  %v14785_v16 = vrot.slane %v8831_v34, 9  ;;  %v14754_v50 = vld [vmem:[%s20857_s3 + $0x14] sm:$0xf]  ;;  %v8861_v37 = vrot.slane %v19588_v56, 5 }
 0x33f   : > { %15938 = vmatmul.mubr.msk.bf16.vlgmr.msra.gmra.mxu0 %vm6948_vm2, %v16364_v36  ;;  %v7821_v36 = vld [vmem:[#allocation2 + $0x38] sm:$0xe]  ;;  %v14757_v60 = vcombine.low %v19577_v5, %v19581_v4  ;;  %v19606_v14 = vld [vmem:[#allocation2 + $0x4c] sm:$0x1]  ;;  %v8834_v33 = vld [vmem:[#allocation2 + $0x48] sm:$0xe] }
 0x340   : > { %15941 = vmatprep.mubr.msk.bf16.mxu0 %vm6948_vm2, %v16365_v8  ;;  %15956 = vmatpush3.bf16.msra.mxu0 %v8910_v48  ;;  %v14786_v48 = vrot.slane %v8832_v44, 9  ;;  %v7857_v8 = vsel %vm17048_vm7, %v14715_v32, %v7856_v53  ;;  %v14718_v10 = vrot.slane %v7821_v36, 9  ;;  %v8866_v29 = vsel %vm17048_vm7, %v14784_v58, %v8865_v45  ;;  %v8833_v32 = vld [vmem:[#allocation2 + $0x40] sm:$0xe]  ;;  %v19621_v55 = vld [vmem:[#allocation2 + $0x44] sm:$0x1] }
 0x341   : > { %v14722_v25 = vcombine.low %v7857_v8, %v7861_v46  ;;  %v14717_v31 = vrot.slane %v7820_v2, 9  ;;  %v7868_v51 = vrot.slane %v19471_v59, 5  ;;  %v8869_v6 = vrot.slane %v19596_v12, 5  ;;  %v16367_v62 = vld [vmem:[#allocation2 + $0x8] ss:$8 sps:$4 sm:$0xff]  }
 0x342   : > { %v8862_v53 = vsel %vm17048_vm7, %v14783_v52, %v8861_v37  ;;  %v7864_v39 = vrot.slane %v19468_v42, 5  ;;  %v14787_v27 = vrot.slane %v8833_v32, 9  ;;  %v14788_v43 = vrot.slane %v8834_v33, 9  ;;  %v8321_v57 = vld [vmem:[#allocation2 + $0x10] sm:$0xe] }
 0x343   : > { %v7869_v7 = vsel %vm17048_vm7, %v14718_v10, %v7868_v51  ;;  %v14791_v11 = vcombine.low %v8862_v53, %v8866_v29  ;;  %v8870_v59 = vsel %vm17048_vm7, %v14785_v16, %v8869_v6  ;;  %v8881_v44 = vrot.slane %v19606_v14, 5  ;;  %v16368_v34 = vld [vmem:[#allocation2 + $0x18] ss:$8 sps:$4 sm:$0xff]   ;;  %v8320_v36 = vld [vmem:[#allocation2 + $0x8] sm:$0xe] }
 0x344   : > { %15892 = vmatmul.mubr.msk.bf16.gmra.mxu1 %vm6948_vm2, %v14706_v26  ;;  %v14721_v26 = vcombine.low %v7849_v24, %v7853_v15  ;;  %v7865_v61 = vsel %vm17048_vm7, %v14717_v31, %v7864_v39  ;;  %v8877_v17 = vrot.slane %v19621_v55, 5  ;;  %v16369_v58 = vld [vmem:[#allocation2 + $0x28] ss:$8 sps:$4 sm:$0xff]   ;;  %v14772_v24 = vld [vmem:[%s20857_s3 + $0x1c] sm:$0xf]  ;;  %v8350_v8 = vrot.slane %v19352_v30, 5 }
 0x345   : > { %15897 = vmatprep.mubr.msk.bf16.mxu1 %vm6948_vm2, %v14720_v49  ;;  %v8873_v49 = vrot.slane %v19573_v22, 5  ;;  %v14723_v42 = vcombine.low %v7865_v61, %v7869_v7  ;;  %v8597_v2 = vld [vmem:[#allocation2 + $0x10] sm:$0xf]  ;;  %v8603_v31 = vld [vmem:[#allocation2 + $0x28] sm:$0xf]  ;;  %v8752_v39 = vsel %vm7645_vm8, %v14772_v24, 0 }
 0x346   : > { %v8878_v15 = vsel %vm17048_vm7, %v14787_v27, %v8877_v17  ;;  %v8614_v16 = vshrl.u32 %v8597_v2, 16  ;;  %v8326_v51 = vld [vmem:[#allocation2 + $0x38] sm:$0xe]  ;;  %v8327_v6 = vld [vmem:[#allocation2 + $0x40] sm:$0xe]  ;;  %v8656_v32 = vshrl.u32 %v8603_v31, 16 }
 0x347   : > { %15942 = vmatmul.mubr.msk.bf16.gmra.mxu0 %vm6948_vm2, %v16366_v28  ;;  %v8874_v23 = vsel %vm17048_vm7, %v14786_v48, %v8873_v49  ;;  %v8882_v28 = vsel %vm17048_vm7, %v14788_v43, %v8881_v44  ;;  %v14747_v48 = vrot.slane %v8321_v57, 9  ;;  %v8617_v49 = vshll.u32 %v8597_v2, 16  ;;  %v8607_v53 = vld [vmem:[#allocation2 + $0x38] sm:$0xf]  ;;  %v8605_v61 = vld [vmem:[#allocation2 + $0x30] sm:$0xf] }
 0x348   : > { %15957 = vmatprep.mubr.msk.bf16.mxu0 %vm6948_vm2, %v14790_v63  ;;  %v14792_v38 = vcombine.low %v8870_v59, %v8874_v23  ;;  %v14793_v46 = vcombine.low %v8878_v15, %v8882_v28  ;;  %v8403_v63 = vsel %vm7645_vm8, %v14754_v50, 0  ;;  %v8659_v59 = vshll.u32 %v8603_v31, 16  ;;  %s16454_s3 = scalar_lea.vmem %s20536_s30, 64 }
 0x349   : > { %v8351_v10 = vsel %vm17048_vm7, %v14747_v48, %v8350_v8  ;;  %v8619_v23 = vrot.slane %v8617_v49, 5  ;;  %v8370_v27 = vrot.slane %v19481_v47, 5  ;;  %v14753_v43 = vrot.slane %v8327_v6, 9  ;;  %p16455_p11 = scmp.ne.s32.totalorder %s20536_s30, %s16454_s3 }
 0x34a   : > { %v8374_v44 = vrot.slane %v19483_v54, 5  ;;  %v8637_v17 = vshll.u32 %v19536_v13, 16  ;;  %v8687_v15 = vshll.u32 %v8607_v53, 16  ;;  %vm9448_vm1 = vcmask 125952  }
 0x34b   : > { %vm9638_vm6 = vsmask.f32 1280  ;;  %p16456_p12 = pnand %p16455_p11, %p16709_p5 }
 0x34c   : > { %15898 = vmatmul.mubr.msk.bf16.vlgmr.msra.gmra.mxu1 %vm6948_vm2, %v14721_v26  ;;  %v14746_v26 = vrot.slane %v8320_v36, 9  ;;  %v8661_v36 = vrot.slane %v8659_v59, 5  ;;  %v8375_v54 = vsel %vm17048_vm7, %v14753_v43, %v8374_v44  ;;  %v8689_v48 = vrot.slane %v8687_v15, 5 }
 0x34d   : > { %15906 = vmatpush3.bf16.msra.mxu1 %v8015_v9  ;;  %15901 = vmatprep.mubr.msk.bf16.mxu1 %vm6948_vm2, %v14722_v25  ;;  %v8599_v9 = vld [vmem:[#allocation2 + $0x18] sm:$0xf]  ;;  %v8346_v25 = vrot.slane %v19308_v19, 5  ;;  %v8616_v19 = vrot.slane %v8614_v16, 4  ;;  %v8721_v43 = vshll.u32 %v19606_v14, 16  ;;  %p16457_p13 = pneg %p16456_p12 }
 0x34e   : > { %16249 = vmatprep.subr.msk.bf16.mxu1 %vm7645_vm8, %v14754_v50  ;;  %v8628_v52 = vshrl.u32 %v8599_v9, 16  ;;  %v8631_v45 = vshll.u32 %v8599_v9, 16  ;;  %v16370_v50 = vld [vmem:[#allocation2 + $0x38] ss:$8 sps:$4 sm:$0xff]   ;;  %v8611_v9 = vld [vmem:[#allocation2 + $0x48] sm:$0xf] }
 0x34f   : > { %15958 = vmatmul.mubr.msk.bf16.vlgmr.msra.gmra.mxu0 %vm6948_vm2, %v14791_v11  ;;  %v8347_v37 = vsel %vm17048_vm7, %v14746_v26, %v8346_v25  ;;  %v8601_v11 = vld [vmem:[#allocation2 + $0x20] sm:$0xf]  ;;  %v8620_v28 = vor.u32 %v8619_v23, %v8616_v19  ;;  %v8712_v16 = vshrl.u32 %v8611_v9, 16  ;;  %v8715_v49 = vshll.u32 %v8611_v9, 16 }
 0x350   : > { %15961 = vmatprep.mubr.msk.bf16.mxu0 %vm6948_vm2, %v14792_v38  ;;  %v8630_v29 = vrot.slane %v8628_v52, 4  ;;  %v8633_v33 = vrot.slane %v8631_v45, 5  ;;  %v14755_v30 = vcombine.low %v8347_v37, %v8351_v10  ;;  %v14752_v38 = vrot.slane %v8326_v51, 9  ;;  %v8609_v26 = vld [vmem:[#allocation2 + $0x40] sm:$0xf] }
 0x351   : > { %v8645_v57 = vshll.u32 %v8601_v11, 16  ;;  %v8621_v8 = vrot.slane %v8620_v28, 4  ;;  %v8698_v25 = vshrl.u32 %v8609_v26, 16  ;;  %v8701_v10 = vshll.u32 %v8609_v26, 16 }
 0x352   : > { %v8634_v7 = vor.u32 %v8633_v33, %v8630_v29  ;;  %v8371_v47 = vsel %vm17048_vm7, %v14752_v38, %v8370_v27  ;;  %v8665_v29 = vshll.u32 %v19569_v1, 16  ;;  %v8693_v51 = vshll.u32 %v19573_v22, 16 }
 0x353   : > { %v8647_v45 = vrot.slane %v8645_v57, 5  ;;  %v8700_v6 = vrot.slane %v8698_v25, 4  ;;  %v8703_v19 = vrot.slane %v8701_v10, 5  ;;  %v8714_v23 = vrot.slane %v8712_v16, 4 }
 0x354   : > { %15902 = vmatmul.mubr.msk.bf16.gmra.mxu1 %vm6948_vm2, %v14723_v42  ;;  %v8623_v42 = vshll.u32 %v19534_v41, 16  ;;  %v8639_v41 = vrot.slane %v8637_v17, 5  ;;  %v8695_v59 = vrot.slane %v8693_v51, 5  ;;  %v8723_v57 = vrot.slane %v8721_v43, 5 }
 0x355   : > { %15907 = vmatprep.mubr.msk.bf16.mxu1 %vm6948_vm2, %v16367_v62  ;;  %v8684_v62 = vshrl.u32 %v8607_v53, 16  ;;  %v8679_v53 = vshll.u32 %v19596_v12, 16  ;;  %v8704_v22 = vor.u32 %v8703_v19, %v8700_v6  ;;  %vm9453_vm7 = vcmask 124928  }
 0x356   : > { %v8625_v2 = vrot.slane %v8623_v42, 5  ;;  %v8707_v42 = vshll.u32 %v19621_v55, 16  ;;  %v16574_v6 = vmov 0.0   ;;  %vm19828_vm15 = vmand %vm9453_vm7, %vm9578_vm9 }
 0x357   : > { %15962 = vmatmul.mubr.msk.bf16.gmra.mxu0 %vm6948_vm2, %v14793_v46  ;;  %v8642_v46 = vshrl.u32 %v8601_v11, 16  ;;  %v8686_v13 = vrot.slane %v8684_v62, 4  ;;  %v8681_v44 = vrot.slane %v8679_v53, 5  ;;  %v8705_v28 = vrot.slane %v8704_v22, 4  ;;  %15977 = vmatprep.subr.bf16.mxu0 %v16574_v6 }
 0x358   : > { %v8626_v5 = vsel %vm16786_vm4, %v8621_v8, %v8625_v2  ;;  %v8709_v14 = vrot.slane %v8707_v42, 5 }
 0x359   : > { %v8644_v52 = vrot.slane %v8642_v46, 4  ;;  %v8690_v37 = vor.u32 %v8689_v48, %v8686_v13 }
 0x35b   : > { %v8648_v4 = vor.u32 %v8647_v45, %v8644_v52 }
 0x35c   : > { %15908 = vmatmul.mubr.msk.bf16.vlgmr.msra.gmra.mxu1 %vm6948_vm2, %v16368_v34  ;;  %v8658_v34 = vrot.slane %v8656_v32, 4  ;;  %v8717_v32 = vrot.slane %v8715_v49, 5 }
 0x35d   : > { %15926 = vmatpush3.bf16.msra.mxu1 %v8403_v63  ;;  %15911 = vmatprep.mubr.msk.bf16.mxu1 %vm6948_vm2, %v16369_v58  ;;  %v8635_v63 = vrot.slane %v8634_v7, 4  ;;  %v8670_v58 = vshrl.u32 %v8605_v61, 16  ;;  %v8649_v7 = vrot.slane %v8648_v4, 4 }
 0x35e   : > { %16251 = vmatprep.subr.msk.bf16.mxu1 %vm7645_vm8, %v14772_v24  ;;  %v8673_v24 = vshll.u32 %v8605_v61, 16  ;;  %v8662_v0 = vor.u32 %v8661_v36, %v8658_v34  ;;  %v8718_v27 = vor.u32 %v8717_v32, %v8714_v23  ;;  %v8710_v34 = vsel %vm16786_vm4, %v8705_v28, %v8709_v14 }
 0x35f   : > { %v8640_v40 = vsel %vm16786_vm4, %v8635_v63, %v8639_v41  ;;  %v8672_v3 = vrot.slane %v8670_v58, 4  ;;  %v20862_v36 = vmov 0   ;;  %vm9641_vm8 = vsmask.f32 5392 }
 0x360   : > { %v14773_v33 = vcombine.low %v8626_v5, %v8640_v40  ;;  %v8663_v31 = vrot.slane %v8662_v0, 4  ;;  %v8719_v46 = vrot.slane %v8718_v27, 4  ;;  %9454 = vst.msk [vmem:[#allocation3] sm:$0x7] %vm9453_vm7, %v20862_v36  ;;  %9456 = vst.msk [vmem:[#allocation3 + $0x8] sm:$0x7] %vm9453_vm7, %v20862_v36 }
 0x361   : > { %9455 = vst.msk [vmem:[#allocation3 + $0x4] sm:$0x7] %vm9453_vm7, %v20862_v36  ;;  %9457 = vst.msk [vmem:[#allocation3 + $0xc] sm:$0x7] %vm9453_vm7, %v20862_v36 }
 0x362   : > { %v8724_v63 = vsel %vm16786_vm4, %v8719_v46, %v8723_v57  ;;  %9458 = vst.msk [vmem:[#allocation3 + $0x10] sm:$0x7] %vm9453_vm7, %v20862_v36  ;;  %9459 = vst.msk [vmem:[#allocation3 + $0x14] sm:$0x7] %vm9453_vm7, %v20862_v36  ;;  %vm9643_vm7 = vsmask.f32 7448 }
 0x363   : > { %v14776_v55 = vcombine.low %v8710_v34, %v8724_v63 }
 0x364   : > { %15912 = vmatmul.mubr.msk.bf16.gmra.mxu1 %vm6948_vm2, %v16370_v50  ;;  %v14758_v50 = vcombine.low %v8371_v47, %v8375_v54 }
 0x365   : > { %15927 = vmatprep.mubr.msk.bf16.mxu1 %vm6948_vm2, %v14755_v30 }
 0x36c   : > { %15928 = vmatmul.mubr.msk.bf16.vlgmr.msra.gmra.mxu1 %vm6948_vm2, %v14756_v18  ;;  %v8675_v18 = vrot.slane %v8673_v24, 5 }
 0x36d   : > { %15946 = vmatpush3.bf16.msra.mxu1 %v8752_v39  ;;  %15931 = vmatprep.mubr.msk.bf16.mxu1 %vm6948_vm2, %v14757_v60  ;;  %v8651_v60 = vshll.u32 %v19588_v56, 16  ;;  %v8691_v39 = vrot.slane %v8690_v37, 4  ;;  %v8667_v56 = vrot.slane %v8665_v29, 5 }
 0x36e   : > { %v8676_v30 = vor.u32 %v8675_v18, %v8672_v3  ;;  %15965 = vmatprep.subr.bf16.mxu1 %v16574_v6 }
 0x36f   : > { %v8653_v11 = vrot.slane %v8651_v60, 5  ;;  %v8668_v38 = vsel %vm16786_vm4, %v8663_v31, %v8667_v56  ;;  %v8696_v61 = vsel %vm16786_vm4, %v8691_v39, %v8695_v59  ;;  %v16371_v31 = vld [vmem:[%s20863_s5 + $0x8] sm:$0xff]  }
 0x370   : > { %v8677_v1 = vrot.slane %v8676_v30, 4  ;;  %v16372_v30 = vld [vmem:[%s20863_s5 + $0x10] sm:$0xff]  }
 0x371   : > { %v8654_v12 = vsel %vm16786_vm4, %v8649_v7, %v8653_v11  ;;  %15978 = vmatpush3.bf16.msra.mxu0 %v16372_v30 }
 0x372   : > { %v14774_v17 = vcombine.low %v8654_v12, %v8668_v38  ;;  %v8682_v62 = vsel %vm16786_vm4, %v8677_v1, %v8681_v44  ;;  %vm16575_vm4 = vmmov 0   ;;  %15989 = vmatprep.subr.bf16.mxu0 %v16574_v6 }
 0x373   : > { %v14775_v15 = vcombine.low %v8682_v62, %v8696_v61  ;;  %15979 = vmatprep.mubr.msk.bf16.mxu0 %vm16575_vm4, %v16574_v6 }
 0x374   : > { %15932 = vmatmul.mubr.msk.bf16.gmra.mxu1 %vm6948_vm2, %v14758_v50 }
 0x375   : > { %15947 = vmatprep.mubr.msk.bf16.mxu1 %vm6948_vm2, %v14773_v33 }
 0x37c   : > { %15948 = vmatmul.mubr.msk.bf16.vlgmr.msra.gmra.mxu1 %vm6948_vm2, %v14774_v17 }
 0x37d   : > { %15951 = vmatprep.mubr.msk.bf16.mxu1 %vm6948_vm2, %v14775_v15  ;;  %15966 = vmatpush3.bf16.msra.mxu1 %v16371_v31 }
 0x37e   : > { %15971 = vmatprep.subr.bf16.mxu1 %v16574_v6 }
 0x384   : > { %15952 = vmatmul.mubr.msk.bf16.gmra.mxu1 %vm6948_vm2, %v14776_v55  ;;  %vm9883_vm2 = vcmask 1040384  }
 0x385   : > { %15967 = vmatprep.mubr.msk.bf16.mxu1 %vm16575_vm4, %v16574_v6  ;;  %vm9885_vm3 = vmor %vm9883_vm2, %vm6879_vm11  ;;  %vm10852_vm2 = vcmask 254976  }
 0x386   : > { %vm9887_vm5 = vmor %vm9885_vm3, %vm6883_vm13  ;;  %10856 = vst.msk [vmem:[#allocation4 + $0x2] sm:$0x3] %vm10852_vm2, %v20862_v36  ;;  %vm10987_vm3 = vsmask.f32 1284 }
 0x387   : > { %10855 = vst.msk [vmem:[#allocation4] sm:$0x3] %vm10852_vm2, %v20862_v36  ;;  %10857 = vst.msk [vmem:[#allocation4 + $0x4] sm:$0x3] %vm10852_vm2, %v20862_v36 }
 0x388   : > { %10858 = vst.msk [vmem:[#allocation4 + $0x6] sm:$0x3] %vm10852_vm2, %v20862_v36  ;;  %11865 = vst.msk [vmem:[#allocation5] sm:$0x3] %vm10852_vm2, %v20862_v36 }
 0x389   : > { %11866 = vst.msk [vmem:[#allocation5 + $0x2] sm:$0x3] %vm10852_vm2, %v20862_v36  ;;  %11867 = vst.msk [vmem:[#allocation5 + $0x4] sm:$0x3] %vm10852_vm2, %v20862_v36 }
 0x38a   : > { %11868 = vst.msk [vmem:[#allocation5 + $0x6] sm:$0x3] %vm10852_vm2, %v20862_v36  ;;  %12799 = vst.msk [vmem:[#allocation6] sm:$0x3] %vm10852_vm2, %v20862_v36 }
 0x38b   : > { %12800 = vst.msk [vmem:[#allocation6 + $0x2] sm:$0x3] %vm10852_vm2, %v20862_v36  ;;  %12801 = vst.msk [vmem:[#allocation6 + $0x4] sm:$0x3] %vm10852_vm2, %v20862_v36 }
 0x38c   : > { %12802 = vst.msk [vmem:[#allocation6 + $0x6] sm:$0x3] %vm10852_vm2, %v20862_v36  ;;  %v16389_v36 = vld [vmem:[%s20873_s7 + $0x10] sm:$0xff]  }
 0x3e0   : > { %v19707_v35 = vpop.f32.mrf.mxu1 }
 0x3e2   : > { %v19709_v58 = vpop.f32.mrf.mxu1 }
 0x3e4   : > { %v19711_v24 = vpop.f32.mrf.mxu1 }
 0x3e5   : > { %v19715_v13 = vpop.f32.mrf.mxu0 }
 0x3e6   : > { %v19713_v47 = vpop.f32.mrf.mxu1 }
 0x3e7   : > { %v19717_v8 = vpop.f32.mrf.mxu0 }
 0x3e9   : > { %v19719_v45 = vpop.f32.mrf.mxu0 }
 0x3eb   : > { %v19723_v3 = vpop.f32.mrf.mxu0 }
 0x3f4   : > { %v15883_v9 = vpop.f32.mrf.mxu1 }
 0x3f6   : > { %v7699_v54 = vpop.f32.mrf.mxu1 }
 0x3f7   : > { %v19725_v10 = vpop.f32.mrf.mxu0 }
 0x3f8   : > { %v15884_v41 = vpop.f32.mrf.mxu1 }
 0x3f9   : > { %v19727_v5 = vpop.f32.mrf.mxu0 }
 0x3fa   : > { %v7702_v48 = vpop.f32.mrf.mxu1 }
 0x3fb   : > { %v19729_v29 = vpop.f32.mrf.mxu0 }
 0x3fc   : > { %v15889_v26 = vpop.f32.mrf.mxu1 }
 0x3fd   : > { %v19739_v19 = vpop.f32.mrf.mxu0  ;;  %v7792_v34 = vadd.f32 %v15889_v26, %v19707_v35 }
 0x3fe   : > { %v7783_v2 = vpop.f32.mrf.mxu1 }
 0x3ff   : > { %v15939_v39 = vpop.f32.mrf.mxu0  ;;  %v7784_v55 = vadd.f32 %v7783_v2, %v19709_v58 }
 0x400   : > { %v15890_v52 = vpop.f32.mrf.mxu1 }
 0x401   : > { %v8558_v38 = vpop.f32.mrf.mxu0 }
 0x402   : > { %v19721_v40 = vpop.f32.mrf.mxu1 }
 0x403   : > { %v15940_v44 = vpop.f32.mrf.mxu0 }
 0x404   : > { %v15893_v0 = vpop.f32.mrf.mxu1 }
 0x405   : > { %v7808_v18 = vadd.f32 %v15893_v0, %v15883_v9  ;;  %v8561_v42 = vpop.f32.mrf.mxu0 }
 0x406   : > { %v7799_v25 = vpop.f32.mrf.mxu1 }
 0x407   : > { %v7800_v16 = vadd.f32 %v7799_v25, %v7699_v54  ;;  %v19753_v15 = vpop.f32.mrf.mxu0 }
 0x408   : > { %v15894_v49 = vpop.f32.mrf.mxu1 }
 0x409   : > { %v7811_v50 = vadd.f32 %v15894_v49, %v15884_v41  ;;  %v19755_v57 = vpop.f32.mrf.mxu0 }
 0x40a   : > { %v7802_v37 = vpop.f32.mrf.mxu1 }
 0x40b   : > { %v7803_v11 = vadd.f32 %v7802_v37, %v7702_v48  ;;  %v19759_v54 = vpop.f32.mrf.mxu0  ;;  %v7795_v48 = vadd.f32 %v15890_v52, %v19711_v24 }
 0x40c   : > { %v15899_v4 = vpop.f32.mrf.mxu1 }
 0x40d   : > { %v7966_v9 = vadd.f32 %v15899_v4, %v7792_v34 }
 0x40e   : > { %v7933_v60 = vpop.f32.mrf.mxu1 }
 0x40f   : > { %v7964_v0 = vadd.f32 %v7933_v60, %v7784_v55 }
 0x410   : > { %v15900_v33 = vpop.f32.mrf.mxu1 }
 0x411   : > { %v7967_v49 = vadd.f32 %v15900_v33, %v7795_v48 }
 0x412   : > { %v7936_v51 = vpop.f32.mrf.mxu1 }
 0x414   : > { %v15903_v23 = vpop.f32.mrf.mxu1 }
 0x415   : > { %v7970_v32 = vadd.f32 %v15903_v23, %v7808_v18 }
 0x416   : > { %v7949_v53 = vpop.f32.mrf.mxu1 }
 0x417   : > { %v19747_v7 = vadd.f32 %v7949_v53, %v7800_v16  ;;  %v7787_v16 = vadd.f32 %v19721_v40, %v19713_v47 }
 0x418   : > { %v15904_v56 = vpop.f32.mrf.mxu1 }
 0x419   : > { %v19749_v1 = vadd.f32 %v15904_v56, %v7811_v50  ;;  %v19764_v50 = vpop.f32.mrf.mxu0  ;;  %v7965_v26 = vadd.f32 %v7936_v51, %v7787_v16 }
 0x41a   : > { %v7952_v59 = vpop.f32.mrf.mxu1 }
 0x41b   : > { %v19751_v22 = vadd.f32 %v7952_v59, %v7803_v11  ;;  %v15959_v4 = vpop.f32.mrf.mxu0 }
 0x41c   : > { %v15909_v27 = vpop.f32.mrf.mxu1 }
 0x41d   : > { %v8084_v18 = vadd.f32 %v15909_v27, %v7966_v9  ;;  %v8946_v33 = vpop.f32.mrf.mxu0 }
 0x41e   : > { %v8051_v43 = vpop.f32.mrf.mxu1 }
 0x41f   : > { %v8082_v37 = vadd.f32 %v8051_v43, %v7964_v0  ;;  %v8314_v58 = vadd.f32 %v19715_v13, %v8084_v18 }
 0x420   : > { %v15910_v61 = vpop.f32.mrf.mxu1 }
 0x421   : > { %v8085_v31 = vadd.f32 %v15910_v61, %v7967_v49  ;;  %v8312_v24 = vadd.f32 %v19717_v8, %v8082_v37  ;;  %v19776_v8 = vld [vmem:[%s20864_s4] ss:$0 sm:$0xff]  ;;  %s16577_s4 = smov [#allocation9]  }
 0x422   : > { %v8054_v12 = vpop.f32.mrf.mxu1 }
 0x423   : > { %v8083_v30 = vadd.f32 %v8054_v12, %v7965_v26  ;;  %v8315_v53 = vadd.f32 %v19719_v45, %v8085_v31 }
 0x424   : > { %v15913_v17 = vpop.f32.mrf.mxu1 }
 0x425   : > { %v8088_v47 = vadd.f32 %v15913_v17, %v7970_v32  ;;  %v8313_v51 = vadd.f32 %v19723_v3, %v8083_v30  ;;  %v15960_v32 = vpop.f32.mrf.mxu0 }
 0x426   : > { %v8067_v62 = vpop.f32.mrf.mxu1 }
 0x427   : > { %v8318_v61 = vadd.f32 %v19725_v10, %v8088_v47 }
 0x428   : > { %v15914_v28 = vpop.f32.mrf.mxu1 }
 0x429   : > { %v8089_v16 = vadd.f32 %v15914_v28, %v19749_v1 }
 0x42a   : > { %v8070_v46 = vpop.f32.mrf.mxu1 }
 0x42b   : > { %v8319_v1 = vadd.f32 %v19729_v29, %v8089_v16 }
 0x42c   : > { %v15929_v14 = vpop.f32.mrf.mxu1 }
 0x42d   : > { %v8472_v23 = vadd.f32 %v15929_v14, %v8314_v58 }
 0x42e   : > { %v8439_v63 = vpop.f32.mrf.mxu1 }
 0x42f   : > { %v8470_v60 = vadd.f32 %v8439_v63, %v8312_v24  ;;  %v8591_v11 = vadd.f32 %v15939_v39, %v8472_v23 }
 0x430   : > { %v15930_v41 = vpop.f32.mrf.mxu1 }
 0x431   : > { %v8473_v56 = vadd.f32 %v15930_v41, %v8315_v53  ;;  %v8589_v43 = vadd.f32 %v8558_v38, %v8470_v60  ;;  %v8086_v38 = vadd.f32 %v8067_v62, %v19747_v7  ;;  %v8949_v41 = vpop.f32.mrf.mxu0 }
 0x432   : > { %v8442_v25 = vpop.f32.mrf.mxu1 }
 0x433   : > { %v8471_v13 = vadd.f32 %v8442_v25, %v8313_v51  ;;  %v8592_v14 = vadd.f32 %v15940_v44, %v8473_v56  ;;  %v8087_v44 = vadd.f32 %v8070_v46, %v19751_v22  ;;  %v8316_v7 = vadd.f32 %v19727_v5, %v8086_v38  ;;  %v15963_v58 = vpop.f32.mrf.mxu0 }
 0x434   : > { %v15933_v35 = vpop.f32.mrf.mxu1 }
 0x435   : > { %v8476_v34 = vadd.f32 %v15933_v35, %v8318_v61  ;;  %v8590_v9 = vadd.f32 %v8561_v42, %v8471_v13  ;;  %v19789_v22 = vadd.f32 %v19739_v19, %v8087_v44 }
 0x436   : > { %v8455_v2 = vpop.f32.mrf.mxu1 }
 0x437   : > { %v8595_v49 = vadd.f32 %v19753_v15, %v8476_v34  ;;  %v19793_v47 = vadd.f32 %v8455_v2, %v8316_v7 }
 0x438   : > { %v15934_v52 = vpop.f32.mrf.mxu1 }
 0x43a   : > { %v19769_v40 = vpop.f32.mrf.mxu1 }
 0x43c   : > { %v15949_v59 = vpop.f32.mrf.mxu1 }
 0x43d   : > { %v8821_v27 = vadd.f32 %v15949_v59, %v8591_v11 }
 0x43e   : > { %v8788_v45 = vpop.f32.mrf.mxu1 }
 0x43f   : > { %v8979_v12 = vadd.f32 %v15959_v4, %v8821_v27  ;;  %v8819_v17 = vadd.f32 %v8788_v45, %v8589_v43 }
 0x440   : > { %v15950_v63 = vpop.f32.mrf.mxu1 }
 0x441   : > { %v8994_v3 = vadd.f32 %v19776_v8, %v8979_v12  ;;  %v8977_v39 = vadd.f32 %v8946_v33, %v8819_v17  ;;  %v8822_v55 = vadd.f32 %v15950_v63, %v8592_v14  ;;  %v19795_v33 = vadd.f32 %v15934_v52, %v8319_v1 }
 0x442   : > { %v8791_v10 = vpop.f32.mrf.mxu1 }
 0x443   : > { %v9002_v48 = vmul.f32 0.2, %v8994_v3  ;;  %v8992_v0 = vadd.f32 %v19776_v8, %v8977_v39  ;;  %v8980_v18 = vadd.f32 %v15960_v32, %v8822_v55  ;;  %v8820_v25 = vadd.f32 %v8791_v10, %v8590_v9 }
 0x444   : > { %v15953_v37 = vpop.f32.mrf.mxu1 }
 0x445   : > { %v9010_v35 = vmax.f32 %v8994_v3, %v9002_v48  ;;  %v9000_v26 = vmul.f32 0.2, %v8992_v0  ;;  %v8995_v42 = vadd.f32 %v19776_v8, %v8980_v18  ;;  %v8978_v31 = vadd.f32 %v8949_v41, %v8820_v25 }
 0x446   : > { %v8825_v62 = vadd.f32 %v15953_v37, %v8595_v49 }
 0x447   : > { %v9058_v4 = vcombine.high %v9010_v35, %v9010_v35  ;;  %v9065_v30 = vrot.slane %v9010_v35, %v18771_v20  ;;  %v9008_v23 = vmax.f32 %v8992_v0, %v9000_v26  ;;  %v9003_v24 = vmul.f32 0.2, %v8995_v42 }
 0x448   : > { %v8993_v15 = vadd.f32 %v19776_v8, %v8978_v31  ;;  %v8983_v28 = vadd.f32 %v15963_v58, %v8825_v62 }
 0x449   : > { %v9072_v46 = vrot.slane %v9058_v4, %v18771_v20  ;;  %v9073_v60 = vcombine.high %v9065_v30, %v9065_v30  ;;  %v14807_v53 = vrot.slane %v9065_v30, 9  ;;  %v9024_v5 = vcombine.high %v9008_v23, %v9008_v23 }
 0x44a   : > { %v9031_v56 = vrot.slane %v9008_v23, %v18771_v20  ;;  %v9011_v51 = vmax.f32 %v8995_v42, %v9003_v24  ;;  %v9001_v19 = vmul.f32 0.2, %v8993_v15  ;;  %v19801_v2 = vadd.f32 %v19776_v8, %v8983_v28 }
 0x44b   : > { %v9074_v11 = vcombine.high %v9072_v46, %v9072_v46  ;;  %v14808_v29 = vrot.slane %v9073_v60, 9  ;;  %v14809_v59 = vrot.slane %v9072_v46, 9  ;;  %v9038_v13 = vrot.slane %v9024_v5, %v18771_v20 }
 0x44c   : > { %v9039_v27 = vcombine.high %v9031_v56, %v9031_v56  ;;  %v14799_v43 = vrot.slane %v9031_v56, 9  ;;  %v9075_v61 = vcombine.high %v9011_v51, %v9011_v51  ;;  %v9296_v32 = vadd.f32 %v14807_v53, %v9065_v30 }
 0x44d   : > { %v14810_v45 = vrot.slane %v9074_v11, 9  ;;  %v9082_v12 = vrot.slane %v9011_v51, %v18771_v20  ;;  %v9297_v52 = vadd.f32 %v14808_v29, %v9073_v60  ;;  %v9040_v17 = vcombine.high %v9038_v13, %v9038_v13 }
 0x44e   : > { %v14800_v14 = vrot.slane %v9039_v27, 9  ;;  %v14801_v34 = vrot.slane %v9038_v13, 9  ;;  %v9298_v63 = vadd.f32 %v14809_v59, %v9072_v46  ;;  %v9089_v3 = vrot.slane %v9075_v61, %v18771_v20 }
 0x44f   : > { %v9090_v39 = vcombine.high %v9082_v12, %v9082_v12  ;;  %v14811_v55 = vrot.slane %v9082_v12, 9  ;;  %v9299_v9 = vadd.f32 %v14810_v45, %v9074_v11  ;;  %v14802_v38 = vrot.slane %v9040_v17, 9 }
 0x450   : > { %v9288_v10 = vadd.f32 %v14799_v43, %v9031_v56  ;;  %v9009_v41 = vmax.f32 %v8993_v15, %v9001_v19  ;;  %v9091_v48 = vcombine.high %v9089_v3, %v9089_v3  ;;  %v14813_v18 = vrot.slane %v9089_v3, 9 }
 0x451   : > { %v14812_v0 = vrot.slane %v9090_v39, 9  ;;  %v9300_v25 = vadd.f32 %v14811_v55, %v9082_v12  ;;  %v9289_v16 = vadd.f32 %v14800_v14, %v9039_v27  ;;  %v9290_v44 = vadd.f32 %v14801_v34, %v9038_v13 }
 0x452   : > { %v9041_v49 = vcombine.high %v9009_v41, %v9009_v41  ;;  %v9048_v37 = vrot.slane %v9009_v41, %v18771_v20  ;;  %v14814_v35 = vrot.slane %v9091_v48, 9  ;;  %v9302_v42 = vadd.f32 %v14813_v18, %v9089_v3 }
 0x453   : > { %v9301_v26 = vadd.f32 %v14812_v0, %v9090_v39  ;;  %v9324_v31 = vadd.f32 %v9300_v25, %v9296_v32  ;;  %v9006_v4 = vmul.f32 0.2, %v19801_v2  ;;  %v9291_v14 = vadd.f32 %v14802_v38, %v9040_v17  ;;  %v8804_v38 = vpop.f32.mrf.mxu1 }
 0x454   : > { %v9055_v7 = vrot.slane %v9041_v49, %v18771_v20  ;;  %v9056_v62 = vcombine.high %v9048_v37, %v9048_v37  ;;  %v14803_v58 = vrot.slane %v9048_v37, 9  ;;  %v9303_v30 = vadd.f32 %v14814_v35, %v9091_v48 }
 0x455   : > { %v9325_v23 = vadd.f32 %v9301_v26, %v9297_v52  ;;  %v9326_v24 = vadd.f32 %v9302_v42, %v9298_v63  ;;  %v9340_v1 = vmul.f32 0.25, %v9324_v31  ;;  %v9014_v17 = vmax.f32 %v19801_v2, %v9006_v4  ;;  %v9583_v4 = vld [vmem:[#allocation3 + $0x8] sm:$0x7] }
 0x456   : > { %v9057_v15 = vcombine.high %v9055_v7, %v9055_v7  ;;  %v14804_v28 = vrot.slane %v9056_v62, 9  ;;  %v14805_v46 = vrot.slane %v9055_v7, 9  ;;  %v9292_v60 = vadd.f32 %v14803_v58, %v9048_v37 }
 0x457   : > { %v9327_v53 = vadd.f32 %v9303_v30, %v9299_v9  ;;  %v9341_v5 = vmul.f32 0.25, %v9325_v23  ;;  %v9342_v56 = vmul.f32 0.25, %v9326_v24  ;;  %v9387_v51 = vrot.slane %v9340_v1, %v18774_v21 }
 0x458   : > { %v15257_v11 = vpack.c.bf16 %v9340_v1, %v9340_v1  ;;  %v14806_v29 = vrot.slane %v9057_v15, 9  ;;  %v9293_v59 = vadd.f32 %v14804_v28, %v9056_v62  ;;  %v9294_v19 = vadd.f32 %v14805_v46, %v9055_v7 }
 0x459   : > { %v19808_v13 = vmul.f32 0.25, %v9327_v53  ;;  %v9391_v27 = vrot.slane %v9341_v5, %v18774_v21  ;;  %v9395_v43 = vrot.slane %v9342_v56, %v18774_v21  ;;  %v15258_v61 = vpack.c.bf16 %v9341_v5, %v9341_v5 }
 0x45a   : > { %v15259_v45 = vpack.c.bf16 %v9342_v56, %v9342_v56  ;;  %v9528_v32 = vunpack.c.l.b16 %v15257_v11  ;;  %v9295_v12 = vadd.f32 %v14806_v29, %v9057_v15  ;;  %v9320_v52 = vadd.f32 %v9292_v60, %v9288_v10  ;;  %v15954_v15 = vpop.f32.mrf.mxu1 }
 0x45b   : > { %v9435_v34 = vsel %vm6877_vm10, %v9391_v27, %v9387_v51  ;;  %v15260_v63 = vpack.c.bf16 %v19808_v13, %v19808_v13  ;;  %v9529_v3 = vunpack.c.l.b16 %v15258_v61  ;;  %v9321_v41 = vadd.f32 %v9293_v59, %v9289_v16 }
 0x45c   : > { %v19816_v39 = vsel %vm6879_vm11, %v9395_v43, %v9435_v34  ;;  %v9530_v55 = vunpack.c.l.b16 %v15259_v45  ;;  %v9547_v9 = vrot.slane %v9528_v32, 7  ;;  %v9322_v18 = vadd.f32 %v9294_v19, %v9290_v44  ;;  %v8807_v32 = vpop.f32.mrf.mxu1 }
 0x45d   : > { %v9531_v48 = vunpack.c.l.b16 %v15260_v63  ;;  %v9548_v0 = vrot.slane %v9529_v3, 6  ;;  %v9323_v25 = vadd.f32 %v9295_v12, %v9291_v14  ;;  %v9336_v37 = vmul.f32 0.25, %v9320_v52 }
 0x45e   : > { %v9550_v49 = vrot.slane %v9530_v55, 5  ;;  %v9337_v10 = vmul.f32 0.25, %v9321_v41  ;;  %v9338_v42 = vmul.f32 0.25, %v9322_v18  ;;  %v8475_v7 = vadd.f32 %v19769_v40, %v19789_v22  ;;  %v8962_v22 = vpop.f32.mrf.mxu0 }
 0x45f   : > { %v9549_v35 = vsel %vm6879_vm11, %v9548_v0, %v9547_v9  ;;  %v9552_v26 = vrot.slane %v9531_v48, 4  ;;  %v9339_v31 = vmul.f32 0.25, %v9323_v25  ;;  %v15253_v62 = vpack.c.bf16 %v9336_v37, %v9336_v37  ;;  %v9580_v9 = vld [vmem:[#allocation3 + $0x4] sm:$0x7] }
 0x460   : > { %v9551_v16 = vsel %vm6881_vm12, %v9550_v49, %v9549_v35  ;;  %v8593_v44 = vadd.f32 %v19755_v57, %v19793_v47  ;;  %v9375_v30 = vrot.slane %v9337_v10, %v18774_v21  ;;  %v15254_v23 = vpack.c.bf16 %v9337_v10, %v9337_v10  ;;  %v15964_v19 = vpop.f32.mrf.mxu0 }
 0x461   : > { %v9553_v58 = vsel %vm6883_vm13, %v9552_v26, %v9551_v16  ;;  %v8596_v40 = vadd.f32 %v19759_v54, %v19795_v33  ;;  %v15255_v1 = vpack.c.bf16 %v9338_v42, %v9338_v42  ;;  %v15256_v57 = vpack.c.bf16 %v9339_v31, %v9339_v31 }
 0x462   : > { %v9569_v24 = vpack.c.b16 %v9553_v58, %v9553_v58  ;;  %v9126_v47 = vcombine.high %v9014_v17, %v9014_v17  ;;  %v9371_v28 = vrot.slane %v9336_v37, %v18774_v21  ;;  %v9524_v46 = vunpack.c.l.b16 %v15253_v62  ;;  %v8965_v0 = vpop.f32.mrf.mxu0 }
 0x463   : > { %v9525_v60 = vunpack.c.l.b16 %v15254_v23  ;;  %v8823_v53 = vadd.f32 %v8804_v38, %v8593_v44  ;;  %v9379_v56 = vrot.slane %v9338_v42, %v18774_v21  ;;  %v9526_v54 = vunpack.c.l.b16 %v15255_v1 }
 0x464   : > { %v9584_v5 = vsel %vm19828_vm15, %v9569_v24, %v9583_v4  ;;  %v9527_v33 = vunpack.c.l.b16 %v15256_v57  ;;  %v9432_v51 = vsel %vm6877_vm10, %v9375_v30, %v9371_v28  ;;  %v9540_v11 = vrot.slane %v9524_v46, 7 }
 0x465   : > { %9585 = vst [vmem:[#allocation3 + $0x8] sm:$0x7] %v9584_v5  ;;  %v9541_v29 = vrot.slane %v9525_v60, 6  ;;  %v8594_v59 = vadd.f32 %v19764_v50, %v8475_v7  ;;  %v9543_v27 = vrot.slane %v9526_v54, 5  ;;  %v9133_v61 = vrot.slane %v9014_v17, %v18771_v20 }
 0x466   : > { %v9545_v43 = vrot.slane %v9527_v33, 4  ;;  %v9140_v45 = vrot.slane %v9126_v47, %v18771_v20  ;;  %v9399_v12 = vrot.slane %v19808_v13, %v18774_v21  ;;  %v9383_v52 = vrot.slane %v9339_v31, %v18774_v21 }
 0x467   : > { %v9542_v14 = vsel %vm6879_vm11, %v9541_v29, %v9540_v11  ;;  %v8981_v34 = vadd.f32 %v8962_v22, %v8823_v53  ;;  %v9433_v63 = vsel %vm6879_vm11, %v9379_v56, %v9432_v51  ;;  %v8826_v3 = vadd.f32 %v15954_v15, %v8596_v40 }
 0x468   : > { %v9544_v50 = vsel %vm6881_vm12, %v9543_v27, %v9542_v14  ;;  %v8824_v48 = vadd.f32 %v8807_v32, %v8594_v59  ;;  %v9141_v13 = vcombine.high %v9133_v61, %v9133_v61  ;;  %v9142_v25 = vcombine.high %v9140_v45, %v9140_v45 }
 0x469   : > { %v9546_v55 = vsel %vm6883_vm13, %v9545_v43, %v9544_v50  ;;  %v8996_v41 = vadd.f32 %v19776_v8, %v8981_v34  ;;  %v8984_v49 = vadd.f32 %v15964_v19, %v8826_v3  ;;  %v9434_v17 = vsel %vm6881_vm12, %v9383_v52, %v9433_v63 }
 0x46a   : > { %v9568_v18 = vpack.c.b16 %v9546_v55, %v9546_v55  ;;  %v8982_v10 = vadd.f32 %v8965_v0, %v8824_v48  ;;  %v9437_v38 = vsel %vm6881_vm12, %v9399_v12, %v19816_v39  ;;  %v14823_v26 = vrot.slane %v9133_v61, 9  ;;  %9449 = vst.msk [vmem:[%s19861_s28] sm:$0xf] %vm9448_vm1, %v9434_v17 }
 0x46b   : > { %v9004_v37 = vmul.f32 0.2, %v8996_v41  ;;  %v14825_v42 = vrot.slane %v9140_v45, 9  ;;  %v8999_v31 = vadd.f32 %v19776_v8, %v8984_v49  ;;  %9450 = vst.msk [vmem:[%s19861_s28 + $0x4] sm:$0xf] %vm9448_vm1, %v9437_v38  ;;  %v14824_v39 = vrot.slane %v9141_v13, 9 }
 0x46c   : > { %v9581_v35 = vsel %vm19828_vm15, %v9568_v18, %v9580_v9  ;;  %v8997_v16 = vadd.f32 %v19776_v8, %v8982_v10  ;;  %v14826_v62 = vrot.slane %v9142_v25, 9  ;;  %v9312_v23 = vadd.f32 %v14823_v26, %v9133_v61 }
 0x46d   : > { %9582 = vst [vmem:[#allocation3 + $0x4] sm:$0x7] %v9581_v35  ;;  %v9012_v7 = vmax.f32 %v8996_v41, %v9004_v37  ;;  %v9007_v44 = vmul.f32 0.2, %v8999_v31  ;;  %v9314_v40 = vadd.f32 %v14825_v42, %v9140_v45  ;;  %v9313_v15 = vadd.f32 %v14824_v39, %v9141_v13 }
 0x46e   : > { %v9005_v30 = vmul.f32 0.2, %v8997_v16  ;;  %v9315_v28 = vadd.f32 %v14826_v62, %v9142_v25 }
 0x46f   : > { %v9092_v58 = vcombine.high %v9012_v7, %v9012_v7  ;;  %v9099_v4 = vrot.slane %v9012_v7, %v18771_v20  ;;  %v9015_v22 = vmax.f32 %v8999_v31, %v9007_v44 }
 0x470   : > { %v9013_v47 = vmax.f32 %v8997_v16, %v9005_v30 }
 0x471   : > { %v9106_v24 = vrot.slane %v9092_v58, %v18771_v20  ;;  %v9107_v1 = vcombine.high %v9099_v4, %v9099_v4  ;;  %v14815_v57 = vrot.slane %v9099_v4, 9  ;;  %v9143_v46 = vcombine.high %v9015_v22, %v9015_v22 }
 0x472   : > { %v9150_v8 = vrot.slane %v9015_v22, %v18771_v20  ;;  %v9109_v11 = vcombine.high %v9013_v47, %v9013_v47  ;;  %v9116_v27 = vrot.slane %v9013_v47, %v18771_v20 }
 0x473   : > { %v9108_v60 = vcombine.high %v9106_v24, %v9106_v24  ;;  %v14816_v53 = vrot.slane %v9107_v1, 9  ;;  %v14817_v5 = vrot.slane %v9106_v24, 9  ;;  %v9304_v56 = vadd.f32 %v14815_v57, %v9099_v4 }
 0x474   : > { %v9157_v54 = vrot.slane %v9143_v46, %v18771_v20  ;;  %v9158_v33 = vcombine.high %v9150_v8, %v9150_v8  ;;  %v14827_v51 = vrot.slane %v9150_v8, 9  ;;  %v9123_v52 = vrot.slane %v9109_v11, %v18771_v20 }
 0x475   : > { %v14818_v29 = vrot.slane %v9108_v60, 9  ;;  %v9305_v59 = vadd.f32 %v14816_v53, %v9107_v1  ;;  %v9306_v19 = vadd.f32 %v14817_v5, %v9106_v24  ;;  %v9124_v14 = vcombine.high %v9116_v27, %v9116_v27 }
 0x476   : > { %v9159_v43 = vcombine.high %v9157_v54, %v9157_v54  ;;  %v14828_v61 = vrot.slane %v9158_v33, 9  ;;  %v14829_v45 = vrot.slane %v9157_v54, 9  ;;  %v9316_v32 = vadd.f32 %v14827_v51, %v9150_v8 }
 0x477   : > { %v9307_v12 = vadd.f32 %v14818_v29, %v9108_v60  ;;  %v14819_v34 = vrot.slane %v9116_v27, 9  ;;  %v9125_v9 = vcombine.high %v9123_v52, %v9123_v52  ;;  %v14820_v41 = vrot.slane %v9124_v14, 9 }
 0x478   : > { %v14830_v63 = vrot.slane %v9159_v43, 9  ;;  %v9317_v50 = vadd.f32 %v14828_v61, %v9158_v33  ;;  %v9318_v3 = vadd.f32 %v14829_v45, %v9157_v54  ;;  %v9332_v55 = vadd.f32 %v9316_v32, %v9312_v23  ;;  %v19889_v32 = vld.sshfl [vmem:[#allocation3] sm:$0x12 pattern:$0x76325410] }
 0x479   : > { %v14821_v48 = vrot.slane %v9123_v52, 9  ;;  %v9308_v0 = vadd.f32 %v14819_v34, %v9116_v27  ;;  %v14822_v37 = vrot.slane %v9125_v9, 9  ;;  %v9309_v10 = vadd.f32 %v14820_v41, %v9124_v14 }
 0x47a   : > { %v9319_v18 = vadd.f32 %v14830_v63, %v9159_v43  ;;  %v9333_v13 = vadd.f32 %v9317_v50, %v9313_v15  ;;  %v9334_v25 = vadd.f32 %v9318_v3, %v9314_v40  ;;  %v9348_v49 = vmul.f32 0.25, %v9332_v55 }
 0x47b   : > { %v9310_v17 = vadd.f32 %v14821_v48, %v9123_v52  ;;  %v9328_v38 = vadd.f32 %v9308_v0, %v9304_v56  ;;  %v9311_v16 = vadd.f32 %v14822_v37, %v9125_v9  ;;  %v9329_v39 = vadd.f32 %v9309_v10, %v9305_v59  ;;  %v9589_v52 = vld [vmem:[#allocation3 + $0x10] sm:$0x7]  ;;  %v14847_v9 = vld.sshfl [vmem:[#allocation3] sm:$0x13 pattern:$0x76325410] }
 0x47c   : > { %v9335_v35 = vadd.f32 %v9319_v18, %v9315_v28  ;;  %v9349_v26 = vmul.f32 0.25, %v9333_v13  ;;  %v9350_v42 = vmul.f32 0.25, %v9334_v25  ;;  %v9419_v31 = vrot.slane %v9348_v49, %v18774_v21  ;;  %v19895_v0 = vld.sshfl [vmem:[#allocation3 + $0x4] sm:$0x13 pattern:$0x76325410] }
 0x47d   : > { %v15265_v7 = vpack.c.bf16 %v9348_v49, %v9348_v49  ;;  %v9330_v62 = vadd.f32 %v9310_v17, %v9306_v19  ;;  %v9331_v22 = vadd.f32 %v9311_v16, %v9307_v12  ;;  %v9344_v24 = vmul.f32 0.25, %v9328_v38 }
 0x47e   : > { %v19875_v44 = vmul.f32 0.25, %v9335_v35  ;;  %v9423_v58 = vrot.slane %v9349_v26, %v18774_v21  ;;  %v9427_v4 = vrot.slane %v9350_v42, %v18774_v21  ;;  %v15266_v30 = vpack.c.bf16 %v9349_v26, %v9349_v26 }
 0x47f   : > { %v15267_v23 = vpack.c.bf16 %v9350_v42, %v9350_v42  ;;  %v9536_v40 = vunpack.c.l.b16 %v15265_v7  ;;  %v9345_v8 = vmul.f32 0.25, %v9329_v39  ;;  %v9346_v5 = vmul.f32 0.25, %v9330_v62  ;;  %v9586_v42 = vld [vmem:[#allocation3 + $0xc] sm:$0x7] }
 0x480   : > { %v9441_v1 = vsel %vm6877_vm10, %v9423_v58, %v9419_v31  ;;  %v15268_v57 = vpack.c.bf16 %v19875_v44, %v19875_v44  ;;  %v9537_v47 = vunpack.c.l.b16 %v15266_v30  ;;  %v9347_v56 = vmul.f32 0.25, %v9331_v22  ;;  %v14849_v7 = vld.sshfl [vmem:[#allocation3 + $0x8] sm:$0x13 pattern:$0x76325410] }
 0x481   : > { %v9442_v15 = vsel %vm6879_vm11, %v9427_v4, %v9441_v1  ;;  %v9538_v28 = vunpack.c.l.b16 %v15267_v23  ;;  %v9561_v46 = vrot.slane %v9536_v40, 7  ;;  %v9403_v33 = vrot.slane %v9344_v24, %v18774_v21  ;;  %v14858_v58 = vld.sshfl [vmem:[#allocation3 + $0x4] sm:$0x12 pattern:$0x76325410] }
 0x482   : > { %v9539_v60 = vunpack.c.l.b16 %v15268_v57  ;;  %v9562_v53 = vrot.slane %v9537_v47, 6  ;;  %v9407_v51 = vrot.slane %v9345_v8, %v18774_v21  ;;  %v15261_v11 = vpack.c.bf16 %v9344_v24, %v9344_v24 }
 0x483   : > { %v9564_v54 = vrot.slane %v9538_v28, 5  ;;  %v9411_v19 = vrot.slane %v9346_v5, %v18774_v21  ;;  %v15262_v61 = vpack.c.bf16 %v9345_v8, %v9345_v8  ;;  %v15263_v45 = vpack.c.bf16 %v9346_v5, %v9346_v5 }
 0x484   : > { %v9563_v29 = vsel %vm6879_vm11, %v9562_v53, %v9561_v46  ;;  %v9566_v59 = vrot.slane %v9539_v60, 4  ;;  %v9438_v43 = vsel %vm6877_vm10, %v9407_v51, %v9403_v33  ;;  %v15264_v34 = vpack.c.bf16 %v9347_v56, %v9347_v56  ;;  %v14859_v46 = vld.sshfl [vmem:[#allocation3 + $0x8] sm:$0x12 pattern:$0x76325410] }
 0x485   : > { %v9565_v27 = vsel %vm6881_vm12, %v9564_v54, %v9563_v29  ;;  %v9439_v14 = vsel %vm6879_vm11, %v9411_v19, %v9438_v43  ;;  %v9532_v63 = vunpack.c.l.b16 %v15261_v11  ;;  %v9533_v3 = vunpack.c.l.b16 %v15262_v61 }
 0x486   : > { %v9567_v12 = vsel %vm6883_vm13, %v9566_v59, %v9565_v27  ;;  %v9534_v55 = vunpack.c.l.b16 %v15263_v45  ;;  %v9535_v41 = vunpack.c.l.b16 %v15264_v34  ;;  %v9858_v48 = vcombine.high %v19889_v32, %v19889_v32 }
 0x487   : > { %v9571_v50 = vpack.c.b16 %v9567_v12, %v9567_v12  ;;  %v9554_v13 = vrot.slane %v9532_v63, 7  ;;  %v9555_v25 = vrot.slane %v9533_v3, 6  ;;  %v9646_v10 = vshrl.u32 %v14847_v9, 16 }
 0x488   : > { %v9557_v49 = vrot.slane %v9534_v55, 5  ;;  %v9559_v37 = vrot.slane %v9535_v41, 4  ;;  %v9649_v17 = vshll.u32 %v14847_v9, 16  ;;  %v9431_v38 = vrot.slane %v19875_v44, %v18774_v21 }
 0x489   : > { %v9590_v18 = vsel %vm19828_vm15, %v9571_v50, %v9589_v52  ;;  %v9415_v35 = vrot.slane %v9347_v56, %v18774_v21  ;;  %v9556_v26 = vsel %vm6879_vm11, %v9555_v25, %v9554_v13  ;;  %v9660_v16 = vshrl.u32 %v19895_v0, 16 }
 0x48a   : > { %9591 = vst [vmem:[#allocation3 + $0x10] sm:$0x7] %v9590_v18  ;;  %v9558_v31 = vsel %vm6881_vm12, %v9557_v49, %v9556_v26  ;;  %v9663_v39 = vshll.u32 %v19895_v0, 16  ;;  %v14861_v4 = vrot.slane %v19889_v32, 9  ;;  %v9892_v44 = vrot.slane %v9858_v48, 7 }
 0x48b   : > { %v9560_v62 = vsel %vm6883_vm13, %v9559_v37, %v9558_v31  ;;  %v9613_v23 = vcombine.high %v14847_v9, %v14847_v9  ;;  %v9648_v40 = vrot.slane %v9646_v10, 6  ;;  %v9651_v22 = vrot.slane %v9649_v17, 7  ;;  %v16386_v31 = vld [vmem:[%s20873_s7 + $0x8] sm:$0xff]  }
 0x48c   : > { %v9570_v30 = vpack.c.b16 %v9560_v62, %v9560_v62  ;;  %v9674_v24 = vshrl.u32 %v14849_v7, 16  ;;  %v9677_v1 = vshll.u32 %v14849_v7, 16  ;;  %v9440_v57 = vsel %vm6881_vm12, %v9415_v35, %v9439_v14 }
 0x48d   : > { %v9443_v47 = vsel %vm6881_vm12, %v9431_v38, %v9442_v15  ;;  %v9866_v8 = vcombine.high %v14858_v58, %v14858_v58  ;;  %v9662_v60 = vrot.slane %v9660_v16, 6  ;;  %v9665_v53 = vrot.slane %v9663_v39, 7  ;;  %9451 = vst.msk [vmem:[%s19861_s28 + $0x8] sm:$0xf] %vm9448_vm1, %v9440_v57  ;;  %vm19919_vm12 = vmor %vm9887_vm5, %vm6887_vm0  ;;  %v16383_v15 = vld [vmem:[%s20863_s5 + $0x28] sm:$0xff]  }
 0x48e   : > { %v9587_v28 = vsel %vm19828_vm15, %v9570_v30, %v9586_v42  ;;  %9452 = vst.msk [vmem:[%s19861_s28 + $0xc] sm:$0xf] %vm9448_vm1, %v9443_v47  ;;  %v9621_v2 = vcombine.high %v19895_v0, %v19895_v0  ;;  %vm9639_vm13 = vsmask.f32 3336  ;;  %v9652_v33 = vor.u32 %v9651_v22, %v9648_v40 }
 0x48f   : > { %9588 = vst [vmem:[#allocation3 + $0xc] sm:$0x7] %v9587_v28  ;;  %v9655_v51 = vshll.u32 %v9613_v23, 16  ;;  %v9874_v11 = vcombine.high %v14859_v46, %v14859_v46  ;;  %v9893_v29 = vsel %vm19919_vm12, %v14861_v4, %v9892_v44  ;;  %v9896_v59 = vrot.slane %v9866_v8, 7  ;;  %vm19928_vm0 = vmor %vm9638_vm6, %vm9639_vm13 }
 0x490   : > { %v9629_v19 = vcombine.high %v14849_v7, %v14849_v7  ;;  %v9666_v27 = vor.u32 %v9665_v53, %v9662_v60  ;;  %v9676_v43 = vrot.slane %v9674_v24, 6  ;;  %v9679_v61 = vrot.slane %v9677_v1, 7  ;;  %vm9642_vm9 = vmor %vm19928_vm0, %vm9641_vm8  ;;  %v16374_v53 = vld [vmem:[%s20863_s5 + $0x20] sm:$0xff]  }
 0x491   : > { %v14876_v5 = vld.sshfl [vmem:[#allocation3 + $0x10] sm:$0x13 pattern:$0x76325410]  ;;  %v14862_v45 = vrot.slane %v14858_v58, 9  ;;  %v9653_v14 = vrot.slane %v9652_v33, 2  ;;  %vm19940_vm15 = vmor %vm9642_vm9, %vm9643_vm7 }
 0x492   : > { %v10141_v56 = vshrl.u32 %v14876_v5, 16  ;;  %v10144_v54 = vshll.u32 %v14876_v5, 16  ;;  %v9657_v34 = vrot.slane %v9655_v51, 7  ;;  %v9669_v63 = vshll.u32 %v9621_v2, 16  ;;  %vm10988_vm6 = vmor %vm7443_vm14, %vm10987_vm3 }
 0x493   : > { %v19934_v3 = vsel %vm19919_vm12, %v14862_v45, %v9896_v59  ;;  %v14863_v55 = vrot.slane %v14859_v46, 9  ;;  %v9900_v9 = vrot.slane %v9874_v11, 7  ;;  %v10097_v41 = vcombine.high %v14876_v5, %v14876_v5 }
 0x494   : > { %v10143_v12 = vrot.slane %v10141_v56, 6  ;;  %v10146_v52 = vrot.slane %v10144_v54, 7  ;;  %v9667_v18 = vrot.slane %v9666_v27, 2  ;;  %v9680_v13 = vor.u32 %v9679_v61, %v9676_v43  ;;  %v16373_v27 = vld [vmem:[%s20863_s5] sm:$0xff]  }
 0x495   : > { %v9683_v25 = vshll.u32 %v9629_v19, 16  ;;  %v9909_v26 = vcombine.low %v9893_v29, %v19934_v3  ;;  %v9671_v42 = vrot.slane %v9669_v63, 7  ;;  %v10150_v62 = vshll.u32 %v10097_v41, 16 }
 0x496   : > { %v14860_v50 = vld.sshfl [vmem:[#allocation3 + $0xc] sm:$0x12 pattern:$0x76325410]  ;;  %v10147_v17 = vor.u32 %v10146_v52, %v10143_v12  ;;  %v19946_v58 = vsel %vm19919_vm12, %v14863_v55, %v9900_v9  ;;  %v9658_v44 = vsel %vm19940_vm15, %v9653_v14, %v9657_v34  ;;  %v9681_v30 = vrot.slane %v9680_v13, 2  ;;  %v16378_v14 = vld [vmem:[%s20863_s5 + $0x30] sm:$0xff]  }
 0x497   : > { %v9882_v48 = vcombine.high %v14860_v50, %v14860_v50  ;;  %v14850_v0 = vld.sshfl [vmem:[#allocation3 + $0xc] sm:$0x13 pattern:$0x76325410]  ;;  %v14864_v38 = vrot.slane %v14860_v50, 9  ;;  %v9672_v40 = vsel %vm19940_vm15, %v9667_v18, %v9671_v42  ;;  %v9917_v1 = vrot.slane %v9909_v26, %v18771_v20 }
 0x498   : > { %v9637_v49 = vcombine.high %v14850_v0, %v14850_v0  ;;  %v9688_v37 = vshrl.u32 %v14850_v0, 16  ;;  %v9691_v10 = vshll.u32 %v14850_v0, 16  ;;  %v10148_v24 = vrot.slane %v10147_v17, 2  ;;  %v16377_v13 = vld [vmem:[%s20863_s5 + $0x18] sm:$0xff]  }
 0x499   : > { %v9904_v35 = vrot.slane %v9882_v48, 7  ;;  %v9685_v57 = vrot.slane %v9683_v25, 7  ;;  %v10152_v8 = vrot.slane %v10150_v62, 7  ;;  %vm9727_vm1 = vcmask 130048  }
 0x49a   : > { %v9690_v7 = vrot.slane %v9688_v37, 6  ;;  %v9693_v16 = vrot.slane %v9691_v10, 7  ;;  %v9697_v39 = vshll.u32 %v9637_v49, 16  ;;  %v9704_v60 = vcombine.low %v9658_v44, %v9672_v40 }
 0x49b   : > { %v19950_v4 = vsel %vm19919_vm12, %v14864_v38, %v9904_v35  ;;  %v9686_v56 = vsel %vm19940_vm15, %v9681_v30, %v9685_v57  ;;  %v19972_v2 = vsel %vm19940_vm15, %v10148_v24, %v10152_v8  ;;  %v14908_v19 = vld.sshfl [vmem:[#allocation3 + $0x14] sm:$0x12 pattern:$0x76325410]  ;;  %vm10989_vm5 = vsmask.f32 2312 }
 0x49c   : > { %v9910_v23 = vcombine.low %v19946_v58, %v19950_v4  ;;  %v9694_v22 = vor.u32 %v9693_v16, %v9690_v7  ;;  %v9699_v46 = vrot.slane %v9697_v39, 7  ;;  %v10157_v11 = vcombine.low %v9672_v40, %v9686_v56  ;;  %v14907_v61 = vld.sshfl [vmem:[#allocation3 + $0x10] sm:$0x12 pattern:$0x76325410] }
 0x49d   : > { %v9712_v29 = vrot.slane %v9704_v60, %v18771_v20  ;;  %v16448_v32 = vld.sshfl [vmem:[#allocation3 + $0x8] sm:$0xf pattern:$0x76325410]  ;;  %v10634_v34 = vcombine.high %v14907_v61, %v14907_v61  ;;  %v10642_v63 = vcombine.high %v14908_v19, %v14908_v19  ;;  %v14912_v0 = vrot.slane %v14908_v19, 9  ;;  %v16384_v35 = vld [vmem:[%s20863_s5 + $0x40] sm:$0xff]  }
 0x49e   : > { %v19960_v47 = vrot.slane %v9910_v23, %v18771_v20  ;;  %v9695_v28 = vrot.slane %v9694_v22, 2  ;;  %v10165_v12 = vrot.slane %v10157_v11, %v18771_v20  ;;  %v16449_v52 = vld.sshfl [vmem:[#allocation3] sm:$0xf pattern:$0x76325410]  ;;  %v14911_v17 = vrot.slane %v14907_v61, 9 }
 0x49f   : > { %v16450_v55 = vld.sshfl [vmem:[#allocation3 + $0x8] sm:$0xf pattern:$0x76325410]  ;;  %v10653_v48 = vrot.slane %v10634_v34, 7  ;;  %v10657_v18 = vrot.slane %v10642_v63, 7  ;;  %v9792_v37 = vcombine.low %v16449_v52, %v16448_v32 }
 0x4a0   : > { %v9925_v5 = vcombine.low %v9917_v1, %v19960_v47  ;;  %v9700_v54 = vsel %vm19940_vm15, %v9695_v28, %v9699_v46  ;;  %v14900_v9 = vld.sshfl [vmem:[#allocation3 + $0x14] sm:$0x13 pattern:$0x76325410]  ;;  %v10285_v1 = vcombine.low %v19934_v3, %v19946_v58  ;;  %v16385_v3 = vld [vmem:[%s20863_s5 + $0x38] sm:$0xff]   ;;  %s16458_s5 = sshll.u32 %s16577_s4, 4  ;;  %s16459_s5 = int_to_ptr.vmem [resolvable:$false] %s16458_s5 }
 0x4a1   : > { %v9705_v33 = vcombine.low %v9686_v56, %v9700_v54  ;;  %v10158_v51 = vcombine.low %v9700_v54, %v19972_v2  ;;  %v16451_v41 = vld.sshfl [vmem:[#allocation3 + $0x10] sm:$0xf pattern:$0x76325410]  ;;  %v10518_v25 = vshrl.u32 %v14900_v9, 16  ;;  %v10521_v49 = vshll.u32 %v14900_v9, 16  ;;  %p16461_p0 = scmp.lt.s32.totalorder %s20536_s30, %s16459_s5 }
 0x4a2   : > { %15980 = vmatmul.mubr.msk.bf16.vlgmr.msra.gmra.mxu0 %vm9727_vm1, %v9925_v5  ;;  %v16452_v10 = vld.sshfl [vmem:[#allocation3 + $0xc] sm:$0xf pattern:$0x76325410]  ;;  %v10654_v26 = vsel %vm19919_vm12, %v14911_v17, %v10653_v48  ;;  %v10658_v42 = vsel %vm19919_vm12, %v14912_v0, %v10657_v18  ;;  %v10382_v7 = vcombine.low %v16450_v55, %v16451_v41  ;;  %v10474_v16 = vcombine.high %v14900_v9, %v14900_v9  ;;  %vm10990_vm12 = vmor %vm10988_vm6, %vm10989_vm5 }
 0x4a3   : > { %v19978_v59 = vrot.slane %v9705_v33, %v18771_v20  ;;  %15990 = vmatpush3.bf16.msra.mxu0 %v16374_v53  ;;  %15991 = vmatprep.mubr.msk.bf16.mxu0 %vm16575_vm4, %v16574_v6  ;;  %v10172_v43 = vrot.slane %v10158_v51, %v18771_v20  ;;  %v16453_v38 = vld.sshfl [vmem:[#allocation3 + $0x4] sm:$0xf pattern:$0x76325410]  ;;  %v10520_v39 = vrot.slane %v10518_v25, 6  ;;  %v10523_v62 = vrot.slane %v10521_v49, 7 }
 0x4a4   : > { %16001 = vmatprep.subr.bf16.mxu0 %v16574_v6  ;;  %v10663_v44 = vcombine.low %v10654_v26, %v10658_v42  ;;  %v10527_v23 = vshll.u32 %v10474_v16, 16  ;;  %v10005_v40 = vcombine.low %v16453_v38, %v16452_v10  ;;  %v10286_v22 = vcombine.low %v19950_v4, %v10654_v26  ;;  %v16387_v56 = vld [vmem:[%s20873_s7 + $0x18] sm:$0xff]   ;;  %v16388_v54 = vld [vmem:[%s20873_s7] sm:$0xff]  }
 0x4a5   : > { %v9720_v45 = vcombine.low %v9712_v29, %v19978_v59  ;;  %v10173_v50 = vcombine.low %v10165_v12, %v10172_v43  ;;  %v10524_v30 = vor.u32 %v10523_v62, %v10520_v39  ;;  %v10293_v4 = vrot.slane %v10285_v1, %v18771_v20  ;;  %v14917_v1 = vld [vmem:[%s20874_s6] ss:$0 sm:$0xff]  ;;  %s16460_s6 = scalar_lea.vmem %s16459_s5, 128 }
 0x4a6   : > { %v10677_v24 = vrot.slane %v10663_v44, %v18771_v20  ;;  %v10529_v46 = vrot.slane %v10527_v23, 7  ;;  %v10300_v8 = vrot.slane %v10286_v22, %v18771_v20  ;;  %vm10991_vm13 = vsmask.f32 3340  ;;  %p16462_p1 = scmp.lt.s32.totalorder %s16460_s6, %s16454_s3 }
 0x4a7   : > { %15968 = vmatmul.mubr.msk.bf16.vlgmr.msra.gmra.mxu1 %vm9727_vm1, %v9720_v45  ;;  %v10525_v28 = vrot.slane %v10524_v30, 2  ;;  %vm10953_vm14 = vsmask.f32 1282  ;;  %vm10992_vm0 = vmor %vm10990_vm12, %vm10991_vm13  ;;  %vm10993_vm8 = vsmask.f32 4368  ;;  %vm11051_vm6 = vcmask 261120  }
 0x4a8   : > { %15972 = vmatpush3.bf16.msra.mxu1 %v16373_v27  ;;  %15973 = vmatprep.mubr.msk.bf16.mxu1 %vm16575_vm4, %v16574_v6  ;;  %v10678_v57 = vcombine.low %v19960_v47, %v10677_v24  ;;  %v10301_v47 = vcombine.low %v10293_v4, %v10300_v8  ;;  %vm20123_vm7 = vmand %vm10852_vm2, %vm10953_vm14  ;;  %vm10995_vm9 = vsmask.f32 5396  ;;  %vm10999_vm5 = vsmask.f32 7452  ;;  %p16463_p2 = por %p16462_p1, %p16461_p0 }
 0x4a9   : > { %15983 = vmatprep.subr.bf16.mxu1 %v16574_v6  ;;  %v10530_v58 = vsel %vm19940_vm15, %v10525_v28, %v10529_v46 }
 0x4aa   : > { %15992 = vmatmul.mubr.msk.bf16.vlgmr.msra.gmra.mxu0 %vm9727_vm1, %v10173_v50  ;;  %v10535_v60 = vcombine.low %v19972_v2, %v10530_v58  ;;  %p16464_p3 = pnand %p16463_p2, %p16457_p13 }
 0x4ab   : > { %16002 = vmatpush3.bf16.msra.mxu0 %v16378_v14  ;;  %16003 = vmatprep.mubr.msk.bf16.mxu0 %vm16575_vm4, %v16574_v6 }
 0x4ac   : > { %16013 = vmatprep.subr.bf16.mxu0 %v16574_v6  ;;  %v10549_v53 = vrot.slane %v10535_v60, %v18771_v20 }
 0x4ae   : > { %v10550_v5 = vcombine.low %v19978_v59, %v10549_v53 }
 0x4af   : > { %15974 = vmatmul.mubr.msk.bf16.vlgmr.msra.gmra.mxu1 %vm9727_vm1, %v9792_v37 }
 0x4b0   : > { %15984 = vmatpush3.bf16.msra.mxu1 %v16377_v13  ;;  %15985 = vmatprep.mubr.msk.bf16.mxu1 %vm16575_vm4, %v16574_v6 }
 0x4b1   : > { %15995 = vmatprep.subr.bf16.mxu1 %v16574_v6 }
 0x4b2   : > { %16004 = vmatmul.mubr.msk.bf16.vlgmr.msra.gmra.mxu0 %vm9727_vm1, %v10382_v7 }
 0x4b3   : > { %16014 = vmatpush3.bf16.msra.mxu0 %v16384_v35  ;;  %16015 = vmatprep.mubr.msk.bf16.mxu0 %vm16575_vm4, %v16574_v6 }
 0x4b4   : > { %16027 = vmatprep.subr.bf16.mxu0 %v16574_v6 }
 0x4b7   : > { %15986 = vmatmul.mubr.msk.bf16.vlgmr.msra.gmra.mxu1 %vm9727_vm1, %v10005_v40 }
 0x4b8   : > { %15996 = vmatpush3.bf16.msra.mxu1 %v16383_v15  ;;  %15997 = vmatprep.mubr.msk.bf16.mxu1 %vm16575_vm4, %v16574_v6 }
 0x4b9   : > { %16007 = vmatprep.subr.bf16.mxu1 %v16574_v6 }
 0x4ba   : > { %16016 = vmatmul.mubr.msk.bf16.vlgmr.msra.gmra.mxu0 %vm9727_vm1, %v10678_v57 }
 0x4bb   : > { %16031 = vmatprep.mubr.msk.bf16.mxu0 %vm16575_vm4, %v16574_v6  ;;  %16028 = vmatpush3.bf16.msra.mxu0 %v16386_v31 }
 0x4bc   : > { %16029 = vmatprep.subr.bf16.mxu0 %v16574_v6 }
 0x4bf   : > { %15998 = vmatmul.mubr.msk.bf16.vlgmr.msra.gmra.mxu1 %vm9727_vm1, %v10301_v47  ;;  %16030 = vmatpush3.bf16.msra.mxu0 %v16388_v54 }
 0x4c0   : > { %16008 = vmatpush3.bf16.msra.mxu1 %v16385_v3  ;;  %16009 = vmatprep.mubr.msk.bf16.mxu1 %vm16575_vm4, %v16574_v6 }
 0x4c1   : > { %16019 = vmatprep.subr.bf16.mxu1 %v16574_v6  ;;  %16043 = vmatprep.subr.bf16.mxu0 %v16574_v6 }
 0x4c7   : > { %16010 = vmatmul.mubr.msk.bf16.vlgmr.msra.gmra.mxu1 %vm9727_vm1, %v10550_v5  ;;  %vm10997_vm1 = vsmask.f32 6424 }
 0x4c8   : > { %16023 = vmatprep.mubr.msk.bf16.mxu1 %vm16575_vm4, %v16574_v6  ;;  %16020 = vmatpush3.bf16.msra.mxu1 %v16387_v56 }
 0x4c9   : > { %16021 = vmatprep.subr.bf16.mxu1 %v16574_v6 }
 0x4cc   : > { %16022 = vmatpush3.bf16.msra.mxu1 %v16389_v36 }
 0x4cd   : > { %16035 = vmatprep.subr.bf16.mxu1 %v16574_v6 }
 0x562   : > { %v9969_v2 = vpop.f32.mrf.mxu0 }
 0x564   : > { %v15981_v33 = vpop.f32.mrf.mxu0 }
 0x566   : > { %v9972_v51 = vpop.f32.mrf.mxu0 }
 0x567   : > { %v9765_v11 = vpop.f32.mrf.mxu1 }
 0x568   : > { %v15982_v29 = vpop.f32.mrf.mxu0 }
 0x569   : > { %v15969_v59 = vpop.f32.mrf.mxu1 }
 0x56a   : > { %v10217_v19 = vpop.f32.mrf.mxu0 }
 0x56b   : > { %v9768_v27 = vpop.f32.mrf.mxu1 }
 0x56c   : > { %v15993_v43 = vpop.f32.mrf.mxu0 }
 0x56d   : > { %v15970_v61 = vpop.f32.mrf.mxu1 }
 0x56e   : > { %v10220_v45 = vpop.f32.mrf.mxu0 }
 0x56f   : > { %v9836_v32 = vpop.f32.mrf.mxu1 }
 0x570   : > { %v15994_v12 = vpop.f32.mrf.mxu0  ;;  %v9837_v55 = vadd.f32 %v9836_v32, %v9765_v11 }
 0x571   : > { %v15975_v52 = vpop.f32.mrf.mxu1 }
 0x572   : > { %v10426_v14 = vpop.f32.mrf.mxu0  ;;  %v9976_v13 = vadd.f32 %v9969_v2, %v9837_v55 }
 0x573   : > { %v9839_v34 = vpop.f32.mrf.mxu1 }
 0x574   : > { %v16005_v63 = vpop.f32.mrf.mxu0  ;;  %v9840_v18 = vadd.f32 %v9839_v34, %v9768_v27 }
 0x575   : > { %v15976_v50 = vpop.f32.mrf.mxu1 }
 0x576   : > { %v10429_v9 = vpop.f32.mrf.mxu0  ;;  %v9977_v38 = vadd.f32 %v9972_v51, %v9840_v18 }
 0x577   : > { %v10049_v41 = vpop.f32.mrf.mxu1 }
 0x578   : > { %v16006_v48 = vpop.f32.mrf.mxu0  ;;  %v10056_v37 = vadd.f32 %v10049_v41, %v9976_v13 }
 0x579   : > { %v15987_v0 = vpop.f32.mrf.mxu1 }
 0x57a   : > { %v10722_v25 = vpop.f32.mrf.mxu0  ;;  %v10224_v7 = vadd.f32 %v10217_v19, %v10056_v37 }
 0x57b   : > { %v10052_v49 = vpop.f32.mrf.mxu1 }
 0x57c   : > { %v16017_v10 = vpop.f32.mrf.mxu0  ;;  %v10057_v42 = vadd.f32 %v10052_v49, %v9977_v38 }
 0x57d   : > { %v15988_v17 = vpop.f32.mrf.mxu1 }
 0x57e   : > { %v10725_v35 = vpop.f32.mrf.mxu0  ;;  %v10225_v15 = vadd.f32 %v10220_v45, %v10057_v42 }
 0x57f   : > { %v10345_v26 = vpop.f32.mrf.mxu1 }
 0x580   : > { %v16018_v16 = vpop.f32.mrf.mxu0  ;;  %v10352_v62 = vadd.f32 %v10345_v26, %v10224_v7 }
 0x581   : > { %v15999_v39 = vpop.f32.mrf.mxu1 }
 0x582   : > { %v10433_v40 = vadd.f32 %v10426_v14, %v10352_v62 }
 0x583   : > { %v10348_v44 = vpop.f32.mrf.mxu1 }
 0x584   : > { %v10353_v23 = vadd.f32 %v10348_v44, %v10225_v15 }
 0x585   : > { %v16000_v30 = vpop.f32.mrf.mxu1 }
 0x586   : > { %v10434_v46 = vadd.f32 %v10429_v9, %v10353_v23 }
 0x587   : > { %v10594_v22 = vpop.f32.mrf.mxu1 }
 0x588   : > { %v10601_v24 = vadd.f32 %v10594_v22, %v10433_v40 }
 0x589   : > { %v16011_v57 = vpop.f32.mrf.mxu1 }
 0x58a   : > { %v10729_v28 = vadd.f32 %v10722_v25, %v10601_v24 }
 0x58b   : > { %v10597_v8 = vpop.f32.mrf.mxu1 }
 0x58c   : > { %v10738_v4 = vadd.f32 %v14917_v1, %v10729_v28  ;;  %v10602_v3 = vadd.f32 %v10597_v8, %v10434_v46 }
 0x58d   : > { %v16012_v58 = vpop.f32.mrf.mxu1 }
 0x58e   : > { %v10740_v47 = vmul.f32 0.2, %v10738_v4  ;;  %v10730_v60 = vadd.f32 %v10725_v35, %v10602_v3 }
 0x590   : > { %v10742_v53 = vmax.f32 %v10738_v4, %v10740_v47  ;;  %v10739_v5 = vadd.f32 %v14917_v1, %v10730_v60 }
 0x592   : > { %v10746_v31 = vcombine.high %v10742_v53, %v10742_v53  ;;  %v10753_v56 = vrot.slane %v10742_v53, %v18771_v20  ;;  %v10741_v54 = vmul.f32 0.2, %v10739_v5 }
 0x594   : > { %v10760_v36 = vrot.slane %v10746_v31, %v18771_v20  ;;  %v10761_v2 = vcombine.high %v10753_v56, %v10753_v56  ;;  %v14918_v33 = vrot.slane %v10753_v56, 9  ;;  %v10743_v51 = vmax.f32 %v10739_v5, %v10741_v54 }
 0x596   : > { %v10762_v11 = vcombine.high %v10760_v36, %v10760_v36  ;;  %v14919_v29 = vrot.slane %v10761_v2, 9  ;;  %v14920_v59 = vrot.slane %v10760_v36, 9  ;;  %v10763_v19 = vcombine.high %v10743_v51, %v10743_v51 }
 0x597   : > { %v10770_v27 = vrot.slane %v10743_v51, %v18771_v20  ;;  %v10812_v61 = vadd.f32 %v14918_v33, %v10753_v56  ;;  %v10955_v56 = vld [vmem:[#allocation4 + $0x2] sm:$0x3]  ;;  %v16576_v33 = vmov 1966171168  }
 0x598   : > { %v14921_v43 = vrot.slane %v10762_v11, 9  ;;  %v10814_v45 = vadd.f32 %v14920_v59, %v10760_v36  ;;  %v10777_v32 = vrot.slane %v10763_v19, %v18771_v20  ;;  %v10813_v14 = vadd.f32 %v14919_v29, %v10761_v2  ;;  %v14926_v59 = vld.sshfl [vmem:[#allocation4] sm:$0x11 pattern:$0x75316420] }
 0x599   : > { %v10778_v12 = vcombine.high %v10770_v27, %v10770_v27  ;;  %v14922_v52 = vrot.slane %v10770_v27, 9  ;;  %v11026_v51 = vunpack.c.l.s4 %v16576_v33  ;;  %v16398_v33 = vld [vmem:[%s20873_s7 + $0x78] sm:$0xff]  }
 0x59a   : > { %v10815_v34 = vadd.f32 %v14921_v43, %v10762_v11  ;;  %v10820_v63 = vadd.f32 %v10814_v45, %v10812_v61  ;;  %v10779_v50 = vcombine.high %v10777_v32, %v10777_v32  ;;  %v14924_v9 = vrot.slane %v10777_v32, 9 }
 0x59b   : > { %v14923_v55 = vrot.slane %v10778_v12, 9  ;;  %v10816_v18 = vadd.f32 %v14922_v52, %v10770_v27  ;;  %v10958_v27 = vld [vmem:[#allocation4 + $0x4] sm:$0x3]  ;;  %v11027_v61 = vunpack.c.0.s8 %v11026_v51  ;;  %v10978_v45 = vcombine.high %v14926_v59, %v14926_v59  ;;  %v20877_v52 = vld [vmem:[#allocation21_spill] sm:$0xff] }
 0x59c   : > { %v10821_v41 = vadd.f32 %v10815_v34, %v10813_v14  ;;  %v10824_v48 = vmul.f32 0.25, %v10820_v63  ;;  %v14925_v0 = vrot.slane %v10779_v50, 9  ;;  %v10818_v13 = vadd.f32 %v14924_v9, %v10777_v32 }
 0x59d   : > { %v10817_v37 = vadd.f32 %v14923_v55, %v10778_v12  ;;  %v10961_v12 = vld [vmem:[#allocation4] sm:$0x1]  ;;  %v20135_v14 = vsub.s32 %v11027_v61, %v20877_v52  ;;  %v11002_v34 = vshrl.u32 %v14926_v59, 16  ;;  %v11007_v63 = vshll.u32 %v10978_v45, 16 }
 0x59e   : > { %v10825_v25 = vmul.f32 0.25, %v10821_v41  ;;  %v10859_v49 = vpack.c.bf16 %v10824_v48, %v10824_v48  ;;  %v10819_v10 = vadd.f32 %v14925_v0, %v10779_v50  ;;  %v10822_v17 = vadd.f32 %v10818_v13, %v10816_v18  ;;  %v16399_v61 = vld [vmem:[%s20873_s7 + $0x68] sm:$0xff]  }
 0x59f   : > { %v10835_v38 = vrot.slane %v10824_v48, %v18774_v21 }
 0x5a0   : > { %v10860_v35 = vpack.c.bf16 %v10825_v25, %v10825_v25  ;;  %v10873_v26 = vrot.slane %v10859_v49, %v18771_v20  ;;  %v10839_v42 = vrot.slane %v10825_v25, %v18774_v21  ;;  %v10823_v7 = vadd.f32 %v10819_v10, %v10817_v37  ;;  %v16390_v49 = vld [vmem:[%s20873_s7 + $0x38] sm:$0xff]  }
 0x5a1   : > { %v10826_v16 = vmul.f32 0.25, %v10822_v17 }
 0x5a2   : > { %v10880_v39 = vrot.slane %v10860_v35, %v18771_v20  ;;  %v10901_v62 = vrot.slane %v10873_v26, %v18771_v20  ;;  %v10848_v44 = vsel %vm6877_vm10, %v10839_v42, %v10835_v38  ;;  %v10827_v15 = vmul.f32 0.25, %v10823_v7  ;;  %v14940_v35 = vld.sshfl [vmem:[#allocation4] sm:$0x10 pattern:$0x75316420] }
 0x5a3   : > { %v10861_v30 = vpack.c.bf16 %v10826_v16, %v10826_v16  ;;  %10853 = vst.msk [vmem:[%s20106_s26] sm:$0x3] %vm10852_vm2, %v10848_v44  ;;  %v10843_v22 = vrot.slane %v10826_v16, %v18774_v21  ;;  %v14986_v26 = vld.sshfl [vmem:[#allocation4 + $0x6] sm:$0x11 pattern:$0x75316420] }
 0x5a4   : > { %v10908_v23 = vrot.slane %v10880_v39, %v18771_v20  ;;  %v10923_v40 = vunpack.c.l.b16 %v10901_v62  ;;  %v10862_v24 = vpack.c.bf16 %v10827_v15, %v10827_v15  ;;  %v10847_v57 = vrot.slane %v10827_v15, %v18774_v21  ;;  %v16392_v15 = vld [vmem:[%s20873_s7 + $0x30] sm:$0xff]  }
 0x5a5   : > { %v10887_v1 = vrot.slane %v10861_v30, %v18771_v20  ;;  %v16391_v30 = vld [vmem:[%s20873_s7 + $0x28] sm:$0xff]  }
 0x5a6   : > { %v10924_v28 = vunpack.c.l.b16 %v10908_v23  ;;  %v10894_v46 = vrot.slane %v10862_v24, %v18771_v20  ;;  %v10849_v4 = vsel %vm6877_vm10, %v10847_v57, %v10843_v22  ;;  %v10927_v3 = vrot.slane %v10923_v40, 7  ;;  %vm10994_vm10 = vmor %vm10992_vm0, %vm10993_vm8 }
 0x5a7   : > { %v10915_v8 = vrot.slane %v10887_v1, %v18771_v20  ;;  %10854 = vst.msk [vmem:[%s20106_s26 + $0x2] sm:$0x3] %vm10852_vm2, %v10849_v4  ;;  %vm10996_vm15 = vmor %vm10994_vm10, %vm10995_vm9  ;;  %v11653_v1 = vcombine.high %v14986_v26, %v14986_v26 }
 0x5a8   : > { %v10928_v58 = vrot.slane %v10924_v28, 6  ;;  %v10922_v47 = vrot.slane %v10894_v46, %v18771_v20  ;;  %vm10998_vm3 = vmor %vm10996_vm15, %vm10997_vm1  ;;  %v16394_v28 = vld [vmem:[%s20873_s7 + $0x58] sm:$0xff]  }
 0x5a9   : > { %v10925_v60 = vunpack.c.l.b16 %v10915_v8  ;;  %v16393_v8 = vld [vmem:[%s20873_s7 + $0x20] sm:$0xff]  }
 0x5aa   : > { %v10929_v53 = vsel %vm6879_vm11, %v10928_v58, %v10927_v3  ;;  %v10926_v5 = vunpack.c.l.b16 %v10922_v47  ;;  %v11664_v47 = vshrl.u32 %v14986_v26, 16 }
 0x5ab   : > { %v10933_v21 = vpack.c.b16 %v10929_v53, %v10929_v53  ;;  %v10930_v36 = vrot.slane %v10925_v60, 7  ;;  %v11669_v60 = vshll.u32 %v11653_v1, 16 }
 0x5ac   : > { %v10931_v2 = vrot.slane %v10926_v5, 6  ;;  %v16395_v5 = vld [vmem:[%s20873_s7 + $0x48] sm:$0xff]  }
 0x5ad   : > { %v10941_v54 = vrot.slane %v10933_v21, %v18771_v20  ;;  %v16396_v21 = vld [vmem:[%s20873_s7 + $0x50] sm:$0xff]  }
 0x5ae   : > { %v10932_v29 = vsel %vm6879_vm11, %v10931_v2, %v10930_v36  ;;  %vm20137_vm11 = vmor %vm10998_vm3, %vm10999_vm5 }
 0x5af   : > { %v10956_v11 = vsel %vm20123_vm7, %v10941_v54, %v10955_v56  ;;  %v10934_v19 = vpack.c.b16 %v10932_v29, %v10932_v29  ;;  %v11009_v18 = vsel %vm20137_vm11, %v11002_v34, %v11007_v63  ;;  %v11671_v2 = vsel %vm20137_vm11, %v11664_v47, %v11669_v60  ;;  %v16401_v34 = vld [vmem:[%s20873_s7 + $0x60] sm:$0xff]  }
 0x5b0   : > { %10957 = vst [vmem:[#allocation4 + $0x2] sm:$0x3] %v10956_v11  ;;  %v16397_v11 = vld [vmem:[%s20873_s7 + $0x40] sm:$0xff]  }
 0x5b1   : > { %v10948_v43 = vrot.slane %v10934_v19, %v18771_v20 }
 0x5b3   : > { %v10959_v32 = vsel %vm20123_vm7, %v10948_v43, %v10958_v27  ;;  %v11555_v27 = vld [vmem:[#allocation4 + $0x6] sm:$0x1]  ;;  %v16400_v43 = vld [vmem:[%s20873_s7 + $0x70] sm:$0xff]  }
 0x5b4   : > { %10960 = vst [vmem:[#allocation4 + $0x4] sm:$0x3] %v10959_v32 }
 0x5b7   : > { %v10962_v55 = vld [vmem:[#allocation4 + $0x2] sm:$0x1]  ;;  %v14941_v39 = vld.sshfl [vmem:[#allocation4 + $0x2] sm:$0x10 pattern:$0x75316420] }
 0x5b8   : > { %v14927_v9 = vld.sshfl [vmem:[#allocation4 + $0x2] sm:$0x11 pattern:$0x75316420]  ;;  %v11097_v41 = vcombine.low %v10961_v12, %v10962_v55  ;;  %v14946_v22 = vcombine.high %v14940_v35, %v14941_v39 }
 0x5b9   : > { %v10986_v48 = vcombine.high %v14927_v9, %v14927_v9  ;;  %v11011_v13 = vshrl.u32 %v14927_v9, 16  ;;  %v11263_v17 = vld [vmem:[#allocation4 + $0x2] sm:$0x1] }
 0x5ba   : > { %v11104_v0 = vrot.slane %v11097_v41, %v20135_v14  ;;  %v11199_v58 = vrot.slane %v14946_v22, %v20135_v14  ;;  %v14997_v55 = vld.sshfl [vmem:[#allocation4 + $0x6] sm:$0x10 pattern:$0x75316420] }
 0x5bb   : > { %v11016_v25 = vshll.u32 %v10986_v48, 16  ;;  %v11264_v38 = vld [vmem:[#allocation4 + $0x4] sm:$0x1] }
 0x5bc   : > { %v11111_v37 = vrot.slane %v11104_v0, %v20135_v14  ;;  %v11272_v7 = vcombine.low %v11263_v17, %v11264_v38  ;;  %v14958_v16 = vld.sshfl [vmem:[#allocation4 + $0x4] sm:$0x11 pattern:$0x75316420]  ;;  %v11206_v54 = vrot.slane %v11199_v58, %v20135_v14  ;;  %v16403_v0 = vld [vmem:[%s20873_s7 + $0x80] sm:$0xff]  }
 0x5bd   : > { %v11018_v10 = vsel %vm20137_vm11, %v11011_v13, %v11016_v25  ;;  %v11362_v62 = vcombine.high %v14958_v16, %v14958_v16  ;;  %v20163_v24 = vld.sshfl [vmem:[#allocation4 + $0x4] sm:$0x10 pattern:$0x75316420]  ;;  %v11373_v3 = vshrl.u32 %v14958_v16, 16 }
 0x5be   : > { %v11024_v42 = vcombine.low %v11009_v18, %v11018_v10  ;;  %16032 = vmatmul.mubr.msk.bf16.vlgmr.msra.gmra.mxu0 %vm11051_vm6, %v11111_v37  ;;  %v11279_v23 = vrot.slane %v11272_v7, %v20135_v14  ;;  %v14974_v4 = vcombine.high %v14941_v39, %v20163_v24  ;;  %v11554_v19 = vld [vmem:[#allocation4 + $0x4] sm:$0x1]  ;;  %v15002_v48 = vcombine.high %v20163_v24, %v14997_v55  ;;  %v16406_v37 = vld [vmem:[%s20665_s9] sm:$0xff]  }
 0x5bf   : > { %16044 = vmatpush3.bf16.msra.mxu0 %v16390_v49  ;;  %16047 = vmatprep.mubr.msk.bf16.mxu0 %vm16575_vm4, %v16574_v6  ;;  %v11378_v57 = vshll.u32 %v11362_v62, 16  ;;  %v11563_v12 = vcombine.low %v11554_v19, %v11555_v27  ;;  %v16402_v9 = vld [vmem:[%s20873_s7 + $0x88] sm:$0xff]   ;;  %v16405_v49 = vld [vmem:[%s20665_s9 + $0x18] sm:$0xff]  }
 0x5c0   : > { %v11031_v44 = vrot.slane %v11024_v42, %v20135_v14  ;;  %16045 = vmatprep.subr.bf16.mxu0 %v16574_v6  ;;  %v11286_v46 = vrot.slane %v11279_v23, %v20135_v14  ;;  %v11489_v56 = vrot.slane %v14974_v4, %v20135_v14  ;;  %v11780_v18 = vrot.slane %v15002_v48, %v20135_v14  ;;  %v16404_v25 = vld [vmem:[%s20665_s9 + $0x8] sm:$0xff]  }
 0x5c1   : > { %v11380_v53 = vsel %vm20137_vm11, %v11373_v3, %v11378_v57  ;;  %v11570_v63 = vrot.slane %v11563_v12, %v20135_v14 }
 0x5c2   : > { %v11038_v40 = vrot.slane %v11031_v44, %v20135_v14  ;;  %v11386_v36 = vcombine.low %v11018_v10, %v11380_v53  ;;  %v11496_v51 = vrot.slane %v11489_v56, %v20135_v14  ;;  %v11677_v29 = vcombine.low %v11380_v53, %v11671_v2  ;;  %v16407_v10 = vld [vmem:[%s20665_s9 + $0x10] sm:$0xff]  }
 0x5c3   : > { %16046 = vmatpush3.bf16.msra.mxu0 %v16392_v15  ;;  %v11577_v41 = vrot.slane %v11570_v63, %v20135_v14  ;;  %v11787_v13 = vrot.slane %v11780_v18, %v20135_v14 }
 0x5c4   : > { %16024 = vmatmul.mubr.msk.bf16.vlgmr.msra.gmra.mxu1 %vm11051_vm6, %v11038_v40  ;;  %16059 = vmatprep.subr.bf16.mxu0 %v16574_v6  ;;  %v11393_v59 = vrot.slane %v11386_v36, %v20135_v14  ;;  %v11684_v45 = vrot.slane %v11677_v29, %v20135_v14 }
 0x5c5   : > { %16036 = vmatpush3.bf16.msra.mxu1 %v16391_v30  ;;  %16039 = vmatprep.mubr.msk.bf16.mxu1 %vm16575_vm4, %v16574_v6 }
 0x5c6   : > { %16037 = vmatprep.subr.bf16.mxu1 %v16574_v6  ;;  %16048 = vmatmul.mubr.msk.bf16.vlgmr.msra.gmra.mxu0 %vm11051_vm6, %v11286_v46  ;;  %v11400_v32 = vrot.slane %v11393_v59, %v20135_v14  ;;  %v11691_v52 = vrot.slane %v11684_v45, %v20135_v14 }
 0x5c7   : > { %16060 = vmatpush3.bf16.msra.mxu0 %v16394_v28  ;;  %16063 = vmatprep.mubr.msk.bf16.mxu0 %vm16575_vm4, %v16574_v6 }
 0x5c8   : > { %16061 = vmatprep.subr.bf16.mxu0 %v16574_v6 }
 0x5c9   : > { %16038 = vmatpush3.bf16.msra.mxu1 %v16393_v8 }
 0x5ca   : > { %16051 = vmatprep.subr.bf16.mxu1 %v16574_v6 }
 0x5cb   : > { %16062 = vmatpush3.bf16.msra.mxu0 %v16396_v21 }
 0x5cc   : > { %16040 = vmatmul.mubr.msk.bf16.vlgmr.msra.gmra.mxu1 %vm11051_vm6, %v11206_v54  ;;  %16075 = vmatprep.subr.bf16.mxu0 %v16574_v6 }
 0x5cd   : > { %16052 = vmatpush3.bf16.msra.mxu1 %v16395_v5  ;;  %16055 = vmatprep.mubr.msk.bf16.mxu1 %vm16575_vm4, %v16574_v6 }
 0x5ce   : > { %16053 = vmatprep.subr.bf16.mxu1 %v16574_v6  ;;  %16064 = vmatmul.mubr.msk.bf16.vlgmr.msra.gmra.mxu0 %vm11051_vm6, %v11496_v51 }
 0x5cf   : > { %16076 = vmatpush3.bf16.msra.mxu0 %v16398_v33  ;;  %16079 = vmatprep.mubr.msk.bf16.mxu0 %vm16575_vm4, %v16574_v6 }
 0x5d0   : > { %16077 = vmatprep.subr.bf16.mxu0 %v16574_v6 }
 0x5d1   : > { %16054 = vmatpush3.bf16.msra.mxu1 %v16397_v11 }
 0x5d2   : > { %16067 = vmatprep.subr.bf16.mxu1 %v16574_v6 }
 0x5d3   : > { %16078 = vmatpush3.bf16.msra.mxu0 %v16400_v43  ;;  %v15006_v43 = vld [vmem:[%s20664_s8] ss:$0 sm:$0xff] }
 0x5d4   : > { %16056 = vmatmul.mubr.msk.bf16.vlgmr.msra.gmra.mxu1 %vm11051_vm6, %v11400_v32  ;;  %16091 = vmatprep.subr.bf16.mxu0 %v16574_v6 }
 0x5d5   : > { %16068 = vmatpush3.bf16.msra.mxu1 %v16399_v61  ;;  %16071 = vmatprep.mubr.msk.bf16.mxu1 %vm16575_vm4, %v16574_v6 }
 0x5d6   : > { %16069 = vmatprep.subr.bf16.mxu1 %v16574_v6  ;;  %16080 = vmatmul.mubr.msk.bf16.vlgmr.msra.gmra.mxu0 %vm11051_vm6, %v11691_v52 }
 0x5d7   : > { %16095 = vmatprep.mubr.msk.bf16.mxu0 %vm16575_vm4, %v16574_v6  ;;  %16092 = vmatpush3.bf16.msra.mxu0 %v16405_v49 }
 0x5d8   : > { %16093 = vmatprep.subr.bf16.mxu0 %v16574_v6 }
 0x5d9   : > { %16070 = vmatpush3.bf16.msra.mxu1 %v16401_v34 }
 0x5da   : > { %16083 = vmatprep.subr.bf16.mxu1 %v16574_v6 }
 0x5db   : > { %16094 = vmatpush3.bf16.msra.mxu0 %v16407_v10  ;;  %v11904_v10 = vld [vmem:[#allocation5 + $0x2] sm:$0x3] }
 0x5dc   : > { %16072 = vmatmul.mubr.msk.bf16.vlgmr.msra.gmra.mxu1 %vm11051_vm6, %v11577_v41  ;;  %16107 = vmatprep.subr.bf16.mxu0 %v16574_v6 }
 0x5dd   : > { %16084 = vmatpush3.bf16.msra.mxu1 %v16402_v9  ;;  %16087 = vmatprep.mubr.msk.bf16.mxu1 %vm16575_vm4, %v16574_v6 }
 0x5de   : > { %16085 = vmatprep.subr.bf16.mxu1 %v16574_v6 }
 0x5e1   : > { %16086 = vmatpush3.bf16.msra.mxu1 %v16403_v0 }
 0x5e2   : > { %16099 = vmatprep.subr.bf16.mxu1 %v16574_v6 }
 0x5e4   : > { %16088 = vmatmul.mubr.msk.bf16.vlgmr.msra.gmra.mxu1 %vm11051_vm6, %v11787_v13 }
 0x5e5   : > { %16103 = vmatprep.mubr.msk.bf16.mxu1 %vm16575_vm4, %v16574_v6  ;;  %16100 = vmatpush3.bf16.msra.mxu1 %v16404_v25 }
 0x5e6   : > { %16101 = vmatprep.subr.bf16.mxu1 %v16574_v6 }
 0x5e9   : > { %16102 = vmatpush3.bf16.msra.mxu1 %v16406_v37 }
 0x5ea   : > { %16115 = vmatprep.subr.bf16.mxu1 %v16574_v6 }
 0x67e   : > { %v11161_v17 = vpop.f32.mrf.mxu0 }
 0x680   : > { %v16033_v38 = vpop.f32.mrf.mxu0 }
 0x682   : > { %v11164_v35 = vpop.f32.mrf.mxu0 }
 0x684   : > { %v11089_v26 = vpop.f32.mrf.mxu1  ;;  %v16034_v42 = vpop.f32.mrf.mxu0 }
 0x685   : > { %v11162_v1 = vadd.f32 %v11161_v17, %v11089_v26  ;;  %v11907_v26 = vld [vmem:[#allocation5 + $0x4] sm:$0x3] }
 0x686   : > { %v16025_v7 = vpop.f32.mrf.mxu1  ;;  %v11336_v16 = vpop.f32.mrf.mxu0 }
 0x688   : > { %v11092_v39 = vpop.f32.mrf.mxu1  ;;  %v16049_v62 = vpop.f32.mrf.mxu0 }
 0x68a   : > { %v16026_v44 = vpop.f32.mrf.mxu1  ;;  %v11339_v15 = vpop.f32.mrf.mxu0 }
 0x68b   : > { %v11910_v44 = vld [vmem:[#allocation5] sm:$0x1] }
 0x68c   : > { %v11256_v30 = vpop.f32.mrf.mxu1  ;;  %v16050_v23 = vpop.f32.mrf.mxu0 }
 0x68d   : > { %v11262_v46 = vadd.f32 %v11256_v30, %v11162_v1 }
 0x68e   : > { %v16041_v40 = vpop.f32.mrf.mxu1  ;;  %v11546_v22 = vpop.f32.mrf.mxu0 }
 0x68f   : > { %v11342_v47 = vadd.f32 %v11336_v16, %v11262_v46  ;;  %v15007_v16 = vld.sshfl [vmem:[#allocation5] sm:$0x11 pattern:$0x75316420] }
 0x690   : > { %v11259_v24 = vpop.f32.mrf.mxu1  ;;  %v16065_v57 = vpop.f32.mrf.mxu0  ;;  %v11927_v62 = vcombine.high %v15007_v16, %v15007_v16  ;;  %v11937_v15 = vshrl.u32 %v15007_v16, 16 }
 0x692   : > { %v16042_v28 = vpop.f32.mrf.mxu1  ;;  %v11549_v8 = vpop.f32.mrf.mxu0  ;;  %v11942_v30 = vshll.u32 %v11927_v62, 16 }
 0x693   : > { %v16408_v28 = vld [vmem:[%s20665_s9 + $0x38] sm:$0xff]  }
 0x694   : > { %v11450_v4 = vpop.f32.mrf.mxu1  ;;  %v16066_v3 = vpop.f32.mrf.mxu0  ;;  %v11944_v46 = vsel %vm20137_vm11, %v11937_v15, %v11942_v30  ;;  %v16419_v15 = vld [vmem:[%s20665_s9 + $0x60] sm:$0xff]  }
 0x695   : > { %v11456_v21 = vadd.f32 %v11450_v4, %v11342_v47 }
 0x696   : > { %v16057_v58 = vpop.f32.mrf.mxu1  ;;  %v11741_v60 = vpop.f32.mrf.mxu0 }
 0x697   : > { %v11552_v2 = vadd.f32 %v11546_v22, %v11456_v21  ;;  %v15021_v21 = vld.sshfl [vmem:[#allocation5] sm:$0x10 pattern:$0x75316420] }
 0x698   : > { %v11453_v53 = vpop.f32.mrf.mxu1  ;;  %v16081_v5 = vpop.f32.mrf.mxu0 }
 0x69a   : > { %v16058_v56 = vpop.f32.mrf.mxu1  ;;  %v11744_v54 = vpop.f32.mrf.mxu0 }
 0x69b   : > { %v15067_v56 = vld.sshfl [vmem:[#allocation5 + $0x6] sm:$0x11 pattern:$0x75316420] }
 0x69c   : > { %v11627_v36 = vpop.f32.mrf.mxu1  ;;  %v16082_v33 = vpop.f32.mrf.mxu0 }
 0x69d   : > { %v11633_v11 = vadd.f32 %v11627_v36, %v11552_v2  ;;  %v16410_v33 = vld [vmem:[%s20665_s9 + $0x30] sm:$0xff]  }
 0x69e   : > { %v16073_v51 = vpop.f32.mrf.mxu1 }
 0x69f   : > { %v11747_v19 = vadd.f32 %v11741_v60, %v11633_v11  ;;  %v16409_v51 = vld [vmem:[%s20665_s9 + $0x28] sm:$0xff]  }
 0x6a0   : > { %v11630_v29 = vpop.f32.mrf.mxu1 }
 0x6a2   : > { %v16074_v59 = vpop.f32.mrf.mxu1 }
 0x6a4   : > { %v11837_v27 = vpop.f32.mrf.mxu1 }
 0x6a5   : > { %v11843_v61 = vadd.f32 %v11837_v27, %v11747_v19  ;;  %v12587_v27 = vcombine.high %v15067_v56, %v15067_v56 }
 0x6a6   : > { %v16089_v45 = vpop.f32.mrf.mxu1 }
 0x6a7   : > { %v11851_v32 = vadd.f32 %v15006_v43, %v11843_v61  ;;  %v16412_v61 = vld [vmem:[%s20665_s9 + $0x58] sm:$0xff]  }
 0x6a8   : > { %v11840_v12 = vpop.f32.mrf.mxu1 }
 0x6a9   : > { %v11852_v52 = vmul.f32 0.2, %v11851_v32 }
 0x6aa   : > { %v16090_v34 = vpop.f32.mrf.mxu1 }
 0x6ab   : > { %v11853_v63 = vmax.f32 %v11851_v32, %v11852_v52  ;;  %v16411_v32 = vld [vmem:[%s20665_s9 + $0x20] sm:$0xff]  }
 0x6ad   : > { %v11861_v55 = vrot.slane %v11853_v63, %v18771_v20  ;;  %v12598_v63 = vshrl.u32 %v15067_v56, 16 }
 0x6af   : > { %v11862_v9 = vcombine.high %v11861_v55, %v11861_v55  ;;  %v11869_v41 = vpack.c.bf16 %v11861_v55, %v11861_v55  ;;  %v12603_v55 = vshll.u32 %v12587_v27, 16 }
 0x6b1   : > { %v11870_v48 = vpack.c.bf16 %v11862_v9, %v11862_v9  ;;  %v11879_v0 = vrot.slane %v11869_v41, %v18771_v20  ;;  %v16414_v41 = vld [vmem:[%s20665_s9 + $0x50] sm:$0xff]  }
 0x6b3   : > { %v11886_v18 = vrot.slane %v11870_v48, %v18771_v20  ;;  %v11888_v13 = vshrl.u32 %v11879_v0, 16  ;;  %v11891_v49 = vshll.u32 %v11879_v0, 16  ;;  %v16413_v48 = vld [vmem:[%s20665_s9 + $0x48] sm:$0xff]  }
 0x6b5   : > { %v11890_v25 = vrot.slane %v11888_v13, 7  ;;  %v11895_v37 = vshrl.u32 %v11886_v18, 16  ;;  %v11898_v35 = vshll.u32 %v11886_v18, 16 }
 0x6b7   : > { %v11893_v17 = vor.u32 %v11891_v49, %v11890_v25  ;;  %v11897_v38 = vrot.slane %v11895_v37, 7  ;;  %v12605_v25 = vsel %vm20137_vm11, %v12598_v63, %v12603_v55  ;;  %v16416_v49 = vld [vmem:[%s20665_s9 + $0x78] sm:$0xff]  }
 0x6b9   : > { %v11900_v42 = vor.u32 %v11898_v35, %v11897_v38  ;;  %v11905_v7 = vsel %vm20123_vm7, %v11893_v17, %v11904_v10  ;;  %v16415_v10 = vld [vmem:[%s20665_s9 + $0x40] sm:$0xff]  }
 0x6ba   : > { %11906 = vst [vmem:[#allocation5 + $0x2] sm:$0x3] %v11905_v7  ;;  %v16417_v7 = vld [vmem:[%s20665_s9 + $0x68] sm:$0xff]  }
 0x6bb   : > { %v11908_v39 = vsel %vm20123_vm7, %v11900_v42, %v11907_v26  ;;  %v12489_v26 = vld [vmem:[#allocation5 + $0x6] sm:$0x1] }
 0x6bc   : > { %11909 = vst [vmem:[#allocation5 + $0x4] sm:$0x3] %v11908_v39  ;;  %v16418_v42 = vld [vmem:[%s20665_s9 + $0x70] sm:$0xff]  }
 0x6c1   : > { %v11911_v23 = vld [vmem:[#allocation5 + $0x2] sm:$0x1]  ;;  %v15022_v54 = vld.sshfl [vmem:[#allocation5 + $0x2] sm:$0x10 pattern:$0x75316420] }
 0x6c2   : > { %v15008_v40 = vld.sshfl [vmem:[#allocation5 + $0x2] sm:$0x11 pattern:$0x75316420]  ;;  %v12031_v22 = vcombine.low %v11910_v44, %v11911_v23  ;;  %v15027_v59 = vcombine.high %v15021_v21, %v15022_v54 }
 0x6c3   : > { %v11935_v24 = vcombine.high %v15008_v40, %v15008_v40  ;;  %v12198_v1 = vld [vmem:[#allocation5 + $0x4] sm:$0x1]  ;;  %v11946_v8 = vshrl.u32 %v15008_v40, 16  ;;  %v12197_v3 = vld [vmem:[#allocation5 + $0x2] sm:$0x1]  ;;  %v16420_v40 = vld [vmem:[%s20665_s9 + $0x88] sm:$0xff]  }
 0x6c4   : > { %v12038_v57 = vrot.slane %v12031_v22, %v20135_v14  ;;  %v15039_v58 = vld.sshfl [vmem:[#allocation5 + $0x4] sm:$0x11 pattern:$0x75316420]  ;;  %v12206_v53 = vcombine.low %v12197_v3, %v12198_v1  ;;  %v12133_v34 = vrot.slane %v15027_v59, %v20135_v14  ;;  %v16421_v1 = vld [vmem:[%s20665_s9 + $0x80] sm:$0xff]  }
 0x6c5   : > { %v11951_v4 = vshll.u32 %v11935_v24, 16  ;;  %v12296_v36 = vcombine.high %v15039_v58, %v15039_v58  ;;  %v20302_v19 = vld.sshfl [vmem:[#allocation5 + $0x4] sm:$0x10 pattern:$0x75316420]  ;;  %v12307_v52 = vshrl.u32 %v15039_v58, 16 }
 0x6c6   : > { %v12045_v47 = vrot.slane %v12038_v57, %v20135_v14  ;;  %v12213_v11 = vrot.slane %v12206_v53, %v20135_v14  ;;  %v15055_v12 = vcombine.high %v15022_v54, %v20302_v19  ;;  %v12140_v18 = vrot.slane %v12133_v34, %v20135_v14  ;;  %v12488_v35 = vld [vmem:[#allocation5 + $0x4] sm:$0x1]  ;;  %v15078_v23 = vld.sshfl [vmem:[#allocation5 + $0x6] sm:$0x10 pattern:$0x75316420] }
 0x6c7   : > { %v11953_v60 = vsel %vm20137_vm11, %v11946_v8, %v11951_v4  ;;  %v12312_v43 = vshll.u32 %v12296_v36, 16  ;;  %v12497_v62 = vcombine.low %v12488_v35, %v12489_v26  ;;  %v15083_v24 = vcombine.high %v20302_v19, %v15078_v23  ;;  %v16423_v8 = vld [vmem:[%s20667_s11 + $0x18] sm:$0xff]   ;;  %v16424_v4 = vld [vmem:[%s20667_s11] sm:$0xff]   ;;  %v16425_v3 = vld [vmem:[%s20667_s11 + $0x10] sm:$0xff]  }
 0x6c8   : > { %v11959_v5 = vcombine.low %v11944_v46, %v11953_v60  ;;  %16104 = vmatmul.mubr.msk.bf16.vlgmr.msra.gmra.mxu1 %vm11051_vm6, %v12045_v47  ;;  %v12220_v45 = vrot.slane %v12213_v11, %v20135_v14  ;;  %v12423_v0 = vrot.slane %v15055_v12, %v20135_v14  ;;  %v16422_v46 = vld [vmem:[%s20667_s11 + $0x8] sm:$0xff]  }
 0x6c9   : > { %16116 = vmatpush3.bf16.msra.mxu1 %v16408_v28  ;;  %16119 = vmatprep.mubr.msk.bf16.mxu1 %vm16575_vm4, %v16574_v6  ;;  %v12314_v9 = vsel %vm20137_vm11, %v12307_v52, %v12312_v43  ;;  %v12504_v30 = vrot.slane %v12497_v62, %v20135_v14  ;;  %v12714_v57 = vrot.slane %v15083_v24, %v20135_v14 }
 0x6ca   : > { %v11966_v2 = vrot.slane %v11959_v5, %v20135_v14  ;;  %16117 = vmatprep.subr.bf16.mxu1 %v16574_v6  ;;  %v12320_v13 = vcombine.low %v11953_v60, %v12314_v9  ;;  %v12430_v37 = vrot.slane %v12423_v0, %v20135_v14  ;;  %v12611_v17 = vcombine.low %v12314_v9, %v12605_v25 }
 0x6cb   : > { %v12511_v22 = vrot.slane %v12504_v30, %v20135_v14  ;;  %v12721_v28 = vrot.slane %v12714_v57, %v20135_v14 }
 0x6cc   : > { %v11973_v29 = vrot.slane %v11966_v2, %v20135_v14  ;;  %v12327_v38 = vrot.slane %v12320_v13, %v20135_v14  ;;  %v12618_v16 = vrot.slane %v12611_v17, %v20135_v14 }
 0x6cd   : > { %16118 = vmatpush3.bf16.msra.mxu1 %v16410_v33 }
 0x6ce   : > { %16096 = vmatmul.mubr.msk.bf16.vlgmr.msra.gmra.mxu0 %vm11051_vm6, %v11973_v29  ;;  %16131 = vmatprep.subr.bf16.mxu1 %v16574_v6  ;;  %v12334_v39 = vrot.slane %v12327_v38, %v20135_v14  ;;  %v12625_v44 = vrot.slane %v12618_v16, %v20135_v14 }
 0x6cf   : > { %16108 = vmatpush3.bf16.msra.mxu0 %v16409_v51  ;;  %16111 = vmatprep.mubr.msk.bf16.mxu0 %vm16575_vm4, %v16574_v6 }
 0x6d0   : > { %16109 = vmatprep.subr.bf16.mxu0 %v16574_v6  ;;  %16120 = vmatmul.mubr.msk.bf16.vlgmr.msra.gmra.mxu1 %vm11051_vm6, %v12220_v45 }
 0x6d1   : > { %16132 = vmatpush3.bf16.msra.mxu1 %v16412_v61  ;;  %16135 = vmatprep.mubr.msk.bf16.mxu1 %vm16575_vm4, %v16574_v6 }
 0x6d2   : > { %16133 = vmatprep.subr.bf16.mxu1 %v16574_v6 }
 0x6d3   : > { %16110 = vmatpush3.bf16.msra.mxu0 %v16411_v32 }
 0x6d4   : > { %16123 = vmatprep.subr.bf16.mxu0 %v16574_v6 }
 0x6d5   : > { %16134 = vmatpush3.bf16.msra.mxu1 %v16414_v41 }
 0x6d6   : > { %16112 = vmatmul.mubr.msk.bf16.vlgmr.msra.gmra.mxu0 %vm11051_vm6, %v12140_v18  ;;  %16147 = vmatprep.subr.bf16.mxu1 %v16574_v6 }
 0x6d7   : > { %16124 = vmatpush3.bf16.msra.mxu0 %v16413_v48  ;;  %16127 = vmatprep.mubr.msk.bf16.mxu0 %vm16575_vm4, %v16574_v6 }
 0x6d8   : > { %16125 = vmatprep.subr.bf16.mxu0 %v16574_v6  ;;  %16136 = vmatmul.mubr.msk.bf16.vlgmr.msra.gmra.mxu1 %vm11051_vm6, %v12430_v37 }
 0x6d9   : > { %16148 = vmatpush3.bf16.msra.mxu1 %v16416_v49  ;;  %16151 = vmatprep.mubr.msk.bf16.mxu1 %vm16575_vm4, %v16574_v6 }
 0x6da   : > { %16149 = vmatprep.subr.bf16.mxu1 %v16574_v6 }
 0x6db   : > { %16126 = vmatpush3.bf16.msra.mxu0 %v16415_v10 }
 0x6dc   : > { %16139 = vmatprep.subr.bf16.mxu0 %v16574_v6 }
 0x6dd   : > { %16150 = vmatpush3.bf16.msra.mxu1 %v16418_v42  ;;  %v15087_v42 = vld [vmem:[%s20666_s10] ss:$0 sm:$0xff] }
 0x6de   : > { %16128 = vmatmul.mubr.msk.bf16.vlgmr.msra.gmra.mxu0 %vm11051_vm6, %v12334_v39  ;;  %16163 = vmatprep.subr.bf16.mxu1 %v16574_v6 }
 0x6df   : > { %16140 = vmatpush3.bf16.msra.mxu0 %v16417_v7  ;;  %16143 = vmatprep.mubr.msk.bf16.mxu0 %vm16575_vm4, %v16574_v6 }
 0x6e0   : > { %16141 = vmatprep.subr.bf16.mxu0 %v16574_v6  ;;  %16152 = vmatmul.mubr.msk.bf16.vlgmr.msra.gmra.mxu1 %vm11051_vm6, %v12625_v44 }
 0x6e1   : > { %16167 = vmatprep.mubr.msk.bf16.mxu1 %vm16575_vm4, %v16574_v6  ;;  %16164 = vmatpush3.bf16.msra.mxu1 %v16423_v8 }
 0x6e2   : > { %16165 = vmatprep.subr.bf16.mxu1 %v16574_v6 }
 0x6e3   : > { %16142 = vmatpush3.bf16.msra.mxu0 %v16419_v15 }
 0x6e4   : > { %16155 = vmatprep.subr.bf16.mxu0 %v16574_v6 }
 0x6e5   : > { %16166 = vmatpush3.bf16.msra.mxu1 %v16425_v3  ;;  %v12838_v3 = vld [vmem:[#allocation6 + $0x2] sm:$0x3] }
 0x6e6   : > { %16144 = vmatmul.mubr.msk.bf16.vlgmr.msra.gmra.mxu0 %vm11051_vm6, %v12511_v22  ;;  %16179 = vmatprep.subr.bf16.mxu1 %v16574_v6 }
 0x6e7   : > { %16156 = vmatpush3.bf16.msra.mxu0 %v16420_v40  ;;  %16159 = vmatprep.mubr.msk.bf16.mxu0 %vm16575_vm4, %v16574_v6 }
 0x6e8   : > { %16157 = vmatprep.subr.bf16.mxu0 %v16574_v6 }
 0x6eb   : > { %16158 = vmatpush3.bf16.msra.mxu0 %v16421_v1 }
 0x6ec   : > { %16171 = vmatprep.subr.bf16.mxu0 %v16574_v6 }
 0x6ee   : > { %16160 = vmatmul.mubr.msk.bf16.vlgmr.msra.gmra.mxu0 %vm11051_vm6, %v12721_v28 }
 0x6ef   : > { %16175 = vmatprep.mubr.msk.bf16.mxu0 %vm16575_vm4, %v16574_v6  ;;  %16172 = vmatpush3.bf16.msra.mxu0 %v16422_v46 }
 0x6f0   : > { %16173 = vmatprep.subr.bf16.mxu0 %v16574_v6 }
 0x6f3   : > { %16174 = vmatpush3.bf16.msra.mxu0 %v16424_v4 }
 0x6f4   : > { %16187 = vmatprep.subr.bf16.mxu0 %v16574_v6 }
 0x788   : > { %v12095_v58 = vpop.f32.mrf.mxu1 }
 0x78a   : > { %v16105_v47 = vpop.f32.mrf.mxu1 }
 0x78c   : > { %v12098_v60 = vpop.f32.mrf.mxu1 }
 0x78e   : > { %v12023_v53 = vpop.f32.mrf.mxu0  ;;  %v16106_v21 = vpop.f32.mrf.mxu1 }
 0x78f   : > { %v12096_v27 = vadd.f32 %v12095_v58, %v12023_v53  ;;  %v12841_v53 = vld [vmem:[#allocation6 + $0x4] sm:$0x3] }
 0x790   : > { %v16097_v5 = vpop.f32.mrf.mxu0  ;;  %v12270_v56 = vpop.f32.mrf.mxu1 }
 0x792   : > { %v12026_v54 = vpop.f32.mrf.mxu0  ;;  %v16121_v36 = vpop.f32.mrf.mxu1 }
 0x794   : > { %v16098_v2 = vpop.f32.mrf.mxu0  ;;  %v12273_v33 = vpop.f32.mrf.mxu1 }
 0x795   : > { %v12844_v2 = vld [vmem:[#allocation6] sm:$0x1] }
 0x796   : > { %v12190_v51 = vpop.f32.mrf.mxu0  ;;  %v16122_v11 = vpop.f32.mrf.mxu1 }
 0x797   : > { %v12196_v45 = vadd.f32 %v12190_v51, %v12096_v27 }
 0x798   : > { %v16113_v29 = vpop.f32.mrf.mxu0  ;;  %v12480_v59 = vpop.f32.mrf.mxu1 }
 0x799   : > { %v12276_v63 = vadd.f32 %v12270_v56, %v12196_v45  ;;  %v15088_v56 = vld.sshfl [vmem:[#allocation6] sm:$0x11 pattern:$0x75316420] }
 0x79a   : > { %v12193_v19 = vpop.f32.mrf.mxu0  ;;  %v16137_v43 = vpop.f32.mrf.mxu1  ;;  %v12861_v36 = vcombine.high %v15088_v56, %v15088_v56  ;;  %v12871_v33 = vshrl.u32 %v15088_v56, 16 }
 0x79c   : > { %v16114_v61 = vpop.f32.mrf.mxu0  ;;  %v12483_v32 = vpop.f32.mrf.mxu1  ;;  %v12876_v51 = vshll.u32 %v12861_v36, 16  ;;  %v16437_v36 = vld [vmem:[%s20667_s11 + $0x60] sm:$0xff]  }
 0x79d   : > { %v16426_v61 = vld [vmem:[%s20667_s11 + $0x38] sm:$0xff]  }
 0x79e   : > { %v12384_v12 = vpop.f32.mrf.mxu0  ;;  %v16138_v52 = vpop.f32.mrf.mxu1  ;;  %v12878_v31 = vsel %vm20137_vm11, %v12871_v33, %v12876_v51  ;;  %v15159_v33 = vld.sshfl [vmem:[#allocation6 + $0x6] sm:$0x10 pattern:$0x75316420]  ;;  %v16438_v51 = vld [vmem:[%s20667_s11 + $0x88] sm:$0xff]  }
 0x79f   : > { %v12390_v41 = vadd.f32 %v12384_v12, %v12276_v63 }
 0x7a0   : > { %v16129_v34 = vpop.f32.mrf.mxu0  ;;  %v12675_v55 = vpop.f32.mrf.mxu1 }
 0x7a1   : > { %v12486_v25 = vadd.f32 %v12480_v59, %v12390_v41 }
 0x7a2   : > { %v12387_v9 = vpop.f32.mrf.mxu0  ;;  %v16153_v48 = vpop.f32.mrf.mxu1 }
 0x7a3   : > { %v15102_v9 = vld.sshfl [vmem:[#allocation6] sm:$0x10 pattern:$0x75316420] }
 0x7a4   : > { %v16130_v0 = vpop.f32.mrf.mxu0  ;;  %v12678_v18 = vpop.f32.mrf.mxu1  ;;  %v15148_v48 = vld.sshfl [vmem:[#allocation6 + $0x6] sm:$0x11 pattern:$0x75316420] }
 0x7a6   : > { %v12561_v13 = vpop.f32.mrf.mxu0  ;;  %v16154_v49 = vpop.f32.mrf.mxu1 }
 0x7a7   : > { %v12567_v10 = vadd.f32 %v12561_v13, %v12486_v25  ;;  %v16428_v25 = vld [vmem:[%s20667_s11 + $0x30] sm:$0xff]   ;;  %v16427_v49 = vld [vmem:[%s20667_s11 + $0x28] sm:$0xff]  }
 0x7a8   : > { %v16145_v37 = vpop.f32.mrf.mxu0 }
 0x7a9   : > { %v12681_v35 = vadd.f32 %v12675_v55, %v12567_v10 }
 0x7aa   : > { %v12564_v17 = vpop.f32.mrf.mxu0 }
 0x7ac   : > { %v16146_v38 = vpop.f32.mrf.mxu0 }
 0x7ae   : > { %v12771_v26 = vpop.f32.mrf.mxu0 }
 0x7af   : > { %v12777_v7 = vadd.f32 %v12771_v26, %v12681_v35  ;;  %v13521_v35 = vcombine.high %v15148_v48, %v15148_v48 }
 0x7b0   : > { %v16161_v16 = vpop.f32.mrf.mxu0 }
 0x7b1   : > { %v12785_v39 = vadd.f32 %v15087_v42, %v12777_v7  ;;  %v16430_v42 = vld [vmem:[%s20667_s11 + $0x58] sm:$0xff]   ;;  %v16429_v16 = vld [vmem:[%s20667_s11 + $0x20] sm:$0xff]  }
 0x7b2   : > { %v12774_v62 = vpop.f32.mrf.mxu0 }
 0x7b3   : > { %v12786_v44 = vmul.f32 0.2, %v12785_v39 }
 0x7b4   : > { %v16162_v15 = vpop.f32.mrf.mxu0 }
 0x7b5   : > { %v12787_v30 = vmax.f32 %v12785_v39, %v12786_v44  ;;  %v13532_v15 = vshrl.u32 %v15148_v48, 16 }
 0x7b7   : > { %v12795_v23 = vrot.slane %v12787_v30, %v18771_v20  ;;  %v13537_v30 = vshll.u32 %v13521_v35, 16 }
 0x7b9   : > { %v12796_v40 = vcombine.high %v12795_v23, %v12795_v23  ;;  %v12803_v22 = vpack.c.bf16 %v12795_v23, %v12795_v23 }
 0x7bb   : > { %v12804_v24 = vpack.c.bf16 %v12796_v40, %v12796_v40  ;;  %v12813_v1 = vrot.slane %v12803_v22, %v18771_v20  ;;  %v16432_v40 = vld [vmem:[%s20667_s11 + $0x50] sm:$0xff]   ;;  %v16431_v22 = vld [vmem:[%s20667_s11 + $0x48] sm:$0xff]  }
 0x7bd   : > { %v12820_v57 = vrot.slane %v12804_v24, %v18771_v20  ;;  %v12822_v28 = vshrl.u32 %v12813_v1, 16  ;;  %v12825_v8 = vshll.u32 %v12813_v1, 16 }
 0x7bf   : > { %v12824_v46 = vrot.slane %v12822_v28, 7  ;;  %v12829_v4 = vshrl.u32 %v12820_v57, 16  ;;  %v12832_v60 = vshll.u32 %v12820_v57, 16  ;;  %v13539_v28 = vsel %vm20137_vm11, %v13532_v15, %v13537_v30 }
 0x7c1   : > { %v12827_v58 = vor.u32 %v12825_v8, %v12824_v46  ;;  %v12831_v47 = vrot.slane %v12829_v4, 7  ;;  %v16434_v46 = vld [vmem:[%s20667_s11 + $0x78] sm:$0xff]   ;;  %v16433_v4 = vld [vmem:[%s20667_s11 + $0x40] sm:$0xff]  }
 0x7c3   : > { %v12834_v21 = vor.u32 %v12832_v60, %v12831_v47  ;;  %v12839_v5 = vsel %vm20123_vm7, %v12827_v58, %v12838_v3  ;;  %v13423_v47 = vld [vmem:[#allocation6 + $0x6] sm:$0x1]  ;;  %v16436_v60 = vld [vmem:[%s20667_s11 + $0x70] sm:$0xff]  }
 0x7c4   : > { %12840 = vst [vmem:[#allocation6 + $0x2] sm:$0x3] %v12839_v5 }
 0x7c5   : > { %v12842_v54 = vsel %vm20123_vm7, %v12834_v21, %v12841_v53  ;;  %v16435_v53 = vld [vmem:[%s20667_s11 + $0x68] sm:$0xff]  }
 0x7c6   : > { %12843 = vst [vmem:[#allocation6 + $0x4] sm:$0x3] %v12842_v54 }
 0x7cb   : > { %v12845_v11 = vld [vmem:[#allocation6 + $0x2] sm:$0x1]  ;;  %v15103_v0 = vld.sshfl [vmem:[#allocation6 + $0x2] sm:$0x10 pattern:$0x75316420] }
 0x7cc   : > { %v15089_v29 = vld.sshfl [vmem:[#allocation6 + $0x2] sm:$0x11 pattern:$0x75316420]  ;;  %v12965_v59 = vcombine.low %v12844_v2, %v12845_v11  ;;  %v15108_v17 = vcombine.high %v15102_v9, %v15103_v0 }
 0x7cd   : > { %v12869_v19 = vcombine.high %v15089_v29, %v15089_v29  ;;  %v13132_v27 = vld [vmem:[#allocation6 + $0x4] sm:$0x1]  ;;  %v12880_v45 = vshrl.u32 %v15089_v29, 16  ;;  %v13131_v12 = vld [vmem:[#allocation6 + $0x2] sm:$0x1] }
 0x7ce   : > { %v12972_v43 = vrot.slane %v12965_v59, %v20135_v14  ;;  %v15120_v52 = vld.sshfl [vmem:[#allocation6 + $0x4] sm:$0x11 pattern:$0x75316420]  ;;  %v13140_v55 = vcombine.low %v13131_v12, %v13132_v27  ;;  %v13067_v44 = vrot.slane %v15108_v17, %v20135_v14  ;;  %v16439_v59 = vld [vmem:[%s20667_s11 + $0x80] sm:$0xff]  }
 0x7cf   : > { %v12885_v32 = vshll.u32 %v12869_v19, 16  ;;  %v13230_v18 = vcombine.high %v15120_v52, %v15120_v52  ;;  %v20441_v38 = vld.sshfl [vmem:[#allocation6 + $0x4] sm:$0x10 pattern:$0x75316420]  ;;  %v13241_v62 = vshrl.u32 %v15120_v52, 16 }
 0x7d0   : > { %v12979_v34 = vrot.slane %v12972_v43, %v20135_v14  ;;  %v13147_v37 = vrot.slane %v13140_v55, %v20135_v14  ;;  %v15136_v39 = vcombine.high %v15103_v0, %v20441_v38  ;;  %v13074_v1 = vrot.slane %v13067_v44, %v20135_v14  ;;  %v13422_v58 = vld [vmem:[#allocation6 + $0x4] sm:$0x1] }
 0x7d1   : > { %v12887_v63 = vsel %vm20137_vm11, %v12880_v45, %v12885_v32  ;;  %v13246_v26 = vshll.u32 %v13230_v18, 16  ;;  %v13431_v56 = vcombine.low %v13422_v58, %v13423_v47  ;;  %v15164_v29 = vcombine.high %v20441_v38, %v15159_v33 }
 0x7d2   : > { %v12893_v41 = vcombine.low %v12878_v31, %v12887_v63  ;;  %16176 = vmatmul.mubr.msk.bf16.vlgmr.msra.gmra.mxu0 %vm11051_vm6, %v12979_v34  ;;  %v13154_v7 = vrot.slane %v13147_v37, %v20135_v14  ;;  %v13357_v24 = vrot.slane %v15136_v39, %v20135_v14 }
 0x7d3   : > { %16188 = vmatpush3.bf16.msra.mxu0 %v16426_v61  ;;  %16191 = vmatprep.mubr.msk.bf16.mxu0 %vm16575_vm4, %v16574_v6  ;;  %v13248_v23 = vsel %vm20137_vm11, %v13241_v62, %v13246_v26  ;;  %v13438_v2 = vrot.slane %v13431_v56, %v20135_v14  ;;  %v13648_v19 = vrot.slane %v15164_v29, %v20135_v14 }
 0x7d4   : > { %v12900_v13 = vrot.slane %v12893_v41, %v20135_v14  ;;  %16189 = vmatprep.subr.bf16.mxu0 %v16574_v6  ;;  %v13254_v57 = vcombine.low %v12887_v63, %v13248_v23  ;;  %v13364_v8 = vrot.slane %v13357_v24, %v20135_v14  ;;  %v13545_v3 = vcombine.low %v13248_v23, %v13539_v28 }
 0x7d5   : > { %v13445_v11 = vrot.slane %v13438_v2, %v20135_v14  ;;  %v13655_v27 = vrot.slane %v13648_v19, %v20135_v14 }
 0x7d6   : > { %v12907_v10 = vrot.slane %v12900_v13, %v20135_v14  ;;  %v13261_v50 = vrot.slane %v13254_v57, %v20135_v14  ;;  %v13552_v21 = vrot.slane %v13545_v3, %v20135_v14 }
 0x7d7   : > { %16190 = vmatpush3.bf16.msra.mxu0 %v16428_v25 }
 0x7d8   : > { %16168 = vmatmul.mubr.msk.bf16.vlgmr.msra.gmra.mxu1 %vm11051_vm6, %v12907_v10  ;;  %16203 = vmatprep.subr.bf16.mxu0 %v16574_v6  ;;  %v13268_v5 = vrot.slane %v13261_v50, %v20135_v14  ;;  %v13559_v54 = vrot.slane %v13552_v21, %v20135_v14 }
 0x7d9   : > { %16180 = vmatpush3.bf16.msra.mxu1 %v16427_v49  ;;  %16183 = vmatprep.mubr.msk.bf16.mxu1 %vm16575_vm4, %v16574_v6 }
 0x7da   : > { %16181 = vmatprep.subr.bf16.mxu1 %v16574_v6  ;;  %16192 = vmatmul.mubr.msk.bf16.vlgmr.msra.gmra.mxu0 %vm11051_vm6, %v13154_v7 }
 0x7db   : > { %16204 = vmatpush3.bf16.msra.mxu0 %v16430_v42  ;;  %16207 = vmatprep.mubr.msk.bf16.mxu0 %vm16575_vm4, %v16574_v6 }
 0x7dc   : > { %16205 = vmatprep.subr.bf16.mxu0 %v16574_v6 }
 0x7dd   : > { %16182 = vmatpush3.bf16.msra.mxu1 %v16429_v16 }
 0x7de   : > { %16195 = vmatprep.subr.bf16.mxu1 %v16574_v6 }
 0x7df   : > { %16206 = vmatpush3.bf16.msra.mxu0 %v16432_v40 }
 0x7e0   : > { %16184 = vmatmul.mubr.msk.bf16.vlgmr.msra.gmra.mxu1 %vm11051_vm6, %v13074_v1  ;;  %16219 = vmatprep.subr.bf16.mxu0 %v16574_v6 }
 0x7e1   : > { %16196 = vmatpush3.bf16.msra.mxu1 %v16431_v22  ;;  %16199 = vmatprep.mubr.msk.bf16.mxu1 %vm16575_vm4, %v16574_v6 }
 0x7e2   : > { %16197 = vmatprep.subr.bf16.mxu1 %v16574_v6  ;;  %16208 = vmatmul.mubr.msk.bf16.vlgmr.msra.gmra.mxu0 %vm11051_vm6, %v13364_v8 }
 0x7e3   : > { %16220 = vmatpush3.bf16.msra.mxu0 %v16434_v46  ;;  %16223 = vmatprep.mubr.msk.bf16.mxu0 %vm16575_vm4, %v16574_v6 }
 0x7e4   : > { %16221 = vmatprep.subr.bf16.mxu0 %v16574_v6 }
 0x7e5   : > { %16198 = vmatpush3.bf16.msra.mxu1 %v16433_v4 }
 0x7e6   : > { %16211 = vmatprep.subr.bf16.mxu1 %v16574_v6 }
 0x7e7   : > { %16222 = vmatpush3.bf16.msra.mxu0 %v16436_v60 }
 0x7e8   : > { %16200 = vmatmul.mubr.msk.bf16.vlgmr.msra.gmra.mxu1 %vm11051_vm6, %v13268_v5 }
 0x7e9   : > { %16212 = vmatpush3.bf16.msra.mxu1 %v16435_v53  ;;  %16215 = vmatprep.mubr.msk.bf16.mxu1 %vm16575_vm4, %v16574_v6 }
 0x7ea   : > { %16213 = vmatprep.subr.bf16.mxu1 %v16574_v6  ;;  %16224 = vmatmul.mubr.msk.bf16.vlgmr.msra.gmra.mxu0 %vm11051_vm6, %v13559_v54 }
 0x7ed   : > { %16214 = vmatpush3.bf16.msra.mxu1 %v16437_v36 }
 0x7ee   : > { %16227 = vmatprep.subr.bf16.mxu1 %v16574_v6 }
 0x7f0   : > { %16216 = vmatmul.mubr.msk.bf16.vlgmr.msra.gmra.mxu1 %vm11051_vm6, %v13445_v11 }
 0x7f1   : > { %16228 = vmatpush3.bf16.msra.mxu1 %v16438_v51  ;;  %16231 = vmatprep.mubr.msk.bf16.mxu1 %vm16575_vm4, %v16574_v6 }
 0x7f2   : > { %16229 = vmatprep.subr.bf16.mxu1 %v16574_v6 }
 0x7f5   : > { %16230 = vmatpush3.bf16.msra.mxu1 %v16439_v59 }
 0x7f8   : > { %16232 = vmatmul.mubr.msk.bf16.vlgmr.msra.gmra.mxu1 %vm11051_vm6, %v13655_v27 }
 0x7f9   : > { %16467 = shalt.err (!%p16464_p3)
}
 0x7fa   : > { %s16468_s26 = scalar_lea.hbm %s20533_s19, 64  ;;  %s16472_s4 = scalar_lea.hbm %s20671_s15, 128 }
 0x7fb   : > { %p16469_p4 = scmp.ne.s32.totalorder %s20533_s19, %s16468_s26  ;;  %p16473_p9 = scmp.lt.s32.totalorder %s20533_s19, %s20671_s15 }
 0x7fc   : > { %p16474_p10 = scmp.lt.s32.totalorder %s16472_s4, %s16468_s26 }
 0x7fd   : > { %p16470_p7 = pnand %p16469_p4, %p16709_p5 }
 0x7fe   : > { %p16475_p11 = por %p16474_p10, %p16473_p9 }
 0x7ff   : > { %p16471_p8 = pneg %p16470_p7 }
 0x801   : > { %p16476_p12 = pnand %p16475_p11, %p16471_p8 }
 0x803   : > { %16479 = shalt.err (!%p16476_p12)
}
 0x804   : > { %s20691_s3 = smov 32   ;;  %s16579_s5 = smov 2  }
 0x805   : > { %16255 = dma.vmem_to_hbm [thread:$0]  (%p16709_p5), %s20536_s30, 64, %s20533_s19, %s20538_s23, %s20691_s3, %s20691_s3, %s16579_s5  }
 0x806   : > { %s15269_s6 = sshll.u32 %s16690_s25, 8  ;;  %s13767_s2 = sshll.u32 %s19861_s28, 4  ;;  %s20571_s2 = int_to_ptr.vmem [resolvable:$true] %s13767_s2 }
 0x807   : > { %s20568_s18 = scalar_lea.hbm %s20670_s14, %s15269_s6  ;;  %s13741_s4 = scalar_lea.sflag [#allocation8], %s19837_s20 }
 0x808   : > { %s16480_s29 = scalar_lea.vmem %s20571_s2, 256  ;;  %s16580_s7 = smov [#allocation7]  }
 0x809   : > { %p16481_p13 = scmp.ne.s32.totalorder %s20571_s2, %s16480_s29  ;;  %s16484_s19 = sshll.u32 %s16580_s7, 4  ;;  %s16485_s19 = int_to_ptr.vmem [resolvable:$false] %s16484_s19 }
 0x80a   : > { %s16486_s30 = scalar_lea.vmem %s16485_s19, 512  ;;  %p16487_p2 = scmp.lt.s32.totalorder %s20571_s2, %s16485_s19 }
 0x80b   : > { %p16482_p0 = pnand %p16481_p13, %p16709_p5  ;;  %p16488_p3 = scmp.lt.s32.totalorder %s16486_s30, %s16480_s29 }
 0x80d   : > { %p16483_p1 = pneg %p16482_p0  ;;  %p16489_p4 = por %p16488_p3, %p16487_p2 }
 0x80f   : > { %p16490_p7 = pnand %p16489_p4, %p16483_p1 }
 0x811   : > { %16493 = shalt.err (!%p16490_p7)
}
 0x812   : > { %s16494_s28 = scalar_lea.hbm %s20568_s18, 256  ;;  %s16498_s7 = scalar_lea.hbm %s20670_s14, 512 }
 0x813   : > { %p16495_p8 = scmp.ne.s32.totalorder %s20568_s18, %s16494_s28  ;;  %p16499_p11 = scmp.lt.s32.totalorder %s20568_s18, %s20670_s14 }
 0x814   : > { %p16500_p12 = scmp.lt.s32.totalorder %s16498_s7, %s16494_s28 }
 0x815   : > { %p16496_p9 = pnand %p16495_p8, %p16709_p5 }
 0x816   : > { %p16501_p13 = por %p16500_p12, %p16499_p11 }
 0x817   : > { %p16497_p10 = pneg %p16496_p9 }
 0x819   : > { %p16502_p0 = pnand %p16501_p13, %p16497_p10 }
 0x81b   : > { %16505 = shalt.err (!%p16502_p0)
}
 0x81c   : > { %s16581_s29 = smov 64   ;;  %s16582_s19 = smov 4   ;;  %v15168_v28 = vld [vmem:[%s20668_s12] ss:$0 sm:$0xff] }
 0x81d   : > { %16254 = dma.vmem_to_hbm [thread:$0]  (%p16709_p5), %s20571_s2, 256, %s20568_s18, %s13741_s4, %s16581_s29, %s16581_s29, %s16582_s19  }
 0x81e   : > { %s20880_s2 = sshll.u32 %s19837_s20, 2  ;;  %s20881_s28 = sshll.u32 %s16690_s25, 6 }
 0x81f   : > { %s539_s4 = scalar_lea.vmem [#allocation11], %s20880_s2  ;;  %s20608_s7 = scalar_lea.hbm %s20672_s16, %s20881_s28 }
 0x820   : > { %s13799_s30 = sshll.u32 %s539_s4, 4  ;;  %s16583_s26 = smov [#allocation11]   ;;  %s20610_s30 = int_to_ptr.vmem [resolvable:$true] %s13799_s30 }
 0x821   : > { %s16506_s20 = scalar_lea.vmem %s20610_s30, 64  ;;  %s16510_s29 = sshll.u32 %s16583_s26, 4  ;;  %s16511_s29 = int_to_ptr.vmem [resolvable:$false] %s16510_s29 }
 0x822   : > { %p16507_p1 = scmp.ne.s32.totalorder %s20610_s30, %s16506_s20  ;;  %s16512_s25 = scalar_lea.vmem %s16511_s29, 128 }
 0x823   : > { %p16513_p4 = scmp.lt.s32.totalorder %s20610_s30, %s16511_s29  ;;  %p16514_p7 = scmp.lt.s32.totalorder %s16512_s25, %s16506_s20 }
 0x824   : > { %p16508_p2 = pnand %p16507_p1, %p16709_p5 }
 0x825   : > { %p16515_p8 = por %p16514_p7, %p16513_p4 }
 0x826   : > { %p16509_p3 = pneg %p16508_p2 }
 0x828   : > { %p16516_p9 = pnand %p16515_p8, %p16509_p3 }
 0x892   : > { %v13029_v6 = vpop.f32.mrf.mxu0 }
 0x894   : > { %v16177_v14 = vpop.f32.mrf.mxu0 }
 0x896   : > { %v13032_v43 = vpop.f32.mrf.mxu0 }
 0x898   : > { %v12957_v61 = vpop.f32.mrf.mxu1  ;;  %v16178_v31 = vpop.f32.mrf.mxu0 }
 0x899   : > { %v13030_v18 = vadd.f32 %v13029_v6, %v12957_v61 }
 0x89a   : > { %v16169_v45 = vpop.f32.mrf.mxu1  ;;  %v13204_v32 = vpop.f32.mrf.mxu0 }
 0x89c   : > { %v12960_v12 = vpop.f32.mrf.mxu1  ;;  %v16193_v52 = vpop.f32.mrf.mxu0 }
 0x89e   : > { %v16170_v34 = vpop.f32.mrf.mxu1  ;;  %v13207_v63 = vpop.f32.mrf.mxu0 }
 0x8a0   : > { %v13124_v55 = vpop.f32.mrf.mxu1  ;;  %v16194_v9 = vpop.f32.mrf.mxu0 }
 0x8a1   : > { %v13130_v49 = vadd.f32 %v13124_v55, %v13030_v18 }
 0x8a2   : > { %v16185_v41 = vpop.f32.mrf.mxu1  ;;  %v13414_v48 = vpop.f32.mrf.mxu0 }
 0x8a3   : > { %v13210_v35 = vadd.f32 %v13204_v32, %v13130_v49 }
 0x8a4   : > { %v13127_v0 = vpop.f32.mrf.mxu1  ;;  %v16209_v13 = vpop.f32.mrf.mxu0 }
 0x8a6   : > { %v16186_v25 = vpop.f32.mrf.mxu1  ;;  %v13417_v37 = vpop.f32.mrf.mxu0 }
 0x8a8   : > { %v13318_v10 = vpop.f32.mrf.mxu1  ;;  %v16210_v17 = vpop.f32.mrf.mxu0 }
 0x8a9   : > { %v13324_v7 = vadd.f32 %v13318_v10, %v13210_v35 }
 0x8aa   : > { %v16201_v38 = vpop.f32.mrf.mxu1  ;;  %v13609_v26 = vpop.f32.mrf.mxu0 }
 0x8ab   : > { %v13420_v15 = vadd.f32 %v13414_v48, %v13324_v7 }
 0x8ac   : > { %v13321_v42 = vpop.f32.mrf.mxu1  ;;  %v16225_v16 = vpop.f32.mrf.mxu0 }
 0x8ae   : > { %v16202_v39 = vpop.f32.mrf.mxu1  ;;  %v13612_v62 = vpop.f32.mrf.mxu0 }
 0x8b0   : > { %v13495_v44 = vpop.f32.mrf.mxu1  ;;  %v16226_v30 = vpop.f32.mrf.mxu0 }
 0x8b1   : > { %v13501_v40 = vadd.f32 %v13495_v44, %v13420_v15 }
 0x8b2   : > { %v16217_v23 = vpop.f32.mrf.mxu1 }
 0x8b3   : > { %v13615_v1 = vadd.f32 %v13609_v26, %v13501_v40 }
 0x8b4   : > { %v13498_v22 = vpop.f32.mrf.mxu1 }
 0x8b6   : > { %v16218_v24 = vpop.f32.mrf.mxu1 }
 0x8b8   : > { %v13705_v57 = vpop.f32.mrf.mxu1 }
 0x8b9   : > { %v13711_v46 = vadd.f32 %v13705_v57, %v13615_v1 }
 0x8ba   : > { %v16233_v8 = vpop.f32.mrf.mxu1 }
 0x8bb   : > { %v13719_v4 = vadd.f32 %v15168_v28, %v13711_v46 }
 0x8bc   : > { %v13708_v3 = vpop.f32.mrf.mxu1 }
 0x8bd   : > { %v13720_v50 = vmul.f32 0.2, %v13719_v4 }
 0x8be   : > { %v16234_v58 = vpop.f32.mrf.mxu1 }
 0x8bf   : > { %v13721_v47 = vmax.f32 %v13719_v4, %v13720_v50 }
 0x8c1   : > { %v13729_v60 = vrot.slane %v13721_v47, %v18771_v20 }
 0x8c3   : > { %v13730_v53 = vcombine.high %v13729_v60, %v13729_v60  ;;  %13733 = vst.msk [vmem:[%s539_s4] sm:$0x3] %vm10852_vm2, %v13729_v60 }
 0x8c5   : > { %13734 = vst.msk [vmem:[%s539_s4 + $0x2] sm:$0x3] %vm10852_vm2, %v13730_v53 }
 0x8c6   : > { %16519 = shalt.err (!%p16516_p9)
}
 0x8c7   : > { %s16520_s19 = scalar_lea.hbm %s20608_s7, 64  ;;  %s16524_s2 = scalar_lea.hbm %s20672_s16, 128 }
 0x8c8   : > { %p16521_p10 = scmp.ne.s32.totalorder %s20608_s7, %s16520_s19  ;;  %p16525_p13 = scmp.lt.s32.totalorder %s20608_s7, %s20672_s16 }
 0x8c9   : > { %p16526_p0 = scmp.lt.s32.totalorder %s16524_s2, %s16520_s19 }
 0x8ca   : > { %p16522_p11 = pnand %p16521_p10, %p16709_p5 }
 0x8cb   : > { %p16527_p1 = por %p16526_p0, %p16525_p13 }
 0x8cc   : > { %p16523_p12 = pneg %p16522_p11 }
 0x8ce   : > { %p16528_p2 = pnand %p16527_p1, %p16523_p12 }
 0x8d0   : > { %16531 = shalt.err (!%p16528_p2)
}
 0x8d1   : > { %s20882_s6 = smov 32  }
 0x8d2   : > { %16256 = dma.vmem_to_hbm [thread:$0]  (%p16709_p5), %s20610_s30, 64, %s20608_s7, %s20538_s23, %s20882_s6, %s20882_s6, %s16579_s5  }
 0x8d3 PF: > { %p16270_p3 = scmp.ge.s32.totalorder %s16570_s24, 2  ;;  %s13822_s1 = sand.u32 1, %s16558_s21  }
 0x8d4   : > { %s13823_s20 = scalar_lea.sflag [#allocation8], %s13822_s1 }
 0x8d5   : > { %p16261_p4 = pnand %p16270_p3, %p16713_p6 }
 0x8d7   : > { %p16262_p7 = pneg %p16261_p4 }
 0x8d9   : > { %16549 = dma.done.wait (%p16262_p7), %s13823_s20, 256  }
 0x8da   : > { %16551 = vsyncadd (%p16262_p7), %s13823_s20, 4294967040  ;;  %s20883_s0 = sadd.s32 4294967294, %s16570_s24  }
 0x8db   : > { %s13831_s26 = sand.u32 1, %s20883_s0  }
 0x8dc   : > { %s13832_s29 = scalar_lea.sflag [#allocation10], %s13831_s26 }
 0x8dd   : > { %16553 = dma.done.wait (%p16262_p7), %s13832_s29, 128  }
 0x8de   : > { %16555 = vsyncadd (%p16262_p7), %s13832_s29, 4294967168  ;;  %s20884_s23 = sld [smem:[#allocation14_spill]]  ;;  %p30_p5 = scmp.ge.s32.totalorder %s16694_s27, 4  }
 0x8df   : > { %s20885_s5 = sld [smem:[#allocation15_spill]]  ;;  %s20886_s21 = smov %s16562_s22 }
 0x8e0   : > { %s20889_s24 = smov %s16694_s27 }
 0x8e1   :  { %32 = sbr.rel (!%p30_p5) target bundleno = 14 (0xe), region = 211 }
 0x8e4   : > { %s20887_s22 = smov %s20884_s23 }
 0x8e5   : > { %s20888_s23 = smov %s20885_s5 }
 0x8e6   :  { %13846 = vsyncpa [#allocation8], 1 }
 0x8e7   :  { %13848 = vsyncpa [#allocation8 + $0x1], 1 }
 0x8e8   :  { %13849 = vsyncpa [#allocation10], 1 }
 0x8e9   :  { %13851 = vsyncpa [#allocation10 + $0x1], 1 }

</bundles_post_ra>
